<compile_context>
chip_gen: v5e
topology: v5e:2x2
jax: 0.10.0
libtpu: 0.0.40
codegen_flags: <defaults>
</compile_context>

<pallas_src>
import functools
import numpy as np

import jax
import jax.numpy as jnp
from jax.experimental import pallas as pl
from jax.experimental.pallas import tpu as pltpu

# ----------------------------- config (small, deterministic) -----------------------------
N_MEL = 16          # n_mel_channels
D_MODEL = 32        # encoder_hidden == decoder_hidden
D_STYLE = 32        # mel style encoder hidden / style vector dim
N_HEAD = 2
D_INNER = 64        # FFT conv filter size
FFT_KS = 3
ENC_LAYERS = 2
DEC_LAYERS = 2
VP_FILTER = 32      # variance predictor filter size
VP_KS = 3
N_BINS = 16
POSTNET_DIM = 32
POSTNET_KS = 5
VOCAB = 40
MAX_SEQ = 64

F32 = jnp.float32
_NEG = -1e9
_PARALLEL_B = pltpu.CompilerParams(dimension_semantics=("parallel",))


# ----------------------------- BlockSpec helpers -----------------------------

def _batch_spec(tail):
    """Block (1, *tail) over an array whose leading dim is the batch grid axis."""
    tail = tuple(int(t) for t in tail)

    def idx(b):
        return (b,) + (0,) * len(tail)

    return pl.BlockSpec((1,) + tail, idx)


def _const_spec(shape):
    """Full-array block re-used at every grid step (weights / biases)."""
    shape = tuple(int(s) for s in shape)

    def idx(b):
        return (0,) * len(shape)

    return pl.BlockSpec(shape, idx)


def _mish(x):
    # overflow-safe mish: x * tanh(softplus(x))
    sp = jnp.maximum(x, 0.0) + jnp.log(1.0 + jnp.exp(-jnp.abs(x)))
    return x * jnp.tanh(sp)


# ----------------------------- Pallas kernels -----------------------------

def _linear_kernel(x_ref, w_ref, b_ref, o_ref, *, activation):
    acc = jnp.dot(x_ref[...], w_ref[...], preferred_element_type=jnp.float32) + b_ref[...]
    if activation == "relu":
        acc = jnp.maximum(acc, 0.0)
    elif activation == "tanh":
        acc = jnp.tanh(acc)
    o_ref[...] = acc


def pallas_linear(x, w, b, activation="none"):
    """x: (..., K) @ w: (K, N) + b: (N,), fused activation, f32."""
    orig = x.shape
    M = int(np.prod(orig[:-1]))
    K = int(orig[-1])
    N = int(w.shape[1])
    x2 = x.reshape(M, K).astype(F32)
    out = pl.pallas_call(
        functools.partial(_linear_kernel, activation=activation),
        grid=(1,),
        in_specs=[pl.BlockSpec((M, K), lambda i: (0, 0)),
                  pl.BlockSpec((K, N), lambda i: (0, 0)),
                  pl.BlockSpec((1, N), lambda i: (0, 0))],
        out_specs=pl.BlockSpec((M, N), lambda i: (0, 0)),
        out_shape=jax.ShapeDtypeStruct((M, N), F32),
    )(x2, w.astype(F32), b.reshape(1, N).astype(F32))
    return out.reshape(orig[:-1] + (N,))


def _mha_saln_kernel(x_ref, wq_ref, bq_ref, wk_ref, bk_ref, wv_ref, bv_ref,
                     wo_ref, bo_ref, nm_ref, g_ref, bta_ref, keep_ref, o_ref,
                     *, n_head, scale, do_saln):
    """Fused self-attention sub-layer: QKV + softmax + out-proj + residual (+ SALN) + mask."""
    x = x_ref[0]                          # (T, D)
    neg = nm_ref[0]                       # (1, T) additive key mask (0 / -1e9)
    ctx_o = jnp.zeros_like(x)
    for h in range(n_head):
        q = jnp.dot(x, wq_ref[h], preferred_element_type=jnp.float32) + bq_ref[h]
        k = jnp.dot(x, wk_ref[h], preferred_element_type=jnp.float32) + bk_ref[h]
        v = jnp.dot(x, wv_ref[h], preferred_element_type=jnp.float32) + bv_ref[h]
        s = jax.lax.dot_general(q, k, (((1,), (1,)), ((), ())),
                                preferred_element_type=jnp.float32) * scale + neg
        s = s - jnp.max(s, axis=-1, keepdims=True)
        pr = jnp.exp(s)
        pr = pr * pl.reciprocal(jnp.sum(pr, axis=-1, keepdims=True), approx=True)
        ctx = jnp.dot(pr, v, preferred_element_type=jnp.float32)
        ctx_o = ctx_o + jnp.dot(ctx, wo_ref[h], preferred_element_type=jnp.float32)
    h_out = ctx_o + bo_ref[...] + x        # residual (dropout = identity)
    if do_saln:
        mu = jnp.mean(h_out, axis=-1, keepdims=True)
        var = jnp.mean(jnp.square(h_out - mu), axis=-1, keepdims=True)
        h_out = (h_out - mu) * jax.lax.rsqrt(var + 1e-5) * g_ref[0] + bta_ref[0]
    o_ref[0] = h_out * keep_ref[0]


def pallas_mha(x, mp, neg_mask, gamma, beta, keep, *, do_saln):
    B, T, D = x.shape
    H, _, dh = mp["wq"].shape
    scale = 1.0 / float(np.sqrt(dh))
    kern = functools.partial(_mha_saln_kernel, n_head=int(H), scale=scale, do_saln=do_saln)
    return pl.pallas_call(
        kern, grid=(B,),
        in_specs=[_batch_spec((T, D)),
                  _const_spec((H, D, dh)), _const_spec((H, 1, dh)),
                  _const_spec((H, D, dh)), _const_spec((H, 1, dh)),
                  _const_spec((H, D, dh)), _const_spec((H, 1, dh)),
                  _const_spec((H, dh, D)), _const_spec((1, D)),
                  _batch_spec((1, T)),
                  _batch_spec((1, D)), _batch_spec((1, D)),
                  _batch_spec((T, 1))],
        out_specs=_batch_spec((T, D)),
        out_shape=jax.ShapeDtypeStruct((B, T, D), F32),
        compiler_params=_PARALLEL_B,
    )(x, mp["wq"], mp["bq"], mp["wk"], mp["bk"], mp["wv"], mp["bv"],
      mp["wo"], mp["bo"], neg_mask, gamma, beta, keep)


def _ffn_saln_kernel(xp_ref, w1_ref, b1_ref, w2_ref, b2_ref, g_ref, bta_ref, keep_ref,
                     o_ref, *, ks, T):
    """Fused position-wise conv FFN (same-pad ks conv via shifted matmuls, relu, 1x1 conv)
    + residual + SALN + pad mask."""
    pad = (ks - 1) // 2
    xp = xp_ref[0]                        # (T + 2*pad, D)
    x = xp[pad:pad + T, :]                # residual (un-padded view)
    di = w1_ref.shape[-1]
    acc = jnp.zeros((T, di), jnp.float32)
    for k in range(ks):
        acc = acc + jnp.dot(xp[k:k + T, :], w1_ref[k], preferred_element_type=jnp.float32)
    acc = jnp.maximum(acc + b1_ref[...], 0.0)
    y = jnp.dot(acc, w2_ref[...], preferred_element_type=jnp.float32) + b2_ref[...]
    h = x + y
    mu = jnp.mean(h, axis=-1, keepdims=True)
    var = jnp.mean(jnp.square(h - mu), axis=-1, keepdims=True)
    h = (h - mu) * jax.lax.rsqrt(var + 1e-5) * g_ref[0] + bta_ref[0]
    o_ref[0] = h * keep_ref[0]


def pallas_ffn_saln(x, lp, gamma, beta, keep):
    B, T, D = x.shape
    ks = int(lp["w1"].shape[0])
    di = int(lp["w1"].shape[-1])
    pad = (ks - 1) // 2
    xp = jnp.pad(x, ((0, 0), (pad, pad), (0, 0)))
    kern = functools.partial(_ffn_saln_kernel, ks=ks, T=int(T))
    return pl.pallas_call(
        kern, grid=(B,),
        in_specs=[_batch_spec((T + 2 * pad, D)),
                  _const_spec((ks, D, di)), _const_spec((1, di)),
                  _const_spec((di, D)), _const_spec((1, D)),
                  _batch_spec((1, D)), _batch_spec((1, D)),
                  _batch_spec((T, 1))],
        out_specs=_batch_spec((T, D)),
        out_shape=jax.ShapeDtypeStruct((B, T, D), F32),
        compiler_params=_PARALLEL_B,
    )(xp, lp["w1"], lp["b1"], lp["w2"], lp["b2"], gamma, beta, keep)


def _var_pred_kernel(xp_ref, w1_ref, b1_ref, g1_ref, be1_ref,
                     w2_ref, b2_ref, g2_ref, be2_ref, wl_ref, bl_ref,
                     keep_ref, o_ref, *, ks, T):
    """Fused variance predictor(s): conv+relu+LN, conv+relu+LN, linear, pad-mask.
    Multiple predictors with identical shapes are batched via a static loop."""
    pad = (ks - 1) // 2
    text = T + 2 * pad                       # extended length after conv1 (valid conv)
    xp = xp_ref[0]                           # (T + 4*pad, D)
    keep = keep_ref[0]                       # (T, 1)
    n_pred = b1_ref.shape[0]
    f1 = w1_ref.shape[-1]
    f2 = w2_ref.shape[-1]
    row = jax.lax.broadcasted_iota(jnp.int32, (text, 1), 0)
    inner = jnp.logical_and(row >= pad, row < pad + T).astype(jnp.float32)
    outs = []
    for pi in range(n_pred):
        acc = jnp.zeros((text, f1), jnp.float32)
        for k in range(ks):
            acc = acc + jnp.dot(xp[k:k + text, :], w1_ref[pi * ks + k],
                                preferred_element_type=jnp.float32)
        acc = jnp.maximum(acc + b1_ref[pi], 0.0)
        mu = jnp.mean(acc, axis=-1, keepdims=True)
        var = jnp.mean(jnp.square(acc - mu), axis=-1, keepdims=True)
        acc = (acc - mu) * jax.lax.rsqrt(var + 1e-5) * g1_ref[pi] + be1_ref[pi]
        acc = acc * inner                    # reproduce conv2's zero 'same' padding
        acc2 = jnp.zeros((T, f2), jnp.float32)
        for k in range(ks):
            acc2 = acc2 + jnp.dot(acc[k:k + T, :], w2_ref[pi * ks + k],
                                  preferred_element_type=jnp.float32)
        acc2 = jnp.maximum(acc2 + b2_ref[pi], 0.0)
        mu = jnp.mean(acc2, axis=-1, keepdims=True)
        var = jnp.mean(jnp.square(acc2 - mu), axis=-1, keepdims=True)
        acc2 = (acc2 - mu) * jax.lax.rsqrt(var + 1e-5) * g2_ref[pi] + be2_ref[pi]
        out_p = jnp.sum(acc2 * wl_ref[pi], axis=-1, keepdims=True) + bl_ref[pi]   # (T, 1)
        outs.append(out_p * keep)
    o_ref[0] = outs[0] if len(outs) == 1 else jnp.concatenate(outs, axis=-1)


def pallas_var_predictor(x, preds, keep):
    """Returns (B, T, len(preds)) stacked predictor outputs."""
    B, T, D = x.shape
    ks = VP_KS
    pad = (ks - 1) // 2
    P = len(preds)
    F = int(preds[0]["b1"].shape[-1])
    w1 = jnp.concatenate([q["w1"] for q in preds], axis=0)       # (P*ks, D, F)
    w2 = jnp.concatenate([q["w2"] for q in preds], axis=0)       # (P*ks, F, F)
    b1 = jnp.stack([q["b1"] for q in preds], axis=0).reshape(P, 1, F)
    g1 = jnp.stack([q["g1"] for q in preds], axis=0).reshape(P, 1, F)
    be1 = jnp.stack([q["be1"] for q in preds], axis=0).reshape(P, 1, F)
    b2 = jnp.stack([q["b2"] for q in preds], axis=0).reshape(P, 1, F)
    g2 = jnp.stack([q["g2"] for q in preds], axis=0).reshape(P, 1, F)
    be2 = jnp.stack([q["be2"] for q in preds], axis=0).reshape(P, 1, F)
    wl = jnp.stack([q["wl"] for q in preds], axis=0).reshape(P, 1, F)
    bl = jnp.stack([q["bl"] for q in preds], axis=0).reshape(P, 1, 1)
    xp = jnp.pad(x, ((0, 0), (2 * pad, 2 * pad), (0, 0)))
    kern = functools.partial(_var_pred_kernel, ks=ks, T=int(T))
    return pl.pallas_call(
        kern, grid=(B,),
        in_specs=[_batch_spec((T + 4 * pad, D)),
                  _const_spec((P * ks, D, F)), _const_spec((P, 1, F)),
                  _const_spec((P, 1, F)), _const_spec((P, 1, F)),
                  _const_spec((P * ks, F, F)), _const_spec((P, 1, F)),
                  _const_spec((P, 1, F)), _const_spec((P, 1, F)),
                  _const_spec((P, 1, F)), _const_spec((P, 1, 1)),
                  _batch_spec((T, 1))],
        out_specs=_batch_spec((T, P)),
        out_shape=jax.ShapeDtypeStruct((B, T, P), F32),
        compiler_params=_PARALLEL_B,
    )(xp, w1, b1, g1, be1, w2, b2, g2, be2, wl, bl, keep)


def _spec_glu_kernel(mp_ref, w1_ref, b1_ref, w2_ref, b2_ref,
                     wa_ref, ba_ref, wg_ref, bg_ref, keep_ref, o_ref, *, ks, T):
    """Fused mel-style-encoder front: spectral MLP (mish x2) + Conv1dGLU + residual + mask."""
    pad = (ks - 1) // 2
    text = T + 2 * pad
    m = mp_ref[0]                             # (T + 2*pad, n_mel) zero-padded mels
    h = _mish(jnp.dot(m, w1_ref[...], preferred_element_type=jnp.float32) + b1_ref[...])
    h = _mish(jnp.dot(h, w2_ref[...], preferred_element_type=jnp.float32) + b2_ref[...])
    row = jax.lax.broadcasted_iota(jnp.int32, (text, 1), 0)
    inner = jnp.logical_and(row >= pad, row < pad + T).astype(jnp.float32)
    h = h * inner                             # exact zero 'same' padding for the GLU conv
    res = h[pad:pad + T, :]
    d = wa_ref.shape[-1]
    a = jnp.zeros((T, d), jnp.float32)
    g = jnp.zeros((T, d), jnp.float32)
    for k in range(ks):
        hk = h[k:k + T, :]
        a = a + jnp.dot(hk, wa_ref[k], preferred_element_type=jnp.float32)
        g = g + jnp.dot(hk, wg_ref[k], preferred_element_type=jnp.float32)
    a = a + ba_ref[...]
    g = g + bg_ref[...]
    out = res + a * jax.nn.sigmoid(g)
    o_ref[0] = out * keep_ref[0]


def pallas_spec_glu(mels, mp, keep):
    B, T, M = mels.shape
    ks = int(mp["wa"].shape[0])
    D = int(mp["wa"].shape[-1])
    pad = (ks - 1) // 2
    melp = jnp.pad(mels, ((0, 0), (pad, pad), (0, 0)))
    kern = functools.partial(_spec_glu_kernel, ks=ks, T=int(T))
    return pl.pallas_call(
        kern, grid=(B,),
        in_specs=[_batch_spec((T + 2 * pad, M)),
                  _const_spec((M, D)), _const_spec((1, D)),
                  _const_spec((D, D)), _const_spec((1, D)),
                  _const_spec((ks, D, D)), _const_spec((1, D)),
                  _const_spec((ks, D, D)), _const_spec((1, D)),
                  _batch_spec((T, 1))],
        out_specs=_batch_spec((T, D)),
        out_shape=jax.ShapeDtypeStruct((B, T, D), F32),
        compiler_params=_PARALLEL_B,
    )(melp, mp["w_spec1"], mp["b_spec1"], mp["w_spec2"], mp["b_spec2"],
      mp["wa"], mp["ba"], mp["wg"], mp["bg"], keep)


def _fc_pool_kernel(x_ref, w_ref, b_ref, valid_ref, o_ref):
    """Fused fc + masked temporal average pool (guarded against zero counts)."""
    y = jnp.dot(x_ref[0], w_ref[...], preferred_element_type=jnp.float32) + b_ref[...]
    v = valid_ref[0]                               # (T, 1)
    s = jnp.sum(y * v, axis=0, keepdims=True)      # (1, D)
    c = jnp.maximum(jnp.sum(v, axis=0, keepdims=True), 1.0)
    o_ref[0] = s * pl.reciprocal(c, approx=True)


def pallas_fc_pool(x, w, b, valid):
    B, T, D = x.shape
    N = int(w.shape[1])
    out = pl.pallas_call(
        _fc_pool_kernel, grid=(B,),
        in_specs=[_batch_spec((T, D)), _const_spec((D, N)),
                  _const_spec((1, N)), _batch_spec((T, 1))],
        out_specs=_batch_spec((1, N)),
        out_shape=jax.ShapeDtypeStruct((B, 1, N), F32),
        compiler_params=_PARALLEL_B,
    )(x, w, b.reshape(1, N), valid)
    return out[:, 0, :]


def _conv_kernel(xp_ref, w_ref, b_ref, o_ref, *, ks, T, activation):
    """Same-pad conv1d as ks shifted MXU matmuls on a padded block, fused activation."""
    xp = xp_ref[0]
    cout = w_ref.shape[-1]
    acc = jnp.zeros((T, cout), jnp.float32)
    for k in range(ks):
        acc = acc + jnp.dot(xp[k:k + T, :], w_ref[k], preferred_element_type=jnp.float32)
    acc = acc + b_ref[...]
    if activation == "tanh":
        acc = jnp.tanh(acc)
    elif activation == "relu":
        acc = jnp.maximum(acc, 0.0)
    o_ref[0] = acc


def pallas_conv1d(x, w, b, activation="none"):
    B, T, cin = x.shape
    ks = int(w.shape[0])
    cout = int(w.shape[-1])
    padl = (ks - 1) // 2
    padr = ks - 1 - padl
    xp = jnp.pad(x, ((0, 0), (padl, padr), (0, 0)))
    kern = functools.partial(_conv_kernel, ks=ks, T=int(T), activation=activation)
    return pl.pallas_call(
        kern, grid=(B,),
        in_specs=[_batch_spec((T + ks - 1, cin)),
                  _const_spec((ks, cin, cout)), _const_spec((1, cout))],
        out_specs=_batch_spec((T, cout)),
        out_shape=jax.ShapeDtypeStruct((B, T, cout), F32),
        compiler_params=_PARALLEL_B,
    )(xp, w, b)


# ----------------------------- parameter construction -----------------------------

class ParamGen:
    def __init__(self, seed=0):
        self.key = jax.random.PRNGKey(seed)

    def __call__(self, shape, scale=0.1):
        self.key, sub = jax.random.split(self.key)
        return scale * jax.random.normal(sub, shape, dtype=F32)


def mha_p(pg, d, n_head):
    dh = d // n_head
    return {"wq": pg((n_head, d, dh)), "bq": jnp.zeros((n_head, 1, dh), F32),
            "wk": pg((n_head, d, dh)), "bk": jnp.zeros((n_head, 1, dh), F32),
            "wv": pg((n_head, d, dh)), "bv": jnp.zeros((n_head, 1, dh), F32),
            "wo": pg((n_head, dh, d)), "bo": jnp.zeros((1, d), F32)}


def saln_p(pg, d_style, d):
    # affine predictor style -> (gamma, beta), initialized near (1, 0)
    return {"w": pg((d_style, 2 * d), scale=0.01),
            "b": jnp.concatenate([jnp.ones((d,), F32), jnp.zeros((d,), F32)])}


def fft_p(pg):
    return {"mha": mha_p(pg, D_MODEL, N_HEAD),
            "saln0": saln_p(pg, D_STYLE, D_MODEL),
            "w1": pg((FFT_KS, D_MODEL, D_INNER)), "b1": jnp.zeros((1, D_INNER), F32),
            "w2": pg((D_INNER, D_MODEL)), "b2": jnp.zeros((1, D_MODEL), F32),
            "saln1": saln_p(pg, D_STYLE, D_MODEL)}


def vp_p(pg, final_bias):
    F = VP_FILTER
    return {"w1": pg((VP_KS, D_MODEL, F)), "b1": jnp.zeros((1, F), F32),
            "g1": jnp.ones((1, F), F32), "be1": jnp.zeros((1, F), F32),
            "w2": pg((VP_KS, F, F)), "b2": jnp.zeros((1, F), F32),
            "g2": jnp.ones((1, F), F32), "be2": jnp.zeros((1, F), F32),
            "wl": pg((1, F)), "bl": jnp.full((1, 1), final_bias, F32)}


def postnet_p(pg):
    chans = [N_MEL] + [POSTNET_DIM] * 4 + [N_MEL]
    layers = []
    for i in range(5):
        cin, cout = chans[i], chans[i + 1]
        w = pg((POSTNET_KS, cin, cout))
        b = jnp.zeros((cout,), F32)
        # TODO(synk): BatchNorm1d folded with *initial* running stats (mean=0, var=1);
        # trained running stats would only change these folded constants.
        bn_g = jnp.ones((cout,), F32)
        bn_b = jnp.zeros((cout,), F32)
        scale = bn_g / jnp.sqrt(1.0 + 1e-5)
        layers.append({"w": w * scale[None, None, :],
                       "b": (b * scale + bn_b).reshape(1, cout)})
    return layers


def sinusoid_table(n_pos, d):
    pos = np.arange(n_pos)[:, None].astype(np.float64)
    i = np.arange(d)[None, :].astype(np.float64)
    angle = pos / np.power(10000.0, 2.0 * (i // 2) / d)
    table = np.zeros((n_pos, d))
    table[:, 0::2] = np.sin(angle[:, 0::2])
    table[:, 1::2] = np.cos(angle[:, 1::2])
    return jnp.asarray(table, F32)


def build_params():
    pg = ParamGen(0)
    p = {}
    p["mse"] = {"w_spec1": pg((N_MEL, D_STYLE)), "b_spec1": jnp.zeros((1, D_STYLE), F32),
                "w_spec2": pg((D_STYLE, D_STYLE)), "b_spec2": jnp.zeros((1, D_STYLE), F32),
                "wa": pg((3, D_STYLE, D_STYLE)), "ba": jnp.zeros((1, D_STYLE), F32),
                "wg": pg((3, D_STYLE, D_STYLE)), "bg": jnp.zeros((1, D_STYLE), F32),
                "attn": mha_p(pg, D_STYLE, N_HEAD),
                "fc_w": pg((D_STYLE, D_STYLE)), "fc_b": jnp.zeros((D_STYLE,), F32)}
    word_emb = pg((VOCAB, D_MODEL))
    word_emb = word_emb.at[0].set(0.0)          # padding_idx = 0
    p["enc"] = {"word_emb": word_emb,
                "layers": [fft_p(pg) for _ in range(ENC_LAYERS)]}
    p["va"] = {"dur": vp_p(pg, 1.0),            # bias=1 so predicted durations ~2 frames
               "pitch": vp_p(pg, 0.0),
               "energy": vp_p(pg, 0.0),
               "pitch_bins": jnp.linspace(-1.0, 1.0, N_BINS - 1),
               "energy_bins": jnp.linspace(-1.0, 1.0, N_BINS - 1),
               "pitch_emb": pg((N_BINS, D_MODEL)),
               "energy_emb": pg((N_BINS, D_MODEL))}
    p["dec"] = {"layers": [fft_p(pg) for _ in range(DEC_LAYERS)]}
    p["mel_linear"] = {"w": pg((D_MODEL, N_MEL)), "b": jnp.zeros((N_MEL,), F32)}
    p["postnet"] = postnet_p(pg)
    p["pos"] = sinusoid_table(MAX_SEQ, D_MODEL)
    return p


# ----------------------------- model building blocks -----------------------------

def get_mask_from_lengths(lengths, max_len):
    ids = jnp.arange(max_len)[None, :]
    return ids >= lengths[:, None]              # True == padding


def mel_style_encoder(mels, mel_mask, mp):
    B = mels.shape[0]
    keep = (~mel_mask).astype(F32)[:, :, None]
    neg = jnp.where(mel_mask, _NEG, 0.0).astype(F32)[:, None, :]
    x = pallas_spec_glu(mels, mp, keep)                       # spec(mish x2) + GLU + residual
    ones_g = jnp.ones((B, 1, D_STYLE), F32)                   # dummies (no SALN here)
    zeros_b = jnp.zeros((B, 1, D_STYLE), F32)
    x = pallas_mha(x, mp["attn"], neg, ones_g, zeros_b, keep, do_saln=False)
    return pallas_fc_pool(x, mp["fc_w"], mp["fc_b"], keep)    # (B, D_STYLE) style vector


def compute_saln_params(style, layers):
    """All SALN affine projections in one lane-dense matmul; returns list of (gamma, beta)."""
    salns = []
    for lp in layers:
        salns += [lp["saln0"], lp["saln1"]]
    w_all = jnp.concatenate([s["w"] for s in salns], axis=1)   # (D_STYLE, n*2*D_MODEL)
    b_all = jnp.concatenate([s["b"] for s in salns], axis=0)
    gb = pallas_linear(style, w_all, b_all)                    # (B, n*2*D_MODEL)
    B = gb.shape[0]
    out = []
    for i in range(len(salns)):
        seg = gb[:, i * 2 * D_MODEL:(i + 1) * 2 * D_MODEL]
        out.append((seg[:, :D_MODEL].reshape(B, 1, D_MODEL),
                    seg[:, D_MODEL:].reshape(B, 1, D_MODEL)))
    return out


def fft_block(x, lp, gb0, gb1, neg, keep):
    x = pallas_mha(x, lp["mha"], neg, gb0[0], gb0[1], keep, do_saln=True)
    x = pallas_ffn_saln(x, lp, gb1[0], gb1[1], keep)
    return x


def encoder(texts, saln_gb, src_masks, p):
    Ts = texts.shape[1]
    x = jnp.take(p["enc"]["word_emb"], texts, axis=0) + p["pos"][None, :Ts, :]
    keep = (~src_masks).astype(F32)[:, :, None]
    neg = jnp.where(src_masks, _NEG, 0.0).astype(F32)[:, None, :]
    for li, lp in enumerate(p["enc"]["layers"]):
        x = fft_block(x, lp, saln_gb[2 * li], saln_gb[2 * li + 1], neg, keep)
    return x


def decoder(x, saln_gb, mel_masks, p):
    Tm = x.shape[1]
    x = x + p["pos"][None, :Tm, :]
    keep = (~mel_masks).astype(F32)[:, :, None]
    neg = jnp.where(mel_masks, _NEG, 0.0).astype(F32)[:, None, :]
    base = 2 * ENC_LAYERS
    for li, lp in enumerate(p["dec"]["layers"]):
        x = fft_block(x, lp, saln_gb[base + 2 * li], saln_gb[base + 2 * li + 1], neg, keep)
    return x


def length_regulator(x, durations, max_len):
    """Device-side length regulator: cumsum + searchsorted + gather (jittable)."""
    B, T, _ = x.shape
    cum = jnp.cumsum(durations, axis=1)                        # (B, T)
    total = cum[:, -1]
    frames = jnp.arange(max_len)
    idx = jax.vmap(lambda c: jnp.searchsorted(c, frames, side="right"))(cum)
    idx = jnp.minimum(idx, T - 1)
    out = jnp.take_along_axis(x, idx[:, :, None], axis=1)      # (B, max_len, D)
    valid = (frames[None, :] < total[:, None]).astype(F32)[:, :, None]
    out = out * valid
    mel_lens = jnp.minimum(total, max_len).astype(jnp.int32)
    return out, mel_lens


def variance_adaptor(x, src_masks, max_mel_len, vap, p_control, e_control, d_control):
    keep = (~src_masks).astype(F32)[:, :, None]
    dp = pallas_var_predictor(x, [vap["dur"], vap["pitch"]], keep)     # (B, T, 2) batched
    log_d = dp[..., 0]
    p_pred = dp[..., 1]
    p_idx = jnp.searchsorted(vap["pitch_bins"], p_pred * p_control)
    x = x + jnp.take(vap["pitch_emb"], p_idx, axis=0)
    e_pred = pallas_var_predictor(x, [vap["energy"]], keep)[..., 0]
    e_idx = jnp.searchsorted(vap["energy_bins"], e_pred * e_control)
    x = x + jnp.take(vap["energy_emb"], e_idx, axis=0)
    d_rounded = jnp.maximum(jnp.round((jnp.exp(log_d) - 1.0) * d_control), 0.0).astype(jnp.int32)
    x, mel_lens = length_regulator(x, d_rounded, max_mel_len)
    mel_masks = get_mask_from_lengths(mel_lens, max_mel_len)
    return x, p_pred, e_pred, log_d, d_rounded, mel_lens, mel_masks


def postnet(mel, layers):
    x = mel
    for i, lp in enumerate(layers):
        act = "tanh" if i < len(layers) - 1 else "none"
        x = pallas_conv1d(x, lp["w"], lp["b"], activation=act)
    return x


# ----------------------------- full forward -----------------------------

def forward(p, speakers, texts, src_lens, mels, mel_lens,
            max_src_len, max_mel_len, p_control=1.0, e_control=1.0, d_control=1.0):
    del speakers  # multi_speaker=False: the reference forward never adds speaker embeddings
    src_masks = get_mask_from_lengths(src_lens, max_src_len)
    mel_masks_in = get_mask_from_lengths(mel_lens, max_mel_len)

    style = mel_style_encoder(mels.astype(F32), mel_masks_in, p["mse"])
    saln_gb = compute_saln_params(style, p["enc"]["layers"] + p["dec"]["layers"])

    output = encoder(texts, saln_gb, src_masks, p)
    (output, p_pred, e_pred, log_d_pred, d_rounded,
     new_mel_lens, new_mel_masks) = variance_adaptor(
        output, src_masks, max_mel_len, p["va"], p_control, e_control, d_control)
    output = decoder(output, saln_gb, new_mel_masks, p)
    mel_out = pallas_linear(output, p["mel_linear"]["w"], p["mel_linear"]["b"])
    postnet_out = postnet(mel_out, p["postnet"]) + mel_out
    return (mel_out, postnet_out, p_pred, e_pred, log_d_pred, d_rounded,
            src_masks, new_mel_masks, src_lens, new_mel_lens)


# ----------------------------- main -----------------------------

if __name__ == "__main__":
    key = jax.random.PRNGKey(0)
    k1, k2 = jax.random.split(key)

    B = 2
    MAX_SRC = 8
    MAX_MEL = 16

    speakers = jnp.zeros((B,), jnp.int32)
    texts = jax.random.randint(k1, (B, MAX_SRC), 1, VOCAB)
    src_lens = jnp.array([8, 6], jnp.int32)
    mels = jax.random.normal(k2, (B, MAX_MEL, N_MEL), jnp.float32)   # (B, T_mel, n_mel)
    mel_lens = jnp.array([16, 12], jnp.int32)

    params = build_params()
    fwd = jax.jit(forward, static_argnames=("max_src_len", "max_mel_len"))
    outputs = fwd(params, speakers, texts, src_lens, mels, mel_lens,
                  max_src_len=MAX_SRC, max_mel_len=MAX_MEL)
    outputs = jax.block_until_ready(outputs)

    mel_out, postnet_out = outputs[0], outputs[1]
    assert mel_out.shape == (B, MAX_MEL, N_MEL)
    assert postnet_out.shape == (B, MAX_MEL, N_MEL)
    assert bool(jnp.all(jnp.isfinite(mel_out))) and bool(jnp.all(jnp.isfinite(postnet_out)))
    print("KERNEL_OK")
</pallas_src>

<mosaic_0001>
module attributes {stable_mosaic.version = 11 : i64} {
  func.func @_spec_glu_kernel(%arg0: i32, %arg1: memref<1x18x16xf32, #tpu.memory_space<vmem>>, %arg2: memref<16x32xf32, #tpu.memory_space<vmem>>, %arg3: memref<1x32xf32, #tpu.memory_space<vmem>>, %arg4: memref<32x32xf32, #tpu.memory_space<vmem>>, %arg5: memref<1x32xf32, #tpu.memory_space<vmem>>, %arg6: memref<3x32x32xf32, #tpu.memory_space<vmem>>, %arg7: memref<1x32xf32, #tpu.memory_space<vmem>>, %arg8: memref<3x32x32xf32, #tpu.memory_space<vmem>>, %arg9: memref<1x32xf32, #tpu.memory_space<vmem>>, %arg10: memref<1x16x1xf32, #tpu.memory_space<vmem>>, %arg11: memref<1x16x32xf32, #tpu.memory_space<vmem>>) attributes {dimension_semantics = [#tpu.dimension_semantics<parallel>], iteration_bounds = array<i64: 2>, scalar_prefetch = 0 : i64, scratch_operands = 0 : i64, tpu.core_type = #tpu.core_type<tc>, window_params = [{transform_indices = @transform_0, window_bounds = array<i64: 1, 18, 16>}, {pipeline_mode = #tpu.pipeline_mode<synchronous>, transform_indices = @transform_1, window_bounds = array<i64: 16, 32>}, {pipeline_mode = #tpu.pipeline_mode<synchronous>, transform_indices = @transform_2, window_bounds = array<i64: 1, 32>}, {pipeline_mode = #tpu.pipeline_mode<synchronous>, transform_indices = @transform_3, window_bounds = array<i64: 32, 32>}, {pipeline_mode = #tpu.pipeline_mode<synchronous>, transform_indices = @transform_4, window_bounds = array<i64: 1, 32>}, {pipeline_mode = #tpu.pipeline_mode<synchronous>, transform_indices = @transform_5, window_bounds = array<i64: 3, 32, 32>}, {pipeline_mode = #tpu.pipeline_mode<synchronous>, transform_indices = @transform_6, window_bounds = array<i64: 1, 32>}, {pipeline_mode = #tpu.pipeline_mode<synchronous>, transform_indices = @transform_7, window_bounds = array<i64: 3, 32, 32>}, {pipeline_mode = #tpu.pipeline_mode<synchronous>, transform_indices = @transform_8, window_bounds = array<i64: 1, 32>}, {transform_indices = @transform_9, window_bounds = array<i64: 1, 16, 1>}, {transform_indices = @transform_10, window_bounds = array<i64: 1, 16, 32>}]} {
    %c0 = arith.constant 0 : index
    %c0_0 = arith.constant 0 : index
    %c0_1 = arith.constant 0 : index
    %0 = vector.load %arg1[%c0, %c0_0, %c0_1] : memref<1x18x16xf32, #tpu.memory_space<vmem>>, vector<1x18x16xf32>
    %1 = vector.shape_cast %0 : vector<1x18x16xf32> to vector<18x16xf32>
    %c0_2 = arith.constant 0 : index
    %c0_3 = arith.constant 0 : index
    %2 = vector.load %arg2[%c0_2, %c0_3] : memref<16x32xf32, #tpu.memory_space<vmem>>, vector<16x32xf32>
    %cst = arith.constant dense<0.000000e+00> : vector<18x32xf32>
    %3 = tpu.matmul %1, %2, %cst {dimension_numbers = #tpu.dot_dimension_numbers<[1], [0], [0], [1], [0, 0, 1, 1], [], []>} : vector<18x16xf32>, vector<16x32xf32>, vector<18x32xf32> -> vector<18x32xf32>
    %c0_4 = arith.constant 0 : index
    %c0_5 = arith.constant 0 : index
    %4 = vector.load %arg3[%c0_4, %c0_5] : memref<1x32xf32, #tpu.memory_space<vmem>>, vector<1x32xf32>
    %5 = vector.broadcast %4 : vector<1x32xf32> to vector<18x32xf32>
    %6 = arith.addf %3, %5 : vector<18x32xf32>
    %cst_6 = arith.constant 0.000000e+00 : f32
    %7 = vector.broadcast %cst_6 : f32 to vector<18x32xf32>
    %8 = arith.maximumf %6, %7 : vector<18x32xf32>
    %9 = math.absf %6 : vector<18x32xf32>
    %cst_7 = arith.constant 0.000000e+00 : f32
    %10 = vector.broadcast %cst_7 : f32 to vector<18x32xf32>
    %11 = arith.subf %10, %9 : vector<18x32xf32>
    %12 = math.exp %11 : vector<18x32xf32>
    %cst_8 = arith.constant 1.000000e+00 : f32
    %13 = vector.broadcast %cst_8 : f32 to vector<18x32xf32>
    %14 = arith.addf %13, %12 : vector<18x32xf32>
    %15 = math.log %14 : vector<18x32xf32>
    %16 = arith.addf %8, %15 : vector<18x32xf32>
    %17 = math.tanh %16 : vector<18x32xf32>
    %18 = arith.mulf %6, %17 : vector<18x32xf32>
    %c0_9 = arith.constant 0 : index
    %c0_10 = arith.constant 0 : index
    %19 = vector.load %arg4[%c0_9, %c0_10] : memref<32x32xf32, #tpu.memory_space<vmem>>, vector<32x32xf32>
    %cst_11 = arith.constant dense<0.000000e+00> : vector<18x32xf32>
    %20 = tpu.matmul %18, %19, %cst_11 {dimension_numbers = #tpu.dot_dimension_numbers<[1], [0], [0], [1], [0, 0, 1, 1], [], []>} : vector<18x32xf32>, vector<32x32xf32>, vector<18x32xf32> -> vector<18x32xf32>
    %c0_12 = arith.constant 0 : index
    %c0_13 = arith.constant 0 : index
    %21 = vector.load %arg5[%c0_12, %c0_13] : memref<1x32xf32, #tpu.memory_space<vmem>>, vector<1x32xf32>
    %22 = vector.broadcast %21 : vector<1x32xf32> to vector<18x32xf32>
    %23 = arith.addf %20, %22 : vector<18x32xf32>
    %cst_14 = arith.constant 0.000000e+00 : f32
    %24 = vector.broadcast %cst_14 : f32 to vector<18x32xf32>
    %25 = arith.maximumf %23, %24 : vector<18x32xf32>
    %26 = math.absf %23 : vector<18x32xf32>
    %cst_15 = arith.constant 0.000000e+00 : f32
    %27 = vector.broadcast %cst_15 : f32 to vector<18x32xf32>
    %28 = arith.subf %27, %26 : vector<18x32xf32>
    %29 = math.exp %28 : vector<18x32xf32>
    %cst_16 = arith.constant 1.000000e+00 : f32
    %30 = vector.broadcast %cst_16 : f32 to vector<18x32xf32>
    %31 = arith.addf %30, %29 : vector<18x32xf32>
    %32 = math.log %31 : vector<18x32xf32>
    %33 = arith.addf %25, %32 : vector<18x32xf32>
    %34 = math.tanh %33 : vector<18x32xf32>
    %35 = arith.mulf %23, %34 : vector<18x32xf32>
    %36 = tpu.iota {dimensions = array<i32: 0>} : vector<18x1xi32>
    %c1_i32 = arith.constant 1 : i32
    %37 = vector.broadcast %c1_i32 : i32 to vector<18x1xi32>
    %38 = arith.cmpi sge, %36, %37 : vector<18x1xi32>
    %c17_i32 = arith.constant 17 : i32
    %39 = vector.broadcast %c17_i32 : i32 to vector<18x1xi32>
    %40 = arith.cmpi slt, %36, %39 : vector<18x1xi32>
    %41 = arith.andi %38, %40 : vector<18x1xi1>
    %42 = arith.extui %41 : vector<18x1xi1> to vector<18x1xi32>
    %43 = arith.sitofp %42 : vector<18x1xi32> to vector<18x1xf32>
    %44 = vector.broadcast %43 : vector<18x1xf32> to vector<18x32xf32>
    %45 = arith.mulf %35, %44 : vector<18x32xf32>
    %46 = vector.extract_strided_slice %45 {offsets = [1, 0], sizes = [16, 32], strides = [1, 1]} : vector<18x32xf32> to vector<16x32xf32>
    %cst_17 = arith.constant 0.000000e+00 : f32
    %47 = vector.broadcast %cst_17 : f32 to vector<16x32xf32>
    %cst_18 = arith.constant 0.000000e+00 : f32
    %48 = vector.broadcast %cst_18 : f32 to vector<16x32xf32>
    %49 = vector.extract_strided_slice %45 {offsets = [0, 0], sizes = [16, 32], strides = [1, 1]} : vector<18x32xf32> to vector<16x32xf32>
    %c0_19 = arith.constant 0 : index
    %c0_20 = arith.constant 0 : index
    %c0_21 = arith.constant 0 : index
    %50 = vector.load %arg6[%c0_19, %c0_20, %c0_21] : memref<3x32x32xf32, #tpu.memory_space<vmem>>, vector<1x32x32xf32>
    %51 = vector.shape_cast %50 : vector<1x32x32xf32> to vector<32x32xf32>
    %cst_22 = arith.constant dense<0.000000e+00> : vector<16x32xf32>
    %52 = tpu.matmul %49, %51, %cst_22 {dimension_numbers = #tpu.dot_dimension_numbers<[1], [0], [0], [1], [0, 0, 1, 1], [], []>} : vector<16x32xf32>, vector<32x32xf32>, vector<16x32xf32> -> vector<16x32xf32>
    %53 = arith.addf %47, %52 : vector<16x32xf32>
    %c0_23 = arith.constant 0 : index
    %c0_24 = arith.constant 0 : index
    %c0_25 = arith.constant 0 : index
    %54 = vector.load %arg8[%c0_23, %c0_24, %c0_25] : memref<3x32x32xf32, #tpu.memory_space<vmem>>, vector<1x32x32xf32>
    %55 = vector.shape_cast %54 : vector<1x32x32xf32> to vector<32x32xf32>
    %cst_26 = arith.constant dense<0.000000e+00> : vector<16x32xf32>
    %56 = tpu.matmul %49, %55, %cst_26 {dimension_numbers = #tpu.dot_dimension_numbers<[1], [0], [0], [1], [0, 0, 1, 1], [], []>} : vector<16x32xf32>, vector<32x32xf32>, vector<16x32xf32> -> vector<16x32xf32>
    %57 = arith.addf %48, %56 : vector<16x32xf32>
    %58 = vector.extract_strided_slice %45 {offsets = [1, 0], sizes = [16, 32], strides = [1, 1]} : vector<18x32xf32> to vector<16x32xf32>
    %c1 = arith.constant 1 : index
    %c0_27 = arith.constant 0 : index
    %c0_28 = arith.constant 0 : index
    %59 = vector.load %arg6[%c1, %c0_27, %c0_28] : memref<3x32x32xf32, #tpu.memory_space<vmem>>, vector<1x32x32xf32>
    %60 = vector.shape_cast %59 : vector<1x32x32xf32> to vector<32x32xf32>
    %cst_29 = arith.constant dense<0.000000e+00> : vector<16x32xf32>
    %61 = tpu.matmul %58, %60, %cst_29 {dimension_numbers = #tpu.dot_dimension_numbers<[1], [0], [0], [1], [0, 0, 1, 1], [], []>} : vector<16x32xf32>, vector<32x32xf32>, vector<16x32xf32> -> vector<16x32xf32>
    %62 = arith.addf %53, %61 : vector<16x32xf32>
    %c1_30 = arith.constant 1 : index
    %c0_31 = arith.constant 0 : index
    %c0_32 = arith.constant 0 : index
    %63 = vector.load %arg8[%c1_30, %c0_31, %c0_32] : memref<3x32x32xf32, #tpu.memory_space<vmem>>, vector<1x32x32xf32>
    %64 = vector.shape_cast %63 : vector<1x32x32xf32> to vector<32x32xf32>
    %cst_33 = arith.constant dense<0.000000e+00> : vector<16x32xf32>
    %65 = tpu.matmul %58, %64, %cst_33 {dimension_numbers = #tpu.dot_dimension_numbers<[1], [0], [0], [1], [0, 0, 1, 1], [], []>} : vector<16x32xf32>, vector<32x32xf32>, vector<16x32xf32> -> vector<16x32xf32>
    %66 = arith.addf %57, %65 : vector<16x32xf32>
    %67 = vector.extract_strided_slice %45 {offsets = [2, 0], sizes = [16, 32], strides = [1, 1]} : vector<18x32xf32> to vector<16x32xf32>
    %c2 = arith.constant 2 : index
    %c0_34 = arith.constant 0 : index
    %c0_35 = arith.constant 0 : index
    %68 = vector.load %arg6[%c2, %c0_34, %c0_35] : memref<3x32x32xf32, #tpu.memory_space<vmem>>, vector<1x32x32xf32>
    %69 = vector.shape_cast %68 : vector<1x32x32xf32> to vector<32x32xf32>
    %cst_36 = arith.constant dense<0.000000e+00> : vector<16x32xf32>
    %70 = tpu.matmul %67, %69, %cst_36 {dimension_numbers = #tpu.dot_dimension_numbers<[1], [0], [0], [1], [0, 0, 1, 1], [], []>} : vector<16x32xf32>, vector<32x32xf32>, vector<16x32xf32> -> vector<16x32xf32>
    %71 = arith.addf %62, %70 : vector<16x32xf32>
    %c2_37 = arith.constant 2 : index
    %c0_38 = arith.constant 0 : index
    %c0_39 = arith.constant 0 : index
    %72 = vector.load %arg8[%c2_37, %c0_38, %c0_39] : memref<3x32x32xf32, #tpu.memory_space<vmem>>, vector<1x32x32xf32>
    %73 = vector.shape_cast %72 : vector<1x32x32xf32> to vector<32x32xf32>
    %cst_40 = arith.constant dense<0.000000e+00> : vector<16x32xf32>
    %74 = tpu.matmul %67, %73, %cst_40 {dimension_numbers = #tpu.dot_dimension_numbers<[1], [0], [0], [1], [0, 0, 1, 1], [], []>} : vector<16x32xf32>, vector<32x32xf32>, vector<16x32xf32> -> vector<16x32xf32>
    %75 = arith.addf %66, %74 : vector<16x32xf32>
    %c0_41 = arith.constant 0 : index
    %c0_42 = arith.constant 0 : index
    %76 = vector.load %arg7[%c0_41, %c0_42] : memref<1x32xf32, #tpu.memory_space<vmem>>, vector<1x32xf32>
    %77 = vector.broadcast %76 : vector<1x32xf32> to vector<16x32xf32>
    %78 = arith.addf %71, %77 : vector<16x32xf32>
    %c0_43 = arith.constant 0 : index
    %c0_44 = arith.constant 0 : index
    %79 = vector.load %arg9[%c0_43, %c0_44] : memref<1x32xf32, #tpu.memory_space<vmem>>, vector<1x32xf32>
    %80 = vector.broadcast %79 : vector<1x32xf32> to vector<16x32xf32>
    %81 = arith.addf %75, %80 : vector<16x32xf32>
    %82 = arith.negf %81 : vector<16x32xf32>
    %83 = math.exp %82 : vector<16x32xf32>
    %cst_45 = arith.constant 1.000000e+00 : f32
    %84 = vector.broadcast %cst_45 : f32 to vector<16x32xf32>
    %85 = arith.addf %84, %83 : vector<16x32xf32>
    %86 = arith.divf %84, %85 : vector<16x32xf32>
    %87 = arith.mulf %78, %86 : vector<16x32xf32>
    %88 = arith.addf %46, %87 : vector<16x32xf32>
    %c0_46 = arith.constant 0 : index
    %c0_47 = arith.constant 0 : index
    %c0_48 = arith.constant 0 : index
    %89 = vector.load %arg10[%c0_46, %c0_47, %c0_48] : memref<1x16x1xf32, #tpu.memory_space<vmem>>, vector<1x16x1xf32>
    %90 = vector.shape_cast %89 : vector<1x16x1xf32> to vector<16x1xf32>
    %91 = vector.broadcast %90 : vector<16x1xf32> to vector<16x32xf32>
    %92 = arith.mulf %88, %91 : vector<16x32xf32>
    %c0_49 = arith.constant 0 : index
    %c0_50 = arith.constant 0 : index
    %c0_51 = arith.constant 0 : index
    %93 = vector.load %arg11[%c0_49, %c0_50, %c0_51] : memref<1x16x32xf32, #tpu.memory_space<vmem>>, vector<1x16x32xf32>
    %94 = vector.shape_cast %93 : vector<1x16x32xf32> to vector<16x32xf32>
    %95 = vector.shape_cast %92 : vector<16x32xf32> to vector<1x16x32xf32>
    tpu.vector_store %arg11[%c0_49, %c0_50, %c0_51], %95 {strides = array<i32>} : memref<1x16x32xf32, #tpu.memory_space<vmem>>, vector<1x16x32xf32>,
    return
  }
  func.func @transform_0(%arg0: i32) -> (i32, i32, i32) {
    %c0_i32 = arith.constant 0 : i32
    %c0_i32_0 = arith.constant 0 : i32
    %c0_i32_1 = arith.constant 0 : i32
    return %arg0, %c0_i32, %c0_i32_0 : i32, i32, i32
  }
  func.func @transform_1(%arg0: i32) -> (i32, i32) {
    %c0_i32 = arith.constant 0 : i32
    %c0_i32_0 = arith.constant 0 : i32
    %c0_i32_1 = arith.constant 0 : i32
    return %c0_i32, %c0_i32_0 : i32, i32
  }
  func.func @transform_2(%arg0: i32) -> (i32, i32) {
    %c0_i32 = arith.constant 0 : i32
    %c0_i32_0 = arith.constant 0 : i32
    %c0_i32_1 = arith.constant 0 : i32
    return %c0_i32, %c0_i32_0 : i32, i32
  }
  func.func @transform_3(%arg0: i32) -> (i32, i32) {
    %c0_i32 = arith.constant 0 : i32
    %c0_i32_0 = arith.constant 0 : i32
    %c0_i32_1 = arith.constant 0 : i32
    return %c0_i32, %c0_i32_0 : i32, i32
  }
  func.func @transform_4(%arg0: i32) -> (i32, i32) {
    %c0_i32 = arith.constant 0 : i32
    %c0_i32_0 = arith.constant 0 : i32
    %c0_i32_1 = arith.constant 0 : i32
    return %c0_i32, %c0_i32_0 : i32, i32
  }
  func.func @transform_5(%arg0: i32) -> (i32, i32, i32) {
    %c0_i32 = arith.constant 0 : i32
    %c0_i32_0 = arith.constant 0 : i32
    %c0_i32_1 = arith.constant 0 : i32
    %c0_i32_2 = arith.constant 0 : i32
    return %c0_i32, %c0_i32_0, %c0_i32_1 : i32, i32, i32
  }
  func.func @transform_6(%arg0: i32) -> (i32, i32) {
    %c0_i32 = arith.constant 0 : i32
    %c0_i32_0 = arith.constant 0 : i32
    %c0_i32_1 = arith.constant 0 : i32
    return %c0_i32, %c0_i32_0 : i32, i32
  }
  func.func @transform_7(%arg0: i32) -> (i32, i32, i32) {
    %c0_i32 = arith.constant 0 : i32
    %c0_i32_0 = arith.constant 0 : i32
    %c0_i32_1 = arith.constant 0 : i32
    %c0_i32_2 = arith.constant 0 : i32
    return %c0_i32, %c0_i32_0, %c0_i32_1 : i32, i32, i32
  }
  func.func @transform_8(%arg0: i32) -> (i32, i32) {
    %c0_i32 = arith.constant 0 : i32
    %c0_i32_0 = arith.constant 0 : i32
    %c0_i32_1 = arith.constant 0 : i32
    return %c0_i32, %c0_i32_0 : i32, i32
  }
  func.func @transform_9(%arg0: i32) -> (i32, i32, i32) {
    %c0_i32 = arith.constant 0 : i32
    %c0_i32_0 = arith.constant 0 : i32
    %c0_i32_1 = arith.constant 0 : i32
    return %arg0, %c0_i32, %c0_i32_0 : i32, i32, i32
  }
  func.func @transform_10(%arg0: i32) -> (i32, i32, i32) {
    %c0_i32 = arith.constant 0 : i32
    %c0_i32_0 = arith.constant 0 : i32
    %c0_i32_1 = arith.constant 0 : i32
    return %arg0, %c0_i32, %c0_i32_0 : i32, i32, i32
  }
}

module attributes {stable_mosaic.version = 11 : i64} {
  func.func @_mha_saln_kernel(%arg0: i32, %arg1: memref<1x16x32xf32, #tpu.memory_space<vmem>>, %arg2: memref<2x32x16xf32, #tpu.memory_space<vmem>>, %arg3: memref<2x1x16xf32, #tpu.memory_space<vmem>>, %arg4: memref<2x32x16xf32, #tpu.memory_space<vmem>>, %arg5: memref<2x1x16xf32, #tpu.memory_space<vmem>>, %arg6: memref<2x32x16xf32, #tpu.memory_space<vmem>>, %arg7: memref<2x1x16xf32, #tpu.memory_space<vmem>>, %arg8: memref<2x16x32xf32, #tpu.memory_space<vmem>>, %arg9: memref<1x32xf32, #tpu.memory_space<vmem>>, %arg10: memref<1x1x16xf32, #tpu.memory_space<vmem>>, %arg11: memref<1x1x32xf32, #tpu.memory_space<vmem>>, %arg12: memref<1x1x32xf32, #tpu.memory_space<vmem>>, %arg13: memref<1x16x1xf32, #tpu.memory_space<vmem>>, %arg14: memref<1x16x32xf32, #tpu.memory_space<vmem>>) attributes {dimension_semantics = [#tpu.dimension_semantics<parallel>], iteration_bounds = array<i64: 2>, scalar_prefetch = 0 : i64, scratch_operands = 0 : i64, tpu.core_type = #tpu.core_type<tc>, window_params = [{transform_indices = @transform_0, window_bounds = array<i64: 1, 16, 32>}, {pipeline_mode = #tpu.pipeline_mode<synchronous>, transform_indices = @transform_1, window_bounds = array<i64: 2, 32, 16>}, {pipeline_mode = #tpu.pipeline_mode<synchronous>, transform_indices = @transform_2, window_bounds = array<i64: 2, 1, 16>}, {pipeline_mode = #tpu.pipeline_mode<synchronous>, transform_indices = @transform_3, window_bounds = array<i64: 2, 32, 16>}, {pipeline_mode = #tpu.pipeline_mode<synchronous>, transform_indices = @transform_4, window_bounds = array<i64: 2, 1, 16>}, {pipeline_mode = #tpu.pipeline_mode<synchronous>, transform_indices = @transform_5, window_bounds = array<i64: 2, 32, 16>}, {pipeline_mode = #tpu.pipeline_mode<synchronous>, transform_indices = @transform_6, window_bounds = array<i64: 2, 1, 16>}, {pipeline_mode = #tpu.pipeline_mode<synchronous>, transform_indices = @transform_7, window_bounds = array<i64: 2, 16, 32>}, {pipeline_mode = #tpu.pipeline_mode<synchronous>, transform_indices = @transform_8, window_bounds = array<i64: 1, 32>}, {transform_indices = @transform_9, window_bounds = array<i64: 1, 1, 16>}, {transform_indices = @transform_10, window_bounds = array<i64: 1, 1, 32>}, {transform_indices = @transform_11, window_bounds = array<i64: 1, 1, 32>}, {transform_indices = @transform_12, window_bounds = array<i64: 1, 16, 1>}, {transform_indices = @transform_13, window_bounds = array<i64: 1, 16, 32>}]} {
    %c0 = arith.constant 0 : index
    %c0_0 = arith.constant 0 : index
    %c0_1 = arith.constant 0 : index
    %0 = vector.load %arg1[%c0, %c0_0, %c0_1] : memref<1x16x32xf32, #tpu.memory_space<vmem>>, vector<1x16x32xf32>
    %1 = vector.shape_cast %0 : vector<1x16x32xf32> to vector<16x32xf32>
    %c0_2 = arith.constant 0 : index
    %c0_3 = arith.constant 0 : index
    %c0_4 = arith.constant 0 : index
    %2 = vector.load %arg10[%c0_2, %c0_3, %c0_4] : memref<1x1x16xf32, #tpu.memory_space<vmem>>, vector<1x1x16xf32>
    %3 = vector.shape_cast %2 : vector<1x1x16xf32> to vector<1x16xf32>
    %cst = arith.constant 0.000000e+00 : f32
    %4 = vector.broadcast %cst : f32 to vector<16x32xf32>
    %c0_5 = arith.constant 0 : index
    %c0_6 = arith.constant 0 : index
    %c0_7 = arith.constant 0 : index
    %5 = vector.load %arg2[%c0_5, %c0_6, %c0_7] : memref<2x32x16xf32, #tpu.memory_space<vmem>>, vector<1x32x16xf32>
    %6 = vector.shape_cast %5 : vector<1x32x16xf32> to vector<32x16xf32>
    %cst_8 = arith.constant dense<0.000000e+00> : vector<16x16xf32>
    %7 = tpu.matmul %1, %6, %cst_8 {dimension_numbers = #tpu.dot_dimension_numbers<[1], [0], [0], [1], [0, 0, 1, 1], [], []>} : vector<16x32xf32>, vector<32x16xf32>, vector<16x16xf32> -> vector<16x16xf32>
    %c0_9 = arith.constant 0 : index
    %c0_10 = arith.constant 0 : index
    %c0_11 = arith.constant 0 : index
    %8 = vector.load %arg3[%c0_9, %c0_10, %c0_11] : memref<2x1x16xf32, #tpu.memory_space<vmem>>, vector<1x1x16xf32>
    %9 = vector.shape_cast %8 : vector<1x1x16xf32> to vector<1x16xf32>
    %10 = vector.broadcast %9 : vector<1x16xf32> to vector<16x16xf32>
    %11 = arith.addf %7, %10 : vector<16x16xf32>
    %c0_12 = arith.constant 0 : index
    %c0_13 = arith.constant 0 : index
    %c0_14 = arith.constant 0 : index
    %12 = vector.load %arg4[%c0_12, %c0_13, %c0_14] : memref<2x32x16xf32, #tpu.memory_space<vmem>>, vector<1x32x16xf32>
    %13 = vector.shape_cast %12 : vector<1x32x16xf32> to vector<32x16xf32>
    %cst_15 = arith.constant dense<0.000000e+00> : vector<16x16xf32>
    %14 = tpu.matmul %1, %13, %cst_15 {dimension_numbers = #tpu.dot_dimension_numbers<[1], [0], [0], [1], [0, 0, 1, 1], [], []>} : vector<16x32xf32>, vector<32x16xf32>, vector<16x16xf32> -> vector<16x16xf32>
    %c0_16 = arith.constant 0 : index
    %c0_17 = arith.constant 0 : index
    %c0_18 = arith.constant 0 : index
    %15 = vector.load %arg5[%c0_16, %c0_17, %c0_18] : memref<2x1x16xf32, #tpu.memory_space<vmem>>, vector<1x1x16xf32>
    %16 = vector.shape_cast %15 : vector<1x1x16xf32> to vector<1x16xf32>
    %17 = vector.broadcast %16 : vector<1x16xf32> to vector<16x16xf32>
    %18 = arith.addf %14, %17 : vector<16x16xf32>
    %c0_19 = arith.constant 0 : index
    %c0_20 = arith.constant 0 : index
    %c0_21 = arith.constant 0 : index
    %19 = vector.load %arg6[%c0_19, %c0_20, %c0_21] : memref<2x32x16xf32, #tpu.memory_space<vmem>>, vector<1x32x16xf32>
    %20 = vector.shape_cast %19 : vector<1x32x16xf32> to vector<32x16xf32>
    %cst_22 = arith.constant dense<0.000000e+00> : vector<16x16xf32>
    %21 = tpu.matmul %1, %20, %cst_22 {dimension_numbers = #tpu.dot_dimension_numbers<[1], [0], [0], [1], [0, 0, 1, 1], [], []>} : vector<16x32xf32>, vector<32x16xf32>, vector<16x16xf32> -> vector<16x16xf32>
    %c0_23 = arith.constant 0 : index
    %c0_24 = arith.constant 0 : index
    %c0_25 = arith.constant 0 : index
    %22 = vector.load %arg7[%c0_23, %c0_24, %c0_25] : memref<2x1x16xf32, #tpu.memory_space<vmem>>, vector<1x1x16xf32>
    %23 = vector.shape_cast %22 : vector<1x1x16xf32> to vector<1x16xf32>
    %24 = vector.broadcast %23 : vector<1x16xf32> to vector<16x16xf32>
    %25 = arith.addf %21, %24 : vector<16x16xf32>
    %cst_26 = arith.constant dense<0.000000e+00> : vector<16x16xf32>
    %26 = tpu.matmul %11, %18, %cst_26 {dimension_numbers = #tpu.dot_dimension_numbers<[1], [1], [0], [0], [0, 0, 1, 0], [], []>} : vector<16x16xf32>, vector<16x16xf32>, vector<16x16xf32> -> vector<16x16xf32>
    %cst_27 = arith.constant 2.500000e-01 : f32
    %27 = vector.broadcast %cst_27 : f32 to vector<16x16xf32>
    %28 = arith.mulf %26, %27 : vector<16x16xf32>
    %29 = vector.broadcast %3 : vector<1x16xf32> to vector<16x16xf32>
    %30 = arith.addf %28, %29 : vector<16x16xf32>
    %cst_28 = arith.constant dense<0xFF800000> : vector<16xf32>
    %31 = vector.multi_reduction <maximumf>, %30, %cst_28 [1] : vector<16x16xf32> to vector<16xf32>
    %32 = vector.shape_cast %31 : vector<16xf32> to vector<16x1xf32>
    %33 = vector.broadcast %32 : vector<16x1xf32> to vector<16x16xf32>
    %34 = arith.subf %30, %33 : vector<16x16xf32>
    %35 = math.exp %34 : vector<16x16xf32>
    %cst_29 = arith.constant dense<0.000000e+00> : vector<16xf32>
    %36 = vector.multi_reduction <add>, %35, %cst_29 [1] : vector<16x16xf32> to vector<16xf32>
    %37 = vector.shape_cast %36 : vector<16xf32> to vector<16x1xf32>
    %38 = tpu.reciprocal %37 {approx = true} : vector<16x1xf32> -> vector<16x1xf32>
    %39 = vector.broadcast %38 : vector<16x1xf32> to vector<16x16xf32>
    %40 = arith.mulf %35, %39 : vector<16x16xf32>
    %cst_30 = arith.constant dense<0.000000e+00> : vector<16x16xf32>
    %41 = tpu.matmul %40, %25, %cst_30 {dimension_numbers = #tpu.dot_dimension_numbers<[1], [0], [0], [1], [0, 0, 1, 1], [], []>} : vector<16x16xf32>, vector<16x16xf32>, vector<16x16xf32> -> vector<16x16xf32>
    %c0_31 = arith.constant 0 : index
    %c0_32 = arith.constant 0 : index
    %c0_33 = arith.constant 0 : index
    %42 = vector.load %arg8[%c0_31, %c0_32, %c0_33] : memref<2x16x32xf32, #tpu.memory_space<vmem>>, vector<1x16x32xf32>
    %43 = vector.shape_cast %42 : vector<1x16x32xf32> to vector<16x32xf32>
    %cst_34 = arith.constant dense<0.000000e+00> : vector<16x32xf32>
    %44 = tpu.matmul %41, %43, %cst_34 {dimension_numbers = #tpu.dot_dimension_numbers<[1], [0], [0], [1], [0, 0, 1, 1], [], []>} : vector<16x16xf32>, vector<16x32xf32>, vector<16x32xf32> -> vector<16x32xf32>
    %45 = arith.addf %4, %44 : vector<16x32xf32>
    %c1 = arith.constant 1 : index
    %c0_35 = arith.constant 0 : index
    %c0_36 = arith.constant 0 : index
    %46 = vector.load %arg2[%c1, %c0_35, %c0_36] : memref<2x32x16xf32, #tpu.memory_space<vmem>>, vector<1x32x16xf32>
    %47 = vector.shape_cast %46 : vector<1x32x16xf32> to vector<32x16xf32>
    %cst_37 = arith.constant dense<0.000000e+00> : vector<16x16xf32>
    %48 = tpu.matmul %1, %47, %cst_37 {dimension_numbers = #tpu.dot_dimension_numbers<[1], [0], [0], [1], [0, 0, 1, 1], [], []>} : vector<16x32xf32>, vector<32x16xf32>, vector<16x16xf32> -> vector<16x16xf32>
    %c1_38 = arith.constant 1 : index
    %c0_39 = arith.constant 0 : index
    %c0_40 = arith.constant 0 : index
    %49 = vector.load %arg3[%c1_38, %c0_39, %c0_40] : memref<2x1x16xf32, #tpu.memory_space<vmem>>, vector<1x1x16xf32>
    %50 = vector.shape_cast %49 : vector<1x1x16xf32> to vector<1x16xf32>
    %51 = vector.broadcast %50 : vector<1x16xf32> to vector<16x16xf32>
    %52 = arith.addf %48, %51 : vector<16x16xf32>
    %c1_41 = arith.constant 1 : index
    %c0_42 = arith.constant 0 : index
    %c0_43 = arith.constant 0 : index
    %53 = vector.load %arg4[%c1_41, %c0_42, %c0_43] : memref<2x32x16xf32, #tpu.memory_space<vmem>>, vector<1x32x16xf32>
    %54 = vector.shape_cast %53 : vector<1x32x16xf32> to vector<32x16xf32>
    %cst_44 = arith.constant dense<0.000000e+00> : vector<16x16xf32>
    %55 = tpu.matmul %1, %54, %cst_44 {dimension_numbers = #tpu.dot_dimension_numbers<[1], [0], [0], [1], [0, 0, 1, 1], [], []>} : vector<16x32xf32>, vector<32x16xf32>, vector<16x16xf32> -> vector<16x16xf32>
    %c1_45 = arith.constant 1 : index
    %c0_46 = arith.constant 0 : index
    %c0_47 = arith.constant 0 : index
    %56 = vector.load %arg5[%c1_45, %c0_46, %c0_47] : memref<2x1x16xf32, #tpu.memory_space<vmem>>, vector<1x1x16xf32>
    %57 = vector.shape_cast %56 : vector<1x1x16xf32> to vector<1x16xf32>
    %58 = vector.broadcast %57 : vector<1x16xf32> to vector<16x16xf32>
    %59 = arith.addf %55, %58 : vector<16x16xf32>
    %c1_48 = arith.constant 1 : index
    %c0_49 = arith.constant 0 : index
    %c0_50 = arith.constant 0 : index
    %60 = vector.load %arg6[%c1_48, %c0_49, %c0_50] : memref<2x32x16xf32, #tpu.memory_space<vmem>>, vector<1x32x16xf32>
    %61 = vector.shape_cast %60 : vector<1x32x16xf32> to vector<32x16xf32>
    %cst_51 = arith.constant dense<0.000000e+00> : vector<16x16xf32>
    %62 = tpu.matmul %1, %61, %cst_51 {dimension_numbers = #tpu.dot_dimension_numbers<[1], [0], [0], [1], [0, 0, 1, 1], [], []>} : vector<16x32xf32>, vector<32x16xf32>, vector<16x16xf32> -> vector<16x16xf32>
    %c1_52 = arith.constant 1 : index
    %c0_53 = arith.constant 0 : index
    %c0_54 = arith.constant 0 : index
    %63 = vector.load %arg7[%c1_52, %c0_53, %c0_54] : memref<2x1x16xf32, #tpu.memory_space<vmem>>, vector<1x1x16xf32>
    %64 = vector.shape_cast %63 : vector<1x1x16xf32> to vector<1x16xf32>
    %65 = vector.broadcast %64 : vector<1x16xf32> to vector<16x16xf32>
    %66 = arith.addf %62, %65 : vector<16x16xf32>
    %cst_55 = arith.constant dense<0.000000e+00> : vector<16x16xf32>
    %67 = tpu.matmul %52, %59, %cst_55 {dimension_numbers = #tpu.dot_dimension_numbers<[1], [1], [0], [0], [0, 0, 1, 0], [], []>} : vector<16x16xf32>, vector<16x16xf32>, vector<16x16xf32> -> vector<16x16xf32>
    %cst_56 = arith.constant 2.500000e-01 : f32
    %68 = vector.broadcast %cst_56 : f32 to vector<16x16xf32>
    %69 = arith.mulf %67, %68 : vector<16x16xf32>
    %70 = vector.broadcast %3 : vector<1x16xf32> to vector<16x16xf32>
    %71 = arith.addf %69, %70 : vector<16x16xf32>
    %cst_57 = arith.constant dense<0xFF800000> : vector<16xf32>
    %72 = vector.multi_reduction <maximumf>, %71, %cst_57 [1] : vector<16x16xf32> to vector<16xf32>
    %73 = vector.shape_cast %72 : vector<16xf32> to vector<16x1xf32>
    %74 = vector.broadcast %73 : vector<16x1xf32> to vector<16x16xf32>
    %75 = arith.subf %71, %74 : vector<16x16xf32>
    %76 = math.exp %75 : vector<16x16xf32>
    %cst_58 = arith.constant dense<0.000000e+00> : vector<16xf32>
    %77 = vector.multi_reduction <add>, %76, %cst_58 [1] : vector<16x16xf32> to vector<16xf32>
    %78 = vector.shape_cast %77 : vector<16xf32> to vector<16x1xf32>
    %79 = tpu.reciprocal %78 {approx = true} : vector<16x1xf32> -> vector<16x1xf32>
    %80 = vector.broadcast %79 : vector<16x1xf32> to vector<16x16xf32>
    %81 = arith.mulf %76, %80 : vector<16x16xf32>
    %cst_59 = arith.constant dense<0.000000e+00> : vector<16x16xf32>
    %82 = tpu.matmul %81, %66, %cst_59 {dimension_numbers = #tpu.dot_dimension_numbers<[1], [0], [0], [1], [0, 0, 1, 1], [], []>} : vector<16x16xf32>, vector<16x16xf32>, vector<16x16xf32> -> vector<16x16xf32>
    %c1_60 = arith.constant 1 : index
    %c0_61 = arith.constant 0 : index
    %c0_62 = arith.constant 0 : index
    %83 = vector.load %arg8[%c1_60, %c0_61, %c0_62] : memref<2x16x32xf32, #tpu.memory_space<vmem>>, vector<1x16x32xf32>
    %84 = vector.shape_cast %83 : vector<1x16x32xf32> to vector<16x32xf32>
    %cst_63 = arith.constant dense<0.000000e+00> : vector<16x32xf32>
    %85 = tpu.matmul %82, %84, %cst_63 {dimension_numbers = #tpu.dot_dimension_numbers<[1], [0], [0], [1], [0, 0, 1, 1], [], []>} : vector<16x16xf32>, vector<16x32xf32>, vector<16x32xf32> -> vector<16x32xf32>
    %86 = arith.addf %45, %85 : vector<16x32xf32>
    %c0_64 = arith.constant 0 : index
    %c0_65 = arith.constant 0 : index
    %87 = vector.load %arg9[%c0_64, %c0_65] : memref<1x32xf32, #tpu.memory_space<vmem>>, vector<1x32xf32>
    %88 = vector.broadcast %87 : vector<1x32xf32> to vector<16x32xf32>
    %89 = arith.addf %86, %88 : vector<16x32xf32>
    %90 = arith.addf %89, %1 : vector<16x32xf32>
    %c0_66 = arith.constant 0 : index
    %c0_67 = arith.constant 0 : index
    %c0_68 = arith.constant 0 : index
    %91 = vector.load %arg13[%c0_66, %c0_67, %c0_68] : memref<1x16x1xf32, #tpu.memory_space<vmem>>, vector<1x16x1xf32>
    %92 = vector.shape_cast %91 : vector<1x16x1xf32> to vector<16x1xf32>
    %93 = vector.broadcast %92 : vector<16x1xf32> to vector<16x32xf32>
    %94 = arith.mulf %90, %93 : vector<16x32xf32>
    %c0_69 = arith.constant 0 : index
    %c0_70 = arith.constant 0 : index
    %c0_71 = arith.constant 0 : index
    %95 = vector.load %arg14[%c0_69, %c0_70, %c0_71] : memref<1x16x32xf32, #tpu.memory_space<vmem>>, vector<1x16x32xf32>
    %96 = vector.shape_cast %95 : vector<1x16x32xf32> to vector<16x32xf32>
    %97 = vector.shape_cast %94 : vector<16x32xf32> to vector<1x16x32xf32>
    tpu.vector_store %arg14[%c0_69, %c0_70, %c0_71], %97 {strides = array<i32>} : memref<1x16x32xf32, #tpu.memory_space<vmem>>, vector<1x16x32xf32>,
    return
  }
  func.func @transform_0(%arg0: i32) -> (i32, i32, i32) {
    %c0_i32 = arith.constant 0 : i32
    %c0_i32_0 = arith.constant 0 : i32
    %c0_i32_1 = arith.constant 0 : i32
    return %arg0, %c0_i32, %c0_i32_0 : i32, i32, i32
  }
  func.func @transform_1(%arg0: i32) -> (i32, i32, i32) {
    %c0_i32 = arith.constant 0 : i32
    %c0_i32_0 = arith.constant 0 : i32
    %c0_i32_1 = arith.constant 0 : i32
    %c0_i32_2 = arith.constant 0 : i32
    return %c0_i32, %c0_i32_0, %c0_i32_1 : i32, i32, i32
  }
  func.func @transform_2(%arg0: i32) -> (i32, i32, i32) {
    %c0_i32 = arith.constant 0 : i32
    %c0_i32_0 = arith.constant 0 : i32
    %c0_i32_1 = arith.constant 0 : i32
    %c0_i32_2 = arith.constant 0 : i32
    return %c0_i32, %c0_i32_0, %c0_i32_1 : i32, i32, i32
  }
  func.func @transform_3(%arg0: i32) -> (i32, i32, i32) {
    %c0_i32 = arith.constant 0 : i32
    %c0_i32_0 = arith.constant 0 : i32
    %c0_i32_1 = arith.constant 0 : i32
    %c0_i32_2 = arith.constant 0 : i32
    return %c0_i32, %c0_i32_0, %c0_i32_1 : i32, i32, i32
  }
  func.func @transform_4(%arg0: i32) -> (i32, i32, i32) {
    %c0_i32 = arith.constant 0 : i32
    %c0_i32_0 = arith.constant 0 : i32
    %c0_i32_1 = arith.constant 0 : i32
    %c0_i32_2 = arith.constant 0 : i32
    return %c0_i32, %c0_i32_0, %c0_i32_1 : i32, i32, i32
  }
  func.func @transform_5(%arg0: i32) -> (i32, i32, i32) {
    %c0_i32 = arith.constant 0 : i32
    %c0_i32_0 = arith.constant 0 : i32
    %c0_i32_1 = arith.constant 0 : i32
    %c0_i32_2 = arith.constant 0 : i32
    return %c0_i32, %c0_i32_0, %c0_i32_1 : i32, i32, i32
  }
  func.func @transform_6(%arg0: i32) -> (i32, i32, i32) {
    %c0_i32 = arith.constant 0 : i32
    %c0_i32_0 = arith.constant 0 : i32
    %c0_i32_1 = arith.constant 0 : i32
    %c0_i32_2 = arith.constant 0 : i32
    return %c0_i32, %c0_i32_0, %c0_i32_1 : i32, i32, i32
  }
  func.func @transform_7(%arg0: i32) -> (i32, i32, i32) {
    %c0_i32 = arith.constant 0 : i32
    %c0_i32_0 = arith.constant 0 : i32
    %c0_i32_1 = arith.constant 0 : i32
    %c0_i32_2 = arith.constant 0 : i32
    return %c0_i32, %c0_i32_0, %c0_i32_1 : i32, i32, i32
  }
  func.func @transform_8(%arg0: i32) -> (i32, i32) {
    %c0_i32 = arith.constant 0 : i32
    %c0_i32_0 = arith.constant 0 : i32
    %c0_i32_1 = arith.constant 0 : i32
    return %c0_i32, %c0_i32_0 : i32, i32
  }
  func.func @transform_9(%arg0: i32) -> (i32, i32, i32) {
    %c0_i32 = arith.constant 0 : i32
    %c0_i32_0 = arith.constant 0 : i32
    %c0_i32_1 = arith.constant 0 : i32
    return %arg0, %c0_i32, %c0_i32_0 : i32, i32, i32
  }
  func.func @transform_10(%arg0: i32) -> (i32, i32, i32) {
    %c0_i32 = arith.constant 0 : i32
    %c0_i32_0 = arith.constant 0 : i32
    %c0_i32_1 = arith.constant 0 : i32
    return %arg0, %c0_i32, %c0_i32_0 : i32, i32, i32
  }
  func.func @transform_11(%arg0: i32) -> (i32, i32, i32) {
    %c0_i32 = arith.constant 0 : i32
    %c0_i32_0 = arith.constant 0 : i32
    %c0_i32_1 = arith.constant 0 : i32
    return %arg0, %c0_i32, %c0_i32_0 : i32, i32, i32
  }
  func.func @transform_12(%arg0: i32) -> (i32, i32, i32) {
    %c0_i32 = arith.constant 0 : i32
    %c0_i32_0 = arith.constant 0 : i32
    %c0_i32_1 = arith.constant 0 : i32
    return %arg0, %c0_i32, %c0_i32_0 : i32, i32, i32
  }
  func.func @transform_13(%arg0: i32) -> (i32, i32, i32) {
    %c0_i32 = arith.constant 0 : i32
    %c0_i32_0 = arith.constant 0 : i32
    %c0_i32_1 = arith.constant 0 : i32
    return %arg0, %c0_i32, %c0_i32_0 : i32, i32, i32
  }
}

module attributes {stable_mosaic.version = 11 : i64} {
  func.func @_fc_pool_kernel(%arg0: i32, %arg1: memref<1x16x32xf32, #tpu.memory_space<vmem>>, %arg2: memref<32x32xf32, #tpu.memory_space<vmem>>, %arg3: memref<1x32xf32, #tpu.memory_space<vmem>>, %arg4: memref<1x16x1xf32, #tpu.memory_space<vmem>>, %arg5: memref<1x1x32xf32, #tpu.memory_space<vmem>>) attributes {dimension_semantics = [#tpu.dimension_semantics<parallel>], iteration_bounds = array<i64: 2>, scalar_prefetch = 0 : i64, scratch_operands = 0 : i64, tpu.core_type = #tpu.core_type<tc>, window_params = [{transform_indices = @transform_0, window_bounds = array<i64: 1, 16, 32>}, {pipeline_mode = #tpu.pipeline_mode<synchronous>, transform_indices = @transform_1, window_bounds = array<i64: 32, 32>}, {pipeline_mode = #tpu.pipeline_mode<synchronous>, transform_indices = @transform_2, window_bounds = array<i64: 1, 32>}, {transform_indices = @transform_3, window_bounds = array<i64: 1, 16, 1>}, {transform_indices = @transform_4, window_bounds = array<i64: 1, 1, 32>}]} {
    %c0 = arith.constant 0 : index
    %c0_0 = arith.constant 0 : index
    %c0_1 = arith.constant 0 : index
    %0 = vector.load %arg1[%c0, %c0_0, %c0_1] : memref<1x16x32xf32, #tpu.memory_space<vmem>>, vector<1x16x32xf32>
    %1 = vector.shape_cast %0 : vector<1x16x32xf32> to vector<16x32xf32>
    %c0_2 = arith.constant 0 : index
    %c0_3 = arith.constant 0 : index
    %2 = vector.load %arg2[%c0_2, %c0_3] : memref<32x32xf32, #tpu.memory_space<vmem>>, vector<32x32xf32>
    %cst = arith.constant dense<0.000000e+00> : vector<16x32xf32>
    %3 = tpu.matmul %1, %2, %cst {dimension_numbers = #tpu.dot_dimension_numbers<[1], [0], [0], [1], [0, 0, 1, 1], [], []>} : vector<16x32xf32>, vector<32x32xf32>, vector<16x32xf32> -> vector<16x32xf32>
    %c0_4 = arith.constant 0 : index
    %c0_5 = arith.constant 0 : index
    %4 = vector.load %arg3[%c0_4, %c0_5] : memref<1x32xf32, #tpu.memory_space<vmem>>, vector<1x32xf32>
    %5 = vector.broadcast %4 : vector<1x32xf32> to vector<16x32xf32>
    %6 = arith.addf %3, %5 : vector<16x32xf32>
    %c0_6 = arith.constant 0 : index
    %c0_7 = arith.constant 0 : index
    %c0_8 = arith.constant 0 : index
    %7 = vector.load %arg4[%c0_6, %c0_7, %c0_8] : memref<1x16x1xf32, #tpu.memory_space<vmem>>, vector<1x16x1xf32>
    %8 = vector.shape_cast %7 : vector<1x16x1xf32> to vector<16x1xf32>
    %9 = vector.broadcast %8 : vector<16x1xf32> to vector<16x32xf32>
    %10 = arith.mulf %6, %9 : vector<16x32xf32>
    %cst_9 = arith.constant dense<0.000000e+00> : vector<32xf32>
    %11 = vector.multi_reduction <add>, %10, %cst_9 [0] : vector<16x32xf32> to vector<32xf32>
    %12 = vector.shape_cast %11 : vector<32xf32> to vector<1x32xf32>
    %cst_10 = arith.constant dense<0.000000e+00> : vector<1xf32>
    %13 = vector.multi_reduction <add>, %8, %cst_10 [0] : vector<16x1xf32> to vector<1xf32>
    %14 = vector.shape_cast %13 : vector<1xf32> to vector<1x1xf32>
    %cst_11 = arith.constant 1.000000e+00 : f32
    %15 = vector.broadcast %cst_11 : f32 to vector<1x1xf32>
    %16 = arith.maximumf %14, %15 : vector<1x1xf32>
    %17 = tpu.reciprocal %16 {approx = true} : vector<1x1xf32> -> vector<1x1xf32>
    %18 = vector.broadcast %17 : vector<1x1xf32> to vector<1x32xf32>
    %19 = arith.mulf %12, %18 : vector<1x32xf32>
    %c0_12 = arith.constant 0 : index
    %c0_13 = arith.constant 0 : index
    %c0_14 = arith.constant 0 : index
    %20 = vector.load %arg5[%c0_12, %c0_13, %c0_14] : memref<1x1x32xf32, #tpu.memory_space<vmem>>, vector<1x1x32xf32>
    %21 = vector.shape_cast %20 : vector<1x1x32xf32> to vector<1x32xf32>
    %22 = vector.shape_cast %19 : vector<1x32xf32> to vector<1x1x32xf32>
    tpu.vector_store %arg5[%c0_12, %c0_13, %c0_14], %22 {strides = array<i32>} : memref<1x1x32xf32, #tpu.memory_space<vmem>>, vector<1x1x32xf32>,
    return
  }
  func.func @transform_0(%arg0: i32) -> (i32, i32, i32) {
    %c0_i32 = arith.constant 0 : i32
    %c0_i32_0 = arith.constant 0 : i32
    %c0_i32_1 = arith.constant 0 : i32
    return %arg0, %c0_i32, %c0_i32_0 : i32, i32, i32
  }
  func.func @transform_1(%arg0: i32) -> (i32, i32) {
    %c0_i32 = arith.constant 0 : i32
    %c0_i32_0 = arith.constant 0 : i32
    %c0_i32_1 = arith.constant 0 : i32
    return %c0_i32, %c0_i32_0 : i32, i32
  }
  func.func @transform_2(%arg0: i32) -> (i32, i32) {
    %c0_i32 = arith.constant 0 : i32
    %c0_i32_0 = arith.constant 0 : i32
    %c0_i32_1 = arith.constant 0 : i32
    return %c0_i32, %c0_i32_0 : i32, i32
  }
  func.func @transform_3(%arg0: i32) -> (i32, i32, i32) {
    %c0_i32 = arith.constant 0 : i32
    %c0_i32_0 = arith.constant 0 : i32
    %c0_i32_1 = arith.constant 0 : i32
    return %arg0, %c0_i32, %c0_i32_0 : i32, i32, i32
  }
  func.func @transform_4(%arg0: i32) -> (i32, i32, i32) {
    %c0_i32 = arith.constant 0 : i32
    %c0_i32_0 = arith.constant 0 : i32
    %c0_i32_1 = arith.constant 0 : i32
    return %arg0, %c0_i32, %c0_i32_0 : i32, i32, i32
  }
}

module attributes {stable_mosaic.version = 11 : i64} {
  func.func @_linear_kernel(%arg0: i32, %arg1: memref<2x32xf32, #tpu.memory_space<vmem>>, %arg2: memref<32x512xf32, #tpu.memory_space<vmem>>, %arg3: memref<1x512xf32, #tpu.memory_space<vmem>>, %arg4: memref<2x512xf32, #tpu.memory_space<vmem>>) attributes {dimension_semantics = [#tpu.dimension_semantics<arbitrary>], iteration_bounds = array<i64: 1>, scalar_prefetch = 0 : i64, scratch_operands = 0 : i64, tpu.core_type = #tpu.core_type<tc>, window_params = [{pipeline_mode = #tpu.pipeline_mode<synchronous>, transform_indices = @transform_0, window_bounds = array<i64: 2, 32>}, {pipeline_mode = #tpu.pipeline_mode<synchronous>, transform_indices = @transform_1, window_bounds = array<i64: 32, 512>}, {pipeline_mode = #tpu.pipeline_mode<synchronous>, transform_indices = @transform_2, window_bounds = array<i64: 1, 512>}, {pipeline_mode = #tpu.pipeline_mode<synchronous>, transform_indices = @transform_3, window_bounds = array<i64: 2, 512>}]} {
    %c0 = arith.constant 0 : index
    %c0_0 = arith.constant 0 : index
    %0 = vector.load %arg1[%c0, %c0_0] : memref<2x32xf32, #tpu.memory_space<vmem>>, vector<2x32xf32>
    %c0_1 = arith.constant 0 : index
    %c0_2 = arith.constant 0 : index
    %1 = vector.load %arg2[%c0_1, %c0_2] : memref<32x512xf32, #tpu.memory_space<vmem>>, vector<32x512xf32>
    %cst = arith.constant dense<0.000000e+00> : vector<2x512xf32>
    %2 = tpu.matmul %0, %1, %cst {dimension_numbers = #tpu.dot_dimension_numbers<[1], [0], [0], [1], [0, 0, 1, 1], [], []>} : vector<2x32xf32>, vector<32x512xf32>, vector<2x512xf32> -> vector<2x512xf32>
    %c0_3 = arith.constant 0 : index
    %c0_4 = arith.constant 0 : index
    %3 = vector.load %arg3[%c0_3, %c0_4] : memref<1x512xf32, #tpu.memory_space<vmem>>, vector<1x512xf32>
    %4 = vector.broadcast %3 : vector<1x512xf32> to vector<2x512xf32>
    %5 = arith.addf %2, %4 : vector<2x512xf32>
    %c0_5 = arith.constant 0 : index
    %c0_6 = arith.constant 0 : index
    %6 = vector.load %arg4[%c0_5, %c0_6] : memref<2x512xf32, #tpu.memory_space<vmem>>, vector<2x512xf32>
    tpu.vector_store %arg4[%c0_5, %c0_6], %5 {strides = array<i32>} : memref<2x512xf32, #tpu.memory_space<vmem>>, vector<2x512xf32>,
    return
  }
  func.func @transform_0(%arg0: i32) -> (i32, i32) {
    %c0_i32 = arith.constant 0 : i32
    %c0_i32_0 = arith.constant 0 : i32
    %c0_i32_1 = arith.constant 0 : i32
    return %c0_i32, %c0_i32_0 : i32, i32
  }
  func.func @transform_1(%arg0: i32) -> (i32, i32) {
    %c0_i32 = arith.constant 0 : i32
    %c0_i32_0 = arith.constant 0 : i32
    %c0_i32_1 = arith.constant 0 : i32
    return %c0_i32, %c0_i32_0 : i32, i32
  }
  func.func @transform_2(%arg0: i32) -> (i32, i32) {
    %c0_i32 = arith.constant 0 : i32
    %c0_i32_0 = arith.constant 0 : i32
    %c0_i32_1 = arith.constant 0 : i32
    return %c0_i32, %c0_i32_0 : i32, i32
  }
  func.func @transform_3(%arg0: i32) -> (i32, i32) {
    %c0_i32 = arith.constant 0 : i32
    %c0_i32_0 = arith.constant 0 : i32
    %c0_i32_1 = arith.constant 0 : i32
    return %c0_i32, %c0_i32_0 : i32, i32
  }
}

module attributes {stable_mosaic.version = 11 : i64} {
  func.func @_mha_saln_kernel(%arg0: i32, %arg1: memref<1x8x32xf32, #tpu.memory_space<vmem>>, %arg2: memref<2x32x16xf32, #tpu.memory_space<vmem>>, %arg3: memref<2x1x16xf32, #tpu.memory_space<vmem>>, %arg4: memref<2x32x16xf32, #tpu.memory_space<vmem>>, %arg5: memref<2x1x16xf32, #tpu.memory_space<vmem>>, %arg6: memref<2x32x16xf32, #tpu.memory_space<vmem>>, %arg7: memref<2x1x16xf32, #tpu.memory_space<vmem>>, %arg8: memref<2x16x32xf32, #tpu.memory_space<vmem>>, %arg9: memref<1x32xf32, #tpu.memory_space<vmem>>, %arg10: memref<1x1x8xf32, #tpu.memory_space<vmem>>, %arg11: memref<1x1x32xf32, #tpu.memory_space<vmem>>, %arg12: memref<1x1x32xf32, #tpu.memory_space<vmem>>, %arg13: memref<1x8x1xf32, #tpu.memory_space<vmem>>, %arg14: memref<1x8x32xf32, #tpu.memory_space<vmem>>) attributes {dimension_semantics = [#tpu.dimension_semantics<parallel>], iteration_bounds = array<i64: 2>, scalar_prefetch = 0 : i64, scratch_operands = 0 : i64, tpu.core_type = #tpu.core_type<tc>, window_params = [{transform_indices = @transform_0, window_bounds = array<i64: 1, 8, 32>}, {pipeline_mode = #tpu.pipeline_mode<synchronous>, transform_indices = @transform_1, window_bounds = array<i64: 2, 32, 16>}, {pipeline_mode = #tpu.pipeline_mode<synchronous>, transform_indices = @transform_2, window_bounds = array<i64: 2, 1, 16>}, {pipeline_mode = #tpu.pipeline_mode<synchronous>, transform_indices = @transform_3, window_bounds = array<i64: 2, 32, 16>}, {pipeline_mode = #tpu.pipeline_mode<synchronous>, transform_indices = @transform_4, window_bounds = array<i64: 2, 1, 16>}, {pipeline_mode = #tpu.pipeline_mode<synchronous>, transform_indices = @transform_5, window_bounds = array<i64: 2, 32, 16>}, {pipeline_mode = #tpu.pipeline_mode<synchronous>, transform_indices = @transform_6, window_bounds = array<i64: 2, 1, 16>}, {pipeline_mode = #tpu.pipeline_mode<synchronous>, transform_indices = @transform_7, window_bounds = array<i64: 2, 16, 32>}, {pipeline_mode = #tpu.pipeline_mode<synchronous>, transform_indices = @transform_8, window_bounds = array<i64: 1, 32>}, {transform_indices = @transform_9, window_bounds = array<i64: 1, 1, 8>}, {transform_indices = @transform_10, window_bounds = array<i64: 1, 1, 32>}, {transform_indices = @transform_11, window_bounds = array<i64: 1, 1, 32>}, {transform_indices = @transform_12, window_bounds = array<i64: 1, 8, 1>}, {transform_indices = @transform_13, window_bounds = array<i64: 1, 8, 32>}]} {
    %c0 = arith.constant 0 : index
    %c0_0 = arith.constant 0 : index
    %c0_1 = arith.constant 0 : index
    %0 = vector.load %arg1[%c0, %c0_0, %c0_1] : memref<1x8x32xf32, #tpu.memory_space<vmem>>, vector<1x8x32xf32>
    %1 = vector.shape_cast %0 : vector<1x8x32xf32> to vector<8x32xf32>
    %c0_2 = arith.constant 0 : index
    %c0_3 = arith.constant 0 : index
    %c0_4 = arith.constant 0 : index
    %2 = vector.load %arg10[%c0_2, %c0_3, %c0_4] : memref<1x1x8xf32, #tpu.memory_space<vmem>>, vector<1x1x8xf32>
    %3 = vector.shape_cast %2 : vector<1x1x8xf32> to vector<1x8xf32>
    %cst = arith.constant 0.000000e+00 : f32
    %4 = vector.broadcast %cst : f32 to vector<8x32xf32>
    %c0_5 = arith.constant 0 : index
    %c0_6 = arith.constant 0 : index
    %c0_7 = arith.constant 0 : index
    %5 = vector.load %arg2[%c0_5, %c0_6, %c0_7] : memref<2x32x16xf32, #tpu.memory_space<vmem>>, vector<1x32x16xf32>
    %6 = vector.shape_cast %5 : vector<1x32x16xf32> to vector<32x16xf32>
    %cst_8 = arith.constant dense<0.000000e+00> : vector<8x16xf32>
    %7 = tpu.matmul %1, %6, %cst_8 {dimension_numbers = #tpu.dot_dimension_numbers<[1], [0], [0], [1], [0, 0, 1, 1], [], []>} : vector<8x32xf32>, vector<32x16xf32>, vector<8x16xf32> -> vector<8x16xf32>
    %c0_9 = arith.constant 0 : index
    %c0_10 = arith.constant 0 : index
    %c0_11 = arith.constant 0 : index
    %8 = vector.load %arg3[%c0_9, %c0_10, %c0_11] : memref<2x1x16xf32, #tpu.memory_space<vmem>>, vector<1x1x16xf32>
    %9 = vector.shape_cast %8 : vector<1x1x16xf32> to vector<1x16xf32>
    %10 = vector.broadcast %9 : vector<1x16xf32> to vector<8x16xf32>
    %11 = arith.addf %7, %10 : vector<8x16xf32>
    %c0_12 = arith.constant 0 : index
    %c0_13 = arith.constant 0 : index
    %c0_14 = arith.constant 0 : index
    %12 = vector.load %arg4[%c0_12, %c0_13, %c0_14] : memref<2x32x16xf32, #tpu.memory_space<vmem>>, vector<1x32x16xf32>
    %13 = vector.shape_cast %12 : vector<1x32x16xf32> to vector<32x16xf32>
    %cst_15 = arith.constant dense<0.000000e+00> : vector<8x16xf32>
    %14 = tpu.matmul %1, %13, %cst_15 {dimension_numbers = #tpu.dot_dimension_numbers<[1], [0], [0], [1], [0, 0, 1, 1], [], []>} : vector<8x32xf32>, vector<32x16xf32>, vector<8x16xf32> -> vector<8x16xf32>
    %c0_16 = arith.constant 0 : index
    %c0_17 = arith.constant 0 : index
    %c0_18 = arith.constant 0 : index
    %15 = vector.load %arg5[%c0_16, %c0_17, %c0_18] : memref<2x1x16xf32, #tpu.memory_space<vmem>>, vector<1x1x16xf32>
    %16 = vector.shape_cast %15 : vector<1x1x16xf32> to vector<1x16xf32>
    %17 = vector.broadcast %16 : vector<1x16xf32> to vector<8x16xf32>
    %18 = arith.addf %14, %17 : vector<8x16xf32>
    %c0_19 = arith.constant 0 : index
    %c0_20 = arith.constant 0 : index
    %c0_21 = arith.constant 0 : index
    %19 = vector.load %arg6[%c0_19, %c0_20, %c0_21] : memref<2x32x16xf32, #tpu.memory_space<vmem>>, vector<1x32x16xf32>
    %20 = vector.shape_cast %19 : vector<1x32x16xf32> to vector<32x16xf32>
    %cst_22 = arith.constant dense<0.000000e+00> : vector<8x16xf32>
    %21 = tpu.matmul %1, %20, %cst_22 {dimension_numbers = #tpu.dot_dimension_numbers<[1], [0], [0], [1], [0, 0, 1, 1], [], []>} : vector<8x32xf32>, vector<32x16xf32>, vector<8x16xf32> -> vector<8x16xf32>
    %c0_23 = arith.constant 0 : index
    %c0_24 = arith.constant 0 : index
    %c0_25 = arith.constant 0 : index
    %22 = vector.load %arg7[%c0_23, %c0_24, %c0_25] : memref<2x1x16xf32, #tpu.memory_space<vmem>>, vector<1x1x16xf32>
    %23 = vector.shape_cast %22 : vector<1x1x16xf32> to vector<1x16xf32>
    %24 = vector.broadcast %23 : vector<1x16xf32> to vector<8x16xf32>
    %25 = arith.addf %21, %24 : vector<8x16xf32>
    %cst_26 = arith.constant dense<0.000000e+00> : vector<8x8xf32>
    %26 = tpu.matmul %11, %18, %cst_26 {dimension_numbers = #tpu.dot_dimension_numbers<[1], [1], [0], [0], [0, 0, 1, 0], [], []>} : vector<8x16xf32>, vector<8x16xf32>, vector<8x8xf32> -> vector<8x8xf32>
    %cst_27 = arith.constant 2.500000e-01 : f32
    %27 = vector.broadcast %cst_27 : f32 to vector<8x8xf32>
    %28 = arith.mulf %26, %27 : vector<8x8xf32>
    %29 = vector.broadcast %3 : vector<1x8xf32> to vector<8x8xf32>
    %30 = arith.addf %28, %29 : vector<8x8xf32>
    %cst_28 = arith.constant dense<0xFF800000> : vector<8xf32>
    %31 = vector.multi_reduction <maximumf>, %30, %cst_28 [1] : vector<8x8xf32> to vector<8xf32>
    %32 = vector.shape_cast %31 : vector<8xf32> to vector<8x1xf32>
    %33 = vector.broadcast %32 : vector<8x1xf32> to vector<8x8xf32>
    %34 = arith.subf %30, %33 : vector<8x8xf32>
    %35 = math.exp %34 : vector<8x8xf32>
    %cst_29 = arith.constant dense<0.000000e+00> : vector<8xf32>
    %36 = vector.multi_reduction <add>, %35, %cst_29 [1] : vector<8x8xf32> to vector<8xf32>
    %37 = vector.shape_cast %36 : vector<8xf32> to vector<8x1xf32>
    %38 = tpu.reciprocal %37 {approx = true} : vector<8x1xf32> -> vector<8x1xf32>
    %39 = vector.broadcast %38 : vector<8x1xf32> to vector<8x8xf32>
    %40 = arith.mulf %35, %39 : vector<8x8xf32>
    %cst_30 = arith.constant dense<0.000000e+00> : vector<8x16xf32>
    %41 = tpu.matmul %40, %25, %cst_30 {dimension_numbers = #tpu.dot_dimension_numbers<[1], [0], [0], [1], [0, 0, 1, 1], [], []>} : vector<8x8xf32>, vector<8x16xf32>, vector<8x16xf32> -> vector<8x16xf32>
    %c0_31 = arith.constant 0 : index
    %c0_32 = arith.constant 0 : index
    %c0_33 = arith.constant 0 : index
    %42 = vector.load %arg8[%c0_31, %c0_32, %c0_33] : memref<2x16x32xf32, #tpu.memory_space<vmem>>, vector<1x16x32xf32>
    %43 = vector.shape_cast %42 : vector<1x16x32xf32> to vector<16x32xf32>
    %cst_34 = arith.constant dense<0.000000e+00> : vector<8x32xf32>
    %44 = tpu.matmul %41, %43, %cst_34 {dimension_numbers = #tpu.dot_dimension_numbers<[1], [0], [0], [1], [0, 0, 1, 1], [], []>} : vector<8x16xf32>, vector<16x32xf32>, vector<8x32xf32> -> vector<8x32xf32>
    %45 = arith.addf %4, %44 : vector<8x32xf32>
    %c1 = arith.constant 1 : index
    %c0_35 = arith.constant 0 : index
    %c0_36 = arith.constant 0 : index
    %46 = vector.load %arg2[%c1, %c0_35, %c0_36] : memref<2x32x16xf32, #tpu.memory_space<vmem>>, vector<1x32x16xf32>
    %47 = vector.shape_cast %46 : vector<1x32x16xf32> to vector<32x16xf32>
    %cst_37 = arith.constant dense<0.000000e+00> : vector<8x16xf32>
    %48 = tpu.matmul %1, %47, %cst_37 {dimension_numbers = #tpu.dot_dimension_numbers<[1], [0], [0], [1], [0, 0, 1, 1], [], []>} : vector<8x32xf32>, vector<32x16xf32>, vector<8x16xf32> -> vector<8x16xf32>
    %c1_38 = arith.constant 1 : index
    %c0_39 = arith.constant 0 : index
    %c0_40 = arith.constant 0 : index
    %49 = vector.load %arg3[%c1_38, %c0_39, %c0_40] : memref<2x1x16xf32, #tpu.memory_space<vmem>>, vector<1x1x16xf32>
    %50 = vector.shape_cast %49 : vector<1x1x16xf32> to vector<1x16xf32>
    %51 = vector.broadcast %50 : vector<1x16xf32> to vector<8x16xf32>
    %52 = arith.addf %48, %51 : vector<8x16xf32>
    %c1_41 = arith.constant 1 : index
    %c0_42 = arith.constant 0 : index
    %c0_43 = arith.constant 0 : index
    %53 = vector.load %arg4[%c1_41, %c0_42, %c0_43] : memref<2x32x16xf32, #tpu.memory_space<vmem>>, vector<1x32x16xf32>
    %54 = vector.shape_cast %53 : vector<1x32x16xf32> to vector<32x16xf32>
    %cst_44 = arith.constant dense<0.000000e+00> : vector<8x16xf32>
    %55 = tpu.matmul %1, %54, %cst_44 {dimension_numbers = #tpu.dot_dimension_numbers<[1], [0], [0], [1], [0, 0, 1, 1], [], []>} : vector<8x32xf32>, vector<32x16xf32>, vector<8x16xf32> -> vector<8x16xf32>
    %c1_45 = arith.constant 1 : index
    %c0_46 = arith.constant 0 : index
    %c0_47 = arith.constant 0 : index
    %56 = vector.load %arg5[%c1_45, %c0_46, %c0_47] : memref<2x1x16xf32, #tpu.memory_space<vmem>>, vector<1x1x16xf32>
    %57 = vector.shape_cast %56 : vector<1x1x16xf32> to vector<1x16xf32>
    %58 = vector.broadcast %57 : vector<1x16xf32> to vector<8x16xf32>
    %59 = arith.addf %55, %58 : vector<8x16xf32>
    %c1_48 = arith.constant 1 : index
    %c0_49 = arith.constant 0 : index
    %c0_50 = arith.constant 0 : index
    %60 = vector.load %arg6[%c1_48, %c0_49, %c0_50] : memref<2x32x16xf32, #tpu.memory_space<vmem>>, vector<1x32x16xf32>
    %61 = vector.shape_cast %60 : vector<1x32x16xf32> to vector<32x16xf32>
    %cst_51 = arith.constant dense<0.000000e+00> : vector<8x16xf32>
    %62 = tpu.matmul %1, %61, %cst_51 {dimension_numbers = #tpu.dot_dimension_numbers<[1], [0], [0], [1], [0, 0, 1, 1], [], []>} : vector<8x32xf32>, vector<32x16xf32>, vector<8x16xf32> -> vector<8x16xf32>
    %c1_52 = arith.constant 1 : index
    %c0_53 = arith.constant 0 : index
    %c0_54 = arith.constant 0 : index
    %63 = vector.load %arg7[%c1_52, %c0_53, %c0_54] : memref<2x1x16xf32, #tpu.memory_space<vmem>>, vector<1x1x16xf32>
    %64 = vector.shape_cast %63 : vector<1x1x16xf32> to vector<1x16xf32>
    %65 = vector.broadcast %64 : vector<1x16xf32> to vector<8x16xf32>
    %66 = arith.addf %62, %65 : vector<8x16xf32>
    %cst_55 = arith.constant dense<0.000000e+00> : vector<8x8xf32>
    %67 = tpu.matmul %52, %59, %cst_55 {dimension_numbers = #tpu.dot_dimension_numbers<[1], [1], [0], [0], [0, 0, 1, 0], [], []>} : vector<8x16xf32>, vector<8x16xf32>, vector<8x8xf32> -> vector<8x8xf32>
    %cst_56 = arith.constant 2.500000e-01 : f32
    %68 = vector.broadcast %cst_56 : f32 to vector<8x8xf32>
    %69 = arith.mulf %67, %68 : vector<8x8xf32>
    %70 = vector.broadcast %3 : vector<1x8xf32> to vector<8x8xf32>
    %71 = arith.addf %69, %70 : vector<8x8xf32>
    %cst_57 = arith.constant dense<0xFF800000> : vector<8xf32>
    %72 = vector.multi_reduction <maximumf>, %71, %cst_57 [1] : vector<8x8xf32> to vector<8xf32>
    %73 = vector.shape_cast %72 : vector<8xf32> to vector<8x1xf32>
    %74 = vector.broadcast %73 : vector<8x1xf32> to vector<8x8xf32>
    %75 = arith.subf %71, %74 : vector<8x8xf32>
    %76 = math.exp %75 : vector<8x8xf32>
    %cst_58 = arith.constant dense<0.000000e+00> : vector<8xf32>
    %77 = vector.multi_reduction <add>, %76, %cst_58 [1] : vector<8x8xf32> to vector<8xf32>
    %78 = vector.shape_cast %77 : vector<8xf32> to vector<8x1xf32>
    %79 = tpu.reciprocal %78 {approx = true} : vector<8x1xf32> -> vector<8x1xf32>
    %80 = vector.broadcast %79 : vector<8x1xf32> to vector<8x8xf32>
    %81 = arith.mulf %76, %80 : vector<8x8xf32>
    %cst_59 = arith.constant dense<0.000000e+00> : vector<8x16xf32>
    %82 = tpu.matmul %81, %66, %cst_59 {dimension_numbers = #tpu.dot_dimension_numbers<[1], [0], [0], [1], [0, 0, 1, 1], [], []>} : vector<8x8xf32>, vector<8x16xf32>, vector<8x16xf32> -> vector<8x16xf32>
    %c1_60 = arith.constant 1 : index
    %c0_61 = arith.constant 0 : index
    %c0_62 = arith.constant 0 : index
    %83 = vector.load %arg8[%c1_60, %c0_61, %c0_62] : memref<2x16x32xf32, #tpu.memory_space<vmem>>, vector<1x16x32xf32>
    %84 = vector.shape_cast %83 : vector<1x16x32xf32> to vector<16x32xf32>
    %cst_63 = arith.constant dense<0.000000e+00> : vector<8x32xf32>
    %85 = tpu.matmul %82, %84, %cst_63 {dimension_numbers = #tpu.dot_dimension_numbers<[1], [0], [0], [1], [0, 0, 1, 1], [], []>} : vector<8x16xf32>, vector<16x32xf32>, vector<8x32xf32> -> vector<8x32xf32>
    %86 = arith.addf %45, %85 : vector<8x32xf32>
    %c0_64 = arith.constant 0 : index
    %c0_65 = arith.constant 0 : index
    %87 = vector.load %arg9[%c0_64, %c0_65] : memref<1x32xf32, #tpu.memory_space<vmem>>, vector<1x32xf32>
    %88 = vector.broadcast %87 : vector<1x32xf32> to vector<8x32xf32>
    %89 = arith.addf %86, %88 : vector<8x32xf32>
    %90 = arith.addf %89, %1 : vector<8x32xf32>
    %cst_66 = arith.constant dense<0.000000e+00> : vector<8xf32>
    %91 = vector.multi_reduction <add>, %90, %cst_66 [1] : vector<8x32xf32> to vector<8xf32>
    %92 = vector.shape_cast %91 : vector<8xf32> to vector<8x1xf32>
    %cst_67 = arith.constant 3.200000e+01 : f32
    %93 = vector.broadcast %cst_67 : f32 to vector<8x1xf32>
    %94 = arith.divf %92, %93 : vector<8x1xf32>
    %95 = vector.broadcast %94 : vector<8x1xf32> to vector<8x32xf32>
    %96 = arith.subf %90, %95 : vector<8x32xf32>
    %97 = arith.mulf %96, %96 : vector<8x32xf32>
    %cst_68 = arith.constant dense<0.000000e+00> : vector<8xf32>
    %98 = vector.multi_reduction <add>, %97, %cst_68 [1] : vector<8x32xf32> to vector<8xf32>
    %99 = vector.shape_cast %98 : vector<8xf32> to vector<8x1xf32>
    %cst_69 = arith.constant 3.200000e+01 : f32
    %100 = vector.broadcast %cst_69 : f32 to vector<8x1xf32>
    %101 = arith.divf %99, %100 : vector<8x1xf32>
    %102 = vector.broadcast %94 : vector<8x1xf32> to vector<8x32xf32>
    %103 = arith.subf %90, %102 : vector<8x32xf32>
    %cst_70 = arith.constant 9.99999974E-6 : f32
    %104 = vector.broadcast %cst_70 : f32 to vector<8x1xf32>
    %105 = arith.addf %101, %104 : vector<8x1xf32>
    %106 = math.rsqrt %105 : vector<8x1xf32>
    %107 = vector.broadcast %106 : vector<8x1xf32> to vector<8x32xf32>
    %108 = arith.mulf %103, %107 : vector<8x32xf32>
    %c0_71 = arith.constant 0 : index
    %c0_72 = arith.constant 0 : index
    %c0_73 = arith.constant 0 : index
    %109 = vector.load %arg11[%c0_71, %c0_72, %c0_73] : memref<1x1x32xf32, #tpu.memory_space<vmem>>, vector<1x1x32xf32>
    %110 = vector.shape_cast %109 : vector<1x1x32xf32> to vector<1x32xf32>
    %111 = vector.broadcast %110 : vector<1x32xf32> to vector<8x32xf32>
    %112 = arith.mulf %108, %111 : vector<8x32xf32>
    %c0_74 = arith.constant 0 : index
    %c0_75 = arith.constant 0 : index
    %c0_76 = arith.constant 0 : index
    %113 = vector.load %arg12[%c0_74, %c0_75, %c0_76] : memref<1x1x32xf32, #tpu.memory_space<vmem>>, vector<1x1x32xf32>
    %114 = vector.shape_cast %113 : vector<1x1x32xf32> to vector<1x32xf32>
    %115 = vector.broadcast %114 : vector<1x32xf32> to vector<8x32xf32>
    %116 = arith.addf %112, %115 : vector<8x32xf32>
    %c0_77 = arith.constant 0 : index
    %c0_78 = arith.constant 0 : index
    %c0_79 = arith.constant 0 : index
    %117 = vector.load %arg13[%c0_77, %c0_78, %c0_79] : memref<1x8x1xf32, #tpu.memory_space<vmem>>, vector<1x8x1xf32>
    %118 = vector.shape_cast %117 : vector<1x8x1xf32> to vector<8x1xf32>
    %119 = vector.broadcast %118 : vector<8x1xf32> to vector<8x32xf32>
    %120 = arith.mulf %116, %119 : vector<8x32xf32>
    %c0_80 = arith.constant 0 : index
    %c0_81 = arith.constant 0 : index
    %c0_82 = arith.constant 0 : index
    %121 = vector.load %arg14[%c0_80, %c0_81, %c0_82] : memref<1x8x32xf32, #tpu.memory_space<vmem>>, vector<1x8x32xf32>
    %122 = vector.shape_cast %121 : vector<1x8x32xf32> to vector<8x32xf32>
    %123 = vector.shape_cast %120 : vector<8x32xf32> to vector<1x8x32xf32>
    tpu.vector_store %arg14[%c0_80, %c0_81, %c0_82], %123 {strides = array<i32>} : memref<1x8x32xf32, #tpu.memory_space<vmem>>, vector<1x8x32xf32>,
    return
  }
  func.func @transform_0(%arg0: i32) -> (i32, i32, i32) {
    %c0_i32 = arith.constant 0 : i32
    %c0_i32_0 = arith.constant 0 : i32
    %c0_i32_1 = arith.constant 0 : i32
    return %arg0, %c0_i32, %c0_i32_0 : i32, i32, i32
  }
  func.func @transform_1(%arg0: i32) -> (i32, i32, i32) {
    %c0_i32 = arith.constant 0 : i32
    %c0_i32_0 = arith.constant 0 : i32
    %c0_i32_1 = arith.constant 0 : i32
    %c0_i32_2 = arith.constant 0 : i32
    return %c0_i32, %c0_i32_0, %c0_i32_1 : i32, i32, i32
  }
  func.func @transform_2(%arg0: i32) -> (i32, i32, i32) {
    %c0_i32 = arith.constant 0 : i32
    %c0_i32_0 = arith.constant 0 : i32
    %c0_i32_1 = arith.constant 0 : i32
    %c0_i32_2 = arith.constant 0 : i32
    return %c0_i32, %c0_i32_0, %c0_i32_1 : i32, i32, i32
  }
  func.func @transform_3(%arg0: i32) -> (i32, i32, i32) {
    %c0_i32 = arith.constant 0 : i32
    %c0_i32_0 = arith.constant 0 : i32
    %c0_i32_1 = arith.constant 0 : i32
    %c0_i32_2 = arith.constant 0 : i32
    return %c0_i32, %c0_i32_0, %c0_i32_1 : i32, i32, i32
  }
  func.func @transform_4(%arg0: i32) -> (i32, i32, i32) {
    %c0_i32 = arith.constant 0 : i32
    %c0_i32_0 = arith.constant 0 : i32
    %c0_i32_1 = arith.constant 0 : i32
    %c0_i32_2 = arith.constant 0 : i32
    return %c0_i32, %c0_i32_0, %c0_i32_1 : i32, i32, i32
  }
  func.func @transform_5(%arg0: i32) -> (i32, i32, i32) {
    %c0_i32 = arith.constant 0 : i32
    %c0_i32_0 = arith.constant 0 : i32
    %c0_i32_1 = arith.constant 0 : i32
    %c0_i32_2 = arith.constant 0 : i32
    return %c0_i32, %c0_i32_0, %c0_i32_1 : i32, i32, i32
  }
  func.func @transform_6(%arg0: i32) -> (i32, i32, i32) {
    %c0_i32 = arith.constant 0 : i32
    %c0_i32_0 = arith.constant 0 : i32
    %c0_i32_1 = arith.constant 0 : i32
    %c0_i32_2 = arith.constant 0 : i32
    return %c0_i32, %c0_i32_0, %c0_i32_1 : i32, i32, i32
  }
  func.func @transform_7(%arg0: i32) -> (i32, i32, i32) {
    %c0_i32 = arith.constant 0 : i32
    %c0_i32_0 = arith.constant 0 : i32
    %c0_i32_1 = arith.constant 0 : i32
    %c0_i32_2 = arith.constant 0 : i32
    return %c0_i32, %c0_i32_0, %c0_i32_1 : i32, i32, i32
  }
  func.func @transform_8(%arg0: i32) -> (i32, i32) {
    %c0_i32 = arith.constant 0 : i32
    %c0_i32_0 = arith.constant 0 : i32
    %c0_i32_1 = arith.constant 0 : i32
    return %c0_i32, %c0_i32_0 : i32, i32
  }
  func.func @transform_9(%arg0: i32) -> (i32, i32, i32) {
    %c0_i32 = arith.constant 0 : i32
    %c0_i32_0 = arith.constant 0 : i32
    %c0_i32_1 = arith.constant 0 : i32
    return %arg0, %c0_i32, %c0_i32_0 : i32, i32, i32
  }
  func.func @transform_10(%arg0: i32) -> (i32, i32, i32) {
    %c0_i32 = arith.constant 0 : i32
    %c0_i32_0 = arith.constant 0 : i32
    %c0_i32_1 = arith.constant 0 : i32
    return %arg0, %c0_i32, %c0_i32_0 : i32, i32, i32
  }
  func.func @transform_11(%arg0: i32) -> (i32, i32, i32) {
    %c0_i32 = arith.constant 0 : i32
    %c0_i32_0 = arith.constant 0 : i32
    %c0_i32_1 = arith.constant 0 : i32
    return %arg0, %c0_i32, %c0_i32_0 : i32, i32, i32
  }
  func.func @transform_12(%arg0: i32) -> (i32, i32, i32) {
    %c0_i32 = arith.constant 0 : i32
    %c0_i32_0 = arith.constant 0 : i32
    %c0_i32_1 = arith.constant 0 : i32
    return %arg0, %c0_i32, %c0_i32_0 : i32, i32, i32
  }
  func.func @transform_13(%arg0: i32) -> (i32, i32, i32) {
    %c0_i32 = arith.constant 0 : i32
    %c0_i32_0 = arith.constant 0 : i32
    %c0_i32_1 = arith.constant 0 : i32
    return %arg0, %c0_i32, %c0_i32_0 : i32, i32, i32
  }
}

module attributes {stable_mosaic.version = 11 : i64} {
  func.func @_ffn_saln_kernel(%arg0: i32, %arg1: memref<1x10x32xf32, #tpu.memory_space<vmem>>, %arg2: memref<3x32x64xf32, #tpu.memory_space<vmem>>, %arg3: memref<1x64xf32, #tpu.memory_space<vmem>>, %arg4: memref<64x32xf32, #tpu.memory_space<vmem>>, %arg5: memref<1x32xf32, #tpu.memory_space<vmem>>, %arg6: memref<1x1x32xf32, #tpu.memory_space<vmem>>, %arg7: memref<1x1x32xf32, #tpu.memory_space<vmem>>, %arg8: memref<1x8x1xf32, #tpu.memory_space<vmem>>, %arg9: memref<1x8x32xf32, #tpu.memory_space<vmem>>) attributes {dimension_semantics = [#tpu.dimension_semantics<parallel>], iteration_bounds = array<i64: 2>, scalar_prefetch = 0 : i64, scratch_operands = 0 : i64, tpu.core_type = #tpu.core_type<tc>, window_params = [{transform_indices = @transform_0, window_bounds = array<i64: 1, 10, 32>}, {pipeline_mode = #tpu.pipeline_mode<synchronous>, transform_indices = @transform_1, window_bounds = array<i64: 3, 32, 64>}, {pipeline_mode = #tpu.pipeline_mode<synchronous>, transform_indices = @transform_2, window_bounds = array<i64: 1, 64>}, {pipeline_mode = #tpu.pipeline_mode<synchronous>, transform_indices = @transform_3, window_bounds = array<i64: 64, 32>}, {pipeline_mode = #tpu.pipeline_mode<synchronous>, transform_indices = @transform_4, window_bounds = array<i64: 1, 32>}, {transform_indices = @transform_5, window_bounds = array<i64: 1, 1, 32>}, {transform_indices = @transform_6, window_bounds = array<i64: 1, 1, 32>}, {transform_indices = @transform_7, window_bounds = array<i64: 1, 8, 1>}, {transform_indices = @transform_8, window_bounds = array<i64: 1, 8, 32>}]} {
    %c0 = arith.constant 0 : index
    %c0_0 = arith.constant 0 : index
    %c0_1 = arith.constant 0 : index
    %0 = vector.load %arg1[%c0, %c0_0, %c0_1] : memref<1x10x32xf32, #tpu.memory_space<vmem>>, vector<1x10x32xf32>
    %1 = vector.shape_cast %0 : vector<1x10x32xf32> to vector<10x32xf32>
    %2 = vector.extract_strided_slice %1 {offsets = [1, 0], sizes = [8, 32], strides = [1, 1]} : vector<10x32xf32> to vector<8x32xf32>
    %cst = arith.constant 0.000000e+00 : f32
    %3 = vector.broadcast %cst : f32 to vector<8x64xf32>
    %4 = vector.extract_strided_slice %1 {offsets = [0, 0], sizes = [8, 32], strides = [1, 1]} : vector<10x32xf32> to vector<8x32xf32>
    %c0_2 = arith.constant 0 : index
    %c0_3 = arith.constant 0 : index
    %c0_4 = arith.constant 0 : index
    %5 = vector.load %arg2[%c0_2, %c0_3, %c0_4] : memref<3x32x64xf32, #tpu.memory_space<vmem>>, vector<1x32x64xf32>
    %6 = vector.shape_cast %5 : vector<1x32x64xf32> to vector<32x64xf32>
    %cst_5 = arith.constant dense<0.000000e+00> : vector<8x64xf32>
    %7 = tpu.matmul %4, %6, %cst_5 {dimension_numbers = #tpu.dot_dimension_numbers<[1], [0], [0], [1], [0, 0, 1, 1], [], []>} : vector<8x32xf32>, vector<32x64xf32>, vector<8x64xf32> -> vector<8x64xf32>
    %8 = arith.addf %3, %7 : vector<8x64xf32>
    %9 = vector.extract_strided_slice %1 {offsets = [1, 0], sizes = [8, 32], strides = [1, 1]} : vector<10x32xf32> to vector<8x32xf32>
    %c1 = arith.constant 1 : index
    %c0_6 = arith.constant 0 : index
    %c0_7 = arith.constant 0 : index
    %10 = vector.load %arg2[%c1, %c0_6, %c0_7] : memref<3x32x64xf32, #tpu.memory_space<vmem>>, vector<1x32x64xf32>
    %11 = vector.shape_cast %10 : vector<1x32x64xf32> to vector<32x64xf32>
    %cst_8 = arith.constant dense<0.000000e+00> : vector<8x64xf32>
    %12 = tpu.matmul %9, %11, %cst_8 {dimension_numbers = #tpu.dot_dimension_numbers<[1], [0], [0], [1], [0, 0, 1, 1], [], []>} : vector<8x32xf32>, vector<32x64xf32>, vector<8x64xf32> -> vector<8x64xf32>
    %13 = arith.addf %8, %12 : vector<8x64xf32>
    %14 = vector.extract_strided_slice %1 {offsets = [2, 0], sizes = [8, 32], strides = [1, 1]} : vector<10x32xf32> to vector<8x32xf32>
    %c2 = arith.constant 2 : index
    %c0_9 = arith.constant 0 : index
    %c0_10 = arith.constant 0 : index
    %15 = vector.load %arg2[%c2, %c0_9, %c0_10] : memref<3x32x64xf32, #tpu.memory_space<vmem>>, vector<1x32x64xf32>
    %16 = vector.shape_cast %15 : vector<1x32x64xf32> to vector<32x64xf32>
    %cst_11 = arith.constant dense<0.000000e+00> : vector<8x64xf32>
    %17 = tpu.matmul %14, %16, %cst_11 {dimension_numbers = #tpu.dot_dimension_numbers<[1], [0], [0], [1], [0, 0, 1, 1], [], []>} : vector<8x32xf32>, vector<32x64xf32>, vector<8x64xf32> -> vector<8x64xf32>
    %18 = arith.addf %13, %17 : vector<8x64xf32>
    %c0_12 = arith.constant 0 : index
    %c0_13 = arith.constant 0 : index
    %19 = vector.load %arg3[%c0_12, %c0_13] : memref<1x64xf32, #tpu.memory_space<vmem>>, vector<1x64xf32>
    %20 = vector.broadcast %19 : vector<1x64xf32> to vector<8x64xf32>
    %21 = arith.addf %18, %20 : vector<8x64xf32>
    %cst_14 = arith.constant 0.000000e+00 : f32
    %22 = vector.broadcast %cst_14 : f32 to vector<8x64xf32>
    %23 = arith.maximumf %21, %22 : vector<8x64xf32>
    %c0_15 = arith.constant 0 : index
    %c0_16 = arith.constant 0 : index
    %24 = vector.load %arg4[%c0_15, %c0_16] : memref<64x32xf32, #tpu.memory_space<vmem>>, vector<64x32xf32>
    %cst_17 = arith.constant dense<0.000000e+00> : vector<8x32xf32>
    %25 = tpu.matmul %23, %24, %cst_17 {dimension_numbers = #tpu.dot_dimension_numbers<[1], [0], [0], [1], [0, 0, 1, 1], [], []>} : vector<8x64xf32>, vector<64x32xf32>, vector<8x32xf32> -> vector<8x32xf32>
    %c0_18 = arith.constant 0 : index
    %c0_19 = arith.constant 0 : index
    %26 = vector.load %arg5[%c0_18, %c0_19] : memref<1x32xf32, #tpu.memory_space<vmem>>, vector<1x32xf32>
    %27 = vector.broadcast %26 : vector<1x32xf32> to vector<8x32xf32>
    %28 = arith.addf %25, %27 : vector<8x32xf32>
    %29 = arith.addf %2, %28 : vector<8x32xf32>
    %cst_20 = arith.constant dense<0.000000e+00> : vector<8xf32>
    %30 = vector.multi_reduction <add>, %29, %cst_20 [1] : vector<8x32xf32> to vector<8xf32>
    %31 = vector.shape_cast %30 : vector<8xf32> to vector<8x1xf32>
    %cst_21 = arith.constant 3.200000e+01 : f32
    %32 = vector.broadcast %cst_21 : f32 to vector<8x1xf32>
    %33 = arith.divf %31, %32 : vector<8x1xf32>
    %34 = vector.broadcast %33 : vector<8x1xf32> to vector<8x32xf32>
    %35 = arith.subf %29, %34 : vector<8x32xf32>
    %36 = arith.mulf %35, %35 : vector<8x32xf32>
    %cst_22 = arith.constant dense<0.000000e+00> : vector<8xf32>
    %37 = vector.multi_reduction <add>, %36, %cst_22 [1] : vector<8x32xf32> to vector<8xf32>
    %38 = vector.shape_cast %37 : vector<8xf32> to vector<8x1xf32>
    %cst_23 = arith.constant 3.200000e+01 : f32
    %39 = vector.broadcast %cst_23 : f32 to vector<8x1xf32>
    %40 = arith.divf %38, %39 : vector<8x1xf32>
    %41 = vector.broadcast %33 : vector<8x1xf32> to vector<8x32xf32>
    %42 = arith.subf %29, %41 : vector<8x32xf32>
    %cst_24 = arith.constant 9.99999974E-6 : f32
    %43 = vector.broadcast %cst_24 : f32 to vector<8x1xf32>
    %44 = arith.addf %40, %43 : vector<8x1xf32>
    %45 = math.rsqrt %44 : vector<8x1xf32>
    %46 = vector.broadcast %45 : vector<8x1xf32> to vector<8x32xf32>
    %47 = arith.mulf %42, %46 : vector<8x32xf32>
    %c0_25 = arith.constant 0 : index
    %c0_26 = arith.constant 0 : index
    %c0_27 = arith.constant 0 : index
    %48 = vector.load %arg6[%c0_25, %c0_26, %c0_27] : memref<1x1x32xf32, #tpu.memory_space<vmem>>, vector<1x1x32xf32>
    %49 = vector.shape_cast %48 : vector<1x1x32xf32> to vector<1x32xf32>
    %50 = vector.broadcast %49 : vector<1x32xf32> to vector<8x32xf32>
    %51 = arith.mulf %47, %50 : vector<8x32xf32>
    %c0_28 = arith.constant 0 : index
    %c0_29 = arith.constant 0 : index
    %c0_30 = arith.constant 0 : index
    %52 = vector.load %arg7[%c0_28, %c0_29, %c0_30] : memref<1x1x32xf32, #tpu.memory_space<vmem>>, vector<1x1x32xf32>
    %53 = vector.shape_cast %52 : vector<1x1x32xf32> to vector<1x32xf32>
    %54 = vector.broadcast %53 : vector<1x32xf32> to vector<8x32xf32>
    %55 = arith.addf %51, %54 : vector<8x32xf32>
    %c0_31 = arith.constant 0 : index
    %c0_32 = arith.constant 0 : index
    %c0_33 = arith.constant 0 : index
    %56 = vector.load %arg8[%c0_31, %c0_32, %c0_33] : memref<1x8x1xf32, #tpu.memory_space<vmem>>, vector<1x8x1xf32>
    %57 = vector.shape_cast %56 : vector<1x8x1xf32> to vector<8x1xf32>
    %58 = vector.broadcast %57 : vector<8x1xf32> to vector<8x32xf32>
    %59 = arith.mulf %55, %58 : vector<8x32xf32>
    %c0_34 = arith.constant 0 : index
    %c0_35 = arith.constant 0 : index
    %c0_36 = arith.constant 0 : index
    %60 = vector.load %arg9[%c0_34, %c0_35, %c0_36] : memref<1x8x32xf32, #tpu.memory_space<vmem>>, vector<1x8x32xf32>
    %61 = vector.shape_cast %60 : vector<1x8x32xf32> to vector<8x32xf32>
    %62 = vector.shape_cast %59 : vector<8x32xf32> to vector<1x8x32xf32>
    tpu.vector_store %arg9[%c0_34, %c0_35, %c0_36], %62 {strides = array<i32>} : memref<1x8x32xf32, #tpu.memory_space<vmem>>, vector<1x8x32xf32>,
    return
  }
  func.func @transform_0(%arg0: i32) -> (i32, i32, i32) {
    %c0_i32 = arith.constant 0 : i32
    %c0_i32_0 = arith.constant 0 : i32
    %c0_i32_1 = arith.constant 0 : i32
    return %arg0, %c0_i32, %c0_i32_0 : i32, i32, i32
  }
  func.func @transform_1(%arg0: i32) -> (i32, i32, i32) {
    %c0_i32 = arith.constant 0 : i32
    %c0_i32_0 = arith.constant 0 : i32
    %c0_i32_1 = arith.constant 0 : i32
    %c0_i32_2 = arith.constant 0 : i32
    return %c0_i32, %c0_i32_0, %c0_i32_1 : i32, i32, i32
  }
  func.func @transform_2(%arg0: i32) -> (i32, i32) {
    %c0_i32 = arith.constant 0 : i32
    %c0_i32_0 = arith.constant 0 : i32
    %c0_i32_1 = arith.constant 0 : i32
    return %c0_i32, %c0_i32_0 : i32, i32
  }
  func.func @transform_3(%arg0: i32) -> (i32, i32) {
    %c0_i32 = arith.constant 0 : i32
    %c0_i32_0 = arith.constant 0 : i32
    %c0_i32_1 = arith.constant 0 : i32
    return %c0_i32, %c0_i32_0 : i32, i32
  }
  func.func @transform_4(%arg0: i32) -> (i32, i32) {
    %c0_i32 = arith.constant 0 : i32
    %c0_i32_0 = arith.constant 0 : i32
    %c0_i32_1 = arith.constant 0 : i32
    return %c0_i32, %c0_i32_0 : i32, i32
  }
  func.func @transform_5(%arg0: i32) -> (i32, i32, i32) {
    %c0_i32 = arith.constant 0 : i32
    %c0_i32_0 = arith.constant 0 : i32
    %c0_i32_1 = arith.constant 0 : i32
    return %arg0, %c0_i32, %c0_i32_0 : i32, i32, i32
  }
  func.func @transform_6(%arg0: i32) -> (i32, i32, i32) {
    %c0_i32 = arith.constant 0 : i32
    %c0_i32_0 = arith.constant 0 : i32
    %c0_i32_1 = arith.constant 0 : i32
    return %arg0, %c0_i32, %c0_i32_0 : i32, i32, i32
  }
  func.func @transform_7(%arg0: i32) -> (i32, i32, i32) {
    %c0_i32 = arith.constant 0 : i32
    %c0_i32_0 = arith.constant 0 : i32
    %c0_i32_1 = arith.constant 0 : i32
    return %arg0, %c0_i32, %c0_i32_0 : i32, i32, i32
  }
  func.func @transform_8(%arg0: i32) -> (i32, i32, i32) {
    %c0_i32 = arith.constant 0 : i32
    %c0_i32_0 = arith.constant 0 : i32
    %c0_i32_1 = arith.constant 0 : i32
    return %arg0, %c0_i32, %c0_i32_0 : i32, i32, i32
  }
}

module attributes {stable_mosaic.version = 11 : i64} {
  func.func @_var_pred_kernel(%arg0: i32, %arg1: memref<1x12x32xf32, #tpu.memory_space<vmem>>, %arg2: memref<6x32x32xf32, #tpu.memory_space<vmem>>, %arg3: memref<2x1x32xf32, #tpu.memory_space<vmem>>, %arg4: memref<2x1x32xf32, #tpu.memory_space<vmem>>, %arg5: memref<2x1x32xf32, #tpu.memory_space<vmem>>, %arg6: memref<6x32x32xf32, #tpu.memory_space<vmem>>, %arg7: memref<2x1x32xf32, #tpu.memory_space<vmem>>, %arg8: memref<2x1x32xf32, #tpu.memory_space<vmem>>, %arg9: memref<2x1x32xf32, #tpu.memory_space<vmem>>, %arg10: memref<2x1x32xf32, #tpu.memory_space<vmem>>, %arg11: memref<2x1x1xf32, #tpu.memory_space<vmem>>, %arg12: memref<1x8x1xf32, #tpu.memory_space<vmem>>, %arg13: memref<1x8x2xf32, #tpu.memory_space<vmem>>) attributes {dimension_semantics = [#tpu.dimension_semantics<parallel>], iteration_bounds = array<i64: 2>, scalar_prefetch = 0 : i64, scratch_operands = 0 : i64, tpu.core_type = #tpu.core_type<tc>, window_params = [{transform_indices = @transform_0, window_bounds = array<i64: 1, 12, 32>}, {pipeline_mode = #tpu.pipeline_mode<synchronous>, transform_indices = @transform_1, window_bounds = array<i64: 6, 32, 32>}, {pipeline_mode = #tpu.pipeline_mode<synchronous>, transform_indices = @transform_2, window_bounds = array<i64: 2, 1, 32>}, {pipeline_mode = #tpu.pipeline_mode<synchronous>, transform_indices = @transform_3, window_bounds = array<i64: 2, 1, 32>}, {pipeline_mode = #tpu.pipeline_mode<synchronous>, transform_indices = @transform_4, window_bounds = array<i64: 2, 1, 32>}, {pipeline_mode = #tpu.pipeline_mode<synchronous>, transform_indices = @transform_5, window_bounds = array<i64: 6, 32, 32>}, {pipeline_mode = #tpu.pipeline_mode<synchronous>, transform_indices = @transform_6, window_bounds = array<i64: 2, 1, 32>}, {pipeline_mode = #tpu.pipeline_mode<synchronous>, transform_indices = @transform_7, window_bounds = array<i64: 2, 1, 32>}, {pipeline_mode = #tpu.pipeline_mode<synchronous>, transform_indices = @transform_8, window_bounds = array<i64: 2, 1, 32>}, {pipeline_mode = #tpu.pipeline_mode<synchronous>, transform_indices = @transform_9, window_bounds = array<i64: 2, 1, 32>}, {pipeline_mode = #tpu.pipeline_mode<synchronous>, transform_indices = @transform_10, window_bounds = array<i64: 2, 1, 1>}, {transform_indices = @transform_11, window_bounds = array<i64: 1, 8, 1>}, {transform_indices = @transform_12, window_bounds = array<i64: 1, 8, 2>}]} {
    %c0 = arith.constant 0 : index
    %c0_0 = arith.constant 0 : index
    %c0_1 = arith.constant 0 : index
    %0 = vector.load %arg1[%c0, %c0_0, %c0_1] : memref<1x12x32xf32, #tpu.memory_space<vmem>>, vector<1x12x32xf32>
    %1 = vector.shape_cast %0 : vector<1x12x32xf32> to vector<12x32xf32>
    %c0_2 = arith.constant 0 : index
    %c0_3 = arith.constant 0 : index
    %c0_4 = arith.constant 0 : index
    %2 = vector.load %arg12[%c0_2, %c0_3, %c0_4] : memref<1x8x1xf32, #tpu.memory_space<vmem>>, vector<1x8x1xf32>
    %3 = vector.shape_cast %2 : vector<1x8x1xf32> to vector<8x1xf32>
    %4 = tpu.iota {dimensions = array<i32: 0>} : vector<10x1xi32>
    %c1_i32 = arith.constant 1 : i32
    %5 = vector.broadcast %c1_i32 : i32 to vector<10x1xi32>
    %6 = arith.cmpi sge, %4, %5 : vector<10x1xi32>
    %c9_i32 = arith.constant 9 : i32
    %7 = vector.broadcast %c9_i32 : i32 to vector<10x1xi32>
    %8 = arith.cmpi slt, %4, %7 : vector<10x1xi32>
    %9 = arith.andi %6, %8 : vector<10x1xi1>
    %10 = arith.extui %9 : vector<10x1xi1> to vector<10x1xi32>
    %11 = arith.sitofp %10 : vector<10x1xi32> to vector<10x1xf32>
    %cst = arith.constant 0.000000e+00 : f32
    %12 = vector.broadcast %cst : f32 to vector<10x32xf32>
    %13 = vector.extract_strided_slice %1 {offsets = [0, 0], sizes = [10, 32], strides = [1, 1]} : vector<12x32xf32> to vector<10x32xf32>
    %c0_5 = arith.constant 0 : index
    %c0_6 = arith.constant 0 : index
    %c0_7 = arith.constant 0 : index
    %14 = vector.load %arg2[%c0_5, %c0_6, %c0_7] : memref<6x32x32xf32, #tpu.memory_space<vmem>>, vector<1x32x32xf32>
    %15 = vector.shape_cast %14 : vector<1x32x32xf32> to vector<32x32xf32>
    %cst_8 = arith.constant dense<0.000000e+00> : vector<10x32xf32>
    %16 = tpu.matmul %13, %15, %cst_8 {dimension_numbers = #tpu.dot_dimension_numbers<[1], [0], [0], [1], [0, 0, 1, 1], [], []>} : vector<10x32xf32>, vector<32x32xf32>, vector<10x32xf32> -> vector<10x32xf32>
    %17 = arith.addf %12, %16 : vector<10x32xf32>
    %18 = vector.extract_strided_slice %1 {offsets = [1, 0], sizes = [10, 32], strides = [1, 1]} : vector<12x32xf32> to vector<10x32xf32>
    %c1 = arith.constant 1 : index
    %c0_9 = arith.constant 0 : index
    %c0_10 = arith.constant 0 : index
    %19 = vector.load %arg2[%c1, %c0_9, %c0_10] : memref<6x32x32xf32, #tpu.memory_space<vmem>>, vector<1x32x32xf32>
    %20 = vector.shape_cast %19 : vector<1x32x32xf32> to vector<32x32xf32>
    %cst_11 = arith.constant dense<0.000000e+00> : vector<10x32xf32>
    %21 = tpu.matmul %18, %20, %cst_11 {dimension_numbers = #tpu.dot_dimension_numbers<[1], [0], [0], [1], [0, 0, 1, 1], [], []>} : vector<10x32xf32>, vector<32x32xf32>, vector<10x32xf32> -> vector<10x32xf32>
    %22 = arith.addf %17, %21 : vector<10x32xf32>
    %23 = vector.extract_strided_slice %1 {offsets = [2, 0], sizes = [10, 32], strides = [1, 1]} : vector<12x32xf32> to vector<10x32xf32>
    %c2 = arith.constant 2 : index
    %c0_12 = arith.constant 0 : index
    %c0_13 = arith.constant 0 : index
    %24 = vector.load %arg2[%c2, %c0_12, %c0_13] : memref<6x32x32xf32, #tpu.memory_space<vmem>>, vector<1x32x32xf32>
    %25 = vector.shape_cast %24 : vector<1x32x32xf32> to vector<32x32xf32>
    %cst_14 = arith.constant dense<0.000000e+00> : vector<10x32xf32>
    %26 = tpu.matmul %23, %25, %cst_14 {dimension_numbers = #tpu.dot_dimension_numbers<[1], [0], [0], [1], [0, 0, 1, 1], [], []>} : vector<10x32xf32>, vector<32x32xf32>, vector<10x32xf32> -> vector<10x32xf32>
    %27 = arith.addf %22, %26 : vector<10x32xf32>
    %c0_15 = arith.constant 0 : index
    %c0_16 = arith.constant 0 : index
    %c0_17 = arith.constant 0 : index
    %28 = vector.load %arg3[%c0_15, %c0_16, %c0_17] : memref<2x1x32xf32, #tpu.memory_space<vmem>>, vector<1x1x32xf32>
    %29 = vector.shape_cast %28 : vector<1x1x32xf32> to vector<1x32xf32>
    %30 = vector.broadcast %29 : vector<1x32xf32> to vector<10x32xf32>
    %31 = arith.addf %27, %30 : vector<10x32xf32>
    %cst_18 = arith.constant 0.000000e+00 : f32
    %32 = vector.broadcast %cst_18 : f32 to vector<10x32xf32>
    %33 = arith.maximumf %31, %32 : vector<10x32xf32>
    %cst_19 = arith.constant dense<0.000000e+00> : vector<10xf32>
    %34 = vector.multi_reduction <add>, %33, %cst_19 [1] : vector<10x32xf32> to vector<10xf32>
    %35 = vector.shape_cast %34 : vector<10xf32> to vector<10x1xf32>
    %cst_20 = arith.constant 3.200000e+01 : f32
    %36 = vector.broadcast %cst_20 : f32 to vector<10x1xf32>
    %37 = arith.divf %35, %36 : vector<10x1xf32>
    %38 = vector.broadcast %37 : vector<10x1xf32> to vector<10x32xf32>
    %39 = arith.subf %33, %38 : vector<10x32xf32>
    %40 = arith.mulf %39, %39 : vector<10x32xf32>
    %cst_21 = arith.constant dense<0.000000e+00> : vector<10xf32>
    %41 = vector.multi_reduction <add>, %40, %cst_21 [1] : vector<10x32xf32> to vector<10xf32>
    %42 = vector.shape_cast %41 : vector<10xf32> to vector<10x1xf32>
    %cst_22 = arith.constant 3.200000e+01 : f32
    %43 = vector.broadcast %cst_22 : f32 to vector<10x1xf32>
    %44 = arith.divf %42, %43 : vector<10x1xf32>
    %45 = vector.broadcast %37 : vector<10x1xf32> to vector<10x32xf32>
    %46 = arith.subf %33, %45 : vector<10x32xf32>
    %cst_23 = arith.constant 9.99999974E-6 : f32
    %47 = vector.broadcast %cst_23 : f32 to vector<10x1xf32>
    %48 = arith.addf %44, %47 : vector<10x1xf32>
    %49 = math.rsqrt %48 : vector<10x1xf32>
    %50 = vector.broadcast %49 : vector<10x1xf32> to vector<10x32xf32>
    %51 = arith.mulf %46, %50 : vector<10x32xf32>
    %c0_24 = arith.constant 0 : index
    %c0_25 = arith.constant 0 : index
    %c0_26 = arith.constant 0 : index
    %52 = vector.load %arg4[%c0_24, %c0_25, %c0_26] : memref<2x1x32xf32, #tpu.memory_space<vmem>>, vector<1x1x32xf32>
    %53 = vector.shape_cast %52 : vector<1x1x32xf32> to vector<1x32xf32>
    %54 = vector.broadcast %53 : vector<1x32xf32> to vector<10x32xf32>
    %55 = arith.mulf %51, %54 : vector<10x32xf32>
    %c0_27 = arith.constant 0 : index
    %c0_28 = arith.constant 0 : index
    %c0_29 = arith.constant 0 : index
    %56 = vector.load %arg5[%c0_27, %c0_28, %c0_29] : memref<2x1x32xf32, #tpu.memory_space<vmem>>, vector<1x1x32xf32>
    %57 = vector.shape_cast %56 : vector<1x1x32xf32> to vector<1x32xf32>
    %58 = vector.broadcast %57 : vector<1x32xf32> to vector<10x32xf32>
    %59 = arith.addf %55, %58 : vector<10x32xf32>
    %60 = vector.broadcast %11 : vector<10x1xf32> to vector<10x32xf32>
    %61 = arith.mulf %59, %60 : vector<10x32xf32>
    %cst_30 = arith.constant 0.000000e+00 : f32
    %62 = vector.broadcast %cst_30 : f32 to vector<8x32xf32>
    %63 = vector.extract_strided_slice %61 {offsets = [0, 0], sizes = [8, 32], strides = [1, 1]} : vector<10x32xf32> to vector<8x32xf32>
    %c0_31 = arith.constant 0 : index
    %c0_32 = arith.constant 0 : index
    %c0_33 = arith.constant 0 : index
    %64 = vector.load %arg6[%c0_31, %c0_32, %c0_33] : memref<6x32x32xf32, #tpu.memory_space<vmem>>, vector<1x32x32xf32>
    %65 = vector.shape_cast %64 : vector<1x32x32xf32> to vector<32x32xf32>
    %cst_34 = arith.constant dense<0.000000e+00> : vector<8x32xf32>
    %66 = tpu.matmul %63, %65, %cst_34 {dimension_numbers = #tpu.dot_dimension_numbers<[1], [0], [0], [1], [0, 0, 1, 1], [], []>} : vector<8x32xf32>, vector<32x32xf32>, vector<8x32xf32> -> vector<8x32xf32>
    %67 = arith.addf %62, %66 : vector<8x32xf32>
    %68 = vector.extract_strided_slice %61 {offsets = [1, 0], sizes = [8, 32], strides = [1, 1]} : vector<10x32xf32> to vector<8x32xf32>
    %c1_35 = arith.constant 1 : index
    %c0_36 = arith.constant 0 : index
    %c0_37 = arith.constant 0 : index
    %69 = vector.load %arg6[%c1_35, %c0_36, %c0_37] : memref<6x32x32xf32, #tpu.memory_space<vmem>>, vector<1x32x32xf32>
    %70 = vector.shape_cast %69 : vector<1x32x32xf32> to vector<32x32xf32>
    %cst_38 = arith.constant dense<0.000000e+00> : vector<8x32xf32>
    %71 = tpu.matmul %68, %70, %cst_38 {dimension_numbers = #tpu.dot_dimension_numbers<[1], [0], [0], [1], [0, 0, 1, 1], [], []>} : vector<8x32xf32>, vector<32x32xf32>, vector<8x32xf32> -> vector<8x32xf32>
    %72 = arith.addf %67, %71 : vector<8x32xf32>
    %73 = vector.extract_strided_slice %61 {offsets = [2, 0], sizes = [8, 32], strides = [1, 1]} : vector<10x32xf32> to vector<8x32xf32>
    %c2_39 = arith.constant 2 : index
    %c0_40 = arith.constant 0 : index
    %c0_41 = arith.constant 0 : index
    %74 = vector.load %arg6[%c2_39, %c0_40, %c0_41] : memref<6x32x32xf32, #tpu.memory_space<vmem>>, vector<1x32x32xf32>
    %75 = vector.shape_cast %74 : vector<1x32x32xf32> to vector<32x32xf32>
    %cst_42 = arith.constant dense<0.000000e+00> : vector<8x32xf32>
    %76 = tpu.matmul %73, %75, %cst_42 {dimension_numbers = #tpu.dot_dimension_numbers<[1], [0], [0], [1], [0, 0, 1, 1], [], []>} : vector<8x32xf32>, vector<32x32xf32>, vector<8x32xf32> -> vector<8x32xf32>
    %77 = arith.addf %72, %76 : vector<8x32xf32>
    %c0_43 = arith.constant 0 : index
    %c0_44 = arith.constant 0 : index
    %c0_45 = arith.constant 0 : index
    %78 = vector.load %arg7[%c0_43, %c0_44, %c0_45] : memref<2x1x32xf32, #tpu.memory_space<vmem>>, vector<1x1x32xf32>
    %79 = vector.shape_cast %78 : vector<1x1x32xf32> to vector<1x32xf32>
    %80 = vector.broadcast %79 : vector<1x32xf32> to vector<8x32xf32>
    %81 = arith.addf %77, %80 : vector<8x32xf32>
    %cst_46 = arith.constant 0.000000e+00 : f32
    %82 = vector.broadcast %cst_46 : f32 to vector<8x32xf32>
    %83 = arith.maximumf %81, %82 : vector<8x32xf32>
    %cst_47 = arith.constant dense<0.000000e+00> : vector<8xf32>
    %84 = vector.multi_reduction <add>, %83, %cst_47 [1] : vector<8x32xf32> to vector<8xf32>
    %85 = vector.shape_cast %84 : vector<8xf32> to vector<8x1xf32>
    %cst_48 = arith.constant 3.200000e+01 : f32
    %86 = vector.broadcast %cst_48 : f32 to vector<8x1xf32>
    %87 = arith.divf %85, %86 : vector<8x1xf32>
    %88 = vector.broadcast %87 : vector<8x1xf32> to vector<8x32xf32>
    %89 = arith.subf %83, %88 : vector<8x32xf32>
    %90 = arith.mulf %89, %89 : vector<8x32xf32>
    %cst_49 = arith.constant dense<0.000000e+00> : vector<8xf32>
    %91 = vector.multi_reduction <add>, %90, %cst_49 [1] : vector<8x32xf32> to vector<8xf32>
    %92 = vector.shape_cast %91 : vector<8xf32> to vector<8x1xf32>
    %cst_50 = arith.constant 3.200000e+01 : f32
    %93 = vector.broadcast %cst_50 : f32 to vector<8x1xf32>
    %94 = arith.divf %92, %93 : vector<8x1xf32>
    %95 = vector.broadcast %87 : vector<8x1xf32> to vector<8x32xf32>
    %96 = arith.subf %83, %95 : vector<8x32xf32>
    %cst_51 = arith.constant 9.99999974E-6 : f32
    %97 = vector.broadcast %cst_51 : f32 to vector<8x1xf32>
    %98 = arith.addf %94, %97 : vector<8x1xf32>
    %99 = math.rsqrt %98 : vector<8x1xf32>
    %100 = vector.broadcast %99 : vector<8x1xf32> to vector<8x32xf32>
    %101 = arith.mulf %96, %100 : vector<8x32xf32>
    %c0_52 = arith.constant 0 : index
    %c0_53 = arith.constant 0 : index
    %c0_54 = arith.constant 0 : index
    %102 = vector.load %arg8[%c0_52, %c0_53, %c0_54] : memref<2x1x32xf32, #tpu.memory_space<vmem>>, vector<1x1x32xf32>
    %103 = vector.shape_cast %102 : vector<1x1x32xf32> to vector<1x32xf32>
    %104 = vector.broadcast %103 : vector<1x32xf32> to vector<8x32xf32>
    %105 = arith.mulf %101, %104 : vector<8x32xf32>
    %c0_55 = arith.constant 0 : index
    %c0_56 = arith.constant 0 : index
    %c0_57 = arith.constant 0 : index
    %106 = vector.load %arg9[%c0_55, %c0_56, %c0_57] : memref<2x1x32xf32, #tpu.memory_space<vmem>>, vector<1x1x32xf32>
    %107 = vector.shape_cast %106 : vector<1x1x32xf32> to vector<1x32xf32>
    %108 = vector.broadcast %107 : vector<1x32xf32> to vector<8x32xf32>
    %109 = arith.addf %105, %108 : vector<8x32xf32>
    %c0_58 = arith.constant 0 : index
    %c0_59 = arith.constant 0 : index
    %c0_60 = arith.constant 0 : index
    %110 = vector.load %arg10[%c0_58, %c0_59, %c0_60] : memref<2x1x32xf32, #tpu.memory_space<vmem>>, vector<1x1x32xf32>
    %111 = vector.shape_cast %110 : vector<1x1x32xf32> to vector<1x32xf32>
    %112 = vector.broadcast %111 : vector<1x32xf32> to vector<8x32xf32>
    %113 = arith.mulf %109, %112 : vector<8x32xf32>
    %cst_61 = arith.constant dense<0.000000e+00> : vector<8xf32>
    %114 = vector.multi_reduction <add>, %113, %cst_61 [1] : vector<8x32xf32> to vector<8xf32>
    %115 = vector.shape_cast %114 : vector<8xf32> to vector<8x1xf32>
    %c0_62 = arith.constant 0 : index
    %c0_63 = arith.constant 0 : index
    %c0_64 = arith.constant 0 : index
    %116 = vector.load %arg11[%c0_62, %c0_63, %c0_64] : memref<2x1x1xf32, #tpu.memory_space<vmem>>, vector<1x1x1xf32>
    %117 = vector.shape_cast %116 : vector<1x1x1xf32> to vector<1x1xf32>
    %118 = vector.broadcast %117 : vector<1x1xf32> to vector<8x1xf32>
    %119 = arith.addf %115, %118 : vector<8x1xf32>
    %120 = arith.mulf %119, %3 : vector<8x1xf32>
    %cst_65 = arith.constant 0.000000e+00 : f32
    %121 = vector.broadcast %cst_65 : f32 to vector<10x32xf32>
    %122 = vector.extract_strided_slice %1 {offsets = [0, 0], sizes = [10, 32], strides = [1, 1]} : vector<12x32xf32> to vector<10x32xf32>
    %c3 = arith.constant 3 : index
    %c0_66 = arith.constant 0 : index
    %c0_67 = arith.constant 0 : index
    %123 = vector.load %arg2[%c3, %c0_66, %c0_67] : memref<6x32x32xf32, #tpu.memory_space<vmem>>, vector<1x32x32xf32>
    %124 = vector.shape_cast %123 : vector<1x32x32xf32> to vector<32x32xf32>
    %cst_68 = arith.constant dense<0.000000e+00> : vector<10x32xf32>
    %125 = tpu.matmul %122, %124, %cst_68 {dimension_numbers = #tpu.dot_dimension_numbers<[1], [0], [0], [1], [0, 0, 1, 1], [], []>} : vector<10x32xf32>, vector<32x32xf32>, vector<10x32xf32> -> vector<10x32xf32>
    %126 = arith.addf %121, %125 : vector<10x32xf32>
    %127 = vector.extract_strided_slice %1 {offsets = [1, 0], sizes = [10, 32], strides = [1, 1]} : vector<12x32xf32> to vector<10x32xf32>
    %c4 = arith.constant 4 : index
    %c0_69 = arith.constant 0 : index
    %c0_70 = arith.constant 0 : index
    %128 = vector.load %arg2[%c4, %c0_69, %c0_70] : memref<6x32x32xf32, #tpu.memory_space<vmem>>, vector<1x32x32xf32>
    %129 = vector.shape_cast %128 : vector<1x32x32xf32> to vector<32x32xf32>
    %cst_71 = arith.constant dense<0.000000e+00> : vector<10x32xf32>
    %130 = tpu.matmul %127, %129, %cst_71 {dimension_numbers = #tpu.dot_dimension_numbers<[1], [0], [0], [1], [0, 0, 1, 1], [], []>} : vector<10x32xf32>, vector<32x32xf32>, vector<10x32xf32> -> vector<10x32xf32>
    %131 = arith.addf %126, %130 : vector<10x32xf32>
    %132 = vector.extract_strided_slice %1 {offsets = [2, 0], sizes = [10, 32], strides = [1, 1]} : vector<12x32xf32> to vector<10x32xf32>
    %c5 = arith.constant 5 : index
    %c0_72 = arith.constant 0 : index
    %c0_73 = arith.constant 0 : index
    %133 = vector.load %arg2[%c5, %c0_72, %c0_73] : memref<6x32x32xf32, #tpu.memory_space<vmem>>, vector<1x32x32xf32>
    %134 = vector.shape_cast %133 : vector<1x32x32xf32> to vector<32x32xf32>
    %cst_74 = arith.constant dense<0.000000e+00> : vector<10x32xf32>
    %135 = tpu.matmul %132, %134, %cst_74 {dimension_numbers = #tpu.dot_dimension_numbers<[1], [0], [0], [1], [0, 0, 1, 1], [], []>} : vector<10x32xf32>, vector<32x32xf32>, vector<10x32xf32> -> vector<10x32xf32>
    %136 = arith.addf %131, %135 : vector<10x32xf32>
    %c1_75 = arith.constant 1 : index
    %c0_76 = arith.constant 0 : index
    %c0_77 = arith.constant 0 : index
    %137 = vector.load %arg3[%c1_75, %c0_76, %c0_77] : memref<2x1x32xf32, #tpu.memory_space<vmem>>, vector<1x1x32xf32>
    %138 = vector.shape_cast %137 : vector<1x1x32xf32> to vector<1x32xf32>
    %139 = vector.broadcast %138 : vector<1x32xf32> to vector<10x32xf32>
    %140 = arith.addf %136, %139 : vector<10x32xf32>
    %cst_78 = arith.constant 0.000000e+00 : f32
    %141 = vector.broadcast %cst_78 : f32 to vector<10x32xf32>
    %142 = arith.maximumf %140, %141 : vector<10x32xf32>
    %cst_79 = arith.constant dense<0.000000e+00> : vector<10xf32>
    %143 = vector.multi_reduction <add>, %142, %cst_79 [1] : vector<10x32xf32> to vector<10xf32>
    %144 = vector.shape_cast %143 : vector<10xf32> to vector<10x1xf32>
    %cst_80 = arith.constant 3.200000e+01 : f32
    %145 = vector.broadcast %cst_80 : f32 to vector<10x1xf32>
    %146 = arith.divf %144, %145 : vector<10x1xf32>
    %147 = vector.broadcast %146 : vector<10x1xf32> to vector<10x32xf32>
    %148 = arith.subf %142, %147 : vector<10x32xf32>
    %149 = arith.mulf %148, %148 : vector<10x32xf32>
    %cst_81 = arith.constant dense<0.000000e+00> : vector<10xf32>
    %150 = vector.multi_reduction <add>, %149, %cst_81 [1] : vector<10x32xf32> to vector<10xf32>
    %151 = vector.shape_cast %150 : vector<10xf32> to vector<10x1xf32>
    %cst_82 = arith.constant 3.200000e+01 : f32
    %152 = vector.broadcast %cst_82 : f32 to vector<10x1xf32>
    %153 = arith.divf %151, %152 : vector<10x1xf32>
    %154 = vector.broadcast %146 : vector<10x1xf32> to vector<10x32xf32>
    %155 = arith.subf %142, %154 : vector<10x32xf32>
    %cst_83 = arith.constant 9.99999974E-6 : f32
    %156 = vector.broadcast %cst_83 : f32 to vector<10x1xf32>
    %157 = arith.addf %153, %156 : vector<10x1xf32>
    %158 = math.rsqrt %157 : vector<10x1xf32>
    %159 = vector.broadcast %158 : vector<10x1xf32> to vector<10x32xf32>
    %160 = arith.mulf %155, %159 : vector<10x32xf32>
    %c1_84 = arith.constant 1 : index
    %c0_85 = arith.constant 0 : index
    %c0_86 = arith.constant 0 : index
    %161 = vector.load %arg4[%c1_84, %c0_85, %c0_86] : memref<2x1x32xf32, #tpu.memory_space<vmem>>, vector<1x1x32xf32>
    %162 = vector.shape_cast %161 : vector<1x1x32xf32> to vector<1x32xf32>
    %163 = vector.broadcast %162 : vector<1x32xf32> to vector<10x32xf32>
    %164 = arith.mulf %160, %163 : vector<10x32xf32>
    %c1_87 = arith.constant 1 : index
    %c0_88 = arith.constant 0 : index
    %c0_89 = arith.constant 0 : index
    %165 = vector.load %arg5[%c1_87, %c0_88, %c0_89] : memref<2x1x32xf32, #tpu.memory_space<vmem>>, vector<1x1x32xf32>
    %166 = vector.shape_cast %165 : vector<1x1x32xf32> to vector<1x32xf32>
    %167 = vector.broadcast %166 : vector<1x32xf32> to vector<10x32xf32>
    %168 = arith.addf %164, %167 : vector<10x32xf32>
    %169 = vector.broadcast %11 : vector<10x1xf32> to vector<10x32xf32>
    %170 = arith.mulf %168, %169 : vector<10x32xf32>
    %cst_90 = arith.constant 0.000000e+00 : f32
    %171 = vector.broadcast %cst_90 : f32 to vector<8x32xf32>
    %172 = vector.extract_strided_slice %170 {offsets = [0, 0], sizes = [8, 32], strides = [1, 1]} : vector<10x32xf32> to vector<8x32xf32>
    %c3_91 = arith.constant 3 : index
    %c0_92 = arith.constant 0 : index
    %c0_93 = arith.constant 0 : index
    %173 = vector.load %arg6[%c3_91, %c0_92, %c0_93] : memref<6x32x32xf32, #tpu.memory_space<vmem>>, vector<1x32x32xf32>
    %174 = vector.shape_cast %173 : vector<1x32x32xf32> to vector<32x32xf32>
    %cst_94 = arith.constant dense<0.000000e+00> : vector<8x32xf32>
    %175 = tpu.matmul %172, %174, %cst_94 {dimension_numbers = #tpu.dot_dimension_numbers<[1], [0], [0], [1], [0, 0, 1, 1], [], []>} : vector<8x32xf32>, vector<32x32xf32>, vector<8x32xf32> -> vector<8x32xf32>
    %176 = arith.addf %171, %175 : vector<8x32xf32>
    %177 = vector.extract_strided_slice %170 {offsets = [1, 0], sizes = [8, 32], strides = [1, 1]} : vector<10x32xf32> to vector<8x32xf32>
    %c4_95 = arith.constant 4 : index
    %c0_96 = arith.constant 0 : index
    %c0_97 = arith.constant 0 : index
    %178 = vector.load %arg6[%c4_95, %c0_96, %c0_97] : memref<6x32x32xf32, #tpu.memory_space<vmem>>, vector<1x32x32xf32>
    %179 = vector.shape_cast %178 : vector<1x32x32xf32> to vector<32x32xf32>
    %cst_98 = arith.constant dense<0.000000e+00> : vector<8x32xf32>
    %180 = tpu.matmul %177, %179, %cst_98 {dimension_numbers = #tpu.dot_dimension_numbers<[1], [0], [0], [1], [0, 0, 1, 1], [], []>} : vector<8x32xf32>, vector<32x32xf32>, vector<8x32xf32> -> vector<8x32xf32>
    %181 = arith.addf %176, %180 : vector<8x32xf32>
    %182 = vector.extract_strided_slice %170 {offsets = [2, 0], sizes = [8, 32], strides = [1, 1]} : vector<10x32xf32> to vector<8x32xf32>
    %c5_99 = arith.constant 5 : index
    %c0_100 = arith.constant 0 : index
    %c0_101 = arith.constant 0 : index
    %183 = vector.load %arg6[%c5_99, %c0_100, %c0_101] : memref<6x32x32xf32, #tpu.memory_space<vmem>>, vector<1x32x32xf32>
    %184 = vector.shape_cast %183 : vector<1x32x32xf32> to vector<32x32xf32>
    %cst_102 = arith.constant dense<0.000000e+00> : vector<8x32xf32>
    %185 = tpu.matmul %182, %184, %cst_102 {dimension_numbers = #tpu.dot_dimension_numbers<[1], [0], [0], [1], [0, 0, 1, 1], [], []>} : vector<8x32xf32>, vector<32x32xf32>, vector<8x32xf32> -> vector<8x32xf32>
    %186 = arith.addf %181, %185 : vector<8x32xf32>
    %c1_103 = arith.constant 1 : index
    %c0_104 = arith.constant 0 : index
    %c0_105 = arith.constant 0 : index
    %187 = vector.load %arg7[%c1_103, %c0_104, %c0_105] : memref<2x1x32xf32, #tpu.memory_space<vmem>>, vector<1x1x32xf32>
    %188 = vector.shape_cast %187 : vector<1x1x32xf32> to vector<1x32xf32>
    %189 = vector.broadcast %188 : vector<1x32xf32> to vector<8x32xf32>
    %190 = arith.addf %186, %189 : vector<8x32xf32>
    %cst_106 = arith.constant 0.000000e+00 : f32
    %191 = vector.broadcast %cst_106 : f32 to vector<8x32xf32>
    %192 = arith.maximumf %190, %191 : vector<8x32xf32>
    %cst_107 = arith.constant dense<0.000000e+00> : vector<8xf32>
    %193 = vector.multi_reduction <add>, %192, %cst_107 [1] : vector<8x32xf32> to vector<8xf32>
    %194 = vector.shape_cast %193 : vector<8xf32> to vector<8x1xf32>
    %cst_108 = arith.constant 3.200000e+01 : f32
    %195 = vector.broadcast %cst_108 : f32 to vector<8x1xf32>
    %196 = arith.divf %194, %195 : vector<8x1xf32>
    %197 = vector.broadcast %196 : vector<8x1xf32> to vector<8x32xf32>
    %198 = arith.subf %192, %197 : vector<8x32xf32>
    %199 = arith.mulf %198, %198 : vector<8x32xf32>
    %cst_109 = arith.constant dense<0.000000e+00> : vector<8xf32>
    %200 = vector.multi_reduction <add>, %199, %cst_109 [1] : vector<8x32xf32> to vector<8xf32>
    %201 = vector.shape_cast %200 : vector<8xf32> to vector<8x1xf32>
    %cst_110 = arith.constant 3.200000e+01 : f32
    %202 = vector.broadcast %cst_110 : f32 to vector<8x1xf32>
    %203 = arith.divf %201, %202 : vector<8x1xf32>
    %204 = vector.broadcast %196 : vector<8x1xf32> to vector<8x32xf32>
    %205 = arith.subf %192, %204 : vector<8x32xf32>
    %cst_111 = arith.constant 9.99999974E-6 : f32
    %206 = vector.broadcast %cst_111 : f32 to vector<8x1xf32>
    %207 = arith.addf %203, %206 : vector<8x1xf32>
    %208 = math.rsqrt %207 : vector<8x1xf32>
    %209 = vector.broadcast %208 : vector<8x1xf32> to vector<8x32xf32>
    %210 = arith.mulf %205, %209 : vector<8x32xf32>
    %c1_112 = arith.constant 1 : index
    %c0_113 = arith.constant 0 : index
    %c0_114 = arith.constant 0 : index
    %211 = vector.load %arg8[%c1_112, %c0_113, %c0_114] : memref<2x1x32xf32, #tpu.memory_space<vmem>>, vector<1x1x32xf32>
    %212 = vector.shape_cast %211 : vector<1x1x32xf32> to vector<1x32xf32>
    %213 = vector.broadcast %212 : vector<1x32xf32> to vector<8x32xf32>
    %214 = arith.mulf %210, %213 : vector<8x32xf32>
    %c1_115 = arith.constant 1 : index
    %c0_116 = arith.constant 0 : index
    %c0_117 = arith.constant 0 : index
    %215 = vector.load %arg9[%c1_115, %c0_116, %c0_117] : memref<2x1x32xf32, #tpu.memory_space<vmem>>, vector<1x1x32xf32>
    %216 = vector.shape_cast %215 : vector<1x1x32xf32> to vector<1x32xf32>
    %217 = vector.broadcast %216 : vector<1x32xf32> to vector<8x32xf32>
    %218 = arith.addf %214, %217 : vector<8x32xf32>
    %c1_118 = arith.constant 1 : index
    %c0_119 = arith.constant 0 : index
    %c0_120 = arith.constant 0 : index
    %219 = vector.load %arg10[%c1_118, %c0_119, %c0_120] : memref<2x1x32xf32, #tpu.memory_space<vmem>>, vector<1x1x32xf32>
    %220 = vector.shape_cast %219 : vector<1x1x32xf32> to vector<1x32xf32>
    %221 = vector.broadcast %220 : vector<1x32xf32> to vector<8x32xf32>
    %222 = arith.mulf %218, %221 : vector<8x32xf32>
    %cst_121 = arith.constant dense<0.000000e+00> : vector<8xf32>
    %223 = vector.multi_reduction <add>, %222, %cst_121 [1] : vector<8x32xf32> to vector<8xf32>
    %224 = vector.shape_cast %223 : vector<8xf32> to vector<8x1xf32>
    %c1_122 = arith.constant 1 : index
    %c0_123 = arith.constant 0 : index
    %c0_124 = arith.constant 0 : index
    %225 = vector.load %arg11[%c1_122, %c0_123, %c0_124] : memref<2x1x1xf32, #tpu.memory_space<vmem>>, vector<1x1x1xf32>
    %226 = vector.shape_cast %225 : vector<1x1x1xf32> to vector<1x1xf32>
    %227 = vector.broadcast %226 : vector<1x1xf32> to vector<8x1xf32>
    %228 = arith.addf %224, %227 : vector<8x1xf32>
    %229 = arith.mulf %228, %3 : vector<8x1xf32>
    %230 = tpu.concatenate %120, %229 in 1 : vector<8x1xf32>, vector<8x1xf32> -> vector<8x2xf32>
    %c0_125 = arith.constant 0 : index
    %c0_126 = arith.constant 0 : index
    %c0_127 = arith.constant 0 : index
    %231 = vector.load %arg13[%c0_125, %c0_126, %c0_127] : memref<1x8x2xf32, #tpu.memory_space<vmem>>, vector<1x8x2xf32>
    %232 = vector.shape_cast %231 : vector<1x8x2xf32> to vector<8x2xf32>
    %233 = vector.shape_cast %230 : vector<8x2xf32> to vector<1x8x2xf32>
    tpu.vector_store %arg13[%c0_125, %c0_126, %c0_127], %233 {strides = array<i32>} : memref<1x8x2xf32, #tpu.memory_space<vmem>>, vector<1x8x2xf32>,
    return
  }
  func.func @transform_0(%arg0: i32) -> (i32, i32, i32) {
    %c0_i32 = arith.constant 0 : i32
    %c0_i32_0 = arith.constant 0 : i32
    %c0_i32_1 = arith.constant 0 : i32
    return %arg0, %c0_i32, %c0_i32_0 : i32, i32, i32
  }
  func.func @transform_1(%arg0: i32) -> (i32, i32, i32) {
    %c0_i32 = arith.constant 0 : i32
    %c0_i32_0 = arith.constant 0 : i32
    %c0_i32_1 = arith.constant 0 : i32
    %c0_i32_2 = arith.constant 0 : i32
    return %c0_i32, %c0_i32_0, %c0_i32_1 : i32, i32, i32
  }
  func.func @transform_2(%arg0: i32) -> (i32, i32, i32) {
    %c0_i32 = arith.constant 0 : i32
    %c0_i32_0 = arith.constant 0 : i32
    %c0_i32_1 = arith.constant 0 : i32
    %c0_i32_2 = arith.constant 0 : i32
    return %c0_i32, %c0_i32_0, %c0_i32_1 : i32, i32, i32
  }
  func.func @transform_3(%arg0: i32) -> (i32, i32, i32) {
    %c0_i32 = arith.constant 0 : i32
    %c0_i32_0 = arith.constant 0 : i32
    %c0_i32_1 = arith.constant 0 : i32
    %c0_i32_2 = arith.constant 0 : i32
    return %c0_i32, %c0_i32_0, %c0_i32_1 : i32, i32, i32
  }
  func.func @transform_4(%arg0: i32) -> (i32, i32, i32) {
    %c0_i32 = arith.constant 0 : i32
    %c0_i32_0 = arith.constant 0 : i32
    %c0_i32_1 = arith.constant 0 : i32
    %c0_i32_2 = arith.constant 0 : i32
    return %c0_i32, %c0_i32_0, %c0_i32_1 : i32, i32, i32
  }
  func.func @transform_5(%arg0: i32) -> (i32, i32, i32) {
    %c0_i32 = arith.constant 0 : i32
    %c0_i32_0 = arith.constant 0 : i32
    %c0_i32_1 = arith.constant 0 : i32
    %c0_i32_2 = arith.constant 0 : i32
    return %c0_i32, %c0_i32_0, %c0_i32_1 : i32, i32, i32
  }
  func.func @transform_6(%arg0: i32) -> (i32, i32, i32) {
    %c0_i32 = arith.constant 0 : i32
    %c0_i32_0 = arith.constant 0 : i32
    %c0_i32_1 = arith.constant 0 : i32
    %c0_i32_2 = arith.constant 0 : i32
    return %c0_i32, %c0_i32_0, %c0_i32_1 : i32, i32, i32
  }
  func.func @transform_7(%arg0: i32) -> (i32, i32, i32) {
    %c0_i32 = arith.constant 0 : i32
    %c0_i32_0 = arith.constant 0 : i32
    %c0_i32_1 = arith.constant 0 : i32
    %c0_i32_2 = arith.constant 0 : i32
    return %c0_i32, %c0_i32_0, %c0_i32_1 : i32, i32, i32
  }
  func.func @transform_8(%arg0: i32) -> (i32, i32, i32) {
    %c0_i32 = arith.constant 0 : i32
    %c0_i32_0 = arith.constant 0 : i32
    %c0_i32_1 = arith.constant 0 : i32
    %c0_i32_2 = arith.constant 0 : i32
    return %c0_i32, %c0_i32_0, %c0_i32_1 : i32, i32, i32
  }
  func.func @transform_9(%arg0: i32) -> (i32, i32, i32) {
    %c0_i32 = arith.constant 0 : i32
    %c0_i32_0 = arith.constant 0 : i32
    %c0_i32_1 = arith.constant 0 : i32
    %c0_i32_2 = arith.constant 0 : i32
    return %c0_i32, %c0_i32_0, %c0_i32_1 : i32, i32, i32
  }
  func.func @transform_10(%arg0: i32) -> (i32, i32, i32) {
    %c0_i32 = arith.constant 0 : i32
    %c0_i32_0 = arith.constant 0 : i32
    %c0_i32_1 = arith.constant 0 : i32
    %c0_i32_2 = arith.constant 0 : i32
    return %c0_i32, %c0_i32_0, %c0_i32_1 : i32, i32, i32
  }
  func.func @transform_11(%arg0: i32) -> (i32, i32, i32) {
    %c0_i32 = arith.constant 0 : i32
    %c0_i32_0 = arith.constant 0 : i32
    %c0_i32_1 = arith.constant 0 : i32
    return %arg0, %c0_i32, %c0_i32_0 : i32, i32, i32
  }
  func.func @transform_12(%arg0: i32) -> (i32, i32, i32) {
    %c0_i32 = arith.constant 0 : i32
    %c0_i32_0 = arith.constant 0 : i32
    %c0_i32_1 = arith.constant 0 : i32
    return %arg0, %c0_i32, %c0_i32_0 : i32, i32, i32
  }
}

module attributes {stable_mosaic.version = 11 : i64} {
  func.func @_var_pred_kernel(%arg0: i32, %arg1: memref<1x12x32xf32, #tpu.memory_space<vmem>>, %arg2: memref<3x32x32xf32, #tpu.memory_space<vmem>>, %arg3: memref<1x1x32xf32, #tpu.memory_space<vmem>>, %arg4: memref<1x1x32xf32, #tpu.memory_space<vmem>>, %arg5: memref<1x1x32xf32, #tpu.memory_space<vmem>>, %arg6: memref<3x32x32xf32, #tpu.memory_space<vmem>>, %arg7: memref<1x1x32xf32, #tpu.memory_space<vmem>>, %arg8: memref<1x1x32xf32, #tpu.memory_space<vmem>>, %arg9: memref<1x1x32xf32, #tpu.memory_space<vmem>>, %arg10: memref<1x1x32xf32, #tpu.memory_space<vmem>>, %arg11: memref<1x1x1xf32, #tpu.memory_space<vmem>>, %arg12: memref<1x8x1xf32, #tpu.memory_space<vmem>>, %arg13: memref<1x8x1xf32, #tpu.memory_space<vmem>>) attributes {dimension_semantics = [#tpu.dimension_semantics<parallel>], iteration_bounds = array<i64: 2>, scalar_prefetch = 0 : i64, scratch_operands = 0 : i64, tpu.core_type = #tpu.core_type<tc>, window_params = [{transform_indices = @transform_0, window_bounds = array<i64: 1, 12, 32>}, {pipeline_mode = #tpu.pipeline_mode<synchronous>, transform_indices = @transform_1, window_bounds = array<i64: 3, 32, 32>}, {pipeline_mode = #tpu.pipeline_mode<synchronous>, transform_indices = @transform_2, window_bounds = array<i64: 1, 1, 32>}, {pipeline_mode = #tpu.pipeline_mode<synchronous>, transform_indices = @transform_3, window_bounds = array<i64: 1, 1, 32>}, {pipeline_mode = #tpu.pipeline_mode<synchronous>, transform_indices = @transform_4, window_bounds = array<i64: 1, 1, 32>}, {pipeline_mode = #tpu.pipeline_mode<synchronous>, transform_indices = @transform_5, window_bounds = array<i64: 3, 32, 32>}, {pipeline_mode = #tpu.pipeline_mode<synchronous>, transform_indices = @transform_6, window_bounds = array<i64: 1, 1, 32>}, {pipeline_mode = #tpu.pipeline_mode<synchronous>, transform_indices = @transform_7, window_bounds = array<i64: 1, 1, 32>}, {pipeline_mode = #tpu.pipeline_mode<synchronous>, transform_indices = @transform_8, window_bounds = array<i64: 1, 1, 32>}, {pipeline_mode = #tpu.pipeline_mode<synchronous>, transform_indices = @transform_9, window_bounds = array<i64: 1, 1, 32>}, {pipeline_mode = #tpu.pipeline_mode<synchronous>, transform_indices = @transform_10, window_bounds = array<i64: 1, 1, 1>}, {transform_indices = @transform_11, window_bounds = array<i64: 1, 8, 1>}, {transform_indices = @transform_12, window_bounds = array<i64: 1, 8, 1>}]} {
    %c0 = arith.constant 0 : index
    %c0_0 = arith.constant 0 : index
    %c0_1 = arith.constant 0 : index
    %0 = vector.load %arg1[%c0, %c0_0, %c0_1] : memref<1x12x32xf32, #tpu.memory_space<vmem>>, vector<1x12x32xf32>
    %1 = vector.shape_cast %0 : vector<1x12x32xf32> to vector<12x32xf32>
    %c0_2 = arith.constant 0 : index
    %c0_3 = arith.constant 0 : index
    %c0_4 = arith.constant 0 : index
    %2 = vector.load %arg12[%c0_2, %c0_3, %c0_4] : memref<1x8x1xf32, #tpu.memory_space<vmem>>, vector<1x8x1xf32>
    %3 = vector.shape_cast %2 : vector<1x8x1xf32> to vector<8x1xf32>
    %4 = tpu.iota {dimensions = array<i32: 0>} : vector<10x1xi32>
    %c1_i32 = arith.constant 1 : i32
    %5 = vector.broadcast %c1_i32 : i32 to vector<10x1xi32>
    %6 = arith.cmpi sge, %4, %5 : vector<10x1xi32>
    %c9_i32 = arith.constant 9 : i32
    %7 = vector.broadcast %c9_i32 : i32 to vector<10x1xi32>
    %8 = arith.cmpi slt, %4, %7 : vector<10x1xi32>
    %9 = arith.andi %6, %8 : vector<10x1xi1>
    %10 = arith.extui %9 : vector<10x1xi1> to vector<10x1xi32>
    %11 = arith.sitofp %10 : vector<10x1xi32> to vector<10x1xf32>
    %cst = arith.constant 0.000000e+00 : f32
    %12 = vector.broadcast %cst : f32 to vector<10x32xf32>
    %13 = vector.extract_strided_slice %1 {offsets = [0, 0], sizes = [10, 32], strides = [1, 1]} : vector<12x32xf32> to vector<10x32xf32>
    %c0_5 = arith.constant 0 : index
    %c0_6 = arith.constant 0 : index
    %c0_7 = arith.constant 0 : index
    %14 = vector.load %arg2[%c0_5, %c0_6, %c0_7] : memref<3x32x32xf32, #tpu.memory_space<vmem>>, vector<1x32x32xf32>
    %15 = vector.shape_cast %14 : vector<1x32x32xf32> to vector<32x32xf32>
    %cst_8 = arith.constant dense<0.000000e+00> : vector<10x32xf32>
    %16 = tpu.matmul %13, %15, %cst_8 {dimension_numbers = #tpu.dot_dimension_numbers<[1], [0], [0], [1], [0, 0, 1, 1], [], []>} : vector<10x32xf32>, vector<32x32xf32>, vector<10x32xf32> -> vector<10x32xf32>
    %17 = arith.addf %12, %16 : vector<10x32xf32>
    %18 = vector.extract_strided_slice %1 {offsets = [1, 0], sizes = [10, 32], strides = [1, 1]} : vector<12x32xf32> to vector<10x32xf32>
    %c1 = arith.constant 1 : index
    %c0_9 = arith.constant 0 : index
    %c0_10 = arith.constant 0 : index
    %19 = vector.load %arg2[%c1, %c0_9, %c0_10] : memref<3x32x32xf32, #tpu.memory_space<vmem>>, vector<1x32x32xf32>
    %20 = vector.shape_cast %19 : vector<1x32x32xf32> to vector<32x32xf32>
    %cst_11 = arith.constant dense<0.000000e+00> : vector<10x32xf32>
    %21 = tpu.matmul %18, %20, %cst_11 {dimension_numbers = #tpu.dot_dimension_numbers<[1], [0], [0], [1], [0, 0, 1, 1], [], []>} : vector<10x32xf32>, vector<32x32xf32>, vector<10x32xf32> -> vector<10x32xf32>
    %22 = arith.addf %17, %21 : vector<10x32xf32>
    %23 = vector.extract_strided_slice %1 {offsets = [2, 0], sizes = [10, 32], strides = [1, 1]} : vector<12x32xf32> to vector<10x32xf32>
    %c2 = arith.constant 2 : index
    %c0_12 = arith.constant 0 : index
    %c0_13 = arith.constant 0 : index
    %24 = vector.load %arg2[%c2, %c0_12, %c0_13] : memref<3x32x32xf32, #tpu.memory_space<vmem>>, vector<1x32x32xf32>
    %25 = vector.shape_cast %24 : vector<1x32x32xf32> to vector<32x32xf32>
    %cst_14 = arith.constant dense<0.000000e+00> : vector<10x32xf32>
    %26 = tpu.matmul %23, %25, %cst_14 {dimension_numbers = #tpu.dot_dimension_numbers<[1], [0], [0], [1], [0, 0, 1, 1], [], []>} : vector<10x32xf32>, vector<32x32xf32>, vector<10x32xf32> -> vector<10x32xf32>
    %27 = arith.addf %22, %26 : vector<10x32xf32>
    %c0_15 = arith.constant 0 : index
    %c0_16 = arith.constant 0 : index
    %c0_17 = arith.constant 0 : index
    %28 = vector.load %arg3[%c0_15, %c0_16, %c0_17] : memref<1x1x32xf32, #tpu.memory_space<vmem>>, vector<1x1x32xf32>
    %29 = vector.shape_cast %28 : vector<1x1x32xf32> to vector<1x32xf32>
    %30 = vector.broadcast %29 : vector<1x32xf32> to vector<10x32xf32>
    %31 = arith.addf %27, %30 : vector<10x32xf32>
    %cst_18 = arith.constant 0.000000e+00 : f32
    %32 = vector.broadcast %cst_18 : f32 to vector<10x32xf32>
    %33 = arith.maximumf %31, %32 : vector<10x32xf32>
    %cst_19 = arith.constant dense<0.000000e+00> : vector<10xf32>
    %34 = vector.multi_reduction <add>, %33, %cst_19 [1] : vector<10x32xf32> to vector<10xf32>
    %35 = vector.shape_cast %34 : vector<10xf32> to vector<10x1xf32>
    %cst_20 = arith.constant 3.200000e+01 : f32
    %36 = vector.broadcast %cst_20 : f32 to vector<10x1xf32>
    %37 = arith.divf %35, %36 : vector<10x1xf32>
    %38 = vector.broadcast %37 : vector<10x1xf32> to vector<10x32xf32>
    %39 = arith.subf %33, %38 : vector<10x32xf32>
    %40 = arith.mulf %39, %39 : vector<10x32xf32>
    %cst_21 = arith.constant dense<0.000000e+00> : vector<10xf32>
    %41 = vector.multi_reduction <add>, %40, %cst_21 [1] : vector<10x32xf32> to vector<10xf32>
    %42 = vector.shape_cast %41 : vector<10xf32> to vector<10x1xf32>
    %cst_22 = arith.constant 3.200000e+01 : f32
    %43 = vector.broadcast %cst_22 : f32 to vector<10x1xf32>
    %44 = arith.divf %42, %43 : vector<10x1xf32>
    %45 = vector.broadcast %37 : vector<10x1xf32> to vector<10x32xf32>
    %46 = arith.subf %33, %45 : vector<10x32xf32>
    %cst_23 = arith.constant 9.99999974E-6 : f32
    %47 = vector.broadcast %cst_23 : f32 to vector<10x1xf32>
    %48 = arith.addf %44, %47 : vector<10x1xf32>
    %49 = math.rsqrt %48 : vector<10x1xf32>
    %50 = vector.broadcast %49 : vector<10x1xf32> to vector<10x32xf32>
    %51 = arith.mulf %46, %50 : vector<10x32xf32>
    %c0_24 = arith.constant 0 : index
    %c0_25 = arith.constant 0 : index
    %c0_26 = arith.constant 0 : index
    %52 = vector.load %arg4[%c0_24, %c0_25, %c0_26] : memref<1x1x32xf32, #tpu.memory_space<vmem>>, vector<1x1x32xf32>
    %53 = vector.shape_cast %52 : vector<1x1x32xf32> to vector<1x32xf32>
    %54 = vector.broadcast %53 : vector<1x32xf32> to vector<10x32xf32>
    %55 = arith.mulf %51, %54 : vector<10x32xf32>
    %c0_27 = arith.constant 0 : index
    %c0_28 = arith.constant 0 : index
    %c0_29 = arith.constant 0 : index
    %56 = vector.load %arg5[%c0_27, %c0_28, %c0_29] : memref<1x1x32xf32, #tpu.memory_space<vmem>>, vector<1x1x32xf32>
    %57 = vector.shape_cast %56 : vector<1x1x32xf32> to vector<1x32xf32>
    %58 = vector.broadcast %57 : vector<1x32xf32> to vector<10x32xf32>
    %59 = arith.addf %55, %58 : vector<10x32xf32>
    %60 = vector.broadcast %11 : vector<10x1xf32> to vector<10x32xf32>
    %61 = arith.mulf %59, %60 : vector<10x32xf32>
    %cst_30 = arith.constant 0.000000e+00 : f32
    %62 = vector.broadcast %cst_30 : f32 to vector<8x32xf32>
    %63 = vector.extract_strided_slice %61 {offsets = [0, 0], sizes = [8, 32], strides = [1, 1]} : vector<10x32xf32> to vector<8x32xf32>
    %c0_31 = arith.constant 0 : index
    %c0_32 = arith.constant 0 : index
    %c0_33 = arith.constant 0 : index
    %64 = vector.load %arg6[%c0_31, %c0_32, %c0_33] : memref<3x32x32xf32, #tpu.memory_space<vmem>>, vector<1x32x32xf32>
    %65 = vector.shape_cast %64 : vector<1x32x32xf32> to vector<32x32xf32>
    %cst_34 = arith.constant dense<0.000000e+00> : vector<8x32xf32>
    %66 = tpu.matmul %63, %65, %cst_34 {dimension_numbers = #tpu.dot_dimension_numbers<[1], [0], [0], [1], [0, 0, 1, 1], [], []>} : vector<8x32xf32>, vector<32x32xf32>, vector<8x32xf32> -> vector<8x32xf32>
    %67 = arith.addf %62, %66 : vector<8x32xf32>
    %68 = vector.extract_strided_slice %61 {offsets = [1, 0], sizes = [8, 32], strides = [1, 1]} : vector<10x32xf32> to vector<8x32xf32>
    %c1_35 = arith.constant 1 : index
    %c0_36 = arith.constant 0 : index
    %c0_37 = arith.constant 0 : index
    %69 = vector.load %arg6[%c1_35, %c0_36, %c0_37] : memref<3x32x32xf32, #tpu.memory_space<vmem>>, vector<1x32x32xf32>
    %70 = vector.shape_cast %69 : vector<1x32x32xf32> to vector<32x32xf32>
    %cst_38 = arith.constant dense<0.000000e+00> : vector<8x32xf32>
    %71 = tpu.matmul %68, %70, %cst_38 {dimension_numbers = #tpu.dot_dimension_numbers<[1], [0], [0], [1], [0, 0, 1, 1], [], []>} : vector<8x32xf32>, vector<32x32xf32>, vector<8x32xf32> -> vector<8x32xf32>
    %72 = arith.addf %67, %71 : vector<8x32xf32>
    %73 = vector.extract_strided_slice %61 {offsets = [2, 0], sizes = [8, 32], strides = [1, 1]} : vector<10x32xf32> to vector<8x32xf32>
    %c2_39 = arith.constant 2 : index
    %c0_40 = arith.constant 0 : index
    %c0_41 = arith.constant 0 : index
    %74 = vector.load %arg6[%c2_39, %c0_40, %c0_41] : memref<3x32x32xf32, #tpu.memory_space<vmem>>, vector<1x32x32xf32>
    %75 = vector.shape_cast %74 : vector<1x32x32xf32> to vector<32x32xf32>
    %cst_42 = arith.constant dense<0.000000e+00> : vector<8x32xf32>
    %76 = tpu.matmul %73, %75, %cst_42 {dimension_numbers = #tpu.dot_dimension_numbers<[1], [0], [0], [1], [0, 0, 1, 1], [], []>} : vector<8x32xf32>, vector<32x32xf32>, vector<8x32xf32> -> vector<8x32xf32>
    %77 = arith.addf %72, %76 : vector<8x32xf32>
    %c0_43 = arith.constant 0 : index
    %c0_44 = arith.constant 0 : index
    %c0_45 = arith.constant 0 : index
    %78 = vector.load %arg7[%c0_43, %c0_44, %c0_45] : memref<1x1x32xf32, #tpu.memory_space<vmem>>, vector<1x1x32xf32>
    %79 = vector.shape_cast %78 : vector<1x1x32xf32> to vector<1x32xf32>
    %80 = vector.broadcast %79 : vector<1x32xf32> to vector<8x32xf32>
    %81 = arith.addf %77, %80 : vector<8x32xf32>
    %cst_46 = arith.constant 0.000000e+00 : f32
    %82 = vector.broadcast %cst_46 : f32 to vector<8x32xf32>
    %83 = arith.maximumf %81, %82 : vector<8x32xf32>
    %cst_47 = arith.constant dense<0.000000e+00> : vector<8xf32>
    %84 = vector.multi_reduction <add>, %83, %cst_47 [1] : vector<8x32xf32> to vector<8xf32>
    %85 = vector.shape_cast %84 : vector<8xf32> to vector<8x1xf32>
    %cst_48 = arith.constant 3.200000e+01 : f32
    %86 = vector.broadcast %cst_48 : f32 to vector<8x1xf32>
    %87 = arith.divf %85, %86 : vector<8x1xf32>
    %88 = vector.broadcast %87 : vector<8x1xf32> to vector<8x32xf32>
    %89 = arith.subf %83, %88 : vector<8x32xf32>
    %90 = arith.mulf %89, %89 : vector<8x32xf32>
    %cst_49 = arith.constant dense<0.000000e+00> : vector<8xf32>
    %91 = vector.multi_reduction <add>, %90, %cst_49 [1] : vector<8x32xf32> to vector<8xf32>
    %92 = vector.shape_cast %91 : vector<8xf32> to vector<8x1xf32>
    %cst_50 = arith.constant 3.200000e+01 : f32
    %93 = vector.broadcast %cst_50 : f32 to vector<8x1xf32>
    %94 = arith.divf %92, %93 : vector<8x1xf32>
    %95 = vector.broadcast %87 : vector<8x1xf32> to vector<8x32xf32>
    %96 = arith.subf %83, %95 : vector<8x32xf32>
    %cst_51 = arith.constant 9.99999974E-6 : f32
    %97 = vector.broadcast %cst_51 : f32 to vector<8x1xf32>
    %98 = arith.addf %94, %97 : vector<8x1xf32>
    %99 = math.rsqrt %98 : vector<8x1xf32>
    %100 = vector.broadcast %99 : vector<8x1xf32> to vector<8x32xf32>
    %101 = arith.mulf %96, %100 : vector<8x32xf32>
    %c0_52 = arith.constant 0 : index
    %c0_53 = arith.constant 0 : index
    %c0_54 = arith.constant 0 : index
    %102 = vector.load %arg8[%c0_52, %c0_53, %c0_54] : memref<1x1x32xf32, #tpu.memory_space<vmem>>, vector<1x1x32xf32>
    %103 = vector.shape_cast %102 : vector<1x1x32xf32> to vector<1x32xf32>
    %104 = vector.broadcast %103 : vector<1x32xf32> to vector<8x32xf32>
    %105 = arith.mulf %101, %104 : vector<8x32xf32>
    %c0_55 = arith.constant 0 : index
    %c0_56 = arith.constant 0 : index
    %c0_57 = arith.constant 0 : index
    %106 = vector.load %arg9[%c0_55, %c0_56, %c0_57] : memref<1x1x32xf32, #tpu.memory_space<vmem>>, vector<1x1x32xf32>
    %107 = vector.shape_cast %106 : vector<1x1x32xf32> to vector<1x32xf32>
    %108 = vector.broadcast %107 : vector<1x32xf32> to vector<8x32xf32>
    %109 = arith.addf %105, %108 : vector<8x32xf32>
    %c0_58 = arith.constant 0 : index
    %c0_59 = arith.constant 0 : index
    %c0_60 = arith.constant 0 : index
    %110 = vector.load %arg10[%c0_58, %c0_59, %c0_60] : memref<1x1x32xf32, #tpu.memory_space<vmem>>, vector<1x1x32xf32>
    %111 = vector.shape_cast %110 : vector<1x1x32xf32> to vector<1x32xf32>
    %112 = vector.broadcast %111 : vector<1x32xf32> to vector<8x32xf32>
    %113 = arith.mulf %109, %112 : vector<8x32xf32>
    %cst_61 = arith.constant dense<0.000000e+00> : vector<8xf32>
    %114 = vector.multi_reduction <add>, %113, %cst_61 [1] : vector<8x32xf32> to vector<8xf32>
    %115 = vector.shape_cast %114 : vector<8xf32> to vector<8x1xf32>
    %c0_62 = arith.constant 0 : index
    %c0_63 = arith.constant 0 : index
    %c0_64 = arith.constant 0 : index
    %116 = vector.load %arg11[%c0_62, %c0_63, %c0_64] : memref<1x1x1xf32, #tpu.memory_space<vmem>>, vector<1x1x1xf32>
    %117 = vector.shape_cast %116 : vector<1x1x1xf32> to vector<1x1xf32>
    %118 = vector.broadcast %117 : vector<1x1xf32> to vector<8x1xf32>
    %119 = arith.addf %115, %118 : vector<8x1xf32>
    %120 = arith.mulf %119, %3 : vector<8x1xf32>
    %c0_65 = arith.constant 0 : index
    %c0_66 = arith.constant 0 : index
    %c0_67 = arith.constant 0 : index
    %121 = vector.load %arg13[%c0_65, %c0_66, %c0_67] : memref<1x8x1xf32, #tpu.memory_space<vmem>>, vector<1x8x1xf32>
    %122 = vector.shape_cast %121 : vector<1x8x1xf32> to vector<8x1xf32>
    %123 = vector.shape_cast %120 : vector<8x1xf32> to vector<1x8x1xf32>
    tpu.vector_store %arg13[%c0_65, %c0_66, %c0_67], %123 {strides = array<i32>} : memref<1x8x1xf32, #tpu.memory_space<vmem>>, vector<1x8x1xf32>,
    return
  }
  func.func @transform_0(%arg0: i32) -> (i32, i32, i32) {
    %c0_i32 = arith.constant 0 : i32
    %c0_i32_0 = arith.constant 0 : i32
    %c0_i32_1 = arith.constant 0 : i32
    return %arg0, %c0_i32, %c0_i32_0 : i32, i32, i32
  }
  func.func @transform_1(%arg0: i32) -> (i32, i32, i32) {
    %c0_i32 = arith.constant 0 : i32
    %c0_i32_0 = arith.constant 0 : i32
    %c0_i32_1 = arith.constant 0 : i32
    %c0_i32_2 = arith.constant 0 : i32
    return %c0_i32, %c0_i32_0, %c0_i32_1 : i32, i32, i32
  }
  func.func @transform_2(%arg0: i32) -> (i32, i32, i32) {
    %c0_i32 = arith.constant 0 : i32
    %c0_i32_0 = arith.constant 0 : i32
    %c0_i32_1 = arith.constant 0 : i32
    %c0_i32_2 = arith.constant 0 : i32
    return %c0_i32, %c0_i32_0, %c0_i32_1 : i32, i32, i32
  }
  func.func @transform_3(%arg0: i32) -> (i32, i32, i32) {
    %c0_i32 = arith.constant 0 : i32
    %c0_i32_0 = arith.constant 0 : i32
    %c0_i32_1 = arith.constant 0 : i32
    %c0_i32_2 = arith.constant 0 : i32
    return %c0_i32, %c0_i32_0, %c0_i32_1 : i32, i32, i32
  }
  func.func @transform_4(%arg0: i32) -> (i32, i32, i32) {
    %c0_i32 = arith.constant 0 : i32
    %c0_i32_0 = arith.constant 0 : i32
    %c0_i32_1 = arith.constant 0 : i32
    %c0_i32_2 = arith.constant 0 : i32
    return %c0_i32, %c0_i32_0, %c0_i32_1 : i32, i32, i32
  }
  func.func @transform_5(%arg0: i32) -> (i32, i32, i32) {
    %c0_i32 = arith.constant 0 : i32
    %c0_i32_0 = arith.constant 0 : i32
    %c0_i32_1 = arith.constant 0 : i32
    %c0_i32_2 = arith.constant 0 : i32
    return %c0_i32, %c0_i32_0, %c0_i32_1 : i32, i32, i32
  }
  func.func @transform_6(%arg0: i32) -> (i32, i32, i32) {
    %c0_i32 = arith.constant 0 : i32
    %c0_i32_0 = arith.constant 0 : i32
    %c0_i32_1 = arith.constant 0 : i32
    %c0_i32_2 = arith.constant 0 : i32
    return %c0_i32, %c0_i32_0, %c0_i32_1 : i32, i32, i32
  }
  func.func @transform_7(%arg0: i32) -> (i32, i32, i32) {
    %c0_i32 = arith.constant 0 : i32
    %c0_i32_0 = arith.constant 0 : i32
    %c0_i32_1 = arith.constant 0 : i32
    %c0_i32_2 = arith.constant 0 : i32
    return %c0_i32, %c0_i32_0, %c0_i32_1 : i32, i32, i32
  }
  func.func @transform_8(%arg0: i32) -> (i32, i32, i32) {
    %c0_i32 = arith.constant 0 : i32
    %c0_i32_0 = arith.constant 0 : i32
    %c0_i32_1 = arith.constant 0 : i32
    %c0_i32_2 = arith.constant 0 : i32
    return %c0_i32, %c0_i32_0, %c0_i32_1 : i32, i32, i32
  }
  func.func @transform_9(%arg0: i32) -> (i32, i32, i32) {
    %c0_i32 = arith.constant 0 : i32
    %c0_i32_0 = arith.constant 0 : i32
    %c0_i32_1 = arith.constant 0 : i32
    %c0_i32_2 = arith.constant 0 : i32
    return %c0_i32, %c0_i32_0, %c0_i32_1 : i32, i32, i32
  }
  func.func @transform_10(%arg0: i32) -> (i32, i32, i32) {
    %c0_i32 = arith.constant 0 : i32
    %c0_i32_0 = arith.constant 0 : i32
    %c0_i32_1 = arith.constant 0 : i32
    %c0_i32_2 = arith.constant 0 : i32
    return %c0_i32, %c0_i32_0, %c0_i32_1 : i32, i32, i32
  }
  func.func @transform_11(%arg0: i32) -> (i32, i32, i32) {
    %c0_i32 = arith.constant 0 : i32
    %c0_i32_0 = arith.constant 0 : i32
    %c0_i32_1 = arith.constant 0 : i32
    return %arg0, %c0_i32, %c0_i32_0 : i32, i32, i32
  }
  func.func @transform_12(%arg0: i32) -> (i32, i32, i32) {
    %c0_i32 = arith.constant 0 : i32
    %c0_i32_0 = arith.constant 0 : i32
    %c0_i32_1 = arith.constant 0 : i32
    return %arg0, %c0_i32, %c0_i32_0 : i32, i32, i32
  }
}

module attributes {stable_mosaic.version = 11 : i64} {
  func.func @_mha_saln_kernel(%arg0: i32, %arg1: memref<1x16x32xf32, #tpu.memory_space<vmem>>, %arg2: memref<2x32x16xf32, #tpu.memory_space<vmem>>, %arg3: memref<2x1x16xf32, #tpu.memory_space<vmem>>, %arg4: memref<2x32x16xf32, #tpu.memory_space<vmem>>, %arg5: memref<2x1x16xf32, #tpu.memory_space<vmem>>, %arg6: memref<2x32x16xf32, #tpu.memory_space<vmem>>, %arg7: memref<2x1x16xf32, #tpu.memory_space<vmem>>, %arg8: memref<2x16x32xf32, #tpu.memory_space<vmem>>, %arg9: memref<1x32xf32, #tpu.memory_space<vmem>>, %arg10: memref<1x1x16xf32, #tpu.memory_space<vmem>>, %arg11: memref<1x1x32xf32, #tpu.memory_space<vmem>>, %arg12: memref<1x1x32xf32, #tpu.memory_space<vmem>>, %arg13: memref<1x16x1xf32, #tpu.memory_space<vmem>>, %arg14: memref<1x16x32xf32, #tpu.memory_space<vmem>>) attributes {dimension_semantics = [#tpu.dimension_semantics<parallel>], iteration_bounds = array<i64: 2>, scalar_prefetch = 0 : i64, scratch_operands = 0 : i64, tpu.core_type = #tpu.core_type<tc>, window_params = [{transform_indices = @transform_0, window_bounds = array<i64: 1, 16, 32>}, {pipeline_mode = #tpu.pipeline_mode<synchronous>, transform_indices = @transform_1, window_bounds = array<i64: 2, 32, 16>}, {pipeline_mode = #tpu.pipeline_mode<synchronous>, transform_indices = @transform_2, window_bounds = array<i64: 2, 1, 16>}, {pipeline_mode = #tpu.pipeline_mode<synchronous>, transform_indices = @transform_3, window_bounds = array<i64: 2, 32, 16>}, {pipeline_mode = #tpu.pipeline_mode<synchronous>, transform_indices = @transform_4, window_bounds = array<i64: 2, 1, 16>}, {pipeline_mode = #tpu.pipeline_mode<synchronous>, transform_indices = @transform_5, window_bounds = array<i64: 2, 32, 16>}, {pipeline_mode = #tpu.pipeline_mode<synchronous>, transform_indices = @transform_6, window_bounds = array<i64: 2, 1, 16>}, {pipeline_mode = #tpu.pipeline_mode<synchronous>, transform_indices = @transform_7, window_bounds = array<i64: 2, 16, 32>}, {pipeline_mode = #tpu.pipeline_mode<synchronous>, transform_indices = @transform_8, window_bounds = array<i64: 1, 32>}, {transform_indices = @transform_9, window_bounds = array<i64: 1, 1, 16>}, {transform_indices = @transform_10, window_bounds = array<i64: 1, 1, 32>}, {transform_indices = @transform_11, window_bounds = array<i64: 1, 1, 32>}, {transform_indices = @transform_12, window_bounds = array<i64: 1, 16, 1>}, {transform_indices = @transform_13, window_bounds = array<i64: 1, 16, 32>}]} {
    %c0 = arith.constant 0 : index
    %c0_0 = arith.constant 0 : index
    %c0_1 = arith.constant 0 : index
    %0 = vector.load %arg1[%c0, %c0_0, %c0_1] : memref<1x16x32xf32, #tpu.memory_space<vmem>>, vector<1x16x32xf32>
    %1 = vector.shape_cast %0 : vector<1x16x32xf32> to vector<16x32xf32>
    %c0_2 = arith.constant 0 : index
    %c0_3 = arith.constant 0 : index
    %c0_4 = arith.constant 0 : index
    %2 = vector.load %arg10[%c0_2, %c0_3, %c0_4] : memref<1x1x16xf32, #tpu.memory_space<vmem>>, vector<1x1x16xf32>
    %3 = vector.shape_cast %2 : vector<1x1x16xf32> to vector<1x16xf32>
    %cst = arith.constant 0.000000e+00 : f32
    %4 = vector.broadcast %cst : f32 to vector<16x32xf32>
    %c0_5 = arith.constant 0 : index
    %c0_6 = arith.constant 0 : index
    %c0_7 = arith.constant 0 : index
    %5 = vector.load %arg2[%c0_5, %c0_6, %c0_7] : memref<2x32x16xf32, #tpu.memory_space<vmem>>, vector<1x32x16xf32>
    %6 = vector.shape_cast %5 : vector<1x32x16xf32> to vector<32x16xf32>
    %cst_8 = arith.constant dense<0.000000e+00> : vector<16x16xf32>
    %7 = tpu.matmul %1, %6, %cst_8 {dimension_numbers = #tpu.dot_dimension_numbers<[1], [0], [0], [1], [0, 0, 1, 1], [], []>} : vector<16x32xf32>, vector<32x16xf32>, vector<16x16xf32> -> vector<16x16xf32>
    %c0_9 = arith.constant 0 : index
    %c0_10 = arith.constant 0 : index
    %c0_11 = arith.constant 0 : index
    %8 = vector.load %arg3[%c0_9, %c0_10, %c0_11] : memref<2x1x16xf32, #tpu.memory_space<vmem>>, vector<1x1x16xf32>
    %9 = vector.shape_cast %8 : vector<1x1x16xf32> to vector<1x16xf32>
    %10 = vector.broadcast %9 : vector<1x16xf32> to vector<16x16xf32>
    %11 = arith.addf %7, %10 : vector<16x16xf32>
    %c0_12 = arith.constant 0 : index
    %c0_13 = arith.constant 0 : index
    %c0_14 = arith.constant 0 : index
    %12 = vector.load %arg4[%c0_12, %c0_13, %c0_14] : memref<2x32x16xf32, #tpu.memory_space<vmem>>, vector<1x32x16xf32>
    %13 = vector.shape_cast %12 : vector<1x32x16xf32> to vector<32x16xf32>
    %cst_15 = arith.constant dense<0.000000e+00> : vector<16x16xf32>
    %14 = tpu.matmul %1, %13, %cst_15 {dimension_numbers = #tpu.dot_dimension_numbers<[1], [0], [0], [1], [0, 0, 1, 1], [], []>} : vector<16x32xf32>, vector<32x16xf32>, vector<16x16xf32> -> vector<16x16xf32>
    %c0_16 = arith.constant 0 : index
    %c0_17 = arith.constant 0 : index
    %c0_18 = arith.constant 0 : index
    %15 = vector.load %arg5[%c0_16, %c0_17, %c0_18] : memref<2x1x16xf32, #tpu.memory_space<vmem>>, vector<1x1x16xf32>
    %16 = vector.shape_cast %15 : vector<1x1x16xf32> to vector<1x16xf32>
    %17 = vector.broadcast %16 : vector<1x16xf32> to vector<16x16xf32>
    %18 = arith.addf %14, %17 : vector<16x16xf32>
    %c0_19 = arith.constant 0 : index
    %c0_20 = arith.constant 0 : index
    %c0_21 = arith.constant 0 : index
    %19 = vector.load %arg6[%c0_19, %c0_20, %c0_21] : memref<2x32x16xf32, #tpu.memory_space<vmem>>, vector<1x32x16xf32>
    %20 = vector.shape_cast %19 : vector<1x32x16xf32> to vector<32x16xf32>
    %cst_22 = arith.constant dense<0.000000e+00> : vector<16x16xf32>
    %21 = tpu.matmul %1, %20, %cst_22 {dimension_numbers = #tpu.dot_dimension_numbers<[1], [0], [0], [1], [0, 0, 1, 1], [], []>} : vector<16x32xf32>, vector<32x16xf32>, vector<16x16xf32> -> vector<16x16xf32>
    %c0_23 = arith.constant 0 : index
    %c0_24 = arith.constant 0 : index
    %c0_25 = arith.constant 0 : index
    %22 = vector.load %arg7[%c0_23, %c0_24, %c0_25] : memref<2x1x16xf32, #tpu.memory_space<vmem>>, vector<1x1x16xf32>
    %23 = vector.shape_cast %22 : vector<1x1x16xf32> to vector<1x16xf32>
    %24 = vector.broadcast %23 : vector<1x16xf32> to vector<16x16xf32>
    %25 = arith.addf %21, %24 : vector<16x16xf32>
    %cst_26 = arith.constant dense<0.000000e+00> : vector<16x16xf32>
    %26 = tpu.matmul %11, %18, %cst_26 {dimension_numbers = #tpu.dot_dimension_numbers<[1], [1], [0], [0], [0, 0, 1, 0], [], []>} : vector<16x16xf32>, vector<16x16xf32>, vector<16x16xf32> -> vector<16x16xf32>
    %cst_27 = arith.constant 2.500000e-01 : f32
    %27 = vector.broadcast %cst_27 : f32 to vector<16x16xf32>
    %28 = arith.mulf %26, %27 : vector<16x16xf32>
    %29 = vector.broadcast %3 : vector<1x16xf32> to vector<16x16xf32>
    %30 = arith.addf %28, %29 : vector<16x16xf32>
    %cst_28 = arith.constant dense<0xFF800000> : vector<16xf32>
    %31 = vector.multi_reduction <maximumf>, %30, %cst_28 [1] : vector<16x16xf32> to vector<16xf32>
    %32 = vector.shape_cast %31 : vector<16xf32> to vector<16x1xf32>
    %33 = vector.broadcast %32 : vector<16x1xf32> to vector<16x16xf32>
    %34 = arith.subf %30, %33 : vector<16x16xf32>
    %35 = math.exp %34 : vector<16x16xf32>
    %cst_29 = arith.constant dense<0.000000e+00> : vector<16xf32>
    %36 = vector.multi_reduction <add>, %35, %cst_29 [1] : vector<16x16xf32> to vector<16xf32>
    %37 = vector.shape_cast %36 : vector<16xf32> to vector<16x1xf32>
    %38 = tpu.reciprocal %37 {approx = true} : vector<16x1xf32> -> vector<16x1xf32>
    %39 = vector.broadcast %38 : vector<16x1xf32> to vector<16x16xf32>
    %40 = arith.mulf %35, %39 : vector<16x16xf32>
    %cst_30 = arith.constant dense<0.000000e+00> : vector<16x16xf32>
    %41 = tpu.matmul %40, %25, %cst_30 {dimension_numbers = #tpu.dot_dimension_numbers<[1], [0], [0], [1], [0, 0, 1, 1], [], []>} : vector<16x16xf32>, vector<16x16xf32>, vector<16x16xf32> -> vector<16x16xf32>
    %c0_31 = arith.constant 0 : index
    %c0_32 = arith.constant 0 : index
    %c0_33 = arith.constant 0 : index
    %42 = vector.load %arg8[%c0_31, %c0_32, %c0_33] : memref<2x16x32xf32, #tpu.memory_space<vmem>>, vector<1x16x32xf32>
    %43 = vector.shape_cast %42 : vector<1x16x32xf32> to vector<16x32xf32>
    %cst_34 = arith.constant dense<0.000000e+00> : vector<16x32xf32>
    %44 = tpu.matmul %41, %43, %cst_34 {dimension_numbers = #tpu.dot_dimension_numbers<[1], [0], [0], [1], [0, 0, 1, 1], [], []>} : vector<16x16xf32>, vector<16x32xf32>, vector<16x32xf32> -> vector<16x32xf32>
    %45 = arith.addf %4, %44 : vector<16x32xf32>
    %c1 = arith.constant 1 : index
    %c0_35 = arith.constant 0 : index
    %c0_36 = arith.constant 0 : index
    %46 = vector.load %arg2[%c1, %c0_35, %c0_36] : memref<2x32x16xf32, #tpu.memory_space<vmem>>, vector<1x32x16xf32>
    %47 = vector.shape_cast %46 : vector<1x32x16xf32> to vector<32x16xf32>
    %cst_37 = arith.constant dense<0.000000e+00> : vector<16x16xf32>
    %48 = tpu.matmul %1, %47, %cst_37 {dimension_numbers = #tpu.dot_dimension_numbers<[1], [0], [0], [1], [0, 0, 1, 1], [], []>} : vector<16x32xf32>, vector<32x16xf32>, vector<16x16xf32> -> vector<16x16xf32>
    %c1_38 = arith.constant 1 : index
    %c0_39 = arith.constant 0 : index
    %c0_40 = arith.constant 0 : index
    %49 = vector.load %arg3[%c1_38, %c0_39, %c0_40] : memref<2x1x16xf32, #tpu.memory_space<vmem>>, vector<1x1x16xf32>
    %50 = vector.shape_cast %49 : vector<1x1x16xf32> to vector<1x16xf32>
    %51 = vector.broadcast %50 : vector<1x16xf32> to vector<16x16xf32>
    %52 = arith.addf %48, %51 : vector<16x16xf32>
    %c1_41 = arith.constant 1 : index
    %c0_42 = arith.constant 0 : index
    %c0_43 = arith.constant 0 : index
    %53 = vector.load %arg4[%c1_41, %c0_42, %c0_43] : memref<2x32x16xf32, #tpu.memory_space<vmem>>, vector<1x32x16xf32>
    %54 = vector.shape_cast %53 : vector<1x32x16xf32> to vector<32x16xf32>
    %cst_44 = arith.constant dense<0.000000e+00> : vector<16x16xf32>
    %55 = tpu.matmul %1, %54, %cst_44 {dimension_numbers = #tpu.dot_dimension_numbers<[1], [0], [0], [1], [0, 0, 1, 1], [], []>} : vector<16x32xf32>, vector<32x16xf32>, vector<16x16xf32> -> vector<16x16xf32>
    %c1_45 = arith.constant 1 : index
    %c0_46 = arith.constant 0 : index
    %c0_47 = arith.constant 0 : index
    %56 = vector.load %arg5[%c1_45, %c0_46, %c0_47] : memref<2x1x16xf32, #tpu.memory_space<vmem>>, vector<1x1x16xf32>
    %57 = vector.shape_cast %56 : vector<1x1x16xf32> to vector<1x16xf32>
    %58 = vector.broadcast %57 : vector<1x16xf32> to vector<16x16xf32>
    %59 = arith.addf %55, %58 : vector<16x16xf32>
    %c1_48 = arith.constant 1 : index
    %c0_49 = arith.constant 0 : index
    %c0_50 = arith.constant 0 : index
    %60 = vector.load %arg6[%c1_48, %c0_49, %c0_50] : memref<2x32x16xf32, #tpu.memory_space<vmem>>, vector<1x32x16xf32>
    %61 = vector.shape_cast %60 : vector<1x32x16xf32> to vector<32x16xf32>
    %cst_51 = arith.constant dense<0.000000e+00> : vector<16x16xf32>
    %62 = tpu.matmul %1, %61, %cst_51 {dimension_numbers = #tpu.dot_dimension_numbers<[1], [0], [0], [1], [0, 0, 1, 1], [], []>} : vector<16x32xf32>, vector<32x16xf32>, vector<16x16xf32> -> vector<16x16xf32>
    %c1_52 = arith.constant 1 : index
    %c0_53 = arith.constant 0 : index
    %c0_54 = arith.constant 0 : index
    %63 = vector.load %arg7[%c1_52, %c0_53, %c0_54] : memref<2x1x16xf32, #tpu.memory_space<vmem>>, vector<1x1x16xf32>
    %64 = vector.shape_cast %63 : vector<1x1x16xf32> to vector<1x16xf32>
    %65 = vector.broadcast %64 : vector<1x16xf32> to vector<16x16xf32>
    %66 = arith.addf %62, %65 : vector<16x16xf32>
    %cst_55 = arith.constant dense<0.000000e+00> : vector<16x16xf32>
    %67 = tpu.matmul %52, %59, %cst_55 {dimension_numbers = #tpu.dot_dimension_numbers<[1], [1], [0], [0], [0, 0, 1, 0], [], []>} : vector<16x16xf32>, vector<16x16xf32>, vector<16x16xf32> -> vector<16x16xf32>
    %cst_56 = arith.constant 2.500000e-01 : f32
    %68 = vector.broadcast %cst_56 : f32 to vector<16x16xf32>
    %69 = arith.mulf %67, %68 : vector<16x16xf32>
    %70 = vector.broadcast %3 : vector<1x16xf32> to vector<16x16xf32>
    %71 = arith.addf %69, %70 : vector<16x16xf32>
    %cst_57 = arith.constant dense<0xFF800000> : vector<16xf32>
    %72 = vector.multi_reduction <maximumf>, %71, %cst_57 [1] : vector<16x16xf32> to vector<16xf32>
    %73 = vector.shape_cast %72 : vector<16xf32> to vector<16x1xf32>
    %74 = vector.broadcast %73 : vector<16x1xf32> to vector<16x16xf32>
    %75 = arith.subf %71, %74 : vector<16x16xf32>
    %76 = math.exp %75 : vector<16x16xf32>
    %cst_58 = arith.constant dense<0.000000e+00> : vector<16xf32>
    %77 = vector.multi_reduction <add>, %76, %cst_58 [1] : vector<16x16xf32> to vector<16xf32>
    %78 = vector.shape_cast %77 : vector<16xf32> to vector<16x1xf32>
    %79 = tpu.reciprocal %78 {approx = true} : vector<16x1xf32> -> vector<16x1xf32>
    %80 = vector.broadcast %79 : vector<16x1xf32> to vector<16x16xf32>
    %81 = arith.mulf %76, %80 : vector<16x16xf32>
    %cst_59 = arith.constant dense<0.000000e+00> : vector<16x16xf32>
    %82 = tpu.matmul %81, %66, %cst_59 {dimension_numbers = #tpu.dot_dimension_numbers<[1], [0], [0], [1], [0, 0, 1, 1], [], []>} : vector<16x16xf32>, vector<16x16xf32>, vector<16x16xf32> -> vector<16x16xf32>
    %c1_60 = arith.constant 1 : index
    %c0_61 = arith.constant 0 : index
    %c0_62 = arith.constant 0 : index
    %83 = vector.load %arg8[%c1_60, %c0_61, %c0_62] : memref<2x16x32xf32, #tpu.memory_space<vmem>>, vector<1x16x32xf32>
    %84 = vector.shape_cast %83 : vector<1x16x32xf32> to vector<16x32xf32>
    %cst_63 = arith.constant dense<0.000000e+00> : vector<16x32xf32>
    %85 = tpu.matmul %82, %84, %cst_63 {dimension_numbers = #tpu.dot_dimension_numbers<[1], [0], [0], [1], [0, 0, 1, 1], [], []>} : vector<16x16xf32>, vector<16x32xf32>, vector<16x32xf32> -> vector<16x32xf32>
    %86 = arith.addf %45, %85 : vector<16x32xf32>
    %c0_64 = arith.constant 0 : index
    %c0_65 = arith.constant 0 : index
    %87 = vector.load %arg9[%c0_64, %c0_65] : memref<1x32xf32, #tpu.memory_space<vmem>>, vector<1x32xf32>
    %88 = vector.broadcast %87 : vector<1x32xf32> to vector<16x32xf32>
    %89 = arith.addf %86, %88 : vector<16x32xf32>
    %90 = arith.addf %89, %1 : vector<16x32xf32>
    %cst_66 = arith.constant dense<0.000000e+00> : vector<16xf32>
    %91 = vector.multi_reduction <add>, %90, %cst_66 [1] : vector<16x32xf32> to vector<16xf32>
    %92 = vector.shape_cast %91 : vector<16xf32> to vector<16x1xf32>
    %cst_67 = arith.constant 3.200000e+01 : f32
    %93 = vector.broadcast %cst_67 : f32 to vector<16x1xf32>
    %94 = arith.divf %92, %93 : vector<16x1xf32>
    %95 = vector.broadcast %94 : vector<16x1xf32> to vector<16x32xf32>
    %96 = arith.subf %90, %95 : vector<16x32xf32>
    %97 = arith.mulf %96, %96 : vector<16x32xf32>
    %cst_68 = arith.constant dense<0.000000e+00> : vector<16xf32>
    %98 = vector.multi_reduction <add>, %97, %cst_68 [1] : vector<16x32xf32> to vector<16xf32>
    %99 = vector.shape_cast %98 : vector<16xf32> to vector<16x1xf32>
    %cst_69 = arith.constant 3.200000e+01 : f32
    %100 = vector.broadcast %cst_69 : f32 to vector<16x1xf32>
    %101 = arith.divf %99, %100 : vector<16x1xf32>
    %102 = vector.broadcast %94 : vector<16x1xf32> to vector<16x32xf32>
    %103 = arith.subf %90, %102 : vector<16x32xf32>
    %cst_70 = arith.constant 9.99999974E-6 : f32
    %104 = vector.broadcast %cst_70 : f32 to vector<16x1xf32>
    %105 = arith.addf %101, %104 : vector<16x1xf32>
    %106 = math.rsqrt %105 : vector<16x1xf32>
    %107 = vector.broadcast %106 : vector<16x1xf32> to vector<16x32xf32>
    %108 = arith.mulf %103, %107 : vector<16x32xf32>
    %c0_71 = arith.constant 0 : index
    %c0_72 = arith.constant 0 : index
    %c0_73 = arith.constant 0 : index
    %109 = vector.load %arg11[%c0_71, %c0_72, %c0_73] : memref<1x1x32xf32, #tpu.memory_space<vmem>>, vector<1x1x32xf32>
    %110 = vector.shape_cast %109 : vector<1x1x32xf32> to vector<1x32xf32>
    %111 = vector.broadcast %110 : vector<1x32xf32> to vector<16x32xf32>
    %112 = arith.mulf %108, %111 : vector<16x32xf32>
    %c0_74 = arith.constant 0 : index
    %c0_75 = arith.constant 0 : index
    %c0_76 = arith.constant 0 : index
    %113 = vector.load %arg12[%c0_74, %c0_75, %c0_76] : memref<1x1x32xf32, #tpu.memory_space<vmem>>, vector<1x1x32xf32>
    %114 = vector.shape_cast %113 : vector<1x1x32xf32> to vector<1x32xf32>
    %115 = vector.broadcast %114 : vector<1x32xf32> to vector<16x32xf32>
    %116 = arith.addf %112, %115 : vector<16x32xf32>
    %c0_77 = arith.constant 0 : index
    %c0_78 = arith.constant 0 : index
    %c0_79 = arith.constant 0 : index
    %117 = vector.load %arg13[%c0_77, %c0_78, %c0_79] : memref<1x16x1xf32, #tpu.memory_space<vmem>>, vector<1x16x1xf32>
    %118 = vector.shape_cast %117 : vector<1x16x1xf32> to vector<16x1xf32>
    %119 = vector.broadcast %118 : vector<16x1xf32> to vector<16x32xf32>
    %120 = arith.mulf %116, %119 : vector<16x32xf32>
    %c0_80 = arith.constant 0 : index
    %c0_81 = arith.constant 0 : index
    %c0_82 = arith.constant 0 : index
    %121 = vector.load %arg14[%c0_80, %c0_81, %c0_82] : memref<1x16x32xf32, #tpu.memory_space<vmem>>, vector<1x16x32xf32>
    %122 = vector.shape_cast %121 : vector<1x16x32xf32> to vector<16x32xf32>
    %123 = vector.shape_cast %120 : vector<16x32xf32> to vector<1x16x32xf32>
    tpu.vector_store %arg14[%c0_80, %c0_81, %c0_82], %123 {strides = array<i32>} : memref<1x16x32xf32, #tpu.memory_space<vmem>>, vector<1x16x32xf32>,
    return
  }
  func.func @transform_0(%arg0: i32) -> (i32, i32, i32) {
    %c0_i32 = arith.constant 0 : i32
    %c0_i32_0 = arith.constant 0 : i32
    %c0_i32_1 = arith.constant 0 : i32
    return %arg0, %c0_i32, %c0_i32_0 : i32, i32, i32
  }
  func.func @transform_1(%arg0: i32) -> (i32, i32, i32) {
    %c0_i32 = arith.constant 0 : i32
    %c0_i32_0 = arith.constant 0 : i32
    %c0_i32_1 = arith.constant 0 : i32
    %c0_i32_2 = arith.constant 0 : i32
    return %c0_i32, %c0_i32_0, %c0_i32_1 : i32, i32, i32
  }
  func.func @transform_2(%arg0: i32) -> (i32, i32, i32) {
    %c0_i32 = arith.constant 0 : i32
    %c0_i32_0 = arith.constant 0 : i32
    %c0_i32_1 = arith.constant 0 : i32
    %c0_i32_2 = arith.constant 0 : i32
    return %c0_i32, %c0_i32_0, %c0_i32_1 : i32, i32, i32
  }
  func.func @transform_3(%arg0: i32) -> (i32, i32, i32) {
    %c0_i32 = arith.constant 0 : i32
    %c0_i32_0 = arith.constant 0 : i32
    %c0_i32_1 = arith.constant 0 : i32
    %c0_i32_2 = arith.constant 0 : i32
    return %c0_i32, %c0_i32_0, %c0_i32_1 : i32, i32, i32
  }
  func.func @transform_4(%arg0: i32) -> (i32, i32, i32) {
    %c0_i32 = arith.constant 0 : i32
    %c0_i32_0 = arith.constant 0 : i32
    %c0_i32_1 = arith.constant 0 : i32
    %c0_i32_2 = arith.constant 0 : i32
    return %c0_i32, %c0_i32_0, %c0_i32_1 : i32, i32, i32
  }
  func.func @transform_5(%arg0: i32) -> (i32, i32, i32) {
    %c0_i32 = arith.constant 0 : i32
    %c0_i32_0 = arith.constant 0 : i32
    %c0_i32_1 = arith.constant 0 : i32
    %c0_i32_2 = arith.constant 0 : i32
    return %c0_i32, %c0_i32_0, %c0_i32_1 : i32, i32, i32
  }
  func.func @transform_6(%arg0: i32) -> (i32, i32, i32) {
    %c0_i32 = arith.constant 0 : i32
    %c0_i32_0 = arith.constant 0 : i32
    %c0_i32_1 = arith.constant 0 : i32
    %c0_i32_2 = arith.constant 0 : i32
    return %c0_i32, %c0_i32_0, %c0_i32_1 : i32, i32, i32
  }
  func.func @transform_7(%arg0: i32) -> (i32, i32, i32) {
    %c0_i32 = arith.constant 0 : i32
    %c0_i32_0 = arith.constant 0 : i32
    %c0_i32_1 = arith.constant 0 : i32
    %c0_i32_2 = arith.constant 0 : i32
    return %c0_i32, %c0_i32_0, %c0_i32_1 : i32, i32, i32
  }
  func.func @transform_8(%arg0: i32) -> (i32, i32) {
    %c0_i32 = arith.constant 0 : i32
    %c0_i32_0 = arith.constant 0 : i32
    %c0_i32_1 = arith.constant 0 : i32
    return %c0_i32, %c0_i32_0 : i32, i32
  }
  func.func @transform_9(%arg0: i32) -> (i32, i32, i32) {
    %c0_i32 = arith.constant 0 : i32
    %c0_i32_0 = arith.constant 0 : i32
    %c0_i32_1 = arith.constant 0 : i32
    return %arg0, %c0_i32, %c0_i32_0 : i32, i32, i32
  }
  func.func @transform_10(%arg0: i32) -> (i32, i32, i32) {
    %c0_i32 = arith.constant 0 : i32
    %c0_i32_0 = arith.constant 0 : i32
    %c0_i32_1 = arith.constant 0 : i32
    return %arg0, %c0_i32, %c0_i32_0 : i32, i32, i32
  }
  func.func @transform_11(%arg0: i32) -> (i32, i32, i32) {
    %c0_i32 = arith.constant 0 : i32
    %c0_i32_0 = arith.constant 0 : i32
    %c0_i32_1 = arith.constant 0 : i32
    return %arg0, %c0_i32, %c0_i32_0 : i32, i32, i32
  }
  func.func @transform_12(%arg0: i32) -> (i32, i32, i32) {
    %c0_i32 = arith.constant 0 : i32
    %c0_i32_0 = arith.constant 0 : i32
    %c0_i32_1 = arith.constant 0 : i32
    return %arg0, %c0_i32, %c0_i32_0 : i32, i32, i32
  }
  func.func @transform_13(%arg0: i32) -> (i32, i32, i32) {
    %c0_i32 = arith.constant 0 : i32
    %c0_i32_0 = arith.constant 0 : i32
    %c0_i32_1 = arith.constant 0 : i32
    return %arg0, %c0_i32, %c0_i32_0 : i32, i32, i32
  }
}

module attributes {stable_mosaic.version = 11 : i64} {
  func.func @_ffn_saln_kernel(%arg0: i32, %arg1: memref<1x18x32xf32, #tpu.memory_space<vmem>>, %arg2: memref<3x32x64xf32, #tpu.memory_space<vmem>>, %arg3: memref<1x64xf32, #tpu.memory_space<vmem>>, %arg4: memref<64x32xf32, #tpu.memory_space<vmem>>, %arg5: memref<1x32xf32, #tpu.memory_space<vmem>>, %arg6: memref<1x1x32xf32, #tpu.memory_space<vmem>>, %arg7: memref<1x1x32xf32, #tpu.memory_space<vmem>>, %arg8: memref<1x16x1xf32, #tpu.memory_space<vmem>>, %arg9: memref<1x16x32xf32, #tpu.memory_space<vmem>>) attributes {dimension_semantics = [#tpu.dimension_semantics<parallel>], iteration_bounds = array<i64: 2>, scalar_prefetch = 0 : i64, scratch_operands = 0 : i64, tpu.core_type = #tpu.core_type<tc>, window_params = [{transform_indices = @transform_0, window_bounds = array<i64: 1, 18, 32>}, {pipeline_mode = #tpu.pipeline_mode<synchronous>, transform_indices = @transform_1, window_bounds = array<i64: 3, 32, 64>}, {pipeline_mode = #tpu.pipeline_mode<synchronous>, transform_indices = @transform_2, window_bounds = array<i64: 1, 64>}, {pipeline_mode = #tpu.pipeline_mode<synchronous>, transform_indices = @transform_3, window_bounds = array<i64: 64, 32>}, {pipeline_mode = #tpu.pipeline_mode<synchronous>, transform_indices = @transform_4, window_bounds = array<i64: 1, 32>}, {transform_indices = @transform_5, window_bounds = array<i64: 1, 1, 32>}, {transform_indices = @transform_6, window_bounds = array<i64: 1, 1, 32>}, {transform_indices = @transform_7, window_bounds = array<i64: 1, 16, 1>}, {transform_indices = @transform_8, window_bounds = array<i64: 1, 16, 32>}]} {
    %c0 = arith.constant 0 : index
    %c0_0 = arith.constant 0 : index
    %c0_1 = arith.constant 0 : index
    %0 = vector.load %arg1[%c0, %c0_0, %c0_1] : memref<1x18x32xf32, #tpu.memory_space<vmem>>, vector<1x18x32xf32>
    %1 = vector.shape_cast %0 : vector<1x18x32xf32> to vector<18x32xf32>
    %2 = vector.extract_strided_slice %1 {offsets = [1, 0], sizes = [16, 32], strides = [1, 1]} : vector<18x32xf32> to vector<16x32xf32>
    %cst = arith.constant 0.000000e+00 : f32
    %3 = vector.broadcast %cst : f32 to vector<16x64xf32>
    %4 = vector.extract_strided_slice %1 {offsets = [0, 0], sizes = [16, 32], strides = [1, 1]} : vector<18x32xf32> to vector<16x32xf32>
    %c0_2 = arith.constant 0 : index
    %c0_3 = arith.constant 0 : index
    %c0_4 = arith.constant 0 : index
    %5 = vector.load %arg2[%c0_2, %c0_3, %c0_4] : memref<3x32x64xf32, #tpu.memory_space<vmem>>, vector<1x32x64xf32>
    %6 = vector.shape_cast %5 : vector<1x32x64xf32> to vector<32x64xf32>
    %cst_5 = arith.constant dense<0.000000e+00> : vector<16x64xf32>
    %7 = tpu.matmul %4, %6, %cst_5 {dimension_numbers = #tpu.dot_dimension_numbers<[1], [0], [0], [1], [0, 0, 1, 1], [], []>} : vector<16x32xf32>, vector<32x64xf32>, vector<16x64xf32> -> vector<16x64xf32>
    %8 = arith.addf %3, %7 : vector<16x64xf32>
    %9 = vector.extract_strided_slice %1 {offsets = [1, 0], sizes = [16, 32], strides = [1, 1]} : vector<18x32xf32> to vector<16x32xf32>
    %c1 = arith.constant 1 : index
    %c0_6 = arith.constant 0 : index
    %c0_7 = arith.constant 0 : index
    %10 = vector.load %arg2[%c1, %c0_6, %c0_7] : memref<3x32x64xf32, #tpu.memory_space<vmem>>, vector<1x32x64xf32>
    %11 = vector.shape_cast %10 : vector<1x32x64xf32> to vector<32x64xf32>
    %cst_8 = arith.constant dense<0.000000e+00> : vector<16x64xf32>
    %12 = tpu.matmul %9, %11, %cst_8 {dimension_numbers = #tpu.dot_dimension_numbers<[1], [0], [0], [1], [0, 0, 1, 1], [], []>} : vector<16x32xf32>, vector<32x64xf32>, vector<16x64xf32> -> vector<16x64xf32>
    %13 = arith.addf %8, %12 : vector<16x64xf32>
    %14 = vector.extract_strided_slice %1 {offsets = [2, 0], sizes = [16, 32], strides = [1, 1]} : vector<18x32xf32> to vector<16x32xf32>
    %c2 = arith.constant 2 : index
    %c0_9 = arith.constant 0 : index
    %c0_10 = arith.constant 0 : index
    %15 = vector.load %arg2[%c2, %c0_9, %c0_10] : memref<3x32x64xf32, #tpu.memory_space<vmem>>, vector<1x32x64xf32>
    %16 = vector.shape_cast %15 : vector<1x32x64xf32> to vector<32x64xf32>
    %cst_11 = arith.constant dense<0.000000e+00> : vector<16x64xf32>
    %17 = tpu.matmul %14, %16, %cst_11 {dimension_numbers = #tpu.dot_dimension_numbers<[1], [0], [0], [1], [0, 0, 1, 1], [], []>} : vector<16x32xf32>, vector<32x64xf32>, vector<16x64xf32> -> vector<16x64xf32>
    %18 = arith.addf %13, %17 : vector<16x64xf32>
    %c0_12 = arith.constant 0 : index
    %c0_13 = arith.constant 0 : index
    %19 = vector.load %arg3[%c0_12, %c0_13] : memref<1x64xf32, #tpu.memory_space<vmem>>, vector<1x64xf32>
    %20 = vector.broadcast %19 : vector<1x64xf32> to vector<16x64xf32>
    %21 = arith.addf %18, %20 : vector<16x64xf32>
    %cst_14 = arith.constant 0.000000e+00 : f32
    %22 = vector.broadcast %cst_14 : f32 to vector<16x64xf32>
    %23 = arith.maximumf %21, %22 : vector<16x64xf32>
    %c0_15 = arith.constant 0 : index
    %c0_16 = arith.constant 0 : index
    %24 = vector.load %arg4[%c0_15, %c0_16] : memref<64x32xf32, #tpu.memory_space<vmem>>, vector<64x32xf32>
    %cst_17 = arith.constant dense<0.000000e+00> : vector<16x32xf32>
    %25 = tpu.matmul %23, %24, %cst_17 {dimension_numbers = #tpu.dot_dimension_numbers<[1], [0], [0], [1], [0, 0, 1, 1], [], []>} : vector<16x64xf32>, vector<64x32xf32>, vector<16x32xf32> -> vector<16x32xf32>
    %c0_18 = arith.constant 0 : index
    %c0_19 = arith.constant 0 : index
    %26 = vector.load %arg5[%c0_18, %c0_19] : memref<1x32xf32, #tpu.memory_space<vmem>>, vector<1x32xf32>
    %27 = vector.broadcast %26 : vector<1x32xf32> to vector<16x32xf32>
    %28 = arith.addf %25, %27 : vector<16x32xf32>
    %29 = arith.addf %2, %28 : vector<16x32xf32>
    %cst_20 = arith.constant dense<0.000000e+00> : vector<16xf32>
    %30 = vector.multi_reduction <add>, %29, %cst_20 [1] : vector<16x32xf32> to vector<16xf32>
    %31 = vector.shape_cast %30 : vector<16xf32> to vector<16x1xf32>
    %cst_21 = arith.constant 3.200000e+01 : f32
    %32 = vector.broadcast %cst_21 : f32 to vector<16x1xf32>
    %33 = arith.divf %31, %32 : vector<16x1xf32>
    %34 = vector.broadcast %33 : vector<16x1xf32> to vector<16x32xf32>
    %35 = arith.subf %29, %34 : vector<16x32xf32>
    %36 = arith.mulf %35, %35 : vector<16x32xf32>
    %cst_22 = arith.constant dense<0.000000e+00> : vector<16xf32>
    %37 = vector.multi_reduction <add>, %36, %cst_22 [1] : vector<16x32xf32> to vector<16xf32>
    %38 = vector.shape_cast %37 : vector<16xf32> to vector<16x1xf32>
    %cst_23 = arith.constant 3.200000e+01 : f32
    %39 = vector.broadcast %cst_23 : f32 to vector<16x1xf32>
    %40 = arith.divf %38, %39 : vector<16x1xf32>
    %41 = vector.broadcast %33 : vector<16x1xf32> to vector<16x32xf32>
    %42 = arith.subf %29, %41 : vector<16x32xf32>
    %cst_24 = arith.constant 9.99999974E-6 : f32
    %43 = vector.broadcast %cst_24 : f32 to vector<16x1xf32>
    %44 = arith.addf %40, %43 : vector<16x1xf32>
    %45 = math.rsqrt %44 : vector<16x1xf32>
    %46 = vector.broadcast %45 : vector<16x1xf32> to vector<16x32xf32>
    %47 = arith.mulf %42, %46 : vector<16x32xf32>
    %c0_25 = arith.constant 0 : index
    %c0_26 = arith.constant 0 : index
    %c0_27 = arith.constant 0 : index
    %48 = vector.load %arg6[%c0_25, %c0_26, %c0_27] : memref<1x1x32xf32, #tpu.memory_space<vmem>>, vector<1x1x32xf32>
    %49 = vector.shape_cast %48 : vector<1x1x32xf32> to vector<1x32xf32>
    %50 = vector.broadcast %49 : vector<1x32xf32> to vector<16x32xf32>
    %51 = arith.mulf %47, %50 : vector<16x32xf32>
    %c0_28 = arith.constant 0 : index
    %c0_29 = arith.constant 0 : index
    %c0_30 = arith.constant 0 : index
    %52 = vector.load %arg7[%c0_28, %c0_29, %c0_30] : memref<1x1x32xf32, #tpu.memory_space<vmem>>, vector<1x1x32xf32>
    %53 = vector.shape_cast %52 : vector<1x1x32xf32> to vector<1x32xf32>
    %54 = vector.broadcast %53 : vector<1x32xf32> to vector<16x32xf32>
    %55 = arith.addf %51, %54 : vector<16x32xf32>
    %c0_31 = arith.constant 0 : index
    %c0_32 = arith.constant 0 : index
    %c0_33 = arith.constant 0 : index
    %56 = vector.load %arg8[%c0_31, %c0_32, %c0_33] : memref<1x16x1xf32, #tpu.memory_space<vmem>>, vector<1x16x1xf32>
    %57 = vector.shape_cast %56 : vector<1x16x1xf32> to vector<16x1xf32>
    %58 = vector.broadcast %57 : vector<16x1xf32> to vector<16x32xf32>
    %59 = arith.mulf %55, %58 : vector<16x32xf32>
    %c0_34 = arith.constant 0 : index
    %c0_35 = arith.constant 0 : index
    %c0_36 = arith.constant 0 : index
    %60 = vector.load %arg9[%c0_34, %c0_35, %c0_36] : memref<1x16x32xf32, #tpu.memory_space<vmem>>, vector<1x16x32xf32>
    %61 = vector.shape_cast %60 : vector<1x16x32xf32> to vector<16x32xf32>
    %62 = vector.shape_cast %59 : vector<16x32xf32> to vector<1x16x32xf32>
    tpu.vector_store %arg9[%c0_34, %c0_35, %c0_36], %62 {strides = array<i32>} : memref<1x16x32xf32, #tpu.memory_space<vmem>>, vector<1x16x32xf32>,
    return
  }
  func.func @transform_0(%arg0: i32) -> (i32, i32, i32) {
    %c0_i32 = arith.constant 0 : i32
    %c0_i32_0 = arith.constant 0 : i32
    %c0_i32_1 = arith.constant 0 : i32
    return %arg0, %c0_i32, %c0_i32_0 : i32, i32, i32
  }
  func.func @transform_1(%arg0: i32) -> (i32, i32, i32) {
    %c0_i32 = arith.constant 0 : i32
    %c0_i32_0 = arith.constant 0 : i32
    %c0_i32_1 = arith.constant 0 : i32
    %c0_i32_2 = arith.constant 0 : i32
    return %c0_i32, %c0_i32_0, %c0_i32_1 : i32, i32, i32
  }
  func.func @transform_2(%arg0: i32) -> (i32, i32) {
    %c0_i32 = arith.constant 0 : i32
    %c0_i32_0 = arith.constant 0 : i32
    %c0_i32_1 = arith.constant 0 : i32
    return %c0_i32, %c0_i32_0 : i32, i32
  }
  func.func @transform_3(%arg0: i32) -> (i32, i32) {
    %c0_i32 = arith.constant 0 : i32
    %c0_i32_0 = arith.constant 0 : i32
    %c0_i32_1 = arith.constant 0 : i32
    return %c0_i32, %c0_i32_0 : i32, i32
  }
  func.func @transform_4(%arg0: i32) -> (i32, i32) {
    %c0_i32 = arith.constant 0 : i32
    %c0_i32_0 = arith.constant 0 : i32
    %c0_i32_1 = arith.constant 0 : i32
    return %c0_i32, %c0_i32_0 : i32, i32
  }
  func.func @transform_5(%arg0: i32) -> (i32, i32, i32) {
    %c0_i32 = arith.constant 0 : i32
    %c0_i32_0 = arith.constant 0 : i32
    %c0_i32_1 = arith.constant 0 : i32
    return %arg0, %c0_i32, %c0_i32_0 : i32, i32, i32
  }
  func.func @transform_6(%arg0: i32) -> (i32, i32, i32) {
    %c0_i32 = arith.constant 0 : i32
    %c0_i32_0 = arith.constant 0 : i32
    %c0_i32_1 = arith.constant 0 : i32
    return %arg0, %c0_i32, %c0_i32_0 : i32, i32, i32
  }
  func.func @transform_7(%arg0: i32) -> (i32, i32, i32) {
    %c0_i32 = arith.constant 0 : i32
    %c0_i32_0 = arith.constant 0 : i32
    %c0_i32_1 = arith.constant 0 : i32
    return %arg0, %c0_i32, %c0_i32_0 : i32, i32, i32
  }
  func.func @transform_8(%arg0: i32) -> (i32, i32, i32) {
    %c0_i32 = arith.constant 0 : i32
    %c0_i32_0 = arith.constant 0 : i32
    %c0_i32_1 = arith.constant 0 : i32
    return %arg0, %c0_i32, %c0_i32_0 : i32, i32, i32
  }
}

module attributes {stable_mosaic.version = 11 : i64} {
  func.func @_linear_kernel(%arg0: i32, %arg1: memref<32x32xf32, #tpu.memory_space<vmem>>, %arg2: memref<32x16xf32, #tpu.memory_space<vmem>>, %arg3: memref<1x16xf32, #tpu.memory_space<vmem>>, %arg4: memref<32x16xf32, #tpu.memory_space<vmem>>) attributes {dimension_semantics = [#tpu.dimension_semantics<arbitrary>], iteration_bounds = array<i64: 1>, scalar_prefetch = 0 : i64, scratch_operands = 0 : i64, tpu.core_type = #tpu.core_type<tc>, window_params = [{pipeline_mode = #tpu.pipeline_mode<synchronous>, transform_indices = @transform_0, window_bounds = array<i64: 32, 32>}, {pipeline_mode = #tpu.pipeline_mode<synchronous>, transform_indices = @transform_1, window_bounds = array<i64: 32, 16>}, {pipeline_mode = #tpu.pipeline_mode<synchronous>, transform_indices = @transform_2, window_bounds = array<i64: 1, 16>}, {pipeline_mode = #tpu.pipeline_mode<synchronous>, transform_indices = @transform_3, window_bounds = array<i64: 32, 16>}]} {
    %c0 = arith.constant 0 : index
    %c0_0 = arith.constant 0 : index
    %0 = vector.load %arg1[%c0, %c0_0] : memref<32x32xf32, #tpu.memory_space<vmem>>, vector<32x32xf32>
    %c0_1 = arith.constant 0 : index
    %c0_2 = arith.constant 0 : index
    %1 = vector.load %arg2[%c0_1, %c0_2] : memref<32x16xf32, #tpu.memory_space<vmem>>, vector<32x16xf32>
    %cst = arith.constant dense<0.000000e+00> : vector<32x16xf32>
    %2 = tpu.matmul %0, %1, %cst {dimension_numbers = #tpu.dot_dimension_numbers<[1], [0], [0], [1], [0, 0, 1, 1], [], []>} : vector<32x32xf32>, vector<32x16xf32>, vector<32x16xf32> -> vector<32x16xf32>
    %c0_3 = arith.constant 0 : index
    %c0_4 = arith.constant 0 : index
    %3 = vector.load %arg3[%c0_3, %c0_4] : memref<1x16xf32, #tpu.memory_space<vmem>>, vector<1x16xf32>
    %4 = vector.broadcast %3 : vector<1x16xf32> to vector<32x16xf32>
    %5 = arith.addf %2, %4 : vector<32x16xf32>
    %c0_5 = arith.constant 0 : index
    %c0_6 = arith.constant 0 : index
    %6 = vector.load %arg4[%c0_5, %c0_6] : memref<32x16xf32, #tpu.memory_space<vmem>>, vector<32x16xf32>
    tpu.vector_store %arg4[%c0_5, %c0_6], %5 {strides = array<i32>} : memref<32x16xf32, #tpu.memory_space<vmem>>, vector<32x16xf32>,
    return
  }
  func.func @transform_0(%arg0: i32) -> (i32, i32) {
    %c0_i32 = arith.constant 0 : i32
    %c0_i32_0 = arith.constant 0 : i32
    %c0_i32_1 = arith.constant 0 : i32
    return %c0_i32, %c0_i32_0 : i32, i32
  }
  func.func @transform_1(%arg0: i32) -> (i32, i32) {
    %c0_i32 = arith.constant 0 : i32
    %c0_i32_0 = arith.constant 0 : i32
    %c0_i32_1 = arith.constant 0 : i32
    return %c0_i32, %c0_i32_0 : i32, i32
  }
  func.func @transform_2(%arg0: i32) -> (i32, i32) {
    %c0_i32 = arith.constant 0 : i32
    %c0_i32_0 = arith.constant 0 : i32
    %c0_i32_1 = arith.constant 0 : i32
    return %c0_i32, %c0_i32_0 : i32, i32
  }
  func.func @transform_3(%arg0: i32) -> (i32, i32) {
    %c0_i32 = arith.constant 0 : i32
    %c0_i32_0 = arith.constant 0 : i32
    %c0_i32_1 = arith.constant 0 : i32
    return %c0_i32, %c0_i32_0 : i32, i32
  }
}

module attributes {stable_mosaic.version = 11 : i64} {
  func.func @_conv_kernel(%arg0: i32, %arg1: memref<1x20x32xf32, #tpu.memory_space<vmem>>, %arg2: memref<5x32x32xf32, #tpu.memory_space<vmem>>, %arg3: memref<1x32xf32, #tpu.memory_space<vmem>>, %arg4: memref<1x16x32xf32, #tpu.memory_space<vmem>>) attributes {dimension_semantics = [#tpu.dimension_semantics<parallel>], iteration_bounds = array<i64: 2>, scalar_prefetch = 0 : i64, scratch_operands = 0 : i64, tpu.core_type = #tpu.core_type<tc>, window_params = [{transform_indices = @transform_0, window_bounds = array<i64: 1, 20, 32>}, {pipeline_mode = #tpu.pipeline_mode<synchronous>, transform_indices = @transform_1, window_bounds = array<i64: 5, 32, 32>}, {pipeline_mode = #tpu.pipeline_mode<synchronous>, transform_indices = @transform_2, window_bounds = array<i64: 1, 32>}, {transform_indices = @transform_3, window_bounds = array<i64: 1, 16, 32>}]} {
    %c0 = arith.constant 0 : index
    %c0_0 = arith.constant 0 : index
    %c0_1 = arith.constant 0 : index
    %0 = vector.load %arg1[%c0, %c0_0, %c0_1] : memref<1x20x32xf32, #tpu.memory_space<vmem>>, vector<1x20x32xf32>
    %1 = vector.shape_cast %0 : vector<1x20x32xf32> to vector<20x32xf32>
    %cst = arith.constant 0.000000e+00 : f32
    %2 = vector.broadcast %cst : f32 to vector<16x32xf32>
    %3 = vector.extract_strided_slice %1 {offsets = [0, 0], sizes = [16, 32], strides = [1, 1]} : vector<20x32xf32> to vector<16x32xf32>
    %c0_2 = arith.constant 0 : index
    %c0_3 = arith.constant 0 : index
    %c0_4 = arith.constant 0 : index
    %4 = vector.load %arg2[%c0_2, %c0_3, %c0_4] : memref<5x32x32xf32, #tpu.memory_space<vmem>>, vector<1x32x32xf32>
    %5 = vector.shape_cast %4 : vector<1x32x32xf32> to vector<32x32xf32>
    %cst_5 = arith.constant dense<0.000000e+00> : vector<16x32xf32>
    %6 = tpu.matmul %3, %5, %cst_5 {dimension_numbers = #tpu.dot_dimension_numbers<[1], [0], [0], [1], [0, 0, 1, 1], [], []>} : vector<16x32xf32>, vector<32x32xf32>, vector<16x32xf32> -> vector<16x32xf32>
    %7 = arith.addf %2, %6 : vector<16x32xf32>
    %8 = vector.extract_strided_slice %1 {offsets = [1, 0], sizes = [16, 32], strides = [1, 1]} : vector<20x32xf32> to vector<16x32xf32>
    %c1 = arith.constant 1 : index
    %c0_6 = arith.constant 0 : index
    %c0_7 = arith.constant 0 : index
    %9 = vector.load %arg2[%c1, %c0_6, %c0_7] : memref<5x32x32xf32, #tpu.memory_space<vmem>>, vector<1x32x32xf32>
    %10 = vector.shape_cast %9 : vector<1x32x32xf32> to vector<32x32xf32>
    %cst_8 = arith.constant dense<0.000000e+00> : vector<16x32xf32>
    %11 = tpu.matmul %8, %10, %cst_8 {dimension_numbers = #tpu.dot_dimension_numbers<[1], [0], [0], [1], [0, 0, 1, 1], [], []>} : vector<16x32xf32>, vector<32x32xf32>, vector<16x32xf32> -> vector<16x32xf32>
    %12 = arith.addf %7, %11 : vector<16x32xf32>
    %13 = vector.extract_strided_slice %1 {offsets = [2, 0], sizes = [16, 32], strides = [1, 1]} : vector<20x32xf32> to vector<16x32xf32>
    %c2 = arith.constant 2 : index
    %c0_9 = arith.constant 0 : index
    %c0_10 = arith.constant 0 : index
    %14 = vector.load %arg2[%c2, %c0_9, %c0_10] : memref<5x32x32xf32, #tpu.memory_space<vmem>>, vector<1x32x32xf32>
    %15 = vector.shape_cast %14 : vector<1x32x32xf32> to vector<32x32xf32>
    %cst_11 = arith.constant dense<0.000000e+00> : vector<16x32xf32>
    %16 = tpu.matmul %13, %15, %cst_11 {dimension_numbers = #tpu.dot_dimension_numbers<[1], [0], [0], [1], [0, 0, 1, 1], [], []>} : vector<16x32xf32>, vector<32x32xf32>, vector<16x32xf32> -> vector<16x32xf32>
    %17 = arith.addf %12, %16 : vector<16x32xf32>
    %18 = vector.extract_strided_slice %1 {offsets = [3, 0], sizes = [16, 32], strides = [1, 1]} : vector<20x32xf32> to vector<16x32xf32>
    %c3 = arith.constant 3 : index
    %c0_12 = arith.constant 0 : index
    %c0_13 = arith.constant 0 : index
    %19 = vector.load %arg2[%c3, %c0_12, %c0_13] : memref<5x32x32xf32, #tpu.memory_space<vmem>>, vector<1x32x32xf32>
    %20 = vector.shape_cast %19 : vector<1x32x32xf32> to vector<32x32xf32>
    %cst_14 = arith.constant dense<0.000000e+00> : vector<16x32xf32>
    %21 = tpu.matmul %18, %20, %cst_14 {dimension_numbers = #tpu.dot_dimension_numbers<[1], [0], [0], [1], [0, 0, 1, 1], [], []>} : vector<16x32xf32>, vector<32x32xf32>, vector<16x32xf32> -> vector<16x32xf32>
    %22 = arith.addf %17, %21 : vector<16x32xf32>
    %23 = vector.extract_strided_slice %1 {offsets = [4, 0], sizes = [16, 32], strides = [1, 1]} : vector<20x32xf32> to vector<16x32xf32>
    %c4 = arith.constant 4 : index
    %c0_15 = arith.constant 0 : index
    %c0_16 = arith.constant 0 : index
    %24 = vector.load %arg2[%c4, %c0_15, %c0_16] : memref<5x32x32xf32, #tpu.memory_space<vmem>>, vector<1x32x32xf32>
    %25 = vector.shape_cast %24 : vector<1x32x32xf32> to vector<32x32xf32>
    %cst_17 = arith.constant dense<0.000000e+00> : vector<16x32xf32>
    %26 = tpu.matmul %23, %25, %cst_17 {dimension_numbers = #tpu.dot_dimension_numbers<[1], [0], [0], [1], [0, 0, 1, 1], [], []>} : vector<16x32xf32>, vector<32x32xf32>, vector<16x32xf32> -> vector<16x32xf32>
    %27 = arith.addf %22, %26 : vector<16x32xf32>
    %c0_18 = arith.constant 0 : index
    %c0_19 = arith.constant 0 : index
    %28 = vector.load %arg3[%c0_18, %c0_19] : memref<1x32xf32, #tpu.memory_space<vmem>>, vector<1x32xf32>
    %29 = vector.broadcast %28 : vector<1x32xf32> to vector<16x32xf32>
    %30 = arith.addf %27, %29 : vector<16x32xf32>
    %31 = math.tanh %30 : vector<16x32xf32>
    %c0_20 = arith.constant 0 : index
    %c0_21 = arith.constant 0 : index
    %c0_22 = arith.constant 0 : index
    %32 = vector.load %arg4[%c0_20, %c0_21, %c0_22] : memref<1x16x32xf32, #tpu.memory_space<vmem>>, vector<1x16x32xf32>
    %33 = vector.shape_cast %32 : vector<1x16x32xf32> to vector<16x32xf32>
    %34 = vector.shape_cast %31 : vector<16x32xf32> to vector<1x16x32xf32>
    tpu.vector_store %arg4[%c0_20, %c0_21, %c0_22], %34 {strides = array<i32>} : memref<1x16x32xf32, #tpu.memory_space<vmem>>, vector<1x16x32xf32>,
    return
  }
  func.func @transform_0(%arg0: i32) -> (i32, i32, i32) {
    %c0_i32 = arith.constant 0 : i32
    %c0_i32_0 = arith.constant 0 : i32
    %c0_i32_1 = arith.constant 0 : i32
    return %arg0, %c0_i32, %c0_i32_0 : i32, i32, i32
  }
  func.func @transform_1(%arg0: i32) -> (i32, i32, i32) {
    %c0_i32 = arith.constant 0 : i32
    %c0_i32_0 = arith.constant 0 : i32
    %c0_i32_1 = arith.constant 0 : i32
    %c0_i32_2 = arith.constant 0 : i32
    return %c0_i32, %c0_i32_0, %c0_i32_1 : i32, i32, i32
  }
  func.func @transform_2(%arg0: i32) -> (i32, i32) {
    %c0_i32 = arith.constant 0 : i32
    %c0_i32_0 = arith.constant 0 : i32
    %c0_i32_1 = arith.constant 0 : i32
    return %c0_i32, %c0_i32_0 : i32, i32
  }
  func.func @transform_3(%arg0: i32) -> (i32, i32, i32) {
    %c0_i32 = arith.constant 0 : i32
    %c0_i32_0 = arith.constant 0 : i32
    %c0_i32_1 = arith.constant 0 : i32
    return %arg0, %c0_i32, %c0_i32_0 : i32, i32, i32
  }
}

module attributes {stable_mosaic.version = 11 : i64} {
  func.func @_conv_kernel(%arg0: i32, %arg1: memref<1x20x16xf32, #tpu.memory_space<vmem>>, %arg2: memref<5x16x32xf32, #tpu.memory_space<vmem>>, %arg3: memref<1x32xf32, #tpu.memory_space<vmem>>, %arg4: memref<1x16x32xf32, #tpu.memory_space<vmem>>) attributes {dimension_semantics = [#tpu.dimension_semantics<parallel>], iteration_bounds = array<i64: 2>, scalar_prefetch = 0 : i64, scratch_operands = 0 : i64, tpu.core_type = #tpu.core_type<tc>, window_params = [{transform_indices = @transform_0, window_bounds = array<i64: 1, 20, 16>}, {pipeline_mode = #tpu.pipeline_mode<synchronous>, transform_indices = @transform_1, window_bounds = array<i64: 5, 16, 32>}, {pipeline_mode = #tpu.pipeline_mode<synchronous>, transform_indices = @transform_2, window_bounds = array<i64: 1, 32>}, {transform_indices = @transform_3, window_bounds = array<i64: 1, 16, 32>}]} {
    %c0 = arith.constant 0 : index
    %c0_0 = arith.constant 0 : index
    %c0_1 = arith.constant 0 : index
    %0 = vector.load %arg1[%c0, %c0_0, %c0_1] : memref<1x20x16xf32, #tpu.memory_space<vmem>>, vector<1x20x16xf32>
    %1 = vector.shape_cast %0 : vector<1x20x16xf32> to vector<20x16xf32>
    %cst = arith.constant 0.000000e+00 : f32
    %2 = vector.broadcast %cst : f32 to vector<16x32xf32>
    %3 = vector.extract_strided_slice %1 {offsets = [0, 0], sizes = [16, 16], strides = [1, 1]} : vector<20x16xf32> to vector<16x16xf32>
    %c0_2 = arith.constant 0 : index
    %c0_3 = arith.constant 0 : index
    %c0_4 = arith.constant 0 : index
    %4 = vector.load %arg2[%c0_2, %c0_3, %c0_4] : memref<5x16x32xf32, #tpu.memory_space<vmem>>, vector<1x16x32xf32>
    %5 = vector.shape_cast %4 : vector<1x16x32xf32> to vector<16x32xf32>
    %cst_5 = arith.constant dense<0.000000e+00> : vector<16x32xf32>
    %6 = tpu.matmul %3, %5, %cst_5 {dimension_numbers = #tpu.dot_dimension_numbers<[1], [0], [0], [1], [0, 0, 1, 1], [], []>} : vector<16x16xf32>, vector<16x32xf32>, vector<16x32xf32> -> vector<16x32xf32>
    %7 = arith.addf %2, %6 : vector<16x32xf32>
    %8 = vector.extract_strided_slice %1 {offsets = [1, 0], sizes = [16, 16], strides = [1, 1]} : vector<20x16xf32> to vector<16x16xf32>
    %c1 = arith.constant 1 : index
    %c0_6 = arith.constant 0 : index
    %c0_7 = arith.constant 0 : index
    %9 = vector.load %arg2[%c1, %c0_6, %c0_7] : memref<5x16x32xf32, #tpu.memory_space<vmem>>, vector<1x16x32xf32>
    %10 = vector.shape_cast %9 : vector<1x16x32xf32> to vector<16x32xf32>
    %cst_8 = arith.constant dense<0.000000e+00> : vector<16x32xf32>
    %11 = tpu.matmul %8, %10, %cst_8 {dimension_numbers = #tpu.dot_dimension_numbers<[1], [0], [0], [1], [0, 0, 1, 1], [], []>} : vector<16x16xf32>, vector<16x32xf32>, vector<16x32xf32> -> vector<16x32xf32>
    %12 = arith.addf %7, %11 : vector<16x32xf32>
    %13 = vector.extract_strided_slice %1 {offsets = [2, 0], sizes = [16, 16], strides = [1, 1]} : vector<20x16xf32> to vector<16x16xf32>
    %c2 = arith.constant 2 : index
    %c0_9 = arith.constant 0 : index
    %c0_10 = arith.constant 0 : index
    %14 = vector.load %arg2[%c2, %c0_9, %c0_10] : memref<5x16x32xf32, #tpu.memory_space<vmem>>, vector<1x16x32xf32>
    %15 = vector.shape_cast %14 : vector<1x16x32xf32> to vector<16x32xf32>
    %cst_11 = arith.constant dense<0.000000e+00> : vector<16x32xf32>
    %16 = tpu.matmul %13, %15, %cst_11 {dimension_numbers = #tpu.dot_dimension_numbers<[1], [0], [0], [1], [0, 0, 1, 1], [], []>} : vector<16x16xf32>, vector<16x32xf32>, vector<16x32xf32> -> vector<16x32xf32>
    %17 = arith.addf %12, %16 : vector<16x32xf32>
    %18 = vector.extract_strided_slice %1 {offsets = [3, 0], sizes = [16, 16], strides = [1, 1]} : vector<20x16xf32> to vector<16x16xf32>
    %c3 = arith.constant 3 : index
    %c0_12 = arith.constant 0 : index
    %c0_13 = arith.constant 0 : index
    %19 = vector.load %arg2[%c3, %c0_12, %c0_13] : memref<5x16x32xf32, #tpu.memory_space<vmem>>, vector<1x16x32xf32>
    %20 = vector.shape_cast %19 : vector<1x16x32xf32> to vector<16x32xf32>
    %cst_14 = arith.constant dense<0.000000e+00> : vector<16x32xf32>
    %21 = tpu.matmul %18, %20, %cst_14 {dimension_numbers = #tpu.dot_dimension_numbers<[1], [0], [0], [1], [0, 0, 1, 1], [], []>} : vector<16x16xf32>, vector<16x32xf32>, vector<16x32xf32> -> vector<16x32xf32>
    %22 = arith.addf %17, %21 : vector<16x32xf32>
    %23 = vector.extract_strided_slice %1 {offsets = [4, 0], sizes = [16, 16], strides = [1, 1]} : vector<20x16xf32> to vector<16x16xf32>
    %c4 = arith.constant 4 : index
    %c0_15 = arith.constant 0 : index
    %c0_16 = arith.constant 0 : index
    %24 = vector.load %arg2[%c4, %c0_15, %c0_16] : memref<5x16x32xf32, #tpu.memory_space<vmem>>, vector<1x16x32xf32>
    %25 = vector.shape_cast %24 : vector<1x16x32xf32> to vector<16x32xf32>
    %cst_17 = arith.constant dense<0.000000e+00> : vector<16x32xf32>
    %26 = tpu.matmul %23, %25, %cst_17 {dimension_numbers = #tpu.dot_dimension_numbers<[1], [0], [0], [1], [0, 0, 1, 1], [], []>} : vector<16x16xf32>, vector<16x32xf32>, vector<16x32xf32> -> vector<16x32xf32>
    %27 = arith.addf %22, %26 : vector<16x32xf32>
    %c0_18 = arith.constant 0 : index
    %c0_19 = arith.constant 0 : index
    %28 = vector.load %arg3[%c0_18, %c0_19] : memref<1x32xf32, #tpu.memory_space<vmem>>, vector<1x32xf32>
    %29 = vector.broadcast %28 : vector<1x32xf32> to vector<16x32xf32>
    %30 = arith.addf %27, %29 : vector<16x32xf32>
    %31 = math.tanh %30 : vector<16x32xf32>
    %c0_20 = arith.constant 0 : index
    %c0_21 = arith.constant 0 : index
    %c0_22 = arith.constant 0 : index
    %32 = vector.load %arg4[%c0_20, %c0_21, %c0_22] : memref<1x16x32xf32, #tpu.memory_space<vmem>>, vector<1x16x32xf32>
    %33 = vector.shape_cast %32 : vector<1x16x32xf32> to vector<16x32xf32>
    %34 = vector.shape_cast %31 : vector<16x32xf32> to vector<1x16x32xf32>
    tpu.vector_store %arg4[%c0_20, %c0_21, %c0_22], %34 {strides = array<i32>} : memref<1x16x32xf32, #tpu.memory_space<vmem>>, vector<1x16x32xf32>,
    return
  }
  func.func @transform_0(%arg0: i32) -> (i32, i32, i32) {
    %c0_i32 = arith.constant 0 : i32
    %c0_i32_0 = arith.constant 0 : i32
    %c0_i32_1 = arith.constant 0 : i32
    return %arg0, %c0_i32, %c0_i32_0 : i32, i32, i32
  }
  func.func @transform_1(%arg0: i32) -> (i32, i32, i32) {
    %c0_i32 = arith.constant 0 : i32
    %c0_i32_0 = arith.constant 0 : i32
    %c0_i32_1 = arith.constant 0 : i32
    %c0_i32_2 = arith.constant 0 : i32
    return %c0_i32, %c0_i32_0, %c0_i32_1 : i32, i32, i32
  }
  func.func @transform_2(%arg0: i32) -> (i32, i32) {
    %c0_i32 = arith.constant 0 : i32
    %c0_i32_0 = arith.constant 0 : i32
    %c0_i32_1 = arith.constant 0 : i32
    return %c0_i32, %c0_i32_0 : i32, i32
  }
  func.func @transform_3(%arg0: i32) -> (i32, i32, i32) {
    %c0_i32 = arith.constant 0 : i32
    %c0_i32_0 = arith.constant 0 : i32
    %c0_i32_1 = arith.constant 0 : i32
    return %arg0, %c0_i32, %c0_i32_0 : i32, i32, i32
  }
}

module attributes {stable_mosaic.version = 11 : i64} {
  func.func @_conv_kernel(%arg0: i32, %arg1: memref<1x20x32xf32, #tpu.memory_space<vmem>>, %arg2: memref<5x32x16xf32, #tpu.memory_space<vmem>>, %arg3: memref<1x16xf32, #tpu.memory_space<vmem>>, %arg4: memref<1x16x16xf32, #tpu.memory_space<vmem>>) attributes {dimension_semantics = [#tpu.dimension_semantics<parallel>], iteration_bounds = array<i64: 2>, scalar_prefetch = 0 : i64, scratch_operands = 0 : i64, tpu.core_type = #tpu.core_type<tc>, window_params = [{transform_indices = @transform_0, window_bounds = array<i64: 1, 20, 32>}, {pipeline_mode = #tpu.pipeline_mode<synchronous>, transform_indices = @transform_1, window_bounds = array<i64: 5, 32, 16>}, {pipeline_mode = #tpu.pipeline_mode<synchronous>, transform_indices = @transform_2, window_bounds = array<i64: 1, 16>}, {transform_indices = @transform_3, window_bounds = array<i64: 1, 16, 16>}]} {
    %c0 = arith.constant 0 : index
    %c0_0 = arith.constant 0 : index
    %c0_1 = arith.constant 0 : index
    %0 = vector.load %arg1[%c0, %c0_0, %c0_1] : memref<1x20x32xf32, #tpu.memory_space<vmem>>, vector<1x20x32xf32>
    %1 = vector.shape_cast %0 : vector<1x20x32xf32> to vector<20x32xf32>
    %cst = arith.constant 0.000000e+00 : f32
    %2 = vector.broadcast %cst : f32 to vector<16x16xf32>
    %3 = vector.extract_strided_slice %1 {offsets = [0, 0], sizes = [16, 32], strides = [1, 1]} : vector<20x32xf32> to vector<16x32xf32>
    %c0_2 = arith.constant 0 : index
    %c0_3 = arith.constant 0 : index
    %c0_4 = arith.constant 0 : index
    %4 = vector.load %arg2[%c0_2, %c0_3, %c0_4] : memref<5x32x16xf32, #tpu.memory_space<vmem>>, vector<1x32x16xf32>
    %5 = vector.shape_cast %4 : vector<1x32x16xf32> to vector<32x16xf32>
    %cst_5 = arith.constant dense<0.000000e+00> : vector<16x16xf32>
    %6 = tpu.matmul %3, %5, %cst_5 {dimension_numbers = #tpu.dot_dimension_numbers<[1], [0], [0], [1], [0, 0, 1, 1], [], []>} : vector<16x32xf32>, vector<32x16xf32>, vector<16x16xf32> -> vector<16x16xf32>
    %7 = arith.addf %2, %6 : vector<16x16xf32>
    %8 = vector.extract_strided_slice %1 {offsets = [1, 0], sizes = [16, 32], strides = [1, 1]} : vector<20x32xf32> to vector<16x32xf32>
    %c1 = arith.constant 1 : index
    %c0_6 = arith.constant 0 : index
    %c0_7 = arith.constant 0 : index
    %9 = vector.load %arg2[%c1, %c0_6, %c0_7] : memref<5x32x16xf32, #tpu.memory_space<vmem>>, vector<1x32x16xf32>
    %10 = vector.shape_cast %9 : vector<1x32x16xf32> to vector<32x16xf32>
    %cst_8 = arith.constant dense<0.000000e+00> : vector<16x16xf32>
    %11 = tpu.matmul %8, %10, %cst_8 {dimension_numbers = #tpu.dot_dimension_numbers<[1], [0], [0], [1], [0, 0, 1, 1], [], []>} : vector<16x32xf32>, vector<32x16xf32>, vector<16x16xf32> -> vector<16x16xf32>
    %12 = arith.addf %7, %11 : vector<16x16xf32>
    %13 = vector.extract_strided_slice %1 {offsets = [2, 0], sizes = [16, 32], strides = [1, 1]} : vector<20x32xf32> to vector<16x32xf32>
    %c2 = arith.constant 2 : index
    %c0_9 = arith.constant 0 : index
    %c0_10 = arith.constant 0 : index
    %14 = vector.load %arg2[%c2, %c0_9, %c0_10] : memref<5x32x16xf32, #tpu.memory_space<vmem>>, vector<1x32x16xf32>
    %15 = vector.shape_cast %14 : vector<1x32x16xf32> to vector<32x16xf32>
    %cst_11 = arith.constant dense<0.000000e+00> : vector<16x16xf32>
    %16 = tpu.matmul %13, %15, %cst_11 {dimension_numbers = #tpu.dot_dimension_numbers<[1], [0], [0], [1], [0, 0, 1, 1], [], []>} : vector<16x32xf32>, vector<32x16xf32>, vector<16x16xf32> -> vector<16x16xf32>
    %17 = arith.addf %12, %16 : vector<16x16xf32>
    %18 = vector.extract_strided_slice %1 {offsets = [3, 0], sizes = [16, 32], strides = [1, 1]} : vector<20x32xf32> to vector<16x32xf32>
    %c3 = arith.constant 3 : index
    %c0_12 = arith.constant 0 : index
    %c0_13 = arith.constant 0 : index
    %19 = vector.load %arg2[%c3, %c0_12, %c0_13] : memref<5x32x16xf32, #tpu.memory_space<vmem>>, vector<1x32x16xf32>
    %20 = vector.shape_cast %19 : vector<1x32x16xf32> to vector<32x16xf32>
    %cst_14 = arith.constant dense<0.000000e+00> : vector<16x16xf32>
    %21 = tpu.matmul %18, %20, %cst_14 {dimension_numbers = #tpu.dot_dimension_numbers<[1], [0], [0], [1], [0, 0, 1, 1], [], []>} : vector<16x32xf32>, vector<32x16xf32>, vector<16x16xf32> -> vector<16x16xf32>
    %22 = arith.addf %17, %21 : vector<16x16xf32>
    %23 = vector.extract_strided_slice %1 {offsets = [4, 0], sizes = [16, 32], strides = [1, 1]} : vector<20x32xf32> to vector<16x32xf32>
    %c4 = arith.constant 4 : index
    %c0_15 = arith.constant 0 : index
    %c0_16 = arith.constant 0 : index
    %24 = vector.load %arg2[%c4, %c0_15, %c0_16] : memref<5x32x16xf32, #tpu.memory_space<vmem>>, vector<1x32x16xf32>
    %25 = vector.shape_cast %24 : vector<1x32x16xf32> to vector<32x16xf32>
    %cst_17 = arith.constant dense<0.000000e+00> : vector<16x16xf32>
    %26 = tpu.matmul %23, %25, %cst_17 {dimension_numbers = #tpu.dot_dimension_numbers<[1], [0], [0], [1], [0, 0, 1, 1], [], []>} : vector<16x32xf32>, vector<32x16xf32>, vector<16x16xf32> -> vector<16x16xf32>
    %27 = arith.addf %22, %26 : vector<16x16xf32>
    %c0_18 = arith.constant 0 : index
    %c0_19 = arith.constant 0 : index
    %28 = vector.load %arg3[%c0_18, %c0_19] : memref<1x16xf32, #tpu.memory_space<vmem>>, vector<1x16xf32>
    %29 = vector.broadcast %28 : vector<1x16xf32> to vector<16x16xf32>
    %30 = arith.addf %27, %29 : vector<16x16xf32>
    %c0_20 = arith.constant 0 : index
    %c0_21 = arith.constant 0 : index
    %c0_22 = arith.constant 0 : index
    %31 = vector.load %arg4[%c0_20, %c0_21, %c0_22] : memref<1x16x16xf32, #tpu.memory_space<vmem>>, vector<1x16x16xf32>
    %32 = vector.shape_cast %31 : vector<1x16x16xf32> to vector<16x16xf32>
    %33 = vector.shape_cast %30 : vector<16x16xf32> to vector<1x16x16xf32>
    tpu.vector_store %arg4[%c0_20, %c0_21, %c0_22], %33 {strides = array<i32>} : memref<1x16x16xf32, #tpu.memory_space<vmem>>, vector<1x16x16xf32>,
    return
  }
  func.func @transform_0(%arg0: i32) -> (i32, i32, i32) {
    %c0_i32 = arith.constant 0 : i32
    %c0_i32_0 = arith.constant 0 : i32
    %c0_i32_1 = arith.constant 0 : i32
    return %arg0, %c0_i32, %c0_i32_0 : i32, i32, i32
  }
  func.func @transform_1(%arg0: i32) -> (i32, i32, i32) {
    %c0_i32 = arith.constant 0 : i32
    %c0_i32_0 = arith.constant 0 : i32
    %c0_i32_1 = arith.constant 0 : i32
    %c0_i32_2 = arith.constant 0 : i32
    return %c0_i32, %c0_i32_0, %c0_i32_1 : i32, i32, i32
  }
  func.func @transform_2(%arg0: i32) -> (i32, i32) {
    %c0_i32 = arith.constant 0 : i32
    %c0_i32_0 = arith.constant 0 : i32
    %c0_i32_1 = arith.constant 0 : i32
    return %c0_i32, %c0_i32_0 : i32, i32
  }
  func.func @transform_3(%arg0: i32) -> (i32, i32, i32) {
    %c0_i32 = arith.constant 0 : i32
    %c0_i32_0 = arith.constant 0 : i32
    %c0_i32_1 = arith.constant 0 : i32
    return %arg0, %c0_i32, %c0_i32_0 : i32, i32, i32
  }
}

</mosaic_0001>

<bundles_post_ra>
// kernel: forward.22
= control target key start
LH: loop header
LB: loop body
LE: loop exit
PB: predicated region body
PF: predicated region fallthrough
CT: control target
= control target key end

     0   :  { %9 = vsyncpa [#allocation3], 0  ;;  %s504_s15 = smov 0   ;;  %s538_s0 = inlined_call_operand.vmem [shape: f32[2,16,32], index: 0, kind: input, shape index: {}]   ;;  %s539_s1 = inlined_call_operand.hbm [shape: f32[32,32], index: 1, kind: input, shape index: {}]   ;;  %s540_s2 = inlined_call_operand.vmem [shape: f32[1,32], index: 2, kind: input, shape index: {}]   ;;  %s541_s3 = inlined_call_operand.vmem [shape: f32[2,16,1], index: 3, kind: input, shape index: {}]   ;;  %s542_s4 = inlined_call_operand.vmem [shape: f32[2,1,32], index: 4, kind: output, shape index: {}]  }
   0x1 LB: > { %s151_s18 = sshll.u32 %s539_s1, 4  ;;  %s385_s19 = sadd.s32 4294967295, %s473_s15   ;;  %s473_s15 = sphi %s504_s15, %s15_s15   ;;  %s152_s18 = int_to_ptr.hbm [resolvable:$true] %s151_s18 }
   0x2   : > { %p387_p0 = scmp.ge.s32.totalorder %s473_s15, 1  ;;  %p140_p1 = scmp.lt.s32.totalorder %s473_s15, 3 }
   0x3   : > { %p414_p2 = scmp.eq.s32.totalorder %s385_s19, 0  ;;  %s475_s20 = smov [#allocation2]  }
   0x4   : > { %p141_p3 = pnand %p387_p0, %p140_p1  ;;  %s153_s21 = sshll.u32 %s475_s20, 4  ;;  %s154_s21 = int_to_ptr.vmem [resolvable:$true] %s153_s21 }
   0x5   : > { %s476_s22 = smov 128   ;;  %s477_s23 = smov 8  }
   0x6   : > { %p410_p4 = pneg %p141_p3  ;;  %188 = sbr.rel (%p141_p3) target bundleno = 170 (0xaa), region = 36 }
   0x8   : > { %p411_p5 = pnand %p414_p2, %p410_p4 }
   0xa   : > { %413 = dma.hbm_to_vmem [thread:$0]  (!%p411_p5), %s152_s18, 512, %s154_s21, [#allocation3], %s476_s22, %s476_s22, %s477_s23  }
   0xb   : > { %468 = dma.done.wait (%p414_p2), [#allocation3], 512  }
   0xc   : > { %470 = vsyncadd (%p414_p2), [#allocation3], 4294966784  ;;  %p218_p6 = scmp.lt.s32.totalorder %s385_s19, 1  ;;  %v478_v0 = vmov 0   ;;  %vm294_vm0 = vcmask 7168   ;;  %v236_v1 = vld [vmem:[#allocation2 + $0x18] sm:$0xff] }
   0xd   : > { %428 = vset.pattern.permute.xlu0 %v478_v0  ;;  %429 = vset.pattern.permute.xlu1 %v478_v0  ;;  %v235_v2 = vld [vmem:[#allocation2 + $0x10] sm:$0xff]  ;;  %v234_v5 = vld [vmem:[#allocation2 + $0x8] sm:$0xff]  ;;  %v233_v8 = vld [vmem:[#allocation2] sm:$0xff]  ;;  %vm241_vm1 = vcmask 261120   ;;  %vm312_vm2 = vcmask 253952  }
   0xe   : > { %s544_s19 = smov (!%p218_p6, %s385_s19), 1  ;;  %260 = vmatpush.msra.mxu0 %v236_v1  ;;  %402 = vmatpush.msra.mxu1 %v236_v1  ;;  %v430_v21 = vld [vmem:[%s540_s2] ss:$0 sm:$0xff] }
   0xf   : > { %s400_s24 = sshll.u32 %s544_s19, 4  ;;  %s230_s9 = scalar_lea.vmem %s542_s4, %s544_s19 }
  0x10   : > { %s227_s27 = scalar_lea.vmem %s541_s3, %s400_s24  ;;  %s222_s30 = scalar_lea.vmem %s538_s0, %s400_s24  ;;  %261 = vmatpush.msra.mxu0 %v235_v2  ;;  %403 = vmatpush.msra.mxu1 %v235_v2 }
  0x11   : > { %v271_v3 = vld [vmem:[%s227_s27] sm:$0xff]  ;;  %v272_v6 = vld [vmem:[%s227_s27 + $0x8] sm:$0xff] }
  0x12   : > { %v295_v4 = vsel %vm294_vm0, %v271_v3, 0.0  ;;  %275 = vperm.xlu0 %428, %v271_v3   ;;  %v296_v7 = vsel %vm294_vm0, %v272_v6, 0.0  ;;  %262 = vmatpush.msra.mxu0 %v234_v5  ;;  %v231_v10 = vld [vmem:[%s222_s30] sm:$0xff]  ;;  %v232_v11 = vld [vmem:[%s222_s30 + $0x8] sm:$0xff] }
  0x13   : > { %v297_v9 = vadd.f32 %v296_v7, %v295_v4  ;;  %404 = vmatpush.msra.mxu1 %v234_v5 }
  0x14   : > { %263 = vmatpush.msra.mxu0 %v233_v8 }
  0x15   : > { %v298_v12 = vrot.slane %v297_v9, 4  ;;  %405 = vmatpush.msra.mxu1 %v233_v8  ;;  %396 = vmatmul.msk.f32.vlgmr.msra.gmra.mxu0 %vm241_vm1, %v231_v10 }
  0x16   : > { %397 = vmatmul.msk.f32.vlgmr.msra.gmra.mxu1 %vm241_vm1, %v232_v11 }
  0x17   : > { %v299_v13 = vadd.f32 %v298_v12, %v297_v9 }
  0x19   : > { %v300_v14 = vrot.slane %v299_v13, 2 }
  0x1a   : > { %280 = vperm.xlu0 %428, %v272_v6  }
  0x1b   : > { %v301_v15 = vadd.f32 %v300_v14, %v299_v13 }
  0x1d   : > { %v302_v16 = vrot.slane %v301_v15, 1 }
  0x1f   : > { %v303_v17 = vadd.f32 %v302_v16, %v301_v15 }
  0x21   : > { %v304_v18 = vmax.f32 %v303_v17, 1.0 }
  0x23   : > { %431 = vrcp.f32 %v304_v18 }
  0x29   : > { %v432_v19 = vpop.eup %431 }
  0x2a   : > { %308 = vperm.xlu1 %429, %v432_v19  }
  0x84   : > { %v276_v20 = vpop.permute.xlu0 %275 }
  0x8c   : > { %v281_v26 = vpop.permute.xlu0 %280 }
  0x92   : > { %v265_v22 = vpop.f32.mrf.mxu0 }
  0x93   : > { %v268_v23 = vpop.f32.mrf.mxu1  ;;  %v266_v24 = vadd.f32 %v430_v21, %v265_v22 }
  0x94   : > { %v269_v25 = vadd.f32 %v430_v21, %v268_v23 }
  0x95   : > { %v283_v27 = vmul.f32 %v276_v20, %v266_v24 }
  0x96   : > { %v284_v28 = vmul.f32 %v281_v26, %v269_v25 }
  0x97   : > { %v285_v29 = vsel %vm241_vm1, %v283_v27, 0.0 }
  0x98   : > { %v286_v30 = vsel %vm241_vm1, %v284_v28, 0.0 }
  0x99   : > { %v287_v31 = vadd.f32 %v286_v30, %v285_v29 }
  0x9b   : > { %v288_v32 = vrot.slane %v287_v31, 4 }
  0x9c   : > { %v309_v37 = vpop.permute.xlu1 %308 }
  0x9d   : > { %v289_v33 = vadd.f32 %v288_v32, %v287_v31 }
  0x9f   : > { %v290_v34 = vrot.slane %v289_v33, 2 }
  0xa1   : > { %v291_v35 = vadd.f32 %v290_v34, %v289_v33 }
  0xa3   : > { %v292_v36 = vrot.slane %v291_v35, 1 }
  0xa5   : > { %v293_v38 = vadd.f32 %v292_v36, %v291_v35 }
  0xa7   : > { %v311_v39 = vmul.f32 %v309_v37, %v293_v38 }
  0xa9   : > { %313 = vst.msk [vmem:[%s230_s9] sm:$0x1] %vm312_vm2, %v311_v39 }
  0xaa PF: > { %s15_s15 = sadd.s32 1, %s473_s15  }
  0xab   : > { %p12_p7 = scmp.ge.s32.totalorder %s15_s15, 4  }
  0xad   :  { %14 = sbr.rel (!%p12_p7) target bundleno = 1 (0x1), region = 74 }
  0xb2   :  { %331 = vsyncpa [#allocation3], 1 }
  0xb3   :  { %333 = vsyncpa [#allocation3 + $0x1], 1 }

// kernel: forward.21
= control target key start
LH: loop header
LB: loop body
LE: loop exit
PB: predicated region body
PF: predicated region fallthrough
CT: control target
= control target key end

     0   :  { %18 = vsyncpa [#allocation3], 0  ;;  %s1324_s25 = smov 0   ;;  %s1514_s0 = inlined_call_operand.vmem [shape: f32[2,16,32], index: 0, kind: input, shape index: {}]   ;;  %s1515_s1 = inlined_call_operand.vmem [shape: f32[2,32,16], index: 1, kind: input, shape index: {}]   ;;  %s1516_s2 = inlined_call_operand.vmem [shape: f32[2,1,16], index: 2, kind: input, shape index: {}]   ;;  %s1517_s3 = inlined_call_operand.vmem [shape: f32[2,32,16], index: 3, kind: input, shape index: {}]   ;;  %s1518_s4 = inlined_call_operand.vmem [shape: f32[2,1,16], index: 4, kind: input, shape index: {}]   ;;  %s1519_s5 = inlined_call_operand.vmem [shape: f32[2,32,16], index: 5, kind: input, shape index: {}]   ;;  %s1520_s6 = inlined_call_operand.vmem [shape: f32[2,1,16], index: 6, kind: input, shape index: {}]   ;;  %s1521_s7 = inlined_call_operand.hbm [shape: f32[2,16,32], index: 7, kind: input, shape index: {}]   ;;  %s1522_s8 = inlined_call_operand.vmem [shape: f32[1,32], index: 8, kind: input, shape index: {}]   ;;  %s1523_s9 = inlined_call_operand.vmem [shape: f32[2,1,16], index: 9, kind: input, shape index: {}]   ;;  %s1524_s10 = inlined_call_operand.vmem [shape: f32[2,1,32], index: 10, kind: input, shape index: {}]   ;;  %s1525_s11 = inlined_call_operand.vmem [shape: f32[2,1,32], index: 11, kind: input, shape index: {}]   ;;  %s1526_s12 = inlined_call_operand.vmem [shape: f32[2,16,1], index: 12, kind: input, shape index: {}]   ;;  %s1527_s13 = inlined_call_operand.vmem [shape: f32[2,16,32], index: 13, kind: output, shape index: {}]  }
   0x1 LB: > { %s382_s10 = sshll.u32 %s1521_s7, 4  ;;  %s1099_s11 = sadd.s32 4294967295, %s1248_s25   ;;  %s1248_s25 = sphi %s1324_s25, %s24_s25   ;;  %s383_s10 = int_to_ptr.hbm [resolvable:$true] %s382_s10 }
   0x2   : > { %p1101_p0 = scmp.ge.s32.totalorder %s1248_s25, 1  ;;  %p353_p1 = scmp.lt.s32.totalorder %s1248_s25, 3 }
   0x3   : > { %p1168_p2 = scmp.eq.s32.totalorder %s1099_s11, 0  ;;  %s1250_s28 = smov [#allocation2]  }
   0x4   : > { %p354_p3 = pnand %p1101_p0, %p353_p1  ;;  %s384_s29 = sshll.u32 %s1250_s28, 4  ;;  %s385_s29 = int_to_ptr.vmem [resolvable:$true] %s384_s29 }
   0x5   : > { %s1251_s30 = smov 128   ;;  %s1252_s14 = smov 8  }
   0x6   : > { %p1164_p4 = pneg %p354_p3  ;;  %437 = sbr.rel (%p354_p3) target bundleno = 1228 (0x4cc), region = 72 }
   0x8   : > { %p1165_p5 = pnand %p1168_p2, %p1164_p4 }
   0xa   : > { %1167 = dma.hbm_to_vmem [thread:$0]  (!%p1165_p5), %s383_s10, 512, %s385_s29, [#allocation3], %s1251_s30, %s1251_s30, %s1252_s14  }
   0xb   : > { %1243 = dma.done.wait (%p1168_p2), [#allocation3], 512  }
   0xc   : > { %1245 = vsyncadd (%p1168_p2), [#allocation3], 4294966784  ;;  %p496_p6 = scmp.lt.s32.totalorder %s1099_s11, 1  ;;  %v564_v0 = vld [vmem:[%s1517_s3 + $0x18] sm:$0xff]  ;;  %v563_v1 = vld [vmem:[%s1517_s3 + $0x10] sm:$0xff]  ;;  %vm531_vm0 = vcmask 261120  }
   0xd   : > { %581 = vmatpush.msra.mxu1 %v564_v0  ;;  %v526_v2 = vld [vmem:[%s1515_s1 + $0x18] sm:$0xff]  ;;  %v562_v3 = vld [vmem:[%s1517_s3 + $0x8] sm:$0xff]  ;;  %v561_v4 = vld [vmem:[%s1517_s3] sm:$0xff]  ;;  %vm623_vm1 = vcmask 130048  }
   0xe   : > { %s1529_s11 = smov (!%p496_p6, %s1099_s11), 1  ;;  %550 = vmatpush.msra.mxu0 %v526_v2  ;;  %v525_v5 = vld [vmem:[%s1515_s1 + $0x10] sm:$0xff]  ;;  %v524_v7 = vld [vmem:[%s1515_s1 + $0x8] sm:$0xff]  ;;  %v523_v8 = vld [vmem:[%s1515_s1] sm:$0xff] }
   0xf   : > { %s1338_s15 = sshll.u32 %s1529_s11, 4  ;;  %582 = vmatpush.msra.mxu1 %v563_v1  ;;  %v1184_v11 = vld [vmem:[%s1518_s4] ss:$0 sm:$0xff]  ;;  %s503_s26 = scalar_lea.vmem %s1523_s9, %s1529_s11  ;;  %v595_v20 = vld [vmem:[%s1519_s5 + $0x18] sm:$0xff]  ;;  %v594_v21 = vld [vmem:[%s1519_s5 + $0x10] sm:$0xff] }
  0x10   : > { %s500_s22 = scalar_lea.vmem %s1514_s0, %s1338_s15  ;;  %551 = vmatpush.msra.mxu0 %v525_v5  ;;  %v1185_v15 = vld [vmem:[%s1516_s2] ss:$0 sm:$0xff]  ;;  %612 = vmatpush.msra.mxu2 %v595_v20  ;;  %v593_v22 = vld [vmem:[%s1519_s5 + $0x8] sm:$0xff]  ;;  %v1134_v24 = vld [vmem:[%s1517_s3 + $0x38] sm:$0xff]  ;;  %s514_s11 = scalar_lea.vmem %s1526_s12, %s1338_s15 }
  0x11   : > { %v1362_v6 = vld [vmem:[%s500_s22] sm:$0xff]  ;;  %583 = vmatpush.msra.mxu1 %v562_v3  ;;  %v1374_v9 = vld [vmem:[%s500_s22 + $0x8] sm:$0xff]  ;;  %v1133_v25 = vld [vmem:[%s1517_s3 + $0x30] sm:$0xff]  ;;  %s519_s23 = scalar_lea.vmem %s1527_s13, %s1338_s15 }
  0x12   : > { %552 = vmatpush.msra.mxu0 %v524_v7  ;;  %613 = vmatpush.msra.mxu2 %v594_v21  ;;  %v592_v23 = vld [vmem:[%s1519_s5] sm:$0xff]  ;;  %v1132_v26 = vld [vmem:[%s1517_s3 + $0x28] sm:$0xff]  ;;  %v1127_v37 = vld [vmem:[%s1515_s1 + $0x38] sm:$0xff] }
  0x13   : > { %584 = vmatpush.msra.mxu1 %v561_v4  ;;  %v1131_v27 = vld [vmem:[%s1517_s3 + $0x20] sm:$0xff]  ;;  %v1126_v38 = vld [vmem:[%s1515_s1 + $0x30] sm:$0xff]  ;;  %v1125_v39 = vld [vmem:[%s1515_s1 + $0x28] sm:$0xff] }
  0x14   : > { %1114 = vmatmul.msk.f32.vlgmr.msra.gmra.mxu1 %vm531_vm0, %v1362_v6  ;;  %553 = vmatpush.msra.mxu0 %v523_v8  ;;  %v1422_v28 = vld [vmem:[%s503_s26] ss:$0 sm:$0xff]  ;;  %v1188_v57 = vld [vmem:[%s1518_s4 + $0x1] ss:$0 sm:$0xff]  ;;  %v1141_v62 = vld [vmem:[%s1519_s5 + $0x38] sm:$0xff] }
  0x15   : > { %1112 = vmatmul.msk.f32.vlgmr.msra.gmra.mxu0 %vm531_vm0, %v1362_v6  ;;  %614 = vmatpush.msra.mxu2 %v593_v22  ;;  %v1124_v40 = vld [vmem:[%s1515_s1 + $0x20] sm:$0xff]  ;;  %v1140_v63 = vld [vmem:[%s1519_s5 + $0x30] sm:$0xff]  ;;  %v1139_v0 = vld [vmem:[%s1519_s5 + $0x28] sm:$0xff] }
  0x16   : > { %741 = vmatpush.msrb.mxu1 %v1127_v37  ;;  %v1187_v45 = vld [vmem:[%s1520_s6] ss:$0 sm:$0xff]  ;;  %v718_v5 = vld [vmem:[#allocation2 + $0x8] sm:$0xff] }
  0x17   : > { %615 = vmatpush.msra.mxu2 %v592_v23  ;;  %v1138_v1 = vld [vmem:[%s1519_s5 + $0x20] sm:$0xff] }
  0x18   : > { %1116 = vmatmul.msk.f32.vlgmr.msra.gmra.mxu2 %vm531_vm0, %v1362_v6  ;;  %742 = vmatpush.msrb.mxu1 %v1126_v38 }
  0x19   : > { %774 = vmatpush.msrb.mxu2 %v1134_v24 }
  0x1a   : > { %743 = vmatpush.msrb.mxu1 %v1125_v39 }
  0x1b   : > { %775 = vmatpush.msrb.mxu2 %v1133_v25 }
  0x1c   : > { %1115 = vmatmul.msk.f32.gmra.mxu1 %vm531_vm0, %v1374_v9 }
  0x1d   : > { %1113 = vmatmul.msk.f32.gmra.mxu0 %vm531_vm0, %v1374_v9  ;;  %776 = vmatpush.msrb.mxu2 %v1132_v26 }
  0x1e   : > { %744 = vmatpush.msrb.mxu1 %v1124_v40 }
  0x1f   : > { %777 = vmatpush.msrb.mxu2 %v1131_v27 }
  0x20   : > { %1117 = vmatmul.msk.f32.gmra.mxu2 %vm531_vm0, %v1374_v9 }
  0x24   : > { %1129 = vmatmul.msk.f32.vlgmr.msrb.gmra.mxu1 %vm531_vm0, %v1362_v6 }
  0x28   : > { %1136 = vmatmul.msk.f32.vlgmr.msrb.gmra.mxu2 %vm531_vm0, %v1362_v6 }
  0x2c   : > { %1130 = vmatmul.msk.f32.gmra.mxu1 %vm531_vm0, %v1374_v9 }
  0x30   : > { %1137 = vmatmul.msk.f32.gmra.mxu2 %vm531_vm0, %v1374_v9 }
  0x91   : > { %v586_v10 = vpop.f32.mrf.mxu1 }
  0x92   : > { %v555_v14 = vpop.f32.mrf.mxu0  ;;  %v587_v16 = vadd.f32 %v1184_v11, %v586_v10 }
  0x93   : > { %v556_v17 = vadd.f32 %v1185_v15, %v555_v14 }
  0x99   : > { %v589_v12 = vpop.f32.mrf.mxu1 }
  0x9a   : > { %v590_v13 = vadd.f32 %v1184_v11, %v589_v12  ;;  %v558_v18 = vpop.f32.mrf.mxu0  ;;  %v1189_v11 = vld [vmem:[%s1516_s2 + $0x1] ss:$0 sm:$0xff] }
  0x9b   : > { %v559_v19 = vadd.f32 %v1185_v15, %v558_v18  ;;  %v617_v42 = vpop.f32.mrf.mxu2  ;;  %v717_v15 = vld [vmem:[#allocation2] sm:$0xff] }
  0x9c   : > { %1118 = vmatpush.xpose.msk.msra.mxu3 %vm623_vm1, %v590_v13  ;;  %v618_v49 = vadd.f32 %v1187_v45, %v617_v42  ;;  %v909_v42 = vld [vmem:[#allocation2 + $0x10] sm:$0xff] }
  0xa0   : > { %1119 = vmatpush.xpose.msk.msra.mxu3 %vm623_vm1, %v587_v16 }
  0xa1   : > { %v746_v10 = vpop.f32.mrf.mxu1 }
  0xa2   : > { %v747_v12 = vadd.f32 %v1189_v11, %v746_v10 }
  0xa3   : > { %1120 = vmatmul.msk.f32.vlgmr.msra.gmra.mxu3 %vm623_vm1, %v556_v17  ;;  %v620_v47 = vpop.f32.mrf.mxu2 }
  0xa4   : > { %v621_v50 = vadd.f32 %v1187_v45, %v620_v47  ;;  %807 = vmatpush.msrb.mxu3 %v1141_v62 }
  0xa6   : > { %708 = vmatpush.msrb.mxu0 %v621_v50  ;;  %808 = vmatpush.msrb.mxu3 %v1140_v63  ;;  %v977_v50 = vld [vmem:[%s514_s11] sm:$0xff] }
  0xa8   : > { %709 = vmatpush.msrb.mxu0 %v618_v49  ;;  %809 = vmatpush.msrb.mxu3 %v1139_v0  ;;  %v978_v49 = vld [vmem:[%s514_s11 + $0x8] sm:$0xff] }
  0xa9   : > { %v749_v13 = vpop.f32.mrf.mxu1 }
  0xaa   : > { %810 = vmatpush.msrb.mxu3 %v1138_v1  ;;  %v750_v14 = vadd.f32 %v1189_v11, %v749_v13 }
  0xab   : > { %1121 = vmatmul.msk.f32.gmra.mxu3 %vm623_vm1, %v559_v19  ;;  %v779_v54 = vpop.f32.mrf.mxu2  ;;  %v1190_v19 = vld [vmem:[%s1520_s6 + $0x1] ss:$0 sm:$0xff] }
  0xac   : > { %v780_v60 = vadd.f32 %v1188_v57, %v779_v54  ;;  %960 = vmatpush.msra.mxu3 %v718_v5 }
  0xae   : > { %961 = vmatpush.msra.mxu3 %v717_v15 }
  0xb3   : > { %v782_v58 = vpop.f32.mrf.mxu2  ;;  %1143 = vmatmul.msk.f32.vlgmr.msrb.gmra.mxu3 %vm531_vm0, %v1362_v6 }
  0xb4   : > { %v783_v59 = vadd.f32 %v1188_v57, %v782_v58 }
  0xb6   : > { %1145 = vmatpush.xpose.msk.msra.mxu0 %vm623_vm1, %v783_v59 }
  0xba   : > { %1146 = vmatpush.xpose.msk.msra.mxu0 %vm623_vm1, %v780_v60 }
  0xbb   : > { %1144 = vmatmul.msk.f32.gmra.mxu3 %vm531_vm0, %v1374_v9 }
 0x126   : > { %v653_v29 = vpop.f32.mrf.mxu3 }
 0x127   : > { %v659_v30 = vmul.f32 0.25, %v653_v29 }
 0x129   : > { %v664_v31 = vadd.f32 %v1422_v28, %v659_v30 }
 0x12b   : > { %v666_v32 = vsel %vm623_vm1, %v664_v31, -inf }
 0x12c   : > { %667 = vmax.xlane.f32.xlu0 %v666_v32 }
 0x12e   : > { %v656_v33 = vpop.f32.mrf.mxu3 }
 0x12f   : > { %v660_v34 = vmul.f32 0.25, %v656_v33 }
 0x131   : > { %v665_v35 = vadd.f32 %v1422_v28, %v660_v34 }
 0x133   : > { %v669_v36 = vsel %vm623_vm1, %v665_v35, -inf }
 0x134   : > { %670 = vmax.xlane.f32.xlu0 %v669_v36 }
 0x136   : > { %v812_v17 = vpop.f32.mrf.mxu3 }
 0x137   : > { %v813_v21 = vadd.f32 %v1190_v19, %v812_v17 }
 0x13e   : > { %v815_v20 = vpop.f32.mrf.mxu3 }
 0x13f   : > { %v816_v22 = vadd.f32 %v1190_v19, %v815_v20 }
 0x141   : > { %899 = vmatpush.msra.mxu1 %v816_v22 }
 0x143   : > { %900 = vmatpush.msra.mxu1 %v813_v21 }
 0x19f   : > { %v668_v41 = vpop.xlane.xlu0 %667 }
 0x1a0   : > { %v672_v43 = vsub.f32 %v664_v31, %v668_v41 }
 0x1a2   : > { %v674_v44 = vmul.f32 1.442695, %v672_v43 }
 0x1a4   : > { %1192 = vpow2.f32 %v674_v44 }
 0x1a7   : > { %v671_v46 = vpop.xlane.xlu0 %670 }
 0x1a8   : > { %v673_v48 = vsub.f32 %v665_v35, %v671_v46 }
 0x1aa   : > { %v1193_v51 = vpop.eup %1192  ;;  %v676_v52 = vmul.f32 1.442695, %v673_v48 }
 0x1ab   : > { %v678_v53 = vsel %vm623_vm1, %v1193_v51, 0.0 }
 0x1ac   : > { %1194 = vpow2.f32 %v676_v52  ;;  %679 = vadd.xlane.f32.xlu1 %v678_v53 }
 0x1b2   : > { %v1195_v55 = vpop.eup %1194 }
 0x1b3   : > { %v681_v56 = vsel %vm623_vm1, %v1195_v55, 0.0 }
 0x1b4   : > { %682 = vadd.xlane.f32.xlu1 %v681_v56 }
 0x21f   : > { %v680_v61 = vpop.xlane.xlu1 %679 }
 0x220   : > { %1196 = vrcp.f32 %v680_v61 }
 0x226   : > { %v1197_v2 = vpop.eup %1196 }
 0x227   : > { %v683_v3 = vpop.xlane.xlu1 %682  ;;  %v686_v4 = vmul.f32 %v1197_v2, %v1193_v51  ;;  %v1253_v51 = vmov 0  }
 0x228   : > { %1198 = vrcp.f32 %v683_v3  ;;  %1183 = vset.pattern.permute.xlu0 %v1253_v51  ;;  %1182 = vset.pattern.permute.xlu2 %v1253_v51 }
 0x229   : > { %1122 = vmatmul.msk.f32.vlgmr.msrb.gmra.mxu0 %vm623_vm1, %v686_v4 }
 0x22e   : > { %v1199_v7 = vpop.eup %1198 }
 0x22f   : > { %v687_v8 = vmul.f32 %v1199_v7, %v1195_v55  ;;  %v1191_v55 = vld [vmem:[%s1522_s8] ss:$0 sm:$0xff] }
 0x231   : > { %1123 = vmatmul.msk.f32.gmra.mxu0 %vm623_vm1, %v687_v8 }
 0x239   : > { %1147 = vmatmul.msk.f32.vlgmr.msra.gmra.mxu0 %vm623_vm1, %v747_v12 }
 0x241   : > { %1148 = vmatmul.msk.f32.gmra.mxu0 %vm623_vm1, %v750_v14 }
 0x2a6   : > { %v711_v16 = vpop.f32.mrf.mxu0 }
 0x2a7   : > { %1153 = vmatmul.msk.f32.vlgmr.msra.gmra.mxu3 %vm623_vm1, %v711_v16 }
 0x2ae   : > { %v714_v18 = vpop.f32.mrf.mxu0 }
 0x2af   : > { %1154 = vmatmul.msk.f32.gmra.mxu3 %vm623_vm1, %v714_v18 }
 0x2b6   : > { %v847_v23 = vpop.f32.mrf.mxu0 }
 0x2b7   : > { %v853_v24 = vmul.f32 0.25, %v847_v23 }
 0x2b9   : > { %v855_v25 = vadd.f32 %v1422_v28, %v853_v24 }
 0x2bb   : > { %v857_v26 = vsel %vm623_vm1, %v855_v25, -inf }
 0x2bc   : > { %858 = vmax.xlane.f32.xlu2 %v857_v26 }
 0x2be   : > { %v850_v27 = vpop.f32.mrf.mxu0 }
 0x2bf   : > { %v854_v29 = vmul.f32 0.25, %v850_v27 }
 0x2c1   : > { %v856_v30 = vadd.f32 %v1422_v28, %v854_v29  ;;  %v910_v28 = vld [vmem:[#allocation2 + $0x18] sm:$0xff] }
 0x2c2   : > { %931 = vmatpush.msra.mxu2 %v910_v28 }
 0x2c3   : > { %v860_v31 = vsel %vm623_vm1, %v856_v30, -inf }
 0x2c4   : > { %861 = vmax.xlane.f32.xlu2 %v860_v31  ;;  %932 = vmatpush.msra.mxu2 %v909_v42 }
 0x2dc   : > { %981 = vperm.xlu2 %1182, %v977_v50  }
 0x32a   : > { %v963_v54 = vpop.f32.mrf.mxu3 }
 0x32f   : > { %v859_v32 = vpop.xlane.xlu2 %858 }
 0x330   : > { %v863_v33 = vsub.f32 %v855_v25, %v859_v32 }
 0x332   : > { %v865_v34 = vmul.f32 1.442695, %v863_v33  ;;  %v966_v62 = vpop.f32.mrf.mxu3 }
 0x334   : > { %1200 = vpow2.f32 %v865_v34 }
 0x337   : > { %v862_v35 = vpop.xlane.xlu2 %861 }
 0x338   : > { %v864_v36 = vsub.f32 %v856_v30, %v862_v35 }
 0x33a   : > { %v1201_v37 = vpop.eup %1200  ;;  %v867_v38 = vmul.f32 1.442695, %v864_v36 }
 0x33b   : > { %v869_v39 = vsel %vm623_vm1, %v1201_v37, 0.0 }
 0x33c   : > { %1202 = vpow2.f32 %v867_v38  ;;  %870 = vadd.xlane.f32.xlu0 %v869_v39 }
 0x33f   : > { %v982_v59 = vpop.permute.xlu2 %981 }
 0x342   : > { %v1203_v40 = vpop.eup %1202 }
 0x343   : > { %v872_v41 = vsel %vm623_vm1, %v1203_v40, 0.0 }
 0x344   : > { %873 = vadd.xlane.f32.xlu1 %v872_v41 }
 0x350   : > { %986 = vperm.xlu0 %1183, %v978_v49  }
 0x3af   : > { %v871_v43 = vpop.xlane.xlu0 %870 }
 0x3b0   : > { %1204 = vrcp.f32 %v871_v43 }
 0x3b6   : > { %v1205_v44 = vpop.eup %1204 }
 0x3b7   : > { %v877_v45 = vmul.f32 %v1205_v44, %v1201_v37  ;;  %v874_v46 = vpop.xlane.xlu1 %873 }
 0x3b8   : > { %1206 = vrcp.f32 %v874_v46 }
 0x3b9   : > { %1149 = vmatmul.msk.f32.vlgmr.msra.gmra.mxu1 %vm623_vm1, %v877_v45 }
 0x3be   : > { %v1207_v47 = vpop.eup %1206 }
 0x3bf   : > { %v878_v48 = vmul.f32 %v1207_v47, %v1203_v40 }
 0x3c1   : > { %1150 = vmatmul.msk.f32.gmra.mxu1 %vm623_vm1, %v878_v48 }
 0x3c2   : > { %v987_v2 = vpop.permute.xlu0 %986 }
 0x436   : > { %v902_v52 = vpop.f32.mrf.mxu1 }
 0x437   : > { %1151 = vmatmul.msk.f32.vlgmr.msra.gmra.mxu2 %vm623_vm1, %v902_v52 }
 0x43e   : > { %v905_v53 = vpop.f32.mrf.mxu1 }
 0x43f   : > { %1152 = vmatmul.msk.f32.gmra.mxu2 %vm623_vm1, %v905_v53 }
 0x4ba   : > { %v934_v56 = vpop.f32.mrf.mxu2 }
 0x4bb   : > { %v964_v57 = vadd.f32 %v963_v54, %v934_v56 }
 0x4bd   : > { %v973_v58 = vadd.f32 %v1191_v55, %v964_v57 }
 0x4bf   : > { %v975_v60 = vadd.f32 %v973_v58, %v1362_v6 }
 0x4c1   : > { %v989_v61 = vmul.f32 %v982_v59, %v975_v60 }
 0x4c2   : > { %v937_v63 = vpop.f32.mrf.mxu2 }
 0x4c3   : > { %991 = vst.msk [vmem:[%s519_s23] sm:$0xff] %vm531_vm0, %v989_v61  ;;  %v967_v0 = vadd.f32 %v966_v62, %v937_v63 }
 0x4c5   : > { %v974_v1 = vadd.f32 %v1191_v55, %v967_v0 }
 0x4c7   : > { %v976_v3 = vadd.f32 %v974_v1, %v1374_v9 }
 0x4c9   : > { %v990_v4 = vmul.f32 %v987_v2, %v976_v3 }
 0x4cb   : > { %992 = vst.msk [vmem:[%s519_s23 + $0x8] sm:$0xff] %vm531_vm0, %v990_v4 }
 0x4cc PF: > { %s24_s25 = sadd.s32 1, %s1248_s25  }
 0x4cd   : > { %p21_p7 = scmp.ge.s32.totalorder %s24_s25, 4  }
 0x4cf   :  { %23 = sbr.rel (!%p21_p7) target bundleno = 1 (0x1), region = 126 }
 0x4d4   :  { %1014 = vsyncpa [#allocation3], 1 }
 0x4d5   :  { %1016 = vsyncpa [#allocation3 + $0x1], 1 }

// kernel: forward.20
= control target key start
LH: loop header
LB: loop body
LE: loop exit
PB: predicated region body
PF: predicated region fallthrough
CT: control target
= control target key end

     0   :  { %15 = vsyncpa [#allocation3], 0  ;;  %s1388_s0 = inlined_call_operand.vmem [shape: f32[2,18,16], index: 0, kind: input, shape index: {}]   ;;  %s1389_s1 = inlined_call_operand.vmem [shape: f32[16,32], index: 1, kind: input, shape index: {}]   ;;  %s1390_s2 = inlined_call_operand.vmem [shape: f32[1,32], index: 2, kind: input, shape index: {}]   ;;  %s1391_s3 = inlined_call_operand.hbm [shape: f32[32,32], index: 3, kind: input, shape index: {}]   ;;  %s1392_s4 = inlined_call_operand.vmem [shape: f32[1,32], index: 4, kind: input, shape index: {}]   ;;  %s1393_s5 = inlined_call_operand.vmem [shape: f32[3,32,32], index: 5, kind: input, shape index: {}]   ;;  %s1394_s6 = inlined_call_operand.vmem [shape: f32[1,32], index: 6, kind: input, shape index: {}]   ;;  %s1395_s7 = inlined_call_operand.hbm [shape: f32[3,32,32], index: 7, kind: input, shape index: {}]   ;;  %s1396_s8 = inlined_call_operand.vmem [shape: f32[1,32], index: 8, kind: input, shape index: {}]   ;;  %s1397_s9 = inlined_call_operand.vmem [shape: f32[2,16,1], index: 9, kind: input, shape index: {}]   ;;  %s1398_s10 = inlined_call_operand.vmem [shape: f32[2,16,32], index: 10, kind: output, shape index: {}]  }
   0x1   :  { %16 = vsyncpa [#allocation5], 0  ;;  %s1233_s13 = smov 0  }
   0x2 LB: > { %s290_s16 = sshll.u32 %s1391_s3, 4  ;;  %s965_s17 = sadd.s32 4294967295, %s1170_s13   ;;  %s1170_s13 = sphi %s1233_s13, %s22_s13   ;;  %s291_s16 = int_to_ptr.hbm [resolvable:$true] %s290_s16 }
   0x3   : > { %p967_p0 = scmp.ge.s32.totalorder %s1170_s13, 1  ;;  %p273_p1 = scmp.lt.s32.totalorder %s1170_s13, 3 }
   0x4   : > { %p1029_p2 = scmp.eq.s32.totalorder %s965_s17, 0  ;;  %s1172_s19 = smov [#allocation2]  }
   0x5   : > { %p1244_p3 = pnand %p967_p0, %p273_p1  ;;  %s292_s20 = sshll.u32 %s1172_s19, 4  ;;  %s293_s20 = int_to_ptr.vmem [resolvable:$true] %s292_s20 }
   0x6   : > { %s313_s23 = sshll.u32 %s1395_s7, 4  ;;  %s1173_s24 = smov [#allocation4]   ;;  %s314_s23 = int_to_ptr.hbm [resolvable:$true] %s313_s23 }
   0x7   : > { %p1022_p4 = pneg %p1244_p3  ;;  %s315_s25 = sshll.u32 %s1173_s24, 4  ;;  %s316_s25 = int_to_ptr.vmem [resolvable:$true] %s315_s25 }
   0x8   : > { %s1174_s26 = smov 128   ;;  %s1175_s27 = smov 8  }
   0x9   : > { %p1023_p5 = pnand %p1029_p2, %p1022_p4  ;;  %350 = sbr.rel (%p1244_p3) target bundleno = 563 (0x233), region = 60 }
   0xb   : > { %1025 = dma.hbm_to_vmem [thread:$0]  (!%p1023_p5), %s291_s16, 512, %s293_s20, [#allocation3], %s1174_s26, %s1174_s26, %s1175_s27  }
   0xc   : > { %1028 = dma.hbm_to_vmem [thread:$0]  (!%p1023_p5), %s314_s23, 1536, %s316_s25, [#allocation5], %s1174_s26, %s1174_s26, %s1175_s27  }
   0xe   : > { %1161 = dma.done.wait (%p1029_p2), [#allocation3], 512  }
   0xf   : > { %1163 = vsyncadd (%p1029_p2), [#allocation3], 4294966784 }
  0x10   : > { %1165 = dma.done.wait (%p1029_p2), [#allocation5], 1536  }
  0x11   : > { %1167 = vsyncadd (%p1029_p2), [#allocation5], 4294965760  ;;  %p399_p6 = scmp.lt.s32.totalorder %s965_s17, 1  ;;  %v418_v0 = vld [vmem:[%s1389_s1 + $0x8] sm:$0xff]  ;;  %v417_v1 = vld [vmem:[%s1389_s1] sm:$0xff]  ;;  %vm423_vm0 = vcmask 130048  }
  0x12   : > { %447 = vmatpush.msra.mxu0 %v418_v0  ;;  %v1048_v5 = vld [vmem:[%s1390_s2] ss:$0 sm:$0xff]  ;;  %v495_v6 = vld [vmem:[#allocation2 + $0x18] sm:$0xff]  ;;  %v494_v8 = vld [vmem:[#allocation2 + $0x10] sm:$0xff]  ;;  %vm500_vm1 = vcmask 261120   ;;  %vm607_vm3 = vcmask 1046528  }
  0x13   : > { %s1401_s17 = smov (!%p399_p6, %s965_s17), 1  ;;  %522 = vmatpush.msra.mxu1 %v495_v6  ;;  %v493_v10 = vld [vmem:[#allocation2 + $0x8] sm:$0xff]  ;;  %v492_v12 = vld [vmem:[#allocation2] sm:$0xff]  ;;  %v594_v51 = vld [vmem:[%s1393_s5 + $0x18] sm:$0xff]  ;;  %vm723_vm4 = vcmask 1045504   ;;  %vm871_vm12 = vcmask 261121  }
  0x14   : > { %s1013_s28 = smul.u32 24, %s1401_s17  ;;  %448 = vmatpush.msra.mxu0 %v417_v1  ;;  %v1049_v49 = vld [vmem:[%s1392_s4] ss:$0 sm:$0xff]  ;;  %656 = vmatpush.msra.mxu3 %v594_v51  ;;  %v593_v53 = vld [vmem:[%s1393_s5 + $0x10] sm:$0xff]  ;;  %v592_v55 = vld [vmem:[%s1393_s5 + $0x8] sm:$0xff]  ;;  %vm842_vm15 = vcmask 1040384  }
  0x15   : > { %523 = vmatpush.msra.mxu1 %v494_v8  ;;  %v591_v57 = vld [vmem:[%s1393_s5] sm:$0xff]  ;;  %v990_v61 = vld [vmem:[%s1393_s5 + $0x38] sm:$0xff]  ;;  %v989_v1 = vld [vmem:[%s1393_s5 + $0x30] sm:$0xff] }
  0x16   : > { %s403_s11 = scalar_lea.vmem %s1388_s0, %s1013_s28  ;;  %657 = vmatpush.msra.mxu3 %v593_v53  ;;  %v1002_v62 = vld [vmem:[%s1393_s5 + $0x58] sm:$0xff]  ;;  %629 = vmatpush.msra.mxu2 %v990_v61  ;;  %v1000_v6 = vld [vmem:[%s1393_s5 + $0x48] sm:$0xff]  ;;  %s1011_s28 = sshll.u32 %s1401_s17, 4 }
  0x17   : > { %v414_v2 = vld [vmem:[%s403_s11] sm:$0xff]  ;;  %v415_v3 = vld [vmem:[%s403_s11 + $0x8] sm:$0xff]  ;;  %v416_v4 = vld [vmem:[%s403_s11 + $0x10] sm:$0x3]  ;;  %524 = vmatpush.msra.mxu1 %v493_v10  ;;  %745 = vmatpush.msrb.mxu0 %v1002_v62  ;;  %s408_s11 = scalar_lea.vmem %s1397_s9, %s1011_s28  ;;  %s413_s20 = scalar_lea.vmem %s1398_s10, %s1011_s28 }
  0x18   : > { %979 = vmatmul.msk.f32.vlgmr.msra.gmra.mxu0 %vm423_vm0, %v414_v2  ;;  %658 = vmatpush.msra.mxu3 %v592_v55  ;;  %v762_v63 = vld [vmem:[#allocation4 + $0x58] sm:$0xff]  ;;  %v1001_v2 = vld [vmem:[%s1393_s5 + $0x50] sm:$0xff]  ;;  %v987_v10 = vld [vmem:[%s1393_s5 + $0x20] sm:$0xff] }
  0x19   : > { %525 = vmatpush.msra.mxu1 %v492_v12  ;;  %630 = vmatpush.msra.mxu2 %v989_v1  ;;  %v759_v12 = vld [vmem:[#allocation4 + $0x40] sm:$0xff]  ;;  %v853_v61 = vld [vmem:[%s408_s11 + $0x8] sm:$0xff] }
  0x1a   : > { %659 = vmatpush.msra.mxu3 %v591_v57  ;;  %746 = vmatpush.msrb.mxu0 %v1001_v2  ;;  %v852_v51 = vld [vmem:[%s408_s11] sm:$0xff] }
  0x1b   : > { %775 = vmatpush.msrb.mxu1 %v762_v63 }
  0x1c   : > { %747 = vmatpush.msrb.mxu0 %v1000_v6 }
  0x20   : > { %980 = vmatmul.msk.f32.gmra.mxu0 %vm423_vm0, %v415_v3  ;;  %v761_v3 = vld [vmem:[#allocation4 + $0x50] sm:$0xff] }
  0x21   : > { %776 = vmatpush.msrb.mxu1 %v761_v3 }
  0x28   : > { %981 = vmatmul.msk.f32.gmra.mxu0 %vm423_vm0, %v416_v4  ;;  %vm874_vm0 = vcmask 253952  }
  0x95   : > { %v450_v7 = vpop.f32.mrf.mxu0 }
  0x96   : > { %v451_v9 = vadd.f32 %v1048_v5, %v450_v7  ;;  %v760_v7 = vld [vmem:[#allocation4 + $0x48] sm:$0xff] }
  0x97   : > { %777 = vmatpush.msrb.mxu1 %v760_v7 }
  0x98   : > { %v462_v11 = vand.u32 2147483647, %v451_v9  ;;  %v459_v30 = vmax.f32 %v451_v9, 0.0 }
  0x99   : > { %778 = vmatpush.msrb.mxu1 %v759_v12 }
  0x9a   : > { %v465_v13 = vsub.f32 0.0, %v462_v11  ;;  %v999_v11 = vld [vmem:[%s1393_s5 + $0x40] sm:$0xff] }
  0x9b   : > { %748 = vmatpush.msrb.mxu0 %v999_v11 }
  0x9c   : > { %v468_v14 = vmul.f32 1.442695, %v465_v13 }
  0x9d   : > { %v453_v15 = vpop.f32.mrf.mxu0 }
  0x9e   : > { %1052 = vpow2.f32 %v468_v14  ;;  %v454_v16 = vadd.f32 %v1048_v5, %v453_v15  ;;  %v598_v15 = vld [vmem:[#allocation4 + $0x18] sm:$0xff] }
  0x9f   : > { %707 = vmatpush.msrb.mxu3 %v598_v15 }
  0xa0   : > { %v463_v17 = vand.u32 2147483647, %v454_v16  ;;  %v460_v36 = vmax.f32 %v454_v16, 0.0 }
  0xa2   : > { %v466_v18 = vsub.f32 0.0, %v463_v17 }
  0xa4   : > { %v1053_v19 = vpop.eup %1052  ;;  %v470_v20 = vmul.f32 1.442695, %v466_v18  ;;  %v597_v18 = vld [vmem:[#allocation4 + $0x10] sm:$0xff] }
  0xa5   : > { %v474_v21 = vadd.f32 1.0, %v1053_v19  ;;  %v456_v22 = vpop.f32.mrf.mxu0  ;;  %708 = vmatpush.msrb.mxu3 %v597_v18 }
  0xa6   : > { %1054 = vpow2.f32 %v470_v20  ;;  %v457_v23 = vadd.f32 %v1048_v5, %v456_v22  ;;  %v988_v5 = vld [vmem:[%s1393_s5 + $0x28] sm:$0xff]  ;;  %v670_v22 = vld [vmem:[#allocation4 + $0x30] sm:$0xff] }
  0xa7   : > { %1056 = vlog2.f32 %v474_v21  ;;  %631 = vmatpush.msra.mxu2 %v988_v5  ;;  %v596_v20 = vld [vmem:[#allocation4 + $0x8] sm:$0xff]  ;;  %v671_v21 = vld [vmem:[#allocation4 + $0x38] sm:$0xff] }
  0xa8   : > { %v464_v24 = vand.u32 2147483647, %v457_v23  ;;  %v461_v42 = vmax.f32 %v457_v23, 0.0  ;;  %709 = vmatpush.msrb.mxu3 %v596_v20 }
  0xa9   : > { %632 = vmatpush.msra.mxu2 %v987_v10 }
  0xaa   : > { %v467_v25 = vsub.f32 0.0, %v464_v24 }
  0xab   : > { %684 = vmatpush.msrb.mxu2 %v671_v21 }
  0xac   : > { %v1055_v26 = vpop.eup %1054  ;;  %v472_v27 = vmul.f32 1.442695, %v467_v25 }
  0xad   : > { %v1057_v28 = vpop.eup %1056  ;;  %v475_v29 = vadd.f32 1.0, %v1055_v26  ;;  %685 = vmatpush.msrb.mxu2 %v670_v22 }
  0xae   : > { %v478_v31 = vmul.f32 0.6931472, %v1057_v28  ;;  %1058 = vpow2.f32 %v472_v27  ;;  %v569_v27 = vlaneseq }
  0xaf   : > { %1060 = vlog2.f32 %v475_v29 }
  0xb0   : > { %v483_v32 = vadd.f32 %v478_v31, %v459_v30 }
  0xb2   : > { %1062 = vtanh.f32 %v483_v32  ;;  %v669_v32 = vld [vmem:[#allocation4 + $0x28] sm:$0xff] }
  0xb3   : > { %686 = vmatpush.msrb.mxu2 %v669_v32 }
  0xb4   : > { %v1059_v33 = vpop.eup %1058 }
  0xb5   : > { %v1061_v34 = vpop.eup %1060  ;;  %v476_v35 = vadd.f32 1.0, %v1059_v33  ;;  %v570_v33 = vshrl.u32 %v569_v27, 7 }
  0xb6   : > { %v480_v37 = vmul.f32 0.6931472, %v1061_v34  ;;  %v668_v34 = vld [vmem:[#allocation4 + $0x20] sm:$0xff] }
  0xb7   : > { %1064 = vlog2.f32 %v476_v35  ;;  %687 = vmatpush.msrb.mxu2 %v668_v34  ;;  %vm573_vm2 = vcmp.ge.s32.totalorder %v570_v33, 1  ;;  %v572_v53 = vadd.s32 16, %v570_v33 }
  0xb8   : > { %v1063_v38 = vpop.eup %1062  ;;  %v484_v39 = vadd.f32 %v480_v37, %v460_v36 }
  0xb9   : > { %v489_v40 = vmul.f32 %v1063_v38, %v451_v9  ;;  %vm578_vm5 = vcmp.lt.s32.totalorder %v572_v53, 17 }
  0xba   : > { %1066 = vtanh.f32 %v484_v39 }
  0xbb   : > { %982 = vmatmul.msk.f32.vlgmr.msra.gmra.mxu1 %vm500_vm1, %v489_v40 }
  0xbd   : > { %v1065_v41 = vpop.eup %1064 }
  0xbe   : > { %v482_v43 = vmul.f32 0.6931472, %v1065_v41  ;;  %v1176_v41 = vmov 0.0  }
  0xbf   : > { %v986_v63 = vsel %vm578_vm5, 1.0, %v1176_v41 }
  0xc0   : > { %v1067_v44 = vpop.eup %1066  ;;  %v485_v45 = vadd.f32 %v482_v43, %v461_v42  ;;  %v985_v42 = vsel %vm573_vm2, 1.0, %v1176_v41 }
  0xc1   : > { %v490_v46 = vmul.f32 %v1067_v44, %v454_v16 }
  0xc2   : > { %1068 = vtanh.f32 %v485_v45 }
  0xc3   : > { %983 = vmatmul.msk.f32.gmra.mxu1 %vm500_vm1, %v490_v46 }
  0xc8   : > { %v1069_v47 = vpop.eup %1068 }
  0xc9   : > { %v491_v48 = vmul.f32 %v1069_v47, %v457_v23  ;;  %v595_v23 = vld [vmem:[#allocation4] sm:$0xff] }
  0xca   : > { %710 = vmatpush.msrb.mxu3 %v595_v23 }
  0xcb   : > { %984 = vmatmul.msk.f32.gmra.mxu1 %vm500_vm1, %v491_v48 }
 0x138   : > { %v527_v50 = vpop.f32.mrf.mxu1 }
 0x139   : > { %v1284_v52 = vadd.f32 %v1049_v49, %v527_v50 }
 0x13b   : > { %v539_v54 = vand.u32 2147483647, %v1284_v52  ;;  %v536_v29 = vmax.f32 %v1284_v52, 0.0 }
 0x13d   : > { %v542_v56 = vsub.f32 0.0, %v539_v54  ;;  %v1177_v54 = vmov 0  }
 0x13e   : > { %1047 = vset.pattern.permute.xlu0 %v1177_v54 }
 0x13f   : > { %v545_v58 = vmul.f32 1.442695, %v542_v56  ;;  %856 = vperm.xlu0 %1047, %v852_v51  }
 0x140   : > { %v530_v59 = vpop.f32.mrf.mxu1 }
 0x141   : > { %1070 = vpow2.f32 %v545_v58  ;;  %v1296_v60 = vadd.f32 %v1049_v49, %v530_v59 }
 0x143   : > { %v540_v0 = vand.u32 2147483647, %v1296_v60  ;;  %v537_v38 = vmax.f32 %v1296_v60, 0.0 }
 0x145   : > { %v543_v4 = vsub.f32 0.0, %v540_v0 }
 0x147   : > { %v1071_v8 = vpop.eup %1070  ;;  %v547_v9 = vmul.f32 1.442695, %v543_v4  ;;  %860 = vperm.xlu0 %1047, %v853_v61  }
 0x148   : > { %v551_v13 = vadd.f32 1.0, %v1071_v8  ;;  %v533_v14 = vpop.f32.mrf.mxu1 }
 0x149   : > { %1072 = vpow2.f32 %v547_v9  ;;  %v1323_v16 = vadd.f32 %v1049_v49, %v533_v14 }
 0x14a   : > { %1074 = vlog2.f32 %v551_v13  ;;  %v1051_v13 = vld [vmem:[%s1396_s8] ss:$0 sm:$0xff] }
 0x14b   : > { %v541_v17 = vand.u32 2147483647, %v1323_v16  ;;  %v538_v47 = vmax.f32 %v1323_v16, 0.0 }
 0x14d   : > { %v544_v19 = vsub.f32 0.0, %v541_v17 }
 0x14f   : > { %v1073_v24 = vpop.eup %1072  ;;  %v549_v25 = vmul.f32 1.442695, %v544_v19 }
 0x150   : > { %v1075_v26 = vpop.eup %1074  ;;  %v552_v28 = vadd.f32 1.0, %v1073_v24 }
 0x151   : > { %v555_v30 = vmul.f32 0.6931472, %v1075_v26  ;;  %1076 = vpow2.f32 %v549_v25 }
 0x152   : > { %1078 = vlog2.f32 %v552_v28 }
 0x153   : > { %v560_v31 = vadd.f32 %v555_v30, %v536_v29 }
 0x155   : > { %1080 = vtanh.f32 %v560_v31 }
 0x157   : > { %v1077_v35 = vpop.eup %1076 }
 0x158   : > { %v1079_v36 = vpop.eup %1078  ;;  %v553_v37 = vadd.f32 1.0, %v1077_v35 }
 0x159   : > { %v557_v39 = vmul.f32 0.6931472, %v1079_v36  ;;  %v1050_v36 = vld [vmem:[%s1394_s6] ss:$0 sm:$0xff] }
 0x15a   : > { %1082 = vlog2.f32 %v553_v37 }
 0x15b   : > { %v1081_v40 = vpop.eup %1080  ;;  %v561_v43 = vadd.f32 %v557_v39, %v537_v38 }
 0x15c   : > { %v566_v44 = vmul.f32 %v1081_v40, %v1284_v52 }
 0x15d   : > { %1084 = vtanh.f32 %v561_v43 }
 0x15e   : > { %v1330_v45 = vmul.f32 %v985_v42, %v566_v44 }
 0x160   : > { %v1083_v46 = vpop.eup %1082  ;;  %993 = vmatmul.msk.f32.vlgmr.msra.gmra.mxu3 %vm500_vm1, %v1330_v45  ;;  %v608_v55 = vrot.slane %v1330_v45, 1  ;;  %v724_v57 = vrot.slane %v1330_v45, 2 }
 0x161   : > { %v559_v48 = vmul.f32 0.6931472, %v1083_v46 }
 0x163   : > { %v1085_v49 = vpop.eup %1084  ;;  %v562_v50 = vadd.f32 %v559_v48, %v538_v47 }
 0x164   : > { %v1341_v52 = vmul.f32 %v1085_v49, %v1296_v60 }
 0x165   : > { %1086 = vtanh.f32 %v562_v50 }
 0x166   : > { %v609_v56 = vrot.slane %v1341_v52, 1  ;;  %v725_v58 = vrot.slane %v1341_v52, 2 }
 0x168   : > { %994 = vmatmul.msk.f32.gmra.mxu3 %vm500_vm1, %v1341_v52  ;;  %v610_v59 = vsel %vm607_vm3, %v608_v55, %v609_v56  ;;  %v726_v60 = vsel %vm723_vm4, %v724_v57, %v725_v58 }
 0x169   : > { %991 = vmatmul.msk.f32.vlgmr.msra.gmra.mxu2 %vm500_vm1, %v610_v59  ;;  %1003 = vmatmul.msk.f32.vlgmr.msrb.gmra.mxu0 %vm500_vm1, %v726_v60 }
 0x16a   : > { %1005 = vmatmul.msk.f32.vlgmr.msrb.gmra.mxu1 %vm500_vm1, %v726_v60 }
 0x16b   : > { %v1087_v62 = vpop.eup %1086 }
 0x16c   : > { %v568_v0 = vmul.f32 %v1087_v62, %v1323_v16 }
 0x16e   : > { %v1355_v1 = vmul.f32 %v986_v63, %v568_v0 }
 0x170   : > { %997 = vmatmul.msk.f32.vlgmr.msrb.gmra.mxu3 %vm500_vm1, %v1330_v45  ;;  %v611_v2 = vrot.slane %v1355_v1, 1  ;;  %v727_v3 = vrot.slane %v1355_v1, 2 }
 0x172   : > { %v612_v4 = vsel %vm607_vm3, %v609_v56, %v611_v2  ;;  %v728_v5 = vsel %vm723_vm4, %v725_v58, %v727_v3 }
 0x173   : > { %992 = vmatmul.msk.f32.gmra.mxu2 %vm500_vm1, %v612_v4  ;;  %1004 = vmatmul.msk.f32.gmra.mxu0 %vm500_vm1, %v728_v5 }
 0x174   : > { %1006 = vmatmul.msk.f32.gmra.mxu1 %vm500_vm1, %v728_v5 }
 0x178   : > { %998 = vmatmul.msk.f32.gmra.mxu3 %vm500_vm1, %v1341_v52 }
 0x17b   : > { %995 = vmatmul.msk.f32.vlgmr.msrb.gmra.mxu2 %vm500_vm1, %v610_v59 }
 0x183   : > { %996 = vmatmul.msk.f32.gmra.mxu2 %vm500_vm1, %v612_v4 }
 0x1b1   : > { %v857_v42 = vpop.permute.xlu0 %856 }
 0x1b2   : > { %v862_v54 = vrot.slane %v857_v42, 7 }
 0x1b9   : > { %v861_v2 = vpop.permute.xlu0 %860 }
 0x1e3   : > { %v661_v6 = vpop.f32.mrf.mxu3 }
 0x1e6   : > { %v750_v32 = vpop.f32.mrf.mxu0 }
 0x1e7   : > { %v780_v14 = vpop.f32.mrf.mxu1 }
 0x1eb   : > { %v664_v8 = vpop.f32.mrf.mxu3 }
 0x1ec   : > { %v634_v7 = vpop.f32.mrf.mxu2 }
 0x1ed   : > { %v662_v30 = vadd.f32 %v661_v6, %v634_v7 }
 0x1ef   : > { %v756_v35 = vadd.f32 %v750_v32, %v662_v30 }
 0x1f0   : > { %v753_v49 = vpop.f32.mrf.mxu0 }
 0x1f1   : > { %v783_v21 = vpop.f32.mrf.mxu1  ;;  %v792_v44 = vadd.f32 %v1050_v36, %v756_v35 }
 0x1f3   : > { %v712_v10 = vpop.f32.mrf.mxu3 }
 0x1f6   : > { %v637_v9 = vpop.f32.mrf.mxu2 }
 0x1f7   : > { %v665_v41 = vadd.f32 %v664_v8, %v637_v9 }
 0x1f9   : > { %v757_v53 = vadd.f32 %v753_v49, %v665_v41 }
 0x1fb   : > { %v715_v18 = vpop.f32.mrf.mxu3  ;;  %v793_v62 = vadd.f32 %v1050_v36, %v757_v53 }
 0x1fe   : > { %v689_v11 = vpop.f32.mrf.mxu2 }
 0x1ff   : > { %v713_v12 = vadd.f32 %v712_v10, %v689_v11 }
 0x201   : > { %v786_v15 = vadd.f32 %v780_v14, %v713_v12 }
 0x203   : > { %v798_v16 = vadd.f32 %v1051_v13, %v786_v15 }
 0x205   : > { %v1007_v17 = vmul.f32 -1.442695, %v798_v16 }
 0x206   : > { %v692_v19 = vpop.f32.mrf.mxu2 }
 0x207   : > { %1088 = vpow2.f32 %v1007_v17  ;;  %v716_v20 = vadd.f32 %v715_v18, %v692_v19 }
 0x209   : > { %v787_v22 = vadd.f32 %v783_v21, %v716_v20 }
 0x20b   : > { %v799_v23 = vadd.f32 %v1051_v13, %v787_v22 }
 0x20d   : > { %v1089_v24 = vpop.eup %1088  ;;  %v1008_v25 = vmul.f32 -1.442695, %v799_v23 }
 0x20e   : > { %v806_v26 = vadd.f32 1.0, %v1089_v24 }
 0x20f   : > { %1090 = vpow2.f32 %v1008_v25 }
 0x210   : > { %1092 = vrcp.f32 %v806_v26  ;;  %v819_v34 = vand.u32 2147483648, %v806_v26  ;;  %v817_v38 = vand.u32 2147483647, %v806_v26  ;;  %vm813_vm7 = vweird.f32 %v806_v26 }
 0x212   : > { %v820_v43 = vor.u32 1.1754944e-38, %v819_v34  ;;  %vm818_vm9 = vcmp.eq.f32.partialorder %v817_v38, 8.507059e+37 }
 0x215   : > { %v1091_v27 = vpop.eup %1090 }
 0x216   : > { %v1093_v28 = vpop.eup %1092  ;;  %v807_v29 = vadd.f32 1.0, %v1091_v27 }
 0x217   : > { %v809_v31 = vmul.f32 %v1093_v28, %v806_v26  ;;  %vm814_vm6 = vweird.f32 %v1093_v28 }
 0x218   : > { %1094 = vrcp.f32 %v807_v29  ;;  %vm815_vm8 = vmor %vm813_vm7, %vm814_vm6  ;;  %v834_v55 = vand.u32 2147483648, %v807_v29  ;;  %v832_v58 = vand.u32 2147483647, %v807_v29  ;;  %vm828_vm11 = vweird.f32 %v807_v29 }
 0x219   : > { %v810_v33 = vsub.f32 1.0, %v809_v31 }
 0x21a   : > { %v835_v61 = vor.u32 1.1754944e-38, %v834_v55  ;;  %vm833_vm14 = vcmp.eq.f32.partialorder %v832_v58, 8.507059e+37 }
 0x21b   : > { %v811_v37 = vmul.f32 %v1093_v28, %v810_v33 }
 0x21d   : > { %v812_v39 = vadd.f32 %v1093_v28, %v811_v37 }
 0x21e   : > { %v1095_v40 = vpop.eup %1094 }
 0x21f   : > { %v816_v46 = vsel %vm815_vm8, %v1093_v28, %v812_v39  ;;  %v824_v47 = vmul.f32 %v1095_v40, %v807_v29  ;;  %vm829_vm10 = vweird.f32 %v1095_v40 }
 0x220   : > { %v821_v48 = vsel %vm818_vm9, %v820_v43, %v816_v46  ;;  %vm830_vm13 = vmor %vm828_vm11, %vm829_vm10 }
 0x221   : > { %v838_v50 = vmul.f32 %v821_v48, %v792_v44  ;;  %v825_v51 = vsub.f32 1.0, %v824_v47 }
 0x223   : > { %v843_v56 = vrot.slane %v838_v50, 7  ;;  %v826_v57 = vmul.f32 %v1095_v40, %v825_v51 }
 0x225   : > { %v849_v59 = vadd.f32 %v843_v56, %v1330_v45  ;;  %v827_v60 = vadd.f32 %v1095_v40, %v826_v57  ;;  %v863_v45 = vrot.slane %v861_v2, 7 }
 0x227   : > { %v868_v63 = vmul.f32 %v862_v54, %v849_v59  ;;  %v831_v0 = vsel %vm830_vm13, %v1095_v40, %v827_v60  ;;  %v864_v9 = vsel %vm842_vm15, %v862_v54, %v863_v45 }
 0x228   : > { %v836_v3 = vsel %vm833_vm14, %v835_v61, %v831_v0 }
 0x229   : > { %872 = vst.msk [vmem:[%s413_s20 - $0x1] sm:$0xfe] %vm871_vm12, %v868_v63  ;;  %v839_v4 = vmul.f32 %v836_v3, %v793_v62 }
 0x22b   : > { %v844_v5 = vrot.slane %v839_v4, 7 }
 0x22d   : > { %v845_v6 = vsel %vm842_vm15, %v843_v56, %v844_v5  ;;  %v851_v7 = vadd.f32 %v844_v5, %v1355_v1 }
 0x22e   : > { %v850_v8 = vadd.f32 %v845_v6, %v1341_v52 }
 0x22f   : > { %v870_v10 = vmul.f32 %v863_v45, %v851_v7 }
 0x230   : > { %v869_v11 = vmul.f32 %v864_v9, %v850_v8 }
 0x231   : > { %875 = vst.msk [vmem:[%s413_s20 + $0xf] sm:$0x1] %vm874_vm0, %v870_v10 }
 0x232   : > { %873 = vst.msk [vmem:[%s413_s20 + $0x7] sm:$0xff] %vm500_vm1, %v869_v11 }
 0x233 PF: > { %s22_s13 = sadd.s32 1, %s1170_s13  }
 0x234   : > { %p19_p7 = scmp.ge.s32.totalorder %s22_s13, 4  }
 0x236   :  { %21 = sbr.rel (!%p19_p7) target bundleno = 2 (0x2), region = 106 }
 0x23b   :  { %897 = vsyncpa [#allocation3], 1 }
 0x23c   :  { %899 = vsyncpa [#allocation3 + $0x1], 1 }
 0x23d   :  { %900 = vsyncpa [#allocation5], 1 }

// kernel: forward.23
= control target key start
LH: loop header
LB: loop body
LE: loop exit
PB: predicated region body
PF: predicated region fallthrough
CT: control target
= control target key end

     0   :  { %vm41_vm0 = vcmask 261120   ;;  %vm132_vm1 = vcmask 1041408   ;;  %vm134_vm2 = vcmask 1045508   ;;  %vm136_vm3 = vcmask 1043456   ;;  %s229_s1 = inlined_call_operand.vmem [shape: f32[32,512], index: 1, kind: input, shape index: {}]   ;;  %s230_s0 = inlined_call_operand.vmem [shape: f32[2,32], index: 0, kind: input, shape index: {}]   ;;  %s231_s2 = inlined_call_operand.vmem [shape: f32[1,512], index: 2, kind: input, shape index: {}]   ;;  %s232_s3 = inlined_call_operand.vmem [shape: f32[2,512], index: 3, kind: output, shape index: {}]  }
   0x1   :  { %v29_v0 = vld [vmem:[%s229_s1 + $0x70] sm:$0xff]  ;;  %v30_v1 = vld [vmem:[%s229_s1 + $0x78] sm:$0xff]  ;;  %v28_v6 = vld [vmem:[%s229_s1 + $0x68] sm:$0xff] }
   0x2   :  { %v25_v2 = vld [vmem:[%s229_s1 + $0x50] sm:$0xff]  ;;  %97 = vmatpush.msra.mxu2 %v29_v0  ;;  %117 = vmatpush.msra.mxu3 %v30_v1  ;;  %v26_v3 = vld [vmem:[%s229_s1 + $0x58] sm:$0xff]  ;;  %v27_v7 = vld [vmem:[%s229_s1 + $0x60] sm:$0xff] }
   0x3   :  { %v21_v4 = vld [vmem:[%s229_s1 + $0x30] sm:$0xff]  ;;  %v22_v5 = vld [vmem:[%s229_s1 + $0x38] sm:$0xff]  ;;  %v24_v8 = vld [vmem:[%s229_s1 + $0x48] sm:$0xff]  ;;  %77 = vmatpush.msra.mxu1 %v28_v6  ;;  %57 = vmatpush.msra.mxu0 %v27_v7 }
   0x4   :  { %98 = vmatpush.msra.mxu2 %v25_v2  ;;  %118 = vmatpush.msra.mxu3 %v26_v3  ;;  %v17_v9 = vld [vmem:[%s229_s1 + $0x10] sm:$0xff]  ;;  %v18_v10 = vld [vmem:[%s229_s1 + $0x18] sm:$0xff]  ;;  %v23_v11 = vld [vmem:[%s229_s1 + $0x40] sm:$0xff] }
   0x5   :  { %v14_v12 = vld [vmem:[%s230_s0] sm:$0x3]  ;;  %78 = vmatpush.msra.mxu1 %v24_v8  ;;  %58 = vmatpush.msra.mxu0 %v23_v11  ;;  %v20_v13 = vld [vmem:[%s229_s1 + $0x28] sm:$0xff] }
   0x6   :  { %99 = vmatpush.msra.mxu2 %v21_v4  ;;  %119 = vmatpush.msra.mxu3 %v22_v5  ;;  %v19_v14 = vld [vmem:[%s229_s1 + $0x20] sm:$0xff]  ;;  %v16_v15 = vld [vmem:[%s229_s1 + $0x8] sm:$0xff] }
   0x7   :  { %v15_v16 = vld [vmem:[%s229_s1] sm:$0xff]  ;;  %79 = vmatpush.msra.mxu1 %v20_v13  ;;  %59 = vmatpush.msra.mxu0 %v19_v14 }
   0x8   :  { %100 = vmatpush.msra.mxu2 %v17_v9  ;;  %120 = vmatpush.msra.mxu3 %v18_v10  ;;  %v31_v17 = vld [vmem:[%s231_s2] sm:$0xf] }
   0x9   :  { %146 = vmatmul.msk.f32.vlgmr.msra.gmra.mxu2 %vm41_vm0, %v14_v12  ;;  %147 = vmatmul.msk.f32.vlgmr.msra.gmra.mxu3 %vm41_vm0, %v14_v12  ;;  %v34_v18 = vperm.slane %v31_v17, 1  ;;  %v33_v19 = vperm.slane %v31_v17, 0  ;;  %v35_v20 = vperm.slane %v31_v17, 2  ;;  %v36_v21 = vperm.slane %v31_v17, 3 }
   0xa   :  { %80 = vmatpush.msra.mxu1 %v16_v15  ;;  %60 = vmatpush.msra.mxu0 %v15_v16 }
   0xb   :  { %145 = vmatmul.msk.f32.vlgmr.msra.gmra.mxu1 %vm41_vm0, %v14_v12  ;;  %144 = vmatmul.msk.f32.vlgmr.msra.gmra.mxu0 %vm41_vm0, %v14_v12 }
  0x88   :  { %v82_v22 = vpop.f32.mrf.mxu1  ;;  %v62_v23 = vpop.f32.mrf.mxu0 }
  0x89   :  { %v83_v24 = vadd.f32 %v82_v22, %v34_v18  ;;  %v63_v25 = vadd.f32 %v62_v23, %v33_v19 }
  0x8b   :  { %v129_v28 = vrot.slane %v83_v24, 6 }
  0x8c   :  { %v102_v26 = vpop.f32.mrf.mxu2  ;;  %v122_v27 = vpop.f32.mrf.mxu3 }
  0x8d   :  { %v103_v29 = vadd.f32 %v102_v26, %v35_v20  ;;  %v123_v30 = vadd.f32 %v122_v27, %v36_v21  ;;  %v133_v33 = vsel %vm132_vm1, %v63_v25, %v129_v28 }
  0x8f   :  { %v130_v31 = vrot.slane %v103_v29, 4  ;;  %v131_v32 = vrot.slane %v123_v30, 2 }
  0x91   :  { %v135_v34 = vsel %vm134_vm2, %v130_v31, %v131_v32 }
  0x92   :  { %v137_v35 = vsel %vm136_vm3, %v133_v33, %v135_v34 }
  0x93   :  { %139 = vst [vmem:[%s232_s3] sm:$0xff] %v137_v35 }

// kernel: ne.4
= control target key start
LH: loop header
LB: loop body
LE: loop exit
PB: predicated region body
PF: predicated region fallthrough
CT: control target
= control target key end

     0   :  { %v16_v2 = vmov 0   ;;  %s41_s0 = inlined_call_operand.vmem [shape: f32[2,8], index: 0, kind: input, shape index: {}, may-alias: {0,1}]   ;;  %s42_s1 = inlined_call_operand.vmem [shape: f32[2,8], index: 1, kind: input, shape index: {}, may-alias: {0,1}]   ;;  %s43_s2 = inlined_call_operand.vmem [shape: pred[2,8], index: 2, kind: output, shape index: {}]  }
   0x1   :  { %v3_v0 = vld [vmem:[%s41_s0] sm:$0x3] }
   0x2   :  { %v4_v1 = vld [vmem:[%s42_s1] sm:$0x3] }
   0x3   :  { %vm7_vm0 = vcmp.ne.f32.partialorder %v3_v0, %v4_v1 }
   0x4   :  { %v8_v3 = vsel %vm7_vm0, 1, %v16_v2 }
   0x5   :  { %v10_v4 = vpack.c.b16 0, %v8_v3 }
   0x7   :  { %v11_v5 = vpack.c.b8 0, %v10_v4 }
   0x9   :  { %14 = vst [vmem:[%s43_s2] sm:$0x1] %v11_v5 }

// kernel: custom-call.4
= control target key start
LH: loop header
LB: loop body
LE: loop exit
PB: predicated region body
PF: predicated region fallthrough
CT: control target
= control target key end

     0   :  { %s6_s0 = inlined_call_operand.vmem [shape: u32[2,8], index: 0, kind: output, shape index: {}]  }

// kernel: squeeze.24
= control target key start
LH: loop header
LB: loop body
LE: loop exit
PB: predicated region body
PF: predicated region fallthrough
CT: control target
= control target key end

     0   :  { %vm7_vm0 = vcmask 64512   ;;  %s39_s0 = inlined_call_operand.vmem [shape: f32[16], index: 0, kind: input, shape index: {}]   ;;  %s40_s1 = inlined_call_operand.vmem [shape: f32[2,8], index: 1, kind: output, shape index: {}]  }
   0x1   :  { %v4_v0 = vld [vmem:[%s39_s0] sm:$0x1]  ;;  %s22_s0 = smov 120  }
   0x2   :  { %5 = vst [vmem:[#allocation1] sm:$0x1] %v4_v0 }
   0x9   :  { %v9_v1 = vld [vmem:[#allocation1] sm:$0x1]  }
   0xa   :  { %v6_v2 = vld [vmem:[#allocation1] sm:$0x1]   ;;  %10 = vrot.lane.b32.xlu0 %v9_v1, %s22_s0 }
   0xb   :  { %8 = vst.msk [vmem:[#allocation0] sm:$0x1] %vm7_vm0, %v6_v2  }
  0x7c   :  { %v11_v3 = vpop.permute.xlu0 %10  }
  0x7d   :  { %14 = vst.msk [vmem:[#allocation0 + $0x1] sm:$0x1] %vm7_vm0, %v11_v3  }
  0x84   :  { %v17_v4 = vld [vmem:[#allocation0] sm:$0x3] }
  0x85   :  { %20 = vst [vmem:[%s40_s1] sm:$0x3] %v17_v4 }

// kernel: forward.25
= control target key start
LH: loop header
LB: loop body
LE: loop exit
PB: predicated region body
PF: predicated region fallthrough
CT: control target
= control target key end

     0   :  { %s750_s27 = smov 0   ;;  %s861_s0 = inlined_call_operand.vmem [shape: f32[2,10,32], index: 0, kind: input, shape index: {}]   ;;  %s862_s1 = inlined_call_operand.vmem [shape: f32[3,32,64], index: 1, kind: input, shape index: {}]   ;;  %s863_s2 = inlined_call_operand.vmem [shape: f32[1,64], index: 2, kind: input, shape index: {}]   ;;  %s864_s3 = inlined_call_operand.vmem [shape: f32[64,32], index: 3, kind: input, shape index: {}]   ;;  %s865_s4 = inlined_call_operand.vmem [shape: f32[1,32], index: 4, kind: input, shape index: {}]   ;;  %s866_s5 = inlined_call_operand.vmem [shape: f32[2,1,32], index: 5, kind: input, shape index: {}]   ;;  %s867_s6 = inlined_call_operand.vmem [shape: f32[2,1,32], index: 6, kind: input, shape index: {}]   ;;  %s868_s7 = inlined_call_operand.vmem [shape: f32[2,8,1], index: 7, kind: input, shape index: {}]   ;;  %s869_s8 = inlined_call_operand.vmem [shape: f32[2,8,32], index: 8, kind: output, shape index: {}]  }
   0x1 LB: > { %s649_s28 = sadd.s32 4294967295, %s701_s27   ;;  %p653_p0 = scmp.ge.s32.totalorder %s701_s27, 1  ;;  %s701_s27 = sphi %s750_s27, %s18_s27  }
   0x2   : > { %p287_p1 = scmp.lt.s32.totalorder %s701_s27, 3 }
   0x4   : > { %p288_p2 = pnand %p653_p0, %p287_p1 }
   0x5   : > { %p330_p3 = scmp.lt.s32.totalorder (!%p288_p2), %s649_s28, 1 }
   0x6   : > { %291 = sbr.rel (%p288_p2) target bundleno = 575 (0x23f), region = 52 }
   0xb   : > { %v667_v0 = vld [vmem:[%s862_s1 + $0x58] sm:$0xff]  ;;  %v666_v1 = vld [vmem:[%s862_s1 + $0x50] sm:$0xff]  ;;  %v665_v5 = vld [vmem:[%s862_s1 + $0x48] sm:$0xff]  ;;  %s871_s28 = smov (!%p330_p3, %s649_s28), 1  ;;  %vm366_vm0 = vcmask 261120   ;;  %vm416_vm1 = vcmask 1045504  }
   0xc   : > { %v661_v2 = vld [vmem:[%s862_s1 + $0x38] sm:$0xff]  ;;  %434 = vmatpush.msra.mxu2 %v667_v0  ;;  %v660_v4 = vld [vmem:[%s862_s1 + $0x30] sm:$0xff]  ;;  %v659_v7 = vld [vmem:[%s862_s1 + $0x28] sm:$0xff]  ;;  %s672_s29 = sshll.u32 %s871_s28, 4  ;;  %vm362_vm2 = vcmask 1046528   ;;  %vm461_vm3 = vcmask 523264   ;;  %s337_s21 = scalar_lea.vmem %s866_s5, %s871_s28 }
   0xd   : > { %381 = vmatpush.msra.mxu0 %v661_v2  ;;  %v354_v3 = vld [vmem:[%s862_s1 + $0x18] sm:$0xff]  ;;  %v353_v6 = vld [vmem:[%s862_s1 + $0x10] sm:$0xff]  ;;  %v664_v8 = vld [vmem:[%s862_s1 + $0x40] sm:$0xff]  ;;  %s334_s16 = scalar_lea.vmem %s861_s0, %s672_s29  ;;  %vm490_vm4 = vcmask 261121   ;;  %vm494_vm5 = vcmask 253952   ;;  %v703_v44 = vmov 32.0   ;;  %s340_s24 = scalar_lea.vmem %s867_s6, %s871_s28 }
   0xe   : > { %403 = vmatpush.msra.mxu1 %v354_v3  ;;  %435 = vmatpush.msra.mxu2 %v666_v1  ;;  %v352_v9 = vld [vmem:[%s862_s1 + $0x8] sm:$0xff]  ;;  %v658_v10 = vld [vmem:[%s862_s1 + $0x20] sm:$0xff]  ;;  %v456_v12 = vld [vmem:[%s864_s3 + $0x38] sm:$0xff]  ;;  %689 = vrcp.f32 %v703_v44  ;;  %s656_s15 = sshll.u32 %s871_s28, 3  ;;  %v704_v48 = vmov 0  }
   0xf   : > { %382 = vmatpush.msra.mxu0 %v660_v4  ;;  %v351_v11 = vld [vmem:[%s862_s1] sm:$0xff]  ;;  %v455_v13 = vld [vmem:[%s864_s3 + $0x30] sm:$0xff]  ;;  %v350_v15 = vld [vmem:[%s334_s16 + $0x8] sm:$0x3]  ;;  %473 = vmatpush.msra.mxu3 %v456_v12  ;;  %s344_s18 = scalar_lea.vmem %s868_s7, %s656_s15  ;;  %s348_s29 = scalar_lea.vmem %s869_s8, %s656_s15 }
  0x10   : > { %404 = vmatpush.msra.mxu1 %v353_v6  ;;  %436 = vmatpush.msra.mxu2 %v665_v5  ;;  %v349_v14 = vld [vmem:[%s334_s16] sm:$0xff]  ;;  %v418_v17 = vrot.slane %v350_v15, 2  ;;  %v364_v19 = vrot.slane %v350_v15, 1  ;;  %v454_v20 = vld [vmem:[%s864_s3 + $0x28] sm:$0xff]  ;;  %v452_v24 = vld [vmem:[%s864_s3 + $0x18] sm:$0xff] }
  0x11   : > { %383 = vmatpush.msra.mxu0 %v659_v7  ;;  %v417_v16 = vrot.slane %v349_v14, 2  ;;  %v363_v18 = vrot.slane %v349_v14, 1  ;;  %474 = vmatpush.msra.mxu3 %v455_v13  ;;  %v453_v23 = vld [vmem:[%s864_s3 + $0x20] sm:$0xff]  ;;  %v451_v25 = vld [vmem:[%s864_s3 + $0x10] sm:$0xff]  ;;  %v450_v26 = vld [vmem:[%s864_s3 + $0x8] sm:$0xff] }
  0x12   : > { %405 = vmatpush.msra.mxu1 %v352_v9  ;;  %437 = vmatpush.msra.mxu2 %v664_v8  ;;  %v449_v27 = vld [vmem:[%s864_s3] sm:$0xff] }
  0x13   : > { %384 = vmatpush.msra.mxu0 %v658_v10  ;;  %v419_v21 = vsel %vm416_vm1, %v417_v16, %v418_v17  ;;  %v365_v22 = vsel %vm362_vm2, %v363_v18, %v364_v19  ;;  %475 = vmatpush.msra.mxu3 %v454_v20  ;;  %v685_v31 = vld [vmem:[%s863_s2] ss:$0 sm:$0xff] }
  0x14   : > { %406 = vmatpush.msra.mxu1 %v351_v11  ;;  %668 = vmatmul.msk.f32.vlgmr.msra.gmra.mxu2 %vm366_vm0, %v419_v21  ;;  %v686_v36 = vld [vmem:[%s865_s4] ss:$0 sm:$0xff]  ;;  %v690_v45 = vpop.eup %689 }
  0x15   : > { %663 = vmatmul.msk.f32.vlgmr.msra.gmra.mxu1 %vm366_vm0, %v349_v14  ;;  %662 = vmatmul.msk.f32.vlgmr.msra.gmra.mxu0 %vm366_vm0, %v365_v22  ;;  %v499_v46 = vmul.f32 32.0, %v690_v45  ;;  %v555_v47 = vld [vmem:[%s344_s18] sm:$0xff]  ;;  %vm503_vm6 = vweird.f32 %v690_v45 }
  0x16   : > { %476 = vmatpush.msra.mxu3 %v453_v23  ;;  %683 = vset.pattern.permute.xlu2 %v704_v48  ;;  %v687_v13 = vld [vmem:[%s337_s21] ss:$0 sm:$0xff] }
  0x17   : > { %684 = vset.pattern.permute.xlu0 %v704_v48  ;;  %v500_v49 = vsub.f32 1.0, %v499_v46  ;;  %558 = vperm.xlu2 %683, %v555_v47   ;;  %v688_v18 = vld [vmem:[%s340_s24] ss:$0 sm:$0xff] }
  0x18   : > { %477 = vmatpush.msra.mxu3 %v452_v24 }
  0x19   : > { %v501_v50 = vmul.f32 %v690_v45, %v500_v49 }
  0x1a   : > { %478 = vmatpush.msra.mxu3 %v451_v25 }
  0x1b   : > { %v502_v51 = vadd.f32 %v690_v45, %v501_v50 }
  0x1c   : > { %479 = vmatpush.msra.mxu3 %v450_v26 }
  0x1d   : > { %v504_v52 = vsel %vm503_vm6, %v690_v45, %v502_v51 }
  0x1e   : > { %480 = vmatpush.msra.mxu3 %v449_v27 }
  0x92   : > { %v386_v28 = vpop.f32.mrf.mxu0  ;;  %v408_v29 = vpop.f32.mrf.mxu1 }
  0x93   : > { %v409_v30 = vadd.f32 %v408_v29, %v386_v28 }
  0x97   : > { %v439_v32 = vpop.f32.mrf.mxu2 }
  0x98   : > { %v442_v33 = vadd.f32 %v439_v32, %v409_v30 }
  0x9a   : > { %v447_v34 = vadd.f32 %v685_v31, %v442_v33 }
  0x9c   : > { %v448_v35 = vmax.f32 %v447_v34, 0.0 }
  0x9e   : > { %669 = vmatmul.msk.f32.vlgmr.msra.gmra.mxu3 %vm461_vm3, %v448_v35 }
 0x121   : > { %v482_v37 = vpop.f32.mrf.mxu3 }
 0x122   : > { %v483_v38 = vadd.f32 %v686_v36, %v482_v37 }
 0x124   : > { %v486_v39 = vrot.slane %v483_v38, 7 }
 0x126   : > { %v488_v40 = vadd.f32 %v486_v39, %v349_v14  ;;  %v489_v42 = vadd.f32 %v486_v39, %v350_v15  ;;  %v559_v15 = vpop.permute.xlu2 %558 }
 0x127   : > { %v560_v21 = vrot.slane %v559_v15, 7 }
 0x128   : > { %v491_v41 = vsel %vm490_vm4, %v488_v40, 0.0  ;;  %v495_v43 = vsel %vm494_vm5, %v489_v42, 0.0 }
 0x129   : > { %492 = vadd.xlane.f32.xlu0 %v491_v41 }
 0x131   : > { %496 = vadd.xlane.f32.xlu0 %v495_v43 }
 0x19c   : > { %v493_v53 = vpop.xlane.xlu0 %492 }
 0x19d   : > { %v505_v54 = vmul.f32 %v504_v52, %v493_v53 }
 0x19f   : > { %v507_v55 = vsub.f32 %v488_v40, %v505_v54 }
 0x1a1   : > { %v509_v56 = vmul.f32 %v507_v55, %v507_v55 }
 0x1a3   : > { %v511_v57 = vsel %vm490_vm4, %v509_v56, 0.0 }
 0x1a4   : > { %512 = vadd.xlane.f32.xlu1 %v511_v57  ;;  %v497_v58 = vpop.xlane.xlu0 %496 }
 0x1a5   : > { %v506_v59 = vmul.f32 %v504_v52, %v497_v58 }
 0x1a7   : > { %v508_v60 = vsub.f32 %v489_v42, %v506_v59 }
 0x1a9   : > { %v510_v61 = vmul.f32 %v508_v60, %v508_v60 }
 0x1ab   : > { %v514_v62 = vsel %vm494_vm5, %v510_v61, 0.0 }
 0x1ac   : > { %515 = vadd.xlane.f32.xlu1 %v514_v62 }
 0x217   : > { %v513_v63 = vpop.xlane.xlu1 %512 }
 0x218   : > { %v517_v0 = vmul.f32 %v513_v63, %v504_v52 }
 0x21a   : > { %v519_v1 = vadd.f32 1e-05, %v517_v0 }
 0x21c   : > { %691 = vrsqrt.f32 %v519_v1  ;;  %vm527_vm8 = vweird.f32 %v519_v1 }
 0x21f   : > { %v516_v2 = vpop.xlane.xlu1 %515 }
 0x220   : > { %v518_v3 = vmul.f32 %v516_v2, %v504_v52 }
 0x222   : > { %v692_v4 = vpop.eup %691  ;;  %v520_v5 = vadd.f32 1e-05, %v518_v3 }
 0x223   : > { %v522_v6 = vmul.f32 %v692_v4, %v519_v1  ;;  %vm528_vm7 = vweird.f32 %v692_v4 }
 0x224   : > { %693 = vrsqrt.f32 %v520_v5  ;;  %vm529_vm9 = vmor %vm527_vm8, %vm528_vm7  ;;  %vm537_vm11 = vweird.f32 %v520_v5 }
 0x225   : > { %v523_v7 = vmul.f32 %v692_v4, %v522_v6 }
 0x227   : > { %v524_v8 = vmul.f32 0.5, %v523_v7 }
 0x229   : > { %v525_v9 = vsub.f32 1.5, %v524_v8 }
 0x22a   : > { %v694_v10 = vpop.eup %693 }
 0x22b   : > { %v526_v11 = vmul.f32 %v692_v4, %v525_v9  ;;  %v532_v12 = vmul.f32 %v694_v10, %v520_v5  ;;  %vm538_vm10 = vweird.f32 %v694_v10 }
 0x22c   : > { %vm539_vm12 = vmor %vm537_vm11, %vm538_vm10 }
 0x22d   : > { %v533_v14 = vmul.f32 %v694_v10, %v532_v12  ;;  %v530_v16 = vsel %vm529_vm9, %v692_v4, %v526_v11 }
 0x22e   : > { %v541_v17 = vmul.f32 %v530_v16, %v507_v55 }
 0x22f   : > { %v534_v19 = vmul.f32 0.5, %v533_v14 }
 0x230   : > { %v547_v20 = vmul.f32 %v687_v13, %v541_v17 }
 0x231   : > { %v535_v22 = vsub.f32 1.5, %v534_v19 }
 0x232   : > { %v553_v23 = vadd.f32 %v688_v18, %v547_v20 }
 0x233   : > { %v536_v24 = vmul.f32 %v694_v10, %v535_v22 }
 0x234   : > { %v562_v25 = vmul.f32 %v560_v21, %v553_v23 }
 0x235   : > { %v540_v26 = vsel %vm539_vm12, %v694_v10, %v536_v24 }
 0x236   : > { %v542_v27 = vmul.f32 %v540_v26, %v508_v60  ;;  %564 = vst.msk [vmem:[%s348_s29 - $0x1] sm:$0xfe] %vm490_vm4, %v562_v25 }
 0x238   : > { %v548_v28 = vmul.f32 %v687_v13, %v542_v27 }
 0x23a   : > { %v554_v29 = vadd.f32 %v688_v18, %v548_v28 }
 0x23c   : > { %v563_v30 = vmul.f32 %v560_v21, %v554_v29 }
 0x23e   : > { %565 = vst.msk [vmem:[%s348_s29 + $0x7] sm:$0x1] %vm494_vm5, %v563_v30 }
 0x23f PF: > { %s18_s27 = sadd.s32 1, %s701_s27  }
 0x240   : > { %p15_p4 = scmp.ge.s32.totalorder %s18_s27, 4  }
 0x242   :  { %17 = sbr.rel (!%p15_p4) target bundleno = 1 (0x1), region = 93 }

// kernel: forward.24
= control target key start
LH: loop header
LB: loop body
LE: loop exit
PB: predicated region body
PF: predicated region fallthrough
CT: control target
= control target key end

     0   :  { %s1154_s25 = smov 0   ;;  %s1333_s0 = inlined_call_operand.vmem [shape: f32[2,8,32], index: 0, kind: input, shape index: {}]   ;;  %s1334_s1 = inlined_call_operand.vmem [shape: f32[2,32,16], index: 1, kind: input, shape index: {}]   ;;  %s1335_s2 = inlined_call_operand.vmem [shape: f32[2,1,16], index: 2, kind: input, shape index: {}]   ;;  %s1336_s3 = inlined_call_operand.vmem [shape: f32[2,32,16], index: 3, kind: input, shape index: {}]   ;;  %s1337_s4 = inlined_call_operand.vmem [shape: f32[2,1,16], index: 4, kind: input, shape index: {}]   ;;  %s1338_s5 = inlined_call_operand.vmem [shape: f32[2,32,16], index: 5, kind: input, shape index: {}]   ;;  %s1339_s6 = inlined_call_operand.vmem [shape: f32[2,1,16], index: 6, kind: input, shape index: {}]   ;;  %s1340_s7 = inlined_call_operand.vmem [shape: f32[2,16,32], index: 7, kind: input, shape index: {}]   ;;  %s1341_s8 = inlined_call_operand.vmem [shape: f32[1,32], index: 8, kind: input, shape index: {}]   ;;  %s1342_s9 = inlined_call_operand.vmem [shape: f32[2,1,8], index: 9, kind: input, shape index: {}]   ;;  %s1343_s10 = inlined_call_operand.vmem [shape: f32[2,1,32], index: 10, kind: input, shape index: {}]   ;;  %s1344_s11 = inlined_call_operand.vmem [shape: f32[2,1,32], index: 11, kind: input, shape index: {}]   ;;  %s1345_s12 = inlined_call_operand.vmem [shape: f32[2,8,1], index: 12, kind: input, shape index: {}]   ;;  %s1346_s13 = inlined_call_operand.vmem [shape: f32[2,8,32], index: 13, kind: output, shape index: {}]  }
   0x1 LB: > { %s1000_s26 = sadd.s32 4294967295, %s1080_s25   ;;  %p1004_p0 = scmp.ge.s32.totalorder %s1080_s25, 1  ;;  %s1080_s25 = sphi %s1154_s25, %s23_s25  }
   0x2   : > { %p419_p1 = scmp.lt.s32.totalorder %s1080_s25, 3 }
   0x4   : > { %p420_p2 = pnand %p1004_p0, %p419_p1 }
   0x5   : > { %p474_p3 = scmp.lt.s32.totalorder (!%p420_p2), %s1000_s26, 1 }
   0x6   : > { %423 = sbr.rel (%p420_p2) target bundleno = 1467 (0x5bb), region = 72 }
   0xb   : > { %v532_v0 = vld [vmem:[%s1336_s3 + $0x18] sm:$0xff]  ;;  %v531_v1 = vld [vmem:[%s1336_s3 + $0x10] sm:$0xff]  ;;  %v530_v4 = vld [vmem:[%s1336_s3 + $0x8] sm:$0xff]  ;;  %s1348_s26 = smov (!%p474_p3, %s1000_s26), 1  ;;  %vm505_vm0 = vcmask 261120   ;;  %vm585_vm1 = vcmask 130048  }
   0xc   : > { %v500_v2 = vld [vmem:[%s1334_s1 + $0x18] sm:$0xff]  ;;  %549 = vmatpush.msra.mxu1 %v532_v0  ;;  %v499_v3 = vld [vmem:[%s1334_s1 + $0x10] sm:$0xff]  ;;  %v498_v5 = vld [vmem:[%s1334_s1 + $0x8] sm:$0xff]  ;;  %s1186_s24 = sshll.u32 %s1348_s26, 3  ;;  %s480_s21 = scalar_lea.vmem %s1342_s9, %s1348_s26  ;;  %vm617_vm2 = vcmask 64512  }
   0xd   : > { %521 = vmatpush.msra.mxu0 %v500_v2  ;;  %v529_v6 = vld [vmem:[%s1336_s3] sm:$0xff]  ;;  %s477_s14 = scalar_lea.vmem %s1333_s0, %s1186_s24  ;;  %v560_v15 = vld [vmem:[%s1338_s5 + $0x18] sm:$0xff]  ;;  %v559_v16 = vld [vmem:[%s1338_s5 + $0x10] sm:$0xff]  ;;  %s490_s18 = scalar_lea.vmem %s1345_s12, %s1186_s24 }
   0xe   : > { %550 = vmatpush.msra.mxu1 %v531_v1  ;;  %v497_v7 = vld [vmem:[%s1334_s1] sm:$0xff]  ;;  %577 = vmatpush.msra.mxu2 %v560_v15  ;;  %v558_v17 = vld [vmem:[%s1338_s5 + $0x8] sm:$0xff]  ;;  %v1023_v24 = vld [vmem:[%s1336_s3 + $0x38] sm:$0xff]  ;;  %s486_s27 = scalar_lea.vmem %s1344_s11, %s1348_s26  ;;  %s494_s29 = scalar_lea.vmem %s1346_s13, %s1186_s24 }
   0xf   : > { %522 = vmatpush.msra.mxu0 %v499_v3  ;;  %v1195_v8 = vld [vmem:[%s477_s14] sm:$0xff]  ;;  %v1022_v25 = vld [vmem:[%s1336_s3 + $0x30] sm:$0xff]  ;;  %v1017_v26 = vld [vmem:[%s1334_s1 + $0x38] sm:$0xff] }
  0x10   : > { %551 = vmatpush.msra.mxu1 %v530_v4  ;;  %v1052_v9 = vld [vmem:[%s1337_s4] ss:$0 sm:$0xff]  ;;  %578 = vmatpush.msra.mxu2 %v559_v16  ;;  %v1016_v27 = vld [vmem:[%s1334_s1 + $0x30] sm:$0xff]  ;;  %v1021_v28 = vld [vmem:[%s1336_s3 + $0x28] sm:$0xff] }
  0x11   : > { %523 = vmatpush.msra.mxu0 %v498_v5  ;;  %v1053_v10 = vld [vmem:[%s1335_s2] ss:$0 sm:$0xff]  ;;  %v1015_v30 = vld [vmem:[%s1334_s1 + $0x28] sm:$0xff]  ;;  %v1056_v40 = vld [vmem:[%s1337_s4 + $0x1] ss:$0 sm:$0xff] }
  0x12   : > { %552 = vmatpush.msra.mxu1 %v529_v6  ;;  %v557_v18 = vld [vmem:[%s1338_s5] sm:$0xff]  ;;  %579 = vmatpush.msra.mxu2 %v558_v17  ;;  %v1029_v43 = vld [vmem:[%s1338_s5 + $0x38] sm:$0xff]  ;;  %v1028_v44 = vld [vmem:[%s1338_s5 + $0x30] sm:$0xff] }
  0x13   : > { %524 = vmatpush.msra.mxu0 %v497_v7  ;;  %1009 = vmatmul.msk.f32.vlgmr.msra.gmra.mxu1 %vm505_vm0, %v1195_v8  ;;  %v1227_v19 = vld [vmem:[%s480_s21] ss:$0 sm:$0xff]  ;;  %v1027_v45 = vld [vmem:[%s1338_s5 + $0x28] sm:$0xff]  ;;  %v1057_v51 = vld [vmem:[%s1335_s2 + $0x1] ss:$0 sm:$0xff]  ;;  %s483_s21 = scalar_lea.vmem %s1343_s10, %s1348_s26 }
  0x14   : > { %1008 = vmatmul.msk.f32.vlgmr.msra.gmra.mxu0 %vm505_vm0, %v1195_v8  ;;  %580 = vmatpush.msra.mxu2 %v557_v18  ;;  %v1020_v29 = vld [vmem:[%s1336_s3 + $0x20] sm:$0xff]  ;;  %v653_v47 = vld [vmem:[%s1340_s7 + $0x8] sm:$0xff]  ;;  %v1036_v4 = vld [vmem:[%s1340_s7 + $0x18] sm:$0xff]  ;;  %v1082_v18 = vmov 32.0  }
  0x15   : > { %1010 = vmatmul.msk.f32.vlgmr.msra.gmra.mxu2 %vm505_vm0, %v1195_v8  ;;  %706 = vmatpush.msrb.mxu1 %v1023_v24  ;;  %v1014_v31 = vld [vmem:[%s1334_s1 + $0x20] sm:$0xff]  ;;  %v1035_v5 = vld [vmem:[%s1340_s7 + $0x10] sm:$0xff] }
  0x16   : > { %676 = vmatpush.msrb.mxu0 %v1017_v26  ;;  %v1055_v32 = vld [vmem:[%s1339_s6] ss:$0 sm:$0xff]  ;;  %736 = vmatpush.msrb.mxu2 %v1029_v43  ;;  %v1058_v55 = vld [vmem:[%s1339_s6 + $0x1] ss:$0 sm:$0xff] }
  0x17   : > { %707 = vmatpush.msrb.mxu1 %v1022_v25  ;;  %v1026_v46 = vld [vmem:[%s1338_s5 + $0x20] sm:$0xff] }
  0x18   : > { %677 = vmatpush.msrb.mxu0 %v1016_v27  ;;  %737 = vmatpush.msrb.mxu2 %v1028_v44  ;;  %v652_v54 = vld [vmem:[%s1340_s7] sm:$0xff] }
  0x19   : > { %708 = vmatpush.msrb.mxu1 %v1021_v28  ;;  %v1061_v43 = vld [vmem:[%s486_s27] ss:$0 sm:$0xff] }
  0x1a   : > { %678 = vmatpush.msrb.mxu0 %v1015_v30  ;;  %738 = vmatpush.msrb.mxu2 %v1027_v45 }
  0x1b   : > { %709 = vmatpush.msrb.mxu1 %v1020_v29 }
  0x1c   : > { %1025 = vmatmul.msk.f32.vlgmr.msrb.gmra.mxu1 %vm505_vm0, %v1195_v8  ;;  %679 = vmatpush.msrb.mxu0 %v1014_v31 }
  0x1d   : > { %1019 = vmatmul.msk.f32.vlgmr.msrb.gmra.mxu0 %vm505_vm0, %v1195_v8  ;;  %739 = vmatpush.msrb.mxu2 %v1026_v46 }
  0x1e   : > { %1031 = vmatmul.msk.f32.vlgmr.msrb.gmra.mxu2 %vm505_vm0, %v1195_v8  ;;  %826 = vmatpush.msra.mxu1 %v1036_v4 }
  0x1f   : > { %849 = vmatpush.msra.mxu2 %v653_v47 }
  0x20   : > { %827 = vmatpush.msra.mxu1 %v1035_v5 }
  0x21   : > { %850 = vmatpush.msra.mxu2 %v652_v54 }
  0x90   : > { %v554_v11 = vpop.f32.mrf.mxu1 }
  0x91   : > { %v526_v12 = vpop.f32.mrf.mxu0  ;;  %v555_v13 = vadd.f32 %v1052_v9, %v554_v11  ;;  %v1059_v11 = vld [vmem:[%s1341_s8] ss:$0 sm:$0xff] }
  0x92   : > { %v527_v14 = vadd.f32 %v1053_v10, %v526_v12 }
  0x93   : > { %1011 = vmatpush.xpose.msk.msra.mxu3 %vm585_vm1, %v555_v13 }
  0x96   : > { %1012 = vmatmul.msk.f32.vlgmr.msra.gmra.mxu3 %vm585_vm1, %v527_v14 }
  0x98   : > { %v582_v33 = vpop.f32.mrf.mxu2 }
  0x99   : > { %v583_v34 = vadd.f32 %v1055_v32, %v582_v33  ;;  %v711_v41 = vpop.f32.mrf.mxu1 }
  0x9a   : > { %v712_v42 = vadd.f32 %v1056_v40, %v711_v41  ;;  %v681_v52 = vpop.f32.mrf.mxu0  ;;  %v1060_v40 = vld [vmem:[%s483_s21] ss:$0 sm:$0xff] }
  0x9b   : > { %647 = vmatpush.msrb.mxu3 %v583_v34  ;;  %v682_v53 = vadd.f32 %v1057_v51, %v681_v52 }
  0x9d   : > { %1032 = vmatpush.xpose.msk.msra.mxu3 %vm585_vm1, %v712_v42 }
  0xa1   : > { %v741_v56 = vpop.f32.mrf.mxu2 }
  0xa2   : > { %v742_v57 = vadd.f32 %v1058_v55, %v741_v56 }
  0xa4   : > { %801 = vmatpush.msra.mxu0 %v742_v57 }
 0x119   : > { %v609_v20 = vpop.f32.mrf.mxu3 }
 0x11a   : > { %v612_v21 = vmul.f32 0.25, %v609_v20  ;;  %v1083_v20 = vmov 0  }
 0x11b   : > { %1051 = vset.pattern.permute.xlu0 %v1083_v20 }
 0x11c   : > { %v616_v22 = vadd.f32 %v1227_v19, %v612_v21 }
 0x11e   : > { %v618_v23 = vsel %vm617_vm2, %v616_v22, -inf }
 0x11f   : > { %619 = vmax.xlane.f32.xlu0 %v618_v23 }
 0x192   : > { %v620_v35 = vpop.xlane.xlu0 %619 }
 0x193   : > { %v621_v36 = vsub.f32 %v616_v22, %v620_v35 }
 0x195   : > { %v622_v37 = vmul.f32 1.442695, %v621_v36 }
 0x197   : > { %1062 = vpow2.f32 %v622_v37 }
 0x19d   : > { %v1063_v38 = vpop.eup %1062 }
 0x19e   : > { %v624_v39 = vsel %vm617_vm2, %v1063_v38, 0.0 }
 0x19f   : > { %625 = vadd.xlane.f32.xlu0 %v624_v39 }
 0x212   : > { %v626_v48 = vpop.xlane.xlu0 %625 }
 0x213   : > { %1064 = vrcp.f32 %v626_v48 }
 0x219   : > { %v1065_v49 = vpop.eup %1064 }
 0x21a   : > { %v628_v50 = vmul.f32 %v1065_v49, %v1063_v38 }
 0x21c   : > { %1013 = vmatmul.msk.f32.vlgmr.msrb.gmra.mxu3 %vm617_vm2, %v628_v50 }
 0x224   : > { %1033 = vmatmul.msk.f32.vlgmr.msra.gmra.mxu3 %vm585_vm1, %v682_v53 }
 0x29f   : > { %v649_v58 = vpop.f32.mrf.mxu3 }
 0x2a0   : > { %1038 = vmatmul.msk.f32.vlgmr.msra.gmra.mxu2 %vm585_vm1, %v649_v58 }
 0x2a7   : > { %v767_v59 = vpop.f32.mrf.mxu3 }
 0x2a8   : > { %v770_v60 = vmul.f32 0.25, %v767_v59 }
 0x2aa   : > { %v771_v61 = vadd.f32 %v1227_v19, %v770_v60  ;;  %v900_v19 = vld [vmem:[%s490_s18] sm:$0xff] }
 0x2ab   : > { %903 = vperm.xlu0 %1051, %v900_v19  }
 0x2ac   : > { %v772_v62 = vsel %vm617_vm2, %v771_v61, -inf }
 0x2ad   : > { %773 = vmax.xlane.f32.xlu1 %v772_v62 }
 0x31d   : > { %v904_v45 = vpop.permute.xlu0 %903 }
 0x320   : > { %v774_v63 = vpop.xlane.xlu1 %773 }
 0x321   : > { %v775_v0 = vsub.f32 %v771_v61, %v774_v63 }
 0x323   : > { %v776_v1 = vmul.f32 1.442695, %v775_v0  ;;  %v852_v12 = vpop.f32.mrf.mxu2 }
 0x325   : > { %1066 = vpow2.f32 %v776_v1 }
 0x32b   : > { %v1067_v2 = vpop.eup %1066 }
 0x32c   : > { %v778_v3 = vsel %vm617_vm2, %v1067_v2, 0.0 }
 0x32d   : > { %779 = vadd.xlane.f32.xlu1 %v778_v3 }
 0x3a0   : > { %v780_v6 = vpop.xlane.xlu1 %779 }
 0x3a1   : > { %1068 = vrcp.f32 %v780_v6 }
 0x3a2   : > { %1070 = vrcp.f32 %v1082_v18 }
 0x3a7   : > { %v1069_v7 = vpop.eup %1068 }
 0x3a8   : > { %v782_v9 = vmul.f32 %v1069_v7, %v1067_v2  ;;  %v1071_v21 = vpop.eup %1070 }
 0x3a9   : > { %v865_v22 = vmul.f32 32.0, %v1071_v21  ;;  %vm869_vm3 = vweird.f32 %v1071_v21 }
 0x3aa   : > { %1034 = vmatmul.msk.f32.vlgmr.msra.gmra.mxu0 %vm617_vm2, %v782_v9 }
 0x3ab   : > { %v866_v23 = vsub.f32 1.0, %v865_v22 }
 0x3ad   : > { %v867_v24 = vmul.f32 %v1071_v21, %v866_v23 }
 0x427   : > { %v803_v10 = vpop.f32.mrf.mxu0 }
 0x428   : > { %1037 = vmatmul.msk.f32.vlgmr.msra.gmra.mxu1 %vm585_vm1, %v803_v10 }
 0x4a5   : > { %v829_v13 = vpop.f32.mrf.mxu1 }
 0x4a6   : > { %v853_v14 = vadd.f32 %v852_v12, %v829_v13 }
 0x4a8   : > { %v859_v15 = vadd.f32 %v1059_v11, %v853_v14 }
 0x4aa   : > { %v860_v16 = vadd.f32 %v859_v15, %v1195_v8  ;;  %v868_v8 = vadd.f32 %v1071_v21, %v867_v24 }
 0x4ac   : > { %v861_v17 = vsel %vm505_vm0, %v860_v16, 0.0  ;;  %v870_v25 = vsel %vm869_vm3, %v1071_v21, %v868_v8 }
 0x4ad   : > { %862 = vadd.xlane.f32.xlu2 %v861_v17 }
 0x520   : > { %v863_v26 = vpop.xlane.xlu2 %862 }
 0x521   : > { %v871_v27 = vmul.f32 %v870_v25, %v863_v26 }
 0x523   : > { %v872_v28 = vsub.f32 %v860_v16, %v871_v27 }
 0x525   : > { %v873_v29 = vmul.f32 %v872_v28, %v872_v28 }
 0x527   : > { %v874_v30 = vsel %vm505_vm0, %v873_v29, 0.0 }
 0x528   : > { %875 = vadd.xlane.f32.xlu2 %v874_v30 }
 0x59b   : > { %v876_v31 = vpop.xlane.xlu2 %875 }
 0x59c   : > { %v877_v32 = vmul.f32 %v876_v31, %v870_v25 }
 0x59e   : > { %v878_v33 = vadd.f32 1e-05, %v877_v32 }
 0x5a0   : > { %1072 = vrsqrt.f32 %v878_v33  ;;  %vm885_vm5 = vweird.f32 %v878_v33 }
 0x5a6   : > { %v1073_v34 = vpop.eup %1072 }
 0x5a7   : > { %v880_v35 = vmul.f32 %v1073_v34, %v878_v33  ;;  %vm886_vm4 = vweird.f32 %v1073_v34 }
 0x5a8   : > { %vm887_vm6 = vmor %vm885_vm5, %vm886_vm4 }
 0x5a9   : > { %v881_v36 = vmul.f32 %v1073_v34, %v880_v35 }
 0x5ab   : > { %v882_v37 = vmul.f32 0.5, %v881_v36 }
 0x5ad   : > { %v883_v38 = vsub.f32 1.5, %v882_v37 }
 0x5af   : > { %v884_v39 = vmul.f32 %v1073_v34, %v883_v38 }
 0x5b1   : > { %v888_v41 = vsel %vm887_vm6, %v1073_v34, %v884_v39 }
 0x5b2   : > { %v889_v42 = vmul.f32 %v888_v41, %v872_v28 }
 0x5b4   : > { %v894_v44 = vmul.f32 %v1060_v40, %v889_v42 }
 0x5b6   : > { %v899_v46 = vadd.f32 %v1061_v43, %v894_v44 }
 0x5b8   : > { %v906_v47 = vmul.f32 %v904_v45, %v899_v46 }
 0x5ba   : > { %907 = vst.msk [vmem:[%s494_s29] sm:$0xff] %vm505_vm0, %v906_v47 }
 0x5bb PF: > { %s23_s25 = sadd.s32 1, %s1080_s25  }
 0x5bc   : > { %p20_p4 = scmp.ge.s32.totalorder %s23_s25, 4  }
 0x5be   :  { %22 = sbr.rel (!%p20_p4) target bundleno = 1 (0x1), region = 121 }

// kernel: custom-call.8
= control target key start
LH: loop header
LB: loop body
LE: loop exit
PB: predicated region body
PF: predicated region fallthrough
CT: control target
= control target key end

     0   :  { %s6_s0 = inlined_call_operand.vmem [shape: u32[2,16], index: 0, kind: output, shape index: {}]  }

// kernel: forward.28
= control target key start
LH: loop header
LB: loop body
LE: loop exit
PB: predicated region body
PF: predicated region fallthrough
CT: control target
= control target key end

     0   :  { %s1340_s21 = smov 0   ;;  %s1668_s0 = inlined_call_operand.vmem [shape: f32[2,12,32], index: 0, kind: input, shape index: {}]   ;;  %s1669_s1 = inlined_call_operand.vmem [shape: f32[6,32,32], index: 1, kind: input, shape index: {}]   ;;  %s1670_s2 = inlined_call_operand.vmem [shape: f32[2,1,32], index: 2, kind: input, shape index: {}]   ;;  %s1671_s3 = inlined_call_operand.vmem [shape: f32[2,1,32], index: 3, kind: input, shape index: {}]   ;;  %s1672_s4 = inlined_call_operand.vmem [shape: f32[2,1,32], index: 4, kind: input, shape index: {}]   ;;  %s1673_s5 = inlined_call_operand.vmem [shape: f32[6,32,32], index: 5, kind: input, shape index: {}]   ;;  %s1674_s6 = inlined_call_operand.vmem [shape: f32[2,1,32], index: 6, kind: input, shape index: {}]   ;;  %s1675_s7 = inlined_call_operand.vmem [shape: f32[2,1,32], index: 7, kind: input, shape index: {}]   ;;  %s1676_s8 = inlined_call_operand.vmem [shape: f32[2,1,32], index: 8, kind: input, shape index: {}]   ;;  %s1677_s9 = inlined_call_operand.vmem [shape: f32[2,1,32], index: 9, kind: input, shape index: {}]   ;;  %s1678_s10 = inlined_call_operand.vmem [shape: f32[2,1,1], index: 10, kind: input, shape index: {}]   ;;  %s1679_s11 = inlined_call_operand.vmem [shape: f32[2,8,1], index: 11, kind: input, shape index: {}]   ;;  %s1680_s12 = inlined_call_operand.vmem [shape: f32[2,8,2], index: 12, kind: output, shape index: {}]  }
   0x1 LB: > { %s1143_s22 = sadd.s32 4294967295, %s1270_s21   ;;  %p1147_p0 = scmp.ge.s32.totalorder %s1270_s21, 1  ;;  %s1270_s21 = sphi %s1340_s21, %s22_s21  }
   0x2   : > { %p371_p1 = scmp.lt.s32.totalorder %s1270_s21, 3 }
   0x4   : > { %p372_p2 = pnand %p1147_p0, %p371_p1 }
   0x5   : > { %p416_p3 = scmp.lt.s32.totalorder (!%p372_p2), %s1143_s22, 1 }
   0x6   : > { %375 = sbr.rel (%p372_p2) target bundleno = 1500 (0x5dc), region = 68 }
   0xb   : > { %v1165_v0 = vld [vmem:[%s1669_s1 + $0x58] sm:$0xff]  ;;  %v1164_v1 = vld [vmem:[%s1669_s1 + $0x50] sm:$0xff]  ;;  %v1163_v5 = vld [vmem:[%s1669_s1 + $0x48] sm:$0xff]  ;;  %s1682_s22 = smov (!%p416_p3, %s1143_s22), 1  ;;  %vm460_vm0 = vcmask 261120   ;;  %vm520_vm1 = vcmask 1045504  }
   0xc   : > { %v1157_v2 = vld [vmem:[%s1669_s1 + $0x38] sm:$0xff]  ;;  %540 = vmatpush.msra.mxu2 %v1165_v0  ;;  %v1156_v4 = vld [vmem:[%s1669_s1 + $0x30] sm:$0xff]  ;;  %v1155_v7 = vld [vmem:[%s1669_s1 + $0x28] sm:$0xff]  ;;  %s1222_s29 = sshll.u32 %s1682_s22, 4  ;;  %vm456_vm2 = vcmask 1046528   ;;  %vm564_vm3 = vcmask 254976  }
   0xd   : > { %477 = vmatpush.msra.mxu0 %v1157_v2  ;;  %v448_v3 = vld [vmem:[%s1669_s1 + $0x18] sm:$0xff]  ;;  %v447_v6 = vld [vmem:[%s1669_s1 + $0x10] sm:$0xff]  ;;  %v1162_v8 = vld [vmem:[%s1669_s1 + $0x40] sm:$0xff]  ;;  %s420_s16 = scalar_lea.vmem %s1668_s0, %s1222_s29  ;;  %v1272_v37 = vmov 32.0   ;;  %s1150_s23 = sshll.u32 %s1682_s22, 3 }
   0xe   : > { %504 = vmatpush.msra.mxu1 %v448_v3  ;;  %541 = vmatpush.msra.mxu2 %v1164_v1  ;;  %v446_v9 = vld [vmem:[%s1669_s1 + $0x8] sm:$0xff]  ;;  %v1154_v10 = vld [vmem:[%s1669_s1 + $0x20] sm:$0xff]  ;;  %1250 = vrcp.f32 %v1272_v37  ;;  %v1171_v56 = vld [vmem:[%s1673_s5 + $0x38] sm:$0xff]  ;;  %s424_s28 = scalar_lea.vmem %s1679_s11, %s1150_s23  ;;  %s1274_s29 = smov 1  }
   0xf   : > { %478 = vmatpush.msra.mxu0 %v1156_v4  ;;  %v445_v11 = vld [vmem:[%s1669_s1] sm:$0xff]  ;;  %v1392_v13 = vld [vmem:[%s420_s16 + $0x8] sm:$0xf]  ;;  %v1177_v57 = vld [vmem:[%s1673_s5 + $0x58] sm:$0xff]  ;;  %655 = vmatpush.msra.mxu3 %v1171_v56  ;;  %s428_s15 = scalar_lea.vmem %s1680_s12, %s1150_s23 }
  0x10   : > { %505 = vmatpush.msra.mxu1 %v447_v6  ;;  %542 = vmatpush.msra.mxu2 %v1163_v5  ;;  %v1390_v12 = vld [vmem:[%s420_s16] sm:$0xff]  ;;  %v1396_v15 = vrot.slane %v1392_v13, 2  ;;  %v1400_v17 = vrot.slane %v1392_v13, 1  ;;  %v1170_v58 = vld [vmem:[%s1673_s5 + $0x30] sm:$0xff]  ;;  %v1169_v61 = vld [vmem:[%s1673_s5 + $0x28] sm:$0xff] }
  0x11   : > { %479 = vmatpush.msra.mxu0 %v1155_v7  ;;  %v521_v14 = vrot.slane %v1390_v12, 2  ;;  %v457_v16 = vrot.slane %v1390_v12, 1  ;;  %v1234_v23 = vld [vmem:[%s1670_s2] ss:$0 sm:$0xff]  ;;  %v1176_v59 = vld [vmem:[%s1673_s5 + $0x50] sm:$0xff]  ;;  %v1175_v62 = vld [vmem:[%s1673_s5 + $0x48] sm:$0xff]  ;;  %656 = vmatpush.msra.mxu3 %v1170_v58 }
  0x12   : > { %506 = vmatpush.msra.mxu1 %v446_v9  ;;  %543 = vmatpush.msra.mxu2 %v1162_v8  ;;  %v1182_v63 = vld [vmem:[%s1669_s1 + $0x78] sm:$0xff]  ;;  %v1168_v0 = vld [vmem:[%s1673_s5 + $0x20] sm:$0xff]  ;;  %v629_v5 = vld [vmem:[%s1673_s5 + $0x10] sm:$0xff] }
  0x13   : > { %480 = vmatpush.msra.mxu0 %v1154_v10  ;;  %v1404_v18 = vsel %vm520_vm1, %v521_v14, %v1396_v15  ;;  %v1408_v19 = vsel %vm456_vm2, %v457_v16, %v1400_v17  ;;  %v1174_v1 = vld [vmem:[%s1673_s5 + $0x40] sm:$0xff]  ;;  %657 = vmatpush.msra.mxu3 %v1169_v61  ;;  %v630_v4 = vld [vmem:[%s1673_s5 + $0x18] sm:$0xff]  ;;  %v1181_v6 = vld [vmem:[%s1669_s1 + $0x70] sm:$0xff] }
  0x14   : > { %507 = vmatpush.msra.mxu1 %v445_v11  ;;  %1166 = vmatmul.msk.f32.vlgmr.msra.gmra.mxu2 %vm460_vm0, %v1404_v18  ;;  %v1251_v38 = vpop.eup %1250  ;;  %v1186_v9 = vld [vmem:[%s1669_s1 + $0x98] sm:$0xff]  ;;  %v628_v11 = vld [vmem:[%s1673_s5 + $0x8] sm:$0xff]  ;;  %v1193_v56 = vld [vmem:[%s1669_s1 + $0xb0] sm:$0xff] }
  0x15   : > { %1160 = vmatmul.msk.f32.vlgmr.msra.gmra.mxu1 %vm460_vm0, %v1390_v12  ;;  %1158 = vmatmul.msk.f32.vlgmr.msra.gmra.mxu0 %vm460_vm0, %v1408_v19  ;;  %v569_v39 = vmul.f32 32.0, %v1251_v38  ;;  %vm573_vm4 = vweird.f32 %v1251_v38  ;;  %v1180_v14 = vld [vmem:[%s1669_s1 + $0x68] sm:$0xff]  ;;  %v1191_v58 = vld [vmem:[%s1669_s1 + $0xa0] sm:$0xff] }
  0x16   : > { %707 = vmatpush.msrb.mxu0 %v1177_v57  ;;  %813 = vmatpush.msrb.mxu2 %v1182_v63  ;;  %v1192_v57 = vld [vmem:[%s1669_s1 + $0xa8] sm:$0xff] }
  0x17   : > { %v570_v40 = vsub.f32 1.0, %v569_v39  ;;  %658 = vmatpush.msra.mxu3 %v1168_v0  ;;  %790 = vmatpush.msrb.mxu1 %v1186_v9  ;;  %v1236_v39 = vld [vmem:[%s1672_s4] ss:$0 sm:$0xff] }
  0x18   : > { %708 = vmatpush.msrb.mxu0 %v1176_v59  ;;  %814 = vmatpush.msrb.mxu2 %v1181_v6 }
  0x19   : > { %v571_v41 = vmul.f32 %v1251_v38, %v570_v40  ;;  %677 = vmatpush.msrb.mxu3 %v630_v4 }
  0x1a   : > { %709 = vmatpush.msrb.mxu0 %v1175_v62  ;;  %815 = vmatpush.msrb.mxu2 %v1180_v14 }
  0x1b   : > { %v572_v42 = vadd.f32 %v1251_v38, %v571_v41  ;;  %678 = vmatpush.msrb.mxu3 %v629_v5 }
  0x1c   : > { %1167 = vmatmul.msk.f32.gmra.mxu2 %vm460_vm0, %v1396_v15  ;;  %710 = vmatpush.msrb.mxu0 %v1174_v1  ;;  %v1237_v1 = vld [vmem:[%s1670_s2 + $0x1] ss:$0 sm:$0xff] }
  0x1d   : > { %1161 = vmatmul.msk.f32.gmra.mxu1 %vm460_vm0, %v1392_v13  ;;  %1159 = vmatmul.msk.f32.gmra.mxu0 %vm460_vm0, %v1400_v17  ;;  %v1427_v43 = vsel %vm573_vm4, %v1251_v38, %v572_v42 }
  0x1e   : > { %679 = vmatpush.msrb.mxu3 %v628_v11 }
  0x92   : > { %v509_v20 = vpop.f32.mrf.mxu1  ;;  %v482_v21 = vpop.f32.mrf.mxu0 }
  0x93   : > { %v510_v22 = vadd.f32 %v509_v20, %v482_v21  ;;  %v627_v20 = vld [vmem:[%s1673_s5] sm:$0xff] }
  0x94   : > { %680 = vmatpush.msrb.mxu3 %v627_v20 }
  0x97   : > { %v545_v24 = vpop.f32.mrf.mxu2 }
  0x98   : > { %v551_v25 = vadd.f32 %v545_v24, %v510_v22  ;;  %v1179_v24 = vld [vmem:[%s1669_s1 + $0x60] sm:$0xff] }
  0x99   : > { %816 = vmatpush.msrb.mxu2 %v1179_v24  ;;  %v1238_v24 = vld [vmem:[%s1674_s6] ss:$0 sm:$0xff] }
  0x9a   : > { %v485_v26 = vpop.f32.mrf.mxu0  ;;  %v512_v27 = vpop.f32.mrf.mxu1  ;;  %v557_v28 = vadd.f32 %v1234_v23, %v551_v25  ;;  %1189 = vmatmul.msk.f32.vlgmr.msrb.gmra.mxu2 %vm460_vm0, %v1390_v12 }
  0x9b   : > { %v513_v29 = vadd.f32 %v512_v27, %v485_v26  ;;  %v1184_v26 = vld [vmem:[%s1669_s1 + $0x88] sm:$0xff] }
  0x9c   : > { %v559_v30 = vmax.f32 %v557_v28, 0.0 }
  0x9e   : > { %v561_v31 = vsel %vm460_vm0, %v559_v30, 0.0 }
  0x9f   : > { %v548_v32 = vpop.f32.mrf.mxu2  ;;  %562 = vadd.xlane.f32.xlu0 %v561_v31 }
  0xa0   : > { %v552_v33 = vadd.f32 %v548_v32, %v513_v29  ;;  %v1183_v29 = vld [vmem:[%s1669_s1 + $0x80] sm:$0xff] }
  0xa2   : > { %v558_v34 = vadd.f32 %v1234_v23, %v552_v33  ;;  %v1185_v23 = vld [vmem:[%s1669_s1 + $0x90] sm:$0xff]  ;;  %v1235_v33 = vld [vmem:[%s1671_s3] ss:$0 sm:$0xff]  ;;  %1190 = vmatmul.msk.f32.gmra.mxu2 %vm460_vm0, %v1392_v13 }
  0xa3   : > { %791 = vmatpush.msrb.mxu1 %v1185_v23 }
  0xa4   : > { %v560_v35 = vmax.f32 %v558_v34, 0.0 }
  0xa5   : > { %792 = vmatpush.msrb.mxu1 %v1184_v26 }
  0xa6   : > { %v565_v36 = vsel %vm564_vm3, %v560_v35, 0.0 }
  0xa7   : > { %566 = vadd.xlane.f32.xlu0 %v565_v36  ;;  %793 = vmatpush.msrb.mxu1 %v1183_v29 }
  0xa8   : > { %1187 = vmatmul.msk.f32.vlgmr.msrb.gmra.mxu1 %vm460_vm0, %v1408_v19 }
  0xb0   : > { %1188 = vmatmul.msk.f32.gmra.mxu1 %vm460_vm0, %v1400_v17 }
 0x112   : > { %v563_v44 = vpop.xlane.xlu0 %562 }
 0x113   : > { %v575_v45 = vmul.f32 %v1427_v43, %v563_v44  ;;  %v1273_v44 = vmov 0.0  }
 0x115   : > { %v1430_v46 = vsub.f32 %v559_v30, %v575_v45  ;;  %v432_v30 = vlaneseq }
 0x117   : > { %v579_v47 = vmul.f32 %v1430_v46, %v1430_v46  ;;  %v433_v12 = vshrl.u32 %v432_v30, 7 }
 0x119   : > { %v581_v48 = vsel %vm460_vm0, %v579_v47, 0.0  ;;  %v434_v38 = vadd.s32 8, %v433_v12  ;;  %vm435_vm11 = vcmp.ge.s32.totalorder %v433_v12, 1 }
 0x11a   : > { %582 = vadd.xlane.f32.xlu1 %v581_v48  ;;  %v567_v49 = vpop.xlane.xlu0 %566  ;;  %v1517_v45 = vsel %vm435_vm11, 1.0, %v1273_v44 }
 0x11b   : > { %v576_v50 = vmul.f32 %v1427_v43, %v567_v49  ;;  %vm438_vm12 = vcmp.lt.s32.totalorder %v434_v38, 9 }
 0x11c   : > { %v1521_v47 = vsel %vm438_vm12, 1.0, %v1273_v44  ;;  %v1210_v44 = vld [vmem:[%s1673_s5 + $0xa0] sm:$0xff] }
 0x11d   : > { %v1436_v51 = vsub.f32 %v560_v35, %v576_v50  ;;  %v818_v62 = vpop.f32.mrf.mxu2 }
 0x11f   : > { %v580_v52 = vmul.f32 %v1436_v51, %v1436_v51 }
 0x121   : > { %v584_v53 = vsel %vm564_vm3, %v580_v52, 0.0 }
 0x122   : > { %585 = vadd.xlane.f32.xlu1 %v584_v53 }
 0x125   : > { %v821_v5 = vpop.f32.mrf.mxu2 }
 0x18d   : > { %v583_v54 = vpop.xlane.xlu1 %582 }
 0x18e   : > { %v587_v55 = vmul.f32 %v583_v54, %v1427_v43  ;;  %v1194_v54 = vld [vmem:[%s1669_s1 + $0xb8] sm:$0xff] }
 0x190   : > { %v589_v60 = vadd.f32 1e-05, %v587_v55 }
 0x192   : > { %1252 = vrsqrt.f32 %v589_v60  ;;  %vm597_vm6 = vweird.f32 %v589_v60 }
 0x195   : > { %v586_v2 = vpop.xlane.xlu1 %585 }
 0x196   : > { %v588_v3 = vmul.f32 %v586_v2, %v1427_v43 }
 0x198   : > { %v1253_v7 = vpop.eup %1252  ;;  %v590_v8 = vadd.f32 1e-05, %v588_v3 }
 0x199   : > { %v592_v10 = vmul.f32 %v1253_v7, %v589_v60  ;;  %vm598_vm5 = vweird.f32 %v1253_v7  ;;  %v795_v60 = vpop.f32.mrf.mxu1 }
 0x19a   : > { %1254 = vrsqrt.f32 %v590_v8  ;;  %vm599_vm7 = vmor %vm597_vm6, %vm598_vm5  ;;  %vm607_vm9 = vweird.f32 %v590_v8  ;;  %v819_v0 = vadd.f32 %v818_v62, %v795_v60  ;;  %v1239_v62 = vld [vmem:[%s1671_s3 + $0x1] ss:$0 sm:$0xff] }
 0x19b   : > { %v593_v16 = vmul.f32 %v1253_v7, %v592_v10 }
 0x19d   : > { %v594_v21 = vmul.f32 0.5, %v593_v16 }
 0x19f   : > { %v595_v22 = vsub.f32 1.5, %v594_v21 }
 0x1a0   : > { %v1255_v25 = vpop.eup %1254 }
 0x1a1   : > { %v596_v27 = vmul.f32 %v1253_v7, %v595_v22  ;;  %v602_v28 = vmul.f32 %v1255_v25, %v590_v8  ;;  %vm608_vm8 = vweird.f32 %v1255_v25  ;;  %v798_v4 = vpop.f32.mrf.mxu1 }
 0x1a2   : > { %vm609_vm10 = vmor %vm607_vm9, %vm608_vm8 }
 0x1a3   : > { %v600_v31 = vsel %vm599_vm7, %v1253_v7, %v596_v27  ;;  %v603_v32 = vmul.f32 %v1255_v25, %v602_v28  ;;  %v822_v7 = vadd.f32 %v821_v5, %v798_v4 }
 0x1a4   : > { %v611_v34 = vmul.f32 %v600_v31, %v1430_v46 }
 0x1a5   : > { %v604_v35 = vmul.f32 0.5, %v603_v32 }
 0x1a6   : > { %v617_v37 = vmul.f32 %v1235_v33, %v611_v34 }
 0x1a7   : > { %v605_v36 = vsub.f32 1.5, %v604_v35 }
 0x1a8   : > { %v623_v19 = vadd.f32 %v1236_v39, %v617_v37  ;;  %v1213_v37 = vld [vmem:[%s1673_s5 + $0xb8] sm:$0xff] }
 0x1a9   : > { %v606_v40 = vmul.f32 %v1255_v25, %v605_v36  ;;  %v1207_v36 = vld [vmem:[%s1673_s5 + $0x98] sm:$0xff]  ;;  %1004 = vmatpush.msra.mxu1 %v1213_v37 }
 0x1aa   : > { %v625_v49 = vmul.f32 %v1517_v45, %v623_v19  ;;  %952 = vmatpush.msra.mxu0 %v1207_v36  ;;  %v1204_v19 = vld [vmem:[%s1673_s5 + $0x80] sm:$0xff] }
 0x1ab   : > { %v610_v41 = vsel %vm609_vm10, %v1255_v25, %v606_v40  ;;  %v1212_v40 = vld [vmem:[%s1673_s5 + $0xb0] sm:$0xff]  ;;  %vm1076_vm10 = vcmask 15360  }
 0x1ac   : > { %v612_v42 = vmul.f32 %v610_v41, %v1436_v51  ;;  %v638_v50 = vrot.slane %v625_v49, 1  ;;  %v690_v53 = vrot.slane %v625_v49, 2  ;;  %v1205_v41 = vld [vmem:[%s1673_s5 + $0x88] sm:$0xff]  ;;  %1005 = vmatpush.msra.mxu1 %v1212_v40 }
 0x1ae   : > { %v618_v46 = vmul.f32 %v1235_v33, %v612_v42  ;;  %v1211_v42 = vld [vmem:[%s1673_s5 + $0xa8] sm:$0xff] }
 0x1af   : > { %1006 = vmatpush.msra.mxu1 %v1211_v42 }
 0x1b0   : > { %v624_v48 = vadd.f32 %v1236_v39, %v618_v46  ;;  %v1206_v39 = vld [vmem:[%s1673_s5 + $0x90] sm:$0xff] }
 0x1b1   : > { %953 = vmatpush.msra.mxu0 %v1206_v39  ;;  %1007 = vmatpush.msra.mxu1 %v1210_v44 }
 0x1b2   : > { %v626_v13 = vmul.f32 %v1521_v47, %v624_v48 }
 0x1b3   : > { %954 = vmatpush.msra.mxu0 %v1205_v41 }
 0x1b4   : > { %v639_v52 = vrot.slane %v626_v13, 1  ;;  %v691_v51 = vrot.slane %v626_v13, 2  ;;  %v1202_v13 = vld [vmem:[%s1673_s5 + $0x70] sm:$0xff] }
 0x1b5   : > { %955 = vmatpush.msra.mxu0 %v1204_v19 }
 0x1b6   : > { %v640_v55 = vsel %vm456_vm2, %v638_v50, %v639_v52  ;;  %v692_v17 = vsel %vm520_vm1, %v690_v53, %v691_v51  ;;  %v1201_v51 = vld [vmem:[%s1673_s5 + $0x68] sm:$0xff] }
 0x1b7   : > { %1172 = vmatmul.msk.f32.vlgmr.msra.gmra.mxu3 %vm460_vm0, %v640_v55  ;;  %1178 = vmatmul.msk.f32.vlgmr.msrb.gmra.mxu0 %vm460_vm0, %v692_v17  ;;  %v1200_v55 = vld [vmem:[%s1673_s5 + $0x60] sm:$0xff] }
 0x1b8   : > { %841 = vmatpush.msra.mxu3 %v1194_v54 }
 0x1ba   : > { %842 = vmatpush.msra.mxu3 %v1193_v56 }
 0x1bc   : > { %843 = vmatpush.msra.mxu3 %v1192_v57 }
 0x1be   : > { %844 = vmatpush.msra.mxu3 %v1191_v58 }
 0x1bf   : > { %1173 = vmatmul.msk.f32.vlgmr.msrb.gmra.mxu3 %vm460_vm0, %v625_v49  ;;  %v1203_v49 = vld [vmem:[%s1673_s5 + $0x78] sm:$0xff] }
 0x1c0   : > { %974 = vmatpush.msrb.mxu0 %v1203_v49  ;;  %v1242_v49 = vld [vmem:[%s1675_s7] ss:$0 sm:$0xff] }
 0x1c2   : > { %975 = vmatpush.msrb.mxu0 %v1202_v13 }
 0x1c4   : > { %976 = vmatpush.msrb.mxu0 %v1201_v51  ;;  %v1244_v51 = vld [vmem:[%s1677_s9] ss:$0 sm:$0xff] }
 0x1c6   : > { %977 = vmatpush.msrb.mxu0 %v1200_v55 }
 0x1c7   : > { %1195 = vmatmul.msk.f32.vlgmr.msra.gmra.mxu3 %vm460_vm0, %v1404_v18 }
 0x1cf   : > { %1196 = vmatmul.msk.f32.gmra.mxu3 %vm460_vm0, %v1396_v15 }
 0x234   : > { %v712_v21 = vpop.f32.mrf.mxu0 }
 0x23a   : > { %v660_v59 = vpop.f32.mrf.mxu3 }
 0x242   : > { %v682_v61 = vpop.f32.mrf.mxu3 }
 0x243   : > { %v683_v63 = vadd.f32 %v682_v61, %v660_v59 }
 0x245   : > { %v715_v22 = vadd.f32 %v712_v21, %v683_v63 }
 0x247   : > { %v1556_v27 = vadd.f32 %v1238_v24, %v715_v22 }
 0x249   : > { %v721_v31 = vmax.f32 %v1556_v27, 0.0 }
 0x24a   : > { %v846_v2 = vpop.f32.mrf.mxu3 }
 0x24b   : > { %v852_v3 = vadd.f32 %v846_v2, %v819_v0  ;;  %v722_v34 = vsel %vm460_vm0, %v721_v31, 0.0  ;;  %v1240_v2 = vld [vmem:[%s1672_s4 + $0x1] ss:$0 sm:$0xff] }
 0x24d   : > { %v859_v6 = vadd.f32 %v1237_v1, %v852_v3 }
 0x24f   : > { %v861_v18 = vmax.f32 %v859_v6, 0.0 }
 0x251   : > { %v863_v8 = vsel %vm460_vm0, %v861_v18, 0.0 }
 0x252   : > { %864 = vadd.xlane.f32.xlu2 %v863_v8  ;;  %v849_v15 = vpop.f32.mrf.mxu3 }
 0x253   : > { %v853_v9 = vadd.f32 %v849_v15, %v822_v7 }
 0x255   : > { %v860_v10 = vadd.f32 %v1237_v1, %v853_v9 }
 0x257   : > { %v862_v11 = vmax.f32 %v860_v10, 0.0 }
 0x259   : > { %v866_v14 = vsel %vm564_vm3, %v862_v11, 0.0 }
 0x25a   : > { %867 = vadd.xlane.f32.xlu2 %v866_v14 }
 0x2c5   : > { %v865_v16 = vpop.xlane.xlu2 %864 }
 0x2c6   : > { %v869_v20 = vmul.f32 %v865_v16, %v1427_v43 }
 0x2c8   : > { %v871_v23 = vsub.f32 %v861_v18, %v869_v20 }
 0x2ca   : > { %v873_v25 = vmul.f32 %v871_v23, %v871_v23 }
 0x2cc   : > { %v875_v26 = vsel %vm460_vm0, %v873_v25, 0.0 }
 0x2cd   : > { %876 = vadd.xlane.f32.xlu0 %v875_v26  ;;  %v868_v28 = vpop.xlane.xlu2 %867 }
 0x2ce   : > { %v870_v29 = vmul.f32 %v868_v28, %v1427_v43 }
 0x2d0   : > { %v1559_v30 = vsub.f32 %v862_v11, %v870_v29 }
 0x2d2   : > { %v874_v32 = vmul.f32 %v1559_v30, %v1559_v30 }
 0x2d4   : > { %v878_v33 = vsel %vm564_vm3, %v874_v32, 0.0 }
 0x2d5   : > { %879 = vadd.xlane.f32.xlu1 %v878_v33  ;;  %723 = vadd.xlane.f32.xlu0 %v722_v34 }
 0x340   : > { %v877_v35 = vpop.xlane.xlu0 %876 }
 0x341   : > { %v881_v12 = vmul.f32 %v877_v35, %v1427_v43 }
 0x343   : > { %v883_v38 = vadd.f32 1e-05, %v881_v12 }
 0x345   : > { %1256 = vrsqrt.f32 %v883_v38  ;;  %vm891_vm14 = vweird.f32 %v883_v38 }
 0x348   : > { %v880_v46 = vpop.xlane.xlu1 %879 }
 0x349   : > { %v882_v48 = vmul.f32 %v880_v46, %v1427_v43 }
 0x34b   : > { %v1257_v50 = vpop.eup %1256  ;;  %v884_v52 = vadd.f32 1e-05, %v882_v48 }
 0x34c   : > { %v886_v53 = vmul.f32 %v1257_v50, %v883_v38  ;;  %vm892_vm13 = vweird.f32 %v1257_v50 }
 0x34d   : > { %1258 = vrsqrt.f32 %v884_v52  ;;  %vm893_vm15 = vmor %vm891_vm14, %vm892_vm13  ;;  %vm901_vm4 = vweird.f32 %v884_v52 }
 0x34e   : > { %v887_v54 = vmul.f32 %v1257_v50, %v886_v53 }
 0x350   : > { %v888_v17 = vmul.f32 0.5, %v887_v54 }
 0x352   : > { %v889_v56 = vsub.f32 1.5, %v888_v17 }
 0x353   : > { %v1259_v57 = vpop.eup %1258 }
 0x354   : > { %v890_v58 = vmul.f32 %v1257_v50, %v889_v56  ;;  %v896_v59 = vmul.f32 %v1259_v57, %v884_v52  ;;  %vm902_vm3 = vweird.f32 %v1259_v57  ;;  %v1243_v52 = vld [vmem:[%s1676_s8] ss:$0 sm:$0xff] }
 0x355   : > { %vm903_vm5 = vmor %vm901_vm4, %vm902_vm3 }
 0x356   : > { %v894_v60 = vsel %vm893_vm15, %v1257_v50, %v890_v58  ;;  %v897_v61 = vmul.f32 %v1259_v57, %v896_v59 }
 0x357   : > { %v905_v63 = vmul.f32 %v894_v60, %v871_v23 }
 0x358   : > { %v898_v0 = vmul.f32 0.5, %v897_v61 }
 0x359   : > { %v912_v3 = vmul.f32 %v1239_v62, %v905_v63 }
 0x35a   : > { %v899_v1 = vsub.f32 1.5, %v898_v0 }
 0x35b   : > { %v919_v6 = vadd.f32 %v1240_v2, %v912_v3 }
 0x35c   : > { %v900_v4 = vmul.f32 %v1259_v57, %v899_v1  ;;  %v1245_v1 = vld [vmem:[%s1675_s7 + $0x1] ss:$0 sm:$0xff] }
 0x35d   : > { %v921_v15 = vmul.f32 %v1517_v45, %v919_v6  ;;  %v1241_v45 = vld [vmem:[%s1674_s6 + $0x1] ss:$0 sm:$0xff] }
 0x35e   : > { %v904_v5 = vsel %vm903_vm5, %v1259_v57, %v900_v4 }
 0x35f   : > { %v906_v7 = vmul.f32 %v904_v5, %v1559_v30  ;;  %v935_v10 = vrot.slane %v921_v15, 1  ;;  %v987_v14 = vrot.slane %v921_v15, 2  ;;  %v1247_v5 = vld [vmem:[%s1677_s9 + $0x1] ss:$0 sm:$0xff] }
 0x361   : > { %v913_v18 = vmul.f32 %v1239_v62, %v906_v7 }
 0x363   : > { %v920_v8 = vadd.f32 %v1240_v2, %v913_v18 }
 0x365   : > { %v922_v9 = vmul.f32 %v1521_v47, %v920_v8  ;;  %v724_v47 = vpop.xlane.xlu0 %723  ;;  %v1249_v8 = vld [vmem:[%s1678_s10 + $0x1] ss:$0 sm:$0xff] }
 0x366   : > { %v725_v28 = vmul.f32 %v724_v47, %v1427_v43 }
 0x367   : > { %v936_v11 = vrot.slane %v922_v9, 1  ;;  %v988_v16 = vrot.slane %v922_v9, 2 }
 0x368   : > { %v726_v32 = vsub.f32 %v721_v31, %v725_v28 }
 0x369   : > { %v937_v20 = vsel %vm456_vm2, %v935_v10, %v936_v11  ;;  %v989_v21 = vsel %vm520_vm1, %v987_v14, %v988_v16  ;;  %v431_v10 = vld [vmem:[%s424_s28] sm:$0xff] }
 0x36a   : > { %1208 = vmatmul.msk.f32.vlgmr.msra.gmra.mxu0 %vm460_vm0, %v937_v20  ;;  %1214 = vmatmul.msk.f32.vlgmr.msra.gmra.mxu1 %vm460_vm0, %v989_v21  ;;  %v727_v34 = vmul.f32 %v726_v32, %v726_v32  ;;  %v1248_v14 = vld [vmem:[%s1678_s10] ss:$0 sm:$0xff] }
 0x36c   : > { %v728_v35 = vsel %vm460_vm0, %v727_v34, 0.0 }
 0x372   : > { %1209 = vmatmul.msk.f32.vlgmr.msrb.gmra.mxu0 %vm460_vm0, %v921_v15 }
 0x3e7   : > { %v957_v22 = vpop.f32.mrf.mxu0  ;;  %v1009_v25 = vpop.f32.mrf.mxu1 }
 0x3ef   : > { %v979_v23 = vpop.f32.mrf.mxu0 }
 0x3f0   : > { %v980_v24 = vadd.f32 %v979_v23, %v957_v22 }
 0x3f2   : > { %v1012_v26 = vadd.f32 %v1009_v25, %v980_v24 }
 0x3f4   : > { %v1018_v29 = vadd.f32 %v1241_v45, %v1012_v26 }
 0x3f6   : > { %v1019_v30 = vmax.f32 %v1018_v29, 0.0 }
 0x3f8   : > { %v1020_v33 = vsel %vm460_vm0, %v1019_v30, 0.0 }
 0x3f9   : > { %1021 = vadd.xlane.f32.xlu2 %v1020_v33 }
 0x401   : > { %729 = vadd.xlane.f32.xlu2 %v728_v35 }
 0x46c   : > { %v1022_v12 = vpop.xlane.xlu2 %1021 }
 0x46d   : > { %v1023_v36 = vmul.f32 %v1022_v12, %v1427_v43 }
 0x46f   : > { %v1024_v37 = vsub.f32 %v1019_v30, %v1023_v36 }
 0x471   : > { %v1025_v38 = vmul.f32 %v1024_v37, %v1024_v37 }
 0x473   : > { %v1026_v39 = vsel %vm460_vm0, %v1025_v38, 0.0 }
 0x474   : > { %1027 = vadd.xlane.f32.xlu1 %v1026_v39  ;;  %v730_v40 = vpop.xlane.xlu2 %729 }
 0x475   : > { %v731_v41 = vmul.f32 %v730_v40, %v1427_v43 }
 0x477   : > { %v732_v27 = vadd.f32 1e-05, %v731_v41 }
 0x479   : > { %1260 = vrsqrt.f32 %v732_v27  ;;  %vm739_vm2 = vweird.f32 %v732_v27 }
 0x47f   : > { %v1261_v31 = vpop.eup %1260 }
 0x480   : > { %v734_v42 = vmul.f32 %v1261_v31, %v732_v27  ;;  %vm740_vm1 = vweird.f32 %v1261_v31 }
 0x481   : > { %vm741_vm6 = vmor %vm739_vm2, %vm740_vm1 }
 0x482   : > { %v735_v19 = vmul.f32 %v1261_v31, %v734_v42 }
 0x484   : > { %v736_v44 = vmul.f32 0.5, %v735_v19 }
 0x486   : > { %v737_v46 = vsub.f32 1.5, %v736_v44 }
 0x488   : > { %v738_v48 = vmul.f32 %v1261_v31, %v737_v46 }
 0x48a   : > { %v742_v13 = vsel %vm741_vm6, %v1261_v31, %v738_v48 }
 0x48b   : > { %v743_v50 = vmul.f32 %v742_v13, %v726_v32 }
 0x48d   : > { %v748_v53 = vmul.f32 %v1242_v49, %v743_v50 }
 0x48f   : > { %v753_v54 = vadd.f32 %v1243_v52, %v748_v53 }
 0x491   : > { %v758_v55 = vmul.f32 %v1244_v51, %v753_v54 }
 0x493   : > { %v759_v17 = vsel %vm460_vm0, %v758_v55, 0.0 }
 0x494   : > { %760 = vadd.xlane.f32.xlu1 %v759_v17 }
 0x4e7   : > { %v1028_v56 = vpop.xlane.xlu1 %1027 }
 0x4e8   : > { %v1029_v57 = vmul.f32 %v1028_v56, %v1427_v43  ;;  %v1246_v43 = vld [vmem:[%s1676_s8 + $0x1] ss:$0 sm:$0xff] }
 0x4ea   : > { %v1030_v58 = vadd.f32 1e-05, %v1029_v57 }
 0x4ec   : > { %1262 = vrsqrt.f32 %v1030_v58  ;;  %vm1037_vm8 = vweird.f32 %v1030_v58 }
 0x4f2   : > { %v1263_v59 = vpop.eup %1262 }
 0x4f3   : > { %v1032_v60 = vmul.f32 %v1263_v59, %v1030_v58  ;;  %vm1038_vm7 = vweird.f32 %v1263_v59 }
 0x4f4   : > { %vm1039_vm9 = vmor %vm1037_vm8, %vm1038_vm7 }
 0x4f5   : > { %v1033_v61 = vmul.f32 %v1263_v59, %v1032_v60 }
 0x4f7   : > { %v1034_v62 = vmul.f32 0.5, %v1033_v61 }
 0x4f9   : > { %v1035_v63 = vsub.f32 1.5, %v1034_v62 }
 0x4fb   : > { %v1036_v0 = vmul.f32 %v1263_v59, %v1035_v63 }
 0x4fd   : > { %v1040_v2 = vsel %vm1039_vm9, %v1263_v59, %v1036_v0 }
 0x4fe   : > { %v1041_v3 = vmul.f32 %v1040_v2, %v1024_v37 }
 0x500   : > { %v1047_v4 = vmul.f32 %v1245_v1, %v1041_v3 }
 0x502   : > { %v1053_v6 = vadd.f32 %v1246_v43, %v1047_v4 }
 0x504   : > { %v1059_v7 = vmul.f32 %v1247_v5, %v1053_v6 }
 0x506   : > { %v1060_v18 = vsel %vm460_vm0, %v1059_v7, 0.0  ;;  %vm1074_vm0 = vcmask 7168  }
 0x507   : > { %1061 = vadd.xlane.f32.xlu0 %v1060_v18  ;;  %v761_v16 = vpop.xlane.xlu1 %760 }
 0x508   : > { %v766_v20 = vadd.f32 %v1248_v14, %v761_v16 }
 0x50a   : > { %v767_v21 = vmul.f32 %v766_v20, %v431_v10 }
 0x57a   : > { %v1062_v15 = vpop.xlane.xlu0 %1061 }
 0x57b   : > { %v1068_v9 = vadd.f32 %v1249_v8, %v1062_v15 }
 0x57d   : > { %v1069_v11 = vmul.f32 %v1068_v9, %v431_v10 }
 0x57f   : > { %1071 = vrot.lane.b32.xlu2 %v1069_v11, %s1274_s29 }
 0x5d9   : > { %v1072_v22 = vpop.permute.xlu2 %1071 }
 0x5da   : > { %v1075_v23 = vsel %vm1074_vm0, %v767_v21, %v1072_v22 }
 0x5db   : > { %1077 = vst.msk [vmem:[%s428_s15] sm:$0xff] %vm1076_vm10, %v1075_v23 }
 0x5dc PF: > { %s22_s21 = sadd.s32 1, %s1270_s21  }
 0x5dd   : > { %p19_p4 = scmp.ge.s32.totalorder %s22_s21, 4  }
 0x5df   :  { %21 = sbr.rel (!%p19_p4) target bundleno = 1 (0x1), region = 119 }

// kernel: squeeze.26
= control target key start
LH: loop header
LB: loop body
LE: loop exit
PB: predicated region body
PF: predicated region fallthrough
CT: control target
= control target key end

     0   :  { %vm7_vm0 = vcmask 130048   ;;  %s39_s0 = inlined_call_operand.vmem [shape: s32[32], index: 0, kind: input, shape index: {}]   ;;  %s40_s1 = inlined_call_operand.vmem [shape: s32[2,16], index: 1, kind: output, shape index: {}]  }
   0x1   :  { %v4_v0 = vld [vmem:[%s39_s0] sm:$0x1]  ;;  %s22_s0 = smov 112  }
   0x2   :  { %5 = vst [vmem:[#allocation1] sm:$0x1] %v4_v0 }
   0x9   :  { %v9_v1 = vld [vmem:[#allocation1] sm:$0x1]  }
   0xa   :  { %v6_v2 = vld [vmem:[#allocation1] sm:$0x1]   ;;  %10 = vrot.lane.b32.xlu0 %v9_v1, %s22_s0 }
   0xb   :  { %8 = vst.msk [vmem:[#allocation0] sm:$0x1] %vm7_vm0, %v6_v2  }
  0x7c   :  { %v11_v3 = vpop.permute.xlu0 %10  }
  0x7d   :  { %14 = vst.msk [vmem:[#allocation0 + $0x1] sm:$0x1] %vm7_vm0, %v11_v3  }
  0x84   :  { %v17_v4 = vld [vmem:[#allocation0] sm:$0x3] }
  0x85   :  { %20 = vst [vmem:[%s40_s1] sm:$0x3] %v17_v4 }

// kernel: forward.34
= control target key start
LH: loop header
LB: loop body
LE: loop exit
PB: predicated region body
PF: predicated region fallthrough
CT: control target
= control target key end

     0   :  { %vm26_vm0 = vcmask 261120   ;;  %vm68_vm1 = vcmask 130048   ;;  %s153_s1 = inlined_call_operand.vmem [shape: f32[32,16], index: 1, kind: input, shape index: {}]   ;;  %s154_s2 = inlined_call_operand.vmem [shape: f32[1,16], index: 2, kind: input, shape index: {}]   ;;  %s155_s0 = inlined_call_operand.vmem [shape: f32[32,32], index: 0, kind: input, shape index: {}]   ;;  %s156_s3 = inlined_call_operand.vmem [shape: f32[32,16], index: 3, kind: output, shape index: {}]  }
   0x1   :  { %v21_v0 = vld [vmem:[%s153_s1 + $0x18] sm:$0xff]  ;;  %v20_v1 = vld [vmem:[%s153_s1 + $0x10] sm:$0xff]  ;;  %v19_v2 = vld [vmem:[%s153_s1 + $0x8] sm:$0xff] }
   0x2   :  { %82 = vmatpush.msra.mxu2 %v21_v0  ;;  %83 = vmatpush.msra.mxu3 %v21_v0  ;;  %v18_v3 = vld [vmem:[%s153_s1] sm:$0xff]  ;;  %v16_v4 = vld [vmem:[%s155_s0 + $0x10] sm:$0xff]  ;;  %v17_v5 = vld [vmem:[%s155_s0 + $0x18] sm:$0xff] }
   0x3   :  { %51 = vmatpush.msra.mxu0 %v21_v0  ;;  %81 = vmatpush.msra.mxu1 %v21_v0  ;;  %v14_v6 = vld [vmem:[%s155_s0] sm:$0xff]  ;;  %v15_v7 = vld [vmem:[%s155_s0 + $0x8] sm:$0xff] }
   0x4   :  { %85 = vmatpush.msra.mxu2 %v20_v1  ;;  %86 = vmatpush.msra.mxu3 %v20_v1  ;;  %v93_v8 = vld [vmem:[%s154_s2] ss:$0 sm:$0xff] }
   0x5   :  { %52 = vmatpush.msra.mxu0 %v20_v1  ;;  %84 = vmatpush.msra.mxu1 %v20_v1 }
   0x6   :  { %88 = vmatpush.msra.mxu2 %v19_v2  ;;  %89 = vmatpush.msra.mxu3 %v19_v2 }
   0x7   :  { %53 = vmatpush.msra.mxu0 %v19_v2  ;;  %87 = vmatpush.msra.mxu1 %v19_v2 }
   0x8   :  { %91 = vmatpush.msra.mxu2 %v18_v3  ;;  %92 = vmatpush.msra.mxu3 %v18_v3 }
   0x9   :  { %79 = vmatmul.msk.f32.vlgmr.msra.gmra.mxu2 %vm26_vm0, %v16_v4  ;;  %80 = vmatmul.msk.f32.vlgmr.msra.gmra.mxu3 %vm26_vm0, %v17_v5 }
   0xa   :  { %54 = vmatpush.msra.mxu0 %v18_v3  ;;  %90 = vmatpush.msra.mxu1 %v18_v3 }
   0xb   :  { %77 = vmatmul.msk.f32.vlgmr.msra.gmra.mxu0 %vm26_vm0, %v14_v6  ;;  %78 = vmatmul.msk.f32.vlgmr.msra.gmra.mxu1 %vm26_vm0, %v15_v7 }
  0x88   :  { %v56_v9 = vpop.f32.mrf.mxu0  ;;  %v59_v10 = vpop.f32.mrf.mxu1 }
  0x89   :  { %v57_v11 = vadd.f32 %v93_v8, %v56_v9  ;;  %v60_v12 = vadd.f32 %v93_v8, %v59_v10 }
  0x8b   :  { %69 = vst.msk [vmem:[%s156_s3] sm:$0xff] %vm68_vm1, %v57_v11 }
  0x8c   :  { %70 = vst.msk [vmem:[%s156_s3 + $0x8] sm:$0xff] %vm68_vm1, %v60_v12  ;;  %v62_v13 = vpop.f32.mrf.mxu2  ;;  %v65_v14 = vpop.f32.mrf.mxu3 }
  0x8d   :  { %v63_v15 = vadd.f32 %v93_v8, %v62_v13  ;;  %v66_v16 = vadd.f32 %v93_v8, %v65_v14 }
  0x8f   :  { %71 = vst.msk [vmem:[%s156_s3 + $0x10] sm:$0xff] %vm68_vm1, %v63_v15 }
  0x90   :  { %72 = vst.msk [vmem:[%s156_s3 + $0x18] sm:$0xff] %vm68_vm1, %v66_v16 }

// kernel: forward.29
= control target key start
LH: loop header
LB: loop body
LE: loop exit
PB: predicated region body
PF: predicated region fallthrough
CT: control target
= control target key end

     0   :  { %s980_s23 = smov 0   ;;  %s1130_s0 = inlined_call_operand.vmem [shape: f32[2,12,32], index: 0, kind: input, shape index: {}]   ;;  %s1131_s1 = inlined_call_operand.vmem [shape: f32[3,32,32], index: 1, kind: input, shape index: {}]   ;;  %s1132_s2 = inlined_call_operand.vmem [shape: f32[1,1,32], index: 2, kind: input, shape index: {}]   ;;  %s1133_s3 = inlined_call_operand.vmem [shape: f32[1,1,32], index: 3, kind: input, shape index: {}]   ;;  %s1134_s4 = inlined_call_operand.vmem [shape: f32[1,1,32], index: 4, kind: input, shape index: {}]   ;;  %s1135_s5 = inlined_call_operand.vmem [shape: f32[3,32,32], index: 5, kind: input, shape index: {}]   ;;  %s1136_s6 = inlined_call_operand.vmem [shape: f32[1,1,32], index: 6, kind: input, shape index: {}]   ;;  %s1137_s7 = inlined_call_operand.vmem [shape: f32[1,1,32], index: 7, kind: input, shape index: {}]   ;;  %s1138_s8 = inlined_call_operand.vmem [shape: f32[1,1,32], index: 8, kind: input, shape index: {}]   ;;  %s1139_s9 = inlined_call_operand.vmem [shape: f32[1,1,32], index: 9, kind: input, shape index: {}]   ;;  %s1140_s10 = inlined_call_operand.<no memory space> [shape: f32[1,1,1], index: 10, kind: input, shape index: {}]   ;;  %s1141_s11 = inlined_call_operand.vmem [shape: f32[2,8,1], index: 11, kind: input, shape index: {}]   ;;  %s1142_s12 = inlined_call_operand.vmem [shape: f32[2,8,1], index: 12, kind: output, shape index: {}]  }
   0x1   :  { %v17_v0 = vstv %s1140_s10 }
   0x2   :  { %18 = vst [vmem:[#allocation2] sm:$0x1] %v17_v0 }
   0x3 LB: > { %s837_s24 = sadd.s32 4294967295, %s908_s23   ;;  %p841_p0 = scmp.ge.s32.totalorder %s908_s23, 1  ;;  %s908_s23 = sphi %s980_s23, %s24_s23  }
   0x4   : > { %p373_p1 = scmp.lt.s32.totalorder %s908_s23, 3 }
   0x6   : > { %p374_p2 = pnand %p841_p0, %p373_p1 }
   0x7   : > { %p418_p3 = scmp.lt.s32.totalorder (!%p374_p2), %s837_s24, 1 }
   0x8   : > { %377 = sbr.rel (%p374_p2) target bundleno = 981 (0x3d5), region = 68 }
   0xd   : > { %v859_v1 = vld [vmem:[%s1131_s1 + $0x58] sm:$0xff]  ;;  %v858_v2 = vld [vmem:[%s1131_s1 + $0x50] sm:$0xff]  ;;  %v857_v6 = vld [vmem:[%s1131_s1 + $0x48] sm:$0xff]  ;;  %s1144_s24 = smov (!%p418_p3, %s837_s24), 1  ;;  %vm462_vm0 = vcmask 261120   ;;  %vm522_vm1 = vcmask 1045504  }
   0xe   : > { %v851_v3 = vld [vmem:[%s1131_s1 + $0x38] sm:$0xff]  ;;  %542 = vmatpush.msra.mxu2 %v859_v1  ;;  %v850_v5 = vld [vmem:[%s1131_s1 + $0x30] sm:$0xff]  ;;  %v849_v8 = vld [vmem:[%s1131_s1 + $0x28] sm:$0xff]  ;;  %s875_s29 = sshll.u32 %s1144_s24, 4  ;;  %vm458_vm2 = vcmask 1046528   ;;  %vm566_vm3 = vcmask 254976  }
   0xf   : > { %479 = vmatpush.msra.mxu0 %v851_v3  ;;  %v450_v4 = vld [vmem:[%s1131_s1 + $0x18] sm:$0xff]  ;;  %v449_v7 = vld [vmem:[%s1131_s1 + $0x10] sm:$0xff]  ;;  %v856_v9 = vld [vmem:[%s1131_s1 + $0x40] sm:$0xff]  ;;  %s422_s16 = scalar_lea.vmem %s1130_s0, %s875_s29  ;;  %v910_v38 = vmov 32.0   ;;  %s844_s21 = sshll.u32 %s1144_s24, 3 }
  0x10   : > { %506 = vmatpush.msra.mxu1 %v450_v4  ;;  %543 = vmatpush.msra.mxu2 %v858_v2  ;;  %v448_v10 = vld [vmem:[%s1131_s1 + $0x8] sm:$0xff]  ;;  %v848_v11 = vld [vmem:[%s1131_s1 + $0x20] sm:$0xff]  ;;  %894 = vrcp.f32 %v910_v38  ;;  %v865_v57 = vld [vmem:[%s1135_s5 + $0x38] sm:$0xff]  ;;  %s426_s26 = scalar_lea.vmem %s1141_s11, %s844_s21  ;;  %s430_s28 = scalar_lea.vmem %s1142_s12, %s844_s21 }
  0x11   : > { %480 = vmatpush.msra.mxu0 %v850_v5  ;;  %v447_v12 = vld [vmem:[%s1131_s1] sm:$0xff]  ;;  %v432_v14 = vld [vmem:[%s422_s16 + $0x8] sm:$0xf]  ;;  %v871_v58 = vld [vmem:[%s1135_s5 + $0x58] sm:$0xff]  ;;  %657 = vmatpush.msra.mxu3 %v865_v57 }
  0x12   : > { %507 = vmatpush.msra.mxu1 %v449_v7  ;;  %544 = vmatpush.msra.mxu2 %v857_v6  ;;  %v431_v13 = vld [vmem:[%s422_s16] sm:$0xff]  ;;  %v524_v16 = vrot.slane %v432_v14, 2  ;;  %v460_v18 = vrot.slane %v432_v14, 1  ;;  %v864_v59 = vld [vmem:[%s1135_s5 + $0x30] sm:$0xff]  ;;  %v863_v62 = vld [vmem:[%s1135_s5 + $0x28] sm:$0xff] }
  0x13   : > { %481 = vmatpush.msra.mxu0 %v849_v8  ;;  %v523_v15 = vrot.slane %v431_v13, 2  ;;  %v459_v17 = vrot.slane %v431_v13, 1  ;;  %v886_v24 = vld [vmem:[%s1132_s2] ss:$0 sm:$0xff]  ;;  %v870_v60 = vld [vmem:[%s1135_s5 + $0x50] sm:$0xff]  ;;  %v869_v63 = vld [vmem:[%s1135_s5 + $0x48] sm:$0xff]  ;;  %658 = vmatpush.msra.mxu3 %v864_v59 }
  0x14   : > { %508 = vmatpush.msra.mxu1 %v448_v10  ;;  %545 = vmatpush.msra.mxu2 %v856_v9  ;;  %v862_v0 = vld [vmem:[%s1135_s5 + $0x20] sm:$0xff]  ;;  %v632_v4 = vld [vmem:[%s1135_s5 + $0x18] sm:$0xff]  ;;  %v631_v5 = vld [vmem:[%s1135_s5 + $0x10] sm:$0xff] }
  0x15   : > { %482 = vmatpush.msra.mxu0 %v848_v11  ;;  %v525_v19 = vsel %vm522_vm1, %v523_v15, %v524_v16  ;;  %v461_v20 = vsel %vm458_vm2, %v459_v17, %v460_v18  ;;  %v868_v1 = vld [vmem:[%s1135_s5 + $0x40] sm:$0xff]  ;;  %659 = vmatpush.msra.mxu3 %v863_v62  ;;  %v630_v9 = vld [vmem:[%s1135_s5 + $0x8] sm:$0xff]  ;;  %v434_v17 = vlaneseq }
  0x16   : > { %509 = vmatpush.msra.mxu1 %v447_v12  ;;  %860 = vmatmul.msk.f32.vlgmr.msra.gmra.mxu2 %vm462_vm0, %v525_v19  ;;  %v895_v39 = vpop.eup %894  ;;  %v629_v11 = vld [vmem:[%s1135_s5] sm:$0xff] }
  0x17   : > { %854 = vmatmul.msk.f32.vlgmr.msra.gmra.mxu1 %vm462_vm0, %v431_v13  ;;  %852 = vmatmul.msk.f32.vlgmr.msra.gmra.mxu0 %vm462_vm0, %v461_v20  ;;  %v571_v40 = vmul.f32 32.0, %v895_v39  ;;  %vm575_vm4 = vweird.f32 %v895_v39  ;;  %v887_v20 = vld [vmem:[%s1133_s3] ss:$0 sm:$0xff] }
  0x18   : > { %709 = vmatpush.msrb.mxu0 %v871_v58  ;;  %660 = vmatpush.msra.mxu3 %v862_v0 }
  0x19   : > { %v572_v41 = vsub.f32 1.0, %v571_v40 }
  0x1a   : > { %710 = vmatpush.msrb.mxu0 %v870_v60  ;;  %679 = vmatpush.msrb.mxu3 %v632_v4 }
  0x1b   : > { %v573_v42 = vmul.f32 %v895_v39, %v572_v41 }
  0x1c   : > { %711 = vmatpush.msrb.mxu0 %v869_v63  ;;  %680 = vmatpush.msrb.mxu3 %v631_v5  ;;  %v890_v5 = vld [vmem:[%s1137_s7] ss:$0 sm:$0xff] }
  0x1d   : > { %v574_v43 = vadd.f32 %v895_v39, %v573_v42 }
  0x1e   : > { %861 = vmatmul.msk.f32.gmra.mxu2 %vm462_vm0, %v524_v16  ;;  %712 = vmatpush.msrb.mxu0 %v868_v1 }
  0x1f   : > { %855 = vmatmul.msk.f32.gmra.mxu1 %vm462_vm0, %v432_v14  ;;  %853 = vmatmul.msk.f32.gmra.mxu0 %vm462_vm0, %v460_v18  ;;  %v1043_v44 = vsel %vm575_vm4, %v895_v39, %v574_v43 }
  0x20   : > { %681 = vmatpush.msrb.mxu3 %v630_v9  ;;  %v892_v9 = vld [vmem:[%s1139_s9] ss:$0 sm:$0xff] }
  0x22   : > { %682 = vmatpush.msrb.mxu3 %v629_v11 }
  0x94   : > { %v511_v21 = vpop.f32.mrf.mxu1  ;;  %v484_v22 = vpop.f32.mrf.mxu0 }
  0x95   : > { %v512_v23 = vadd.f32 %v511_v21, %v484_v22 }
  0x99   : > { %v547_v25 = vpop.f32.mrf.mxu2 }
  0x9a   : > { %v553_v26 = vadd.f32 %v547_v25, %v512_v23  ;;  %v435_v23 = vshrl.u32 %v434_v17, 7 }
  0x9c   : > { %v487_v27 = vpop.f32.mrf.mxu0  ;;  %v514_v28 = vpop.f32.mrf.mxu1  ;;  %v559_v29 = vadd.f32 %v886_v24, %v553_v26  ;;  %v436_v26 = vadd.s32 8, %v435_v23  ;;  %vm437_vm11 = vcmp.ge.s32.totalorder %v435_v23, 1 }
  0x9d   : > { %v515_v30 = vadd.f32 %v514_v28, %v487_v27  ;;  %v888_v27 = vld [vmem:[%s1134_s4] ss:$0 sm:$0xff] }
  0x9e   : > { %v561_v31 = vmax.f32 %v559_v29, 0.0  ;;  %vm440_vm12 = vcmp.lt.s32.totalorder %v436_v26, 9 }
  0xa0   : > { %v563_v32 = vsel %vm462_vm0, %v561_v31, 0.0 }
  0xa1   : > { %v550_v33 = vpop.f32.mrf.mxu2  ;;  %564 = vadd.xlane.f32.xlu0 %v563_v32  ;;  %v911_v32 = vmov 0.0  }
  0xa2   : > { %v554_v34 = vadd.f32 %v550_v33, %v515_v30  ;;  %v846_v33 = vsel %vm437_vm11, 1.0, %v911_v32 }
  0xa4   : > { %v560_v35 = vadd.f32 %v886_v24, %v554_v34 }
  0xa6   : > { %v562_v36 = vmax.f32 %v560_v35, 0.0  ;;  %v847_v35 = vsel %vm440_vm12, 1.0, %v911_v32 }
  0xa8   : > { %v567_v37 = vsel %vm566_vm3, %v562_v36, 0.0 }
  0xa9   : > { %568 = vadd.xlane.f32.xlu0 %v567_v37 }
 0x114   : > { %v565_v45 = vpop.xlane.xlu0 %564 }
 0x115   : > { %v577_v46 = vmul.f32 %v1043_v44, %v565_v45 }
 0x117   : > { %v579_v47 = vsub.f32 %v561_v31, %v577_v46 }
 0x119   : > { %v581_v48 = vmul.f32 %v579_v47, %v579_v47 }
 0x11b   : > { %v583_v49 = vsel %vm462_vm0, %v581_v48, 0.0 }
 0x11c   : > { %584 = vadd.xlane.f32.xlu1 %v583_v49  ;;  %v569_v50 = vpop.xlane.xlu0 %568  ;;  %v889_v49 = vld [vmem:[%s1136_s6] ss:$0 sm:$0xff] }
 0x11d   : > { %v578_v51 = vmul.f32 %v1043_v44, %v569_v50 }
 0x11f   : > { %v1048_v52 = vsub.f32 %v562_v36, %v578_v51 }
 0x121   : > { %v582_v53 = vmul.f32 %v1048_v52, %v1048_v52 }
 0x123   : > { %v586_v54 = vsel %vm566_vm3, %v582_v53, 0.0 }
 0x124   : > { %587 = vadd.xlane.f32.xlu1 %v586_v54 }
 0x18f   : > { %v585_v55 = vpop.xlane.xlu1 %584 }
 0x190   : > { %v589_v56 = vmul.f32 %v585_v55, %v1043_v44 }
 0x192   : > { %v591_v61 = vadd.f32 1e-05, %v589_v56 }
 0x194   : > { %896 = vrsqrt.f32 %v591_v61  ;;  %vm599_vm6 = vweird.f32 %v591_v61 }
 0x197   : > { %v588_v2 = vpop.xlane.xlu1 %587 }
 0x198   : > { %v590_v3 = vmul.f32 %v588_v2, %v1043_v44 }
 0x19a   : > { %v897_v6 = vpop.eup %896  ;;  %v592_v7 = vadd.f32 1e-05, %v590_v3 }
 0x19b   : > { %v594_v8 = vmul.f32 %v897_v6, %v591_v61  ;;  %vm600_vm5 = vweird.f32 %v897_v6 }
 0x19c   : > { %898 = vrsqrt.f32 %v592_v7  ;;  %vm601_vm7 = vmor %vm599_vm6, %vm600_vm5  ;;  %vm609_vm9 = vweird.f32 %v592_v7 }
 0x19d   : > { %v595_v10 = vmul.f32 %v897_v6, %v594_v8 }
 0x19f   : > { %v596_v12 = vmul.f32 0.5, %v595_v10 }
 0x1a1   : > { %v597_v13 = vsub.f32 1.5, %v596_v12 }
 0x1a2   : > { %v899_v14 = vpop.eup %898 }
 0x1a3   : > { %v598_v15 = vmul.f32 %v897_v6, %v597_v13  ;;  %v604_v16 = vmul.f32 %v899_v14, %v592_v7  ;;  %vm610_vm8 = vweird.f32 %v899_v14  ;;  %v893_v13 = vld [vmem:[#allocation2] ss:$0 sm:$0xff] }
 0x1a4   : > { %vm611_vm10 = vmor %vm609_vm9, %vm610_vm8 }
 0x1a5   : > { %v602_v18 = vsel %vm601_vm7, %v897_v6, %v598_v15  ;;  %v605_v19 = vmul.f32 %v899_v14, %v604_v16 }
 0x1a6   : > { %v613_v21 = vmul.f32 %v602_v18, %v579_v47 }
 0x1a7   : > { %v606_v22 = vmul.f32 0.5, %v605_v19 }
 0x1a8   : > { %v619_v25 = vmul.f32 %v887_v20, %v613_v21 }
 0x1a9   : > { %v607_v24 = vsub.f32 1.5, %v606_v22 }
 0x1aa   : > { %v625_v31 = vadd.f32 %v888_v27, %v619_v25 }
 0x1ab   : > { %v608_v28 = vmul.f32 %v899_v14, %v607_v24 }
 0x1ac   : > { %v627_v37 = vmul.f32 %v846_v33, %v625_v31 }
 0x1ad   : > { %v612_v29 = vsel %vm611_vm10, %v899_v14, %v608_v28  ;;  %v433_v14 = vld [vmem:[%s426_s26] sm:$0xff] }
 0x1ae   : > { %v614_v30 = vmul.f32 %v612_v29, %v1048_v52  ;;  %v640_v39 = vrot.slane %v627_v37, 1  ;;  %v692_v41 = vrot.slane %v627_v37, 2 }
 0x1b0   : > { %v620_v34 = vmul.f32 %v887_v20, %v614_v30 }
 0x1b2   : > { %v626_v36 = vadd.f32 %v888_v27, %v620_v34 }
 0x1b4   : > { %v628_v38 = vmul.f32 %v847_v35, %v626_v36 }
 0x1b6   : > { %v641_v40 = vrot.slane %v628_v38, 1  ;;  %v693_v42 = vrot.slane %v628_v38, 2 }
 0x1b8   : > { %v642_v43 = vsel %vm458_vm2, %v640_v39, %v641_v40  ;;  %v694_v45 = vsel %vm522_vm1, %v692_v41, %v693_v42  ;;  %vm770_vm1 = vcmask 7168  }
 0x1b9   : > { %866 = vmatmul.msk.f32.vlgmr.msra.gmra.mxu3 %vm462_vm0, %v642_v43  ;;  %872 = vmatmul.msk.f32.vlgmr.msrb.gmra.mxu0 %vm462_vm0, %v694_v45 }
 0x1c1   : > { %867 = vmatmul.msk.f32.vlgmr.msrb.gmra.mxu3 %vm462_vm0, %v627_v37 }
 0x236   : > { %v714_v50 = vpop.f32.mrf.mxu0 }
 0x23c   : > { %v662_v46 = vpop.f32.mrf.mxu3 }
 0x244   : > { %v684_v47 = vpop.f32.mrf.mxu3 }
 0x245   : > { %v685_v48 = vadd.f32 %v684_v47, %v662_v46 }
 0x247   : > { %v717_v51 = vadd.f32 %v714_v50, %v685_v48 }
 0x249   : > { %v722_v52 = vadd.f32 %v889_v49, %v717_v51 }
 0x24b   : > { %v723_v53 = vmax.f32 %v722_v52, 0.0 }
 0x24d   : > { %v724_v54 = vsel %vm462_vm0, %v723_v53, 0.0 }
 0x24e   : > { %725 = vadd.xlane.f32.xlu2 %v724_v54 }
 0x2c1   : > { %v726_v55 = vpop.xlane.xlu2 %725 }
 0x2c2   : > { %v727_v56 = vmul.f32 %v726_v55, %v1043_v44 }
 0x2c4   : > { %v728_v57 = vsub.f32 %v723_v53, %v727_v56 }
 0x2c6   : > { %v729_v58 = vmul.f32 %v728_v57, %v728_v57 }
 0x2c8   : > { %v730_v59 = vsel %vm462_vm0, %v729_v58, 0.0 }
 0x2c9   : > { %731 = vadd.xlane.f32.xlu2 %v730_v59 }
 0x33c   : > { %v732_v60 = vpop.xlane.xlu2 %731 }
 0x33d   : > { %v733_v61 = vmul.f32 %v732_v60, %v1043_v44  ;;  %v891_v44 = vld [vmem:[%s1138_s8] ss:$0 sm:$0xff] }
 0x33f   : > { %v734_v62 = vadd.f32 1e-05, %v733_v61 }
 0x341   : > { %900 = vrsqrt.f32 %v734_v62  ;;  %vm741_vm14 = vweird.f32 %v734_v62 }
 0x347   : > { %v901_v63 = vpop.eup %900 }
 0x348   : > { %v736_v0 = vmul.f32 %v901_v63, %v734_v62  ;;  %vm742_vm13 = vweird.f32 %v901_v63 }
 0x349   : > { %vm743_vm15 = vmor %vm741_vm14, %vm742_vm13 }
 0x34a   : > { %v737_v1 = vmul.f32 %v901_v63, %v736_v0 }
 0x34c   : > { %v738_v2 = vmul.f32 0.5, %v737_v1 }
 0x34e   : > { %v739_v3 = vsub.f32 1.5, %v738_v2 }
 0x350   : > { %v740_v4 = vmul.f32 %v901_v63, %v739_v3 }
 0x352   : > { %v744_v6 = vsel %vm743_vm15, %v901_v63, %v740_v4 }
 0x353   : > { %v745_v7 = vmul.f32 %v744_v6, %v728_v57 }
 0x355   : > { %v750_v8 = vmul.f32 %v890_v5, %v745_v7 }
 0x357   : > { %v755_v10 = vadd.f32 %v891_v44, %v750_v8 }
 0x359   : > { %v760_v11 = vmul.f32 %v892_v9, %v755_v10 }
 0x35b   : > { %v761_v12 = vsel %vm462_vm0, %v760_v11, 0.0 }
 0x35c   : > { %762 = vadd.xlane.f32.xlu0 %v761_v12 }
 0x3cf   : > { %v763_v15 = vpop.xlane.xlu0 %762 }
 0x3d0   : > { %v768_v16 = vadd.f32 %v893_v13, %v763_v15 }
 0x3d2   : > { %v769_v17 = vmul.f32 %v768_v16, %v433_v14 }
 0x3d4   : > { %771 = vst.msk [vmem:[%s430_s28] sm:$0xff] %vm770_vm1, %v769_v17 }
 0x3d5 PF: > { %s24_s23 = sadd.s32 1, %s908_s23  }
 0x3d6   : > { %p21_p4 = scmp.ge.s32.totalorder %s24_s23, 4  }
 0x3d8   :  { %23 = sbr.rel (!%p21_p4) target bundleno = 3 (0x3), region = 105 }

// kernel: forward.31
= control target key start
LH: loop header
LB: loop body
LE: loop exit
PB: predicated region body
PF: predicated region fallthrough
CT: control target
= control target key end

     0   :  { %s838_s27 = smov 0   ;;  %s977_s0 = inlined_call_operand.vmem [shape: f32[2,18,32], index: 0, kind: input, shape index: {}]   ;;  %s978_s1 = inlined_call_operand.vmem [shape: f32[3,32,64], index: 1, kind: input, shape index: {}]   ;;  %s979_s2 = inlined_call_operand.vmem [shape: f32[1,64], index: 2, kind: input, shape index: {}]   ;;  %s980_s3 = inlined_call_operand.vmem [shape: f32[64,32], index: 3, kind: input, shape index: {}]   ;;  %s981_s4 = inlined_call_operand.vmem [shape: f32[1,32], index: 4, kind: input, shape index: {}]   ;;  %s982_s5 = inlined_call_operand.vmem [shape: f32[2,1,32], index: 5, kind: input, shape index: {}]   ;;  %s983_s6 = inlined_call_operand.vmem [shape: f32[2,1,32], index: 6, kind: input, shape index: {}]   ;;  %s984_s7 = inlined_call_operand.vmem [shape: f32[2,16,1], index: 7, kind: input, shape index: {}]   ;;  %s985_s8 = inlined_call_operand.vmem [shape: f32[2,16,32], index: 8, kind: output, shape index: {}]  }
   0x1 LB: > { %s728_s28 = sadd.s32 4294967295, %s789_s27   ;;  %p732_p0 = scmp.ge.s32.totalorder %s789_s27, 1  ;;  %s789_s27 = sphi %s838_s27, %s18_s27  }
   0x2   : > { %p288_p1 = scmp.lt.s32.totalorder %s789_s27, 3 }
   0x4   : > { %p289_p2 = pnand %p732_p0, %p288_p1 }
   0x5   : > { %p333_p3 = scmp.lt.s32.totalorder (!%p289_p2), %s728_s28, 1 }
   0x6   : > { %292 = sbr.rel (%p289_p2) target bundleno = 584 (0x248), region = 52 }
   0xb   : > { %v749_v0 = vld [vmem:[%s978_s1 + $0x58] sm:$0xff]  ;;  %v748_v1 = vld [vmem:[%s978_s1 + $0x50] sm:$0xff]  ;;  %v747_v5 = vld [vmem:[%s978_s1 + $0x48] sm:$0xff]  ;;  %s987_s28 = smov (!%p333_p3, %s728_s28), 1  ;;  %vm375_vm0 = vcmask 261120   ;;  %vm435_vm1 = vcmask 1045504  }
   0xc   : > { %v741_v2 = vld [vmem:[%s978_s1 + $0x38] sm:$0xff]  ;;  %457 = vmatpush.msra.mxu2 %v749_v0  ;;  %v740_v4 = vld [vmem:[%s978_s1 + $0x30] sm:$0xff]  ;;  %v739_v7 = vld [vmem:[%s978_s1 + $0x28] sm:$0xff]  ;;  %s758_s29 = smul.u32 24, %s987_s28  ;;  %vm369_vm2 = vcmask 1046528   ;;  %vm490_vm3 = vcmask 523264   ;;  %s340_s21 = scalar_lea.vmem %s982_s5, %s987_s28 }
   0xd   : > { %392 = vmatpush.msra.mxu0 %v741_v2  ;;  %v360_v3 = vld [vmem:[%s978_s1 + $0x18] sm:$0xff]  ;;  %v359_v6 = vld [vmem:[%s978_s1 + $0x10] sm:$0xff]  ;;  %v746_v8 = vld [vmem:[%s978_s1 + $0x40] sm:$0xff]  ;;  %vm532_vm4 = vcmask 261121   ;;  %vm522_vm5 = vcmask 1040384   ;;  %vm539_vm6 = vcmask 253952   ;;  %s343_s24 = scalar_lea.vmem %s983_s6, %s987_s28 }
   0xe   : > { %419 = vmatpush.msra.mxu1 %v360_v3  ;;  %458 = vmatpush.msra.mxu2 %v748_v1  ;;  %v358_v9 = vld [vmem:[%s978_s1 + $0x8] sm:$0xff]  ;;  %v738_v10 = vld [vmem:[%s978_s1 + $0x20] sm:$0xff]  ;;  %v485_v12 = vld [vmem:[%s980_s3 + $0x38] sm:$0xff]  ;;  %s337_s18 = scalar_lea.vmem %s977_s0, %s758_s29  ;;  %v791_v62 = vmov 32.0   ;;  %s756_s15 = sshll.u32 %s987_s28, 4 }
   0xf   : > { %393 = vmatpush.msra.mxu0 %v740_v4  ;;  %v357_v11 = vld [vmem:[%s978_s1] sm:$0xff]  ;;  %v484_v13 = vld [vmem:[%s980_s3 + $0x30] sm:$0xff]  ;;  %505 = vmatpush.msra.mxu3 %v485_v12  ;;  %v894_v15 = vld [vmem:[%s337_s18 + $0x8] sm:$0xff]  ;;  %775 = vrcp.f32 %v791_v62  ;;  %s353_s9 = scalar_lea.vmem %s985_s8, %s756_s15 }
  0x10   : > { %420 = vmatpush.msra.mxu1 %v359_v6  ;;  %459 = vmatpush.msra.mxu2 %v747_v5  ;;  %v354_v14 = vld [vmem:[%s337_s18] sm:$0xff]  ;;  %v483_v16 = vld [vmem:[%s980_s3 + $0x28] sm:$0xff]  ;;  %v437_v18 = vrot.slane %v894_v15, 2  ;;  %v371_v20 = vrot.slane %v894_v15, 1  ;;  %v356_v21 = vld [vmem:[%s337_s18 + $0x10] sm:$0x3]  ;;  %s348_s18 = scalar_lea.vmem %s984_s7, %s756_s15 }
  0x11   : > { %394 = vmatpush.msra.mxu0 %v739_v7  ;;  %v436_v17 = vrot.slane %v354_v14, 2  ;;  %v370_v19 = vrot.slane %v354_v14, 1  ;;  %506 = vmatpush.msra.mxu3 %v484_v13  ;;  %v439_v24 = vrot.slane %v356_v21, 2  ;;  %v373_v25 = vrot.slane %v356_v21, 1  ;;  %v482_v28 = vld [vmem:[%s980_s3 + $0x20] sm:$0xff]  ;;  %v481_v29 = vld [vmem:[%s980_s3 + $0x18] sm:$0xff] }
  0x12   : > { %421 = vmatpush.msra.mxu1 %v358_v9  ;;  %460 = vmatpush.msra.mxu2 %v746_v8  ;;  %v480_v30 = vld [vmem:[%s980_s3 + $0x10] sm:$0xff]  ;;  %v479_v31 = vld [vmem:[%s980_s3 + $0x8] sm:$0xff]  ;;  %v478_v32 = vld [vmem:[%s980_s3] sm:$0xff]  ;;  %v792_v5 = vmov 0  }
  0x13   : > { %395 = vmatpush.msra.mxu0 %v738_v10  ;;  %v438_v22 = vsel %vm435_vm1, %v436_v17, %v437_v18  ;;  %v372_v23 = vsel %vm369_vm2, %v370_v19, %v371_v20  ;;  %507 = vmatpush.msra.mxu3 %v483_v16  ;;  %v440_v26 = vsel %vm435_vm1, %v437_v18, %v439_v24  ;;  %v771_v36 = vld [vmem:[%s979_s2] ss:$0 sm:$0xff] }
  0x14   : > { %422 = vmatpush.msra.mxu1 %v357_v11  ;;  %750 = vmatmul.msk.f32.vlgmr.msra.gmra.mxu2 %vm375_vm0, %v438_v22  ;;  %v374_v27 = vsel %vm369_vm2, %v371_v20, %v373_v25  ;;  %v772_v48 = vld [vmem:[%s981_s4] ss:$0 sm:$0xff]  ;;  %v622_v22 = vld [vmem:[%s348_s18 + $0x8] sm:$0xff] }
  0x15   : > { %744 = vmatmul.msk.f32.vlgmr.msra.gmra.mxu1 %vm375_vm0, %v354_v14  ;;  %742 = vmatmul.msk.f32.vlgmr.msra.gmra.mxu0 %vm375_vm0, %v372_v23  ;;  %v776_v63 = vpop.eup %775  ;;  %v621_v3 = vld [vmem:[%s348_s18] sm:$0xff] }
  0x16   : > { %508 = vmatpush.msra.mxu3 %v482_v28  ;;  %v544_v0 = vmul.f32 32.0, %v776_v63  ;;  %769 = vset.pattern.permute.xlu0 %v792_v5  ;;  %vm548_vm7 = vweird.f32 %v776_v63 }
  0x17   : > { %770 = vset.pattern.permute.xlu1 %v792_v5 }
  0x18   : > { %509 = vmatpush.msra.mxu3 %v481_v29  ;;  %v545_v1 = vsub.f32 1.0, %v544_v0 }
  0x1a   : > { %510 = vmatpush.msra.mxu3 %v480_v30  ;;  %v546_v2 = vmul.f32 %v776_v63, %v545_v1 }
  0x1c   : > { %751 = vmatmul.msk.f32.gmra.mxu2 %vm375_vm0, %v440_v26  ;;  %511 = vmatpush.msra.mxu3 %v479_v31  ;;  %v547_v4 = vadd.f32 %v776_v63, %v546_v2 }
  0x1d   : > { %745 = vmatmul.msk.f32.gmra.mxu1 %vm375_vm0, %v894_v15  ;;  %743 = vmatmul.msk.f32.gmra.mxu0 %vm375_vm0, %v374_v27 }
  0x1e   : > { %512 = vmatpush.msra.mxu3 %v478_v32  ;;  %v549_v6 = vsel %vm548_vm7, %v776_v63, %v547_v4 }
  0x92   : > { %v424_v33 = vpop.f32.mrf.mxu1  ;;  %v397_v34 = vpop.f32.mrf.mxu0 }
  0x93   : > { %v425_v35 = vadd.f32 %v424_v33, %v397_v34 }
  0x97   : > { %v462_v37 = vpop.f32.mrf.mxu2 }
  0x98   : > { %v468_v38 = vadd.f32 %v462_v37, %v425_v35 }
  0x9a   : > { %v400_v39 = vpop.f32.mrf.mxu0  ;;  %v427_v40 = vpop.f32.mrf.mxu1  ;;  %v474_v41 = vadd.f32 %v771_v36, %v468_v38 }
  0x9b   : > { %v428_v43 = vadd.f32 %v427_v40, %v400_v39  ;;  %v773_v40 = vld [vmem:[%s340_s21] ss:$0 sm:$0xff] }
  0x9c   : > { %v476_v42 = vmax.f32 %v474_v41, 0.0 }
  0x9e   : > { %752 = vmatmul.msk.f32.vlgmr.msra.gmra.mxu3 %vm490_vm3, %v476_v42 }
  0x9f   : > { %v465_v44 = vpop.f32.mrf.mxu2 }
  0xa0   : > { %v469_v45 = vadd.f32 %v465_v44, %v428_v43 }
  0xa2   : > { %v475_v46 = vadd.f32 %v771_v36, %v469_v45  ;;  %v774_v45 = vld [vmem:[%s343_s24] ss:$0 sm:$0xff] }
  0xa4   : > { %v477_v47 = vmax.f32 %v475_v46, 0.0 }
  0xa6   : > { %753 = vmatmul.msk.f32.gmra.mxu3 %vm490_vm3, %v477_v47 }
 0x121   : > { %v514_v49 = vpop.f32.mrf.mxu3 }
 0x122   : > { %v515_v50 = vadd.f32 %v772_v48, %v514_v49 }
 0x124   : > { %v523_v51 = vrot.slane %v515_v50, 7 }
 0x126   : > { %v529_v52 = vadd.f32 %v523_v51, %v354_v14 }
 0x128   : > { %v533_v53 = vsel %vm532_vm4, %v529_v52, 0.0 }
 0x129   : > { %534 = vadd.xlane.f32.xlu0 %v533_v53  ;;  %v517_v54 = vpop.f32.mrf.mxu3 }
 0x12a   : > { %v518_v55 = vadd.f32 %v772_v48, %v517_v54 }
 0x12c   : > { %v524_v56 = vrot.slane %v518_v55, 7 }
 0x12e   : > { %v531_v57 = vadd.f32 %v524_v56, %v356_v21  ;;  %v525_v58 = vsel %vm522_vm5, %v523_v51, %v524_v56 }
 0x12f   : > { %v530_v59 = vadd.f32 %v525_v58, %v894_v15 }
 0x130   : > { %v540_v60 = vsel %vm539_vm6, %v531_v57, 0.0 }
 0x131   : > { %541 = vadd.xlane.f32.xlu1 %v540_v60  ;;  %v536_v61 = vsel %vm375_vm0, %v530_v59, 0.0 }
 0x132   : > { %537 = vadd.xlane.f32.xlu0 %v536_v61 }
 0x146   : > { %625 = vperm.xlu0 %769, %v621_v3  }
 0x19c   : > { %v535_v7 = vpop.xlane.xlu0 %534 }
 0x19d   : > { %v550_v8 = vmul.f32 %v549_v6, %v535_v7 }
 0x19f   : > { %v553_v9 = vsub.f32 %v529_v52, %v550_v8 }
 0x1a1   : > { %v556_v10 = vmul.f32 %v553_v9, %v553_v9 }
 0x1a3   : > { %v559_v11 = vsel %vm532_vm4, %v556_v10, 0.0 }
 0x1a4   : > { %560 = vadd.xlane.f32.xlu1 %v559_v11  ;;  %v542_v12 = vpop.xlane.xlu1 %541 }
 0x1a5   : > { %v538_v13 = vpop.xlane.xlu0 %537  ;;  %v552_v15 = vmul.f32 %v549_v6, %v542_v12 }
 0x1a6   : > { %v551_v14 = vmul.f32 %v549_v6, %v538_v13 }
 0x1a7   : > { %v945_v18 = vsub.f32 %v531_v57, %v552_v15 }
 0x1a8   : > { %v554_v16 = vsub.f32 %v530_v59, %v551_v14 }
 0x1a9   : > { %v558_v20 = vmul.f32 %v945_v18, %v945_v18 }
 0x1aa   : > { %v557_v17 = vmul.f32 %v554_v16, %v554_v16 }
 0x1ab   : > { %v565_v21 = vsel %vm539_vm6, %v558_v20, 0.0 }
 0x1ac   : > { %v562_v19 = vsel %vm375_vm0, %v557_v17, 0.0 }
 0x1ad   : > { %563 = vadd.xlane.f32.xlu2 %v562_v19 }
 0x1b5   : > { %566 = vadd.xlane.f32.xlu2 %v565_v21 }
 0x1b8   : > { %v626_v42 = vpop.permute.xlu0 %625 }
 0x1b9   : > { %v631_v48 = vrot.slane %v626_v42, 7 }
 0x1bd   : > { %629 = vperm.xlu1 %770, %v622_v22  }
 0x217   : > { %v561_v23 = vpop.xlane.xlu1 %560 }
 0x218   : > { %v568_v24 = vmul.f32 %v561_v23, %v549_v6 }
 0x21a   : > { %v571_v25 = vadd.f32 1e-05, %v568_v24 }
 0x21c   : > { %777 = vrsqrt.f32 %v571_v25  ;;  %vm580_vm9 = vweird.f32 %v571_v25 }
 0x220   : > { %v564_v26 = vpop.xlane.xlu2 %563 }
 0x221   : > { %v569_v27 = vmul.f32 %v564_v26, %v549_v6 }
 0x222   : > { %v778_v28 = vpop.eup %777 }
 0x223   : > { %v575_v29 = vmul.f32 %v778_v28, %v571_v25  ;;  %v572_v30 = vadd.f32 1e-05, %v569_v27  ;;  %vm581_vm8 = vweird.f32 %v778_v28 }
 0x224   : > { %vm582_vm10 = vmor %vm580_vm9, %vm581_vm8 }
 0x225   : > { %v576_v31 = vmul.f32 %v778_v28, %v575_v29  ;;  %779 = vrsqrt.f32 %v572_v30  ;;  %vm590_vm12 = vweird.f32 %v572_v30 }
 0x227   : > { %v577_v32 = vmul.f32 0.5, %v576_v31 }
 0x228   : > { %v567_v33 = vpop.xlane.xlu2 %566 }
 0x229   : > { %v578_v34 = vsub.f32 1.5, %v577_v32  ;;  %v570_v35 = vmul.f32 %v567_v33, %v549_v6 }
 0x22b   : > { %v780_v36 = vpop.eup %779  ;;  %v579_v37 = vmul.f32 %v778_v28, %v578_v34  ;;  %v573_v38 = vadd.f32 1e-05, %v570_v35 }
 0x22c   : > { %v585_v39 = vmul.f32 %v780_v36, %v572_v30  ;;  %vm591_vm11 = vweird.f32 %v780_v36 }
 0x22d   : > { %781 = vrsqrt.f32 %v573_v38  ;;  %v583_v41 = vsel %vm582_vm10, %v778_v28, %v579_v37  ;;  %vm592_vm13 = vmor %vm590_vm12, %vm591_vm11  ;;  %vm600_vm15 = vweird.f32 %v573_v38 }
 0x22e   : > { %v586_v43 = vmul.f32 %v780_v36, %v585_v39  ;;  %v604_v44 = vmul.f32 %v583_v41, %v553_v9 }
 0x22f   : > { %v630_v52 = vpop.permute.xlu1 %629 }
 0x230   : > { %v587_v46 = vmul.f32 0.5, %v586_v43  ;;  %v611_v47 = vmul.f32 %v773_v40, %v604_v44  ;;  %v632_v58 = vrot.slane %v630_v52, 7 }
 0x232   : > { %v588_v49 = vsub.f32 1.5, %v587_v46  ;;  %v618_v50 = vadd.f32 %v774_v45, %v611_v47  ;;  %v633_v63 = vsel %vm522_vm5, %v631_v48, %v632_v58 }
 0x233   : > { %v782_v51 = vpop.eup %781 }
 0x234   : > { %v589_v53 = vmul.f32 %v780_v36, %v588_v49  ;;  %v595_v54 = vmul.f32 %v782_v51, %v573_v38  ;;  %v637_v55 = vmul.f32 %v631_v48, %v618_v50  ;;  %vm601_vm14 = vweird.f32 %v782_v51 }
 0x235   : > { %vm602_vm1 = vmor %vm600_vm15, %vm601_vm14 }
 0x236   : > { %v593_v56 = vsel %vm592_vm13, %v780_v36, %v589_v53  ;;  %v596_v57 = vmul.f32 %v782_v51, %v595_v54  ;;  %640 = vst.msk [vmem:[%s353_s9 - $0x1] sm:$0xfe] %vm532_vm4, %v637_v55 }
 0x237   : > { %v605_v59 = vmul.f32 %v593_v56, %v554_v16 }
 0x238   : > { %v597_v60 = vmul.f32 0.5, %v596_v57 }
 0x239   : > { %v612_v61 = vmul.f32 %v773_v40, %v605_v59 }
 0x23a   : > { %v598_v62 = vsub.f32 1.5, %v597_v60 }
 0x23b   : > { %v619_v0 = vadd.f32 %v774_v45, %v612_v61 }
 0x23c   : > { %v599_v1 = vmul.f32 %v782_v51, %v598_v62 }
 0x23d   : > { %v638_v2 = vmul.f32 %v633_v63, %v619_v0 }
 0x23e   : > { %v603_v3 = vsel %vm602_vm1, %v782_v51, %v599_v1 }
 0x23f   : > { %v606_v4 = vmul.f32 %v603_v3, %v945_v18  ;;  %641 = vst.msk [vmem:[%s353_s9 + $0x7] sm:$0xff] %vm375_vm0, %v638_v2 }
 0x241   : > { %v613_v5 = vmul.f32 %v773_v40, %v606_v4 }
 0x243   : > { %v620_v6 = vadd.f32 %v774_v45, %v613_v5 }
 0x245   : > { %v639_v7 = vmul.f32 %v632_v58, %v620_v6 }
 0x247   : > { %642 = vst.msk [vmem:[%s353_s9 + $0xf] sm:$0x1] %vm539_vm6, %v639_v7 }
 0x248 PF: > { %s18_s27 = sadd.s32 1, %s789_s27  }
 0x249   : > { %p15_p4 = scmp.ge.s32.totalorder %s18_s27, 4  }
 0x24b   :  { %17 = sbr.rel (!%p15_p4) target bundleno = 1 (0x1), region = 93 }

// kernel: forward.30
= control target key start
LH: loop header
LB: loop body
LE: loop exit
PB: predicated region body
PF: predicated region fallthrough
CT: control target
= control target key end

     0   :  { %s1318_s25 = smov 0   ;;  %s1529_s0 = inlined_call_operand.vmem [shape: f32[2,16,32], index: 0, kind: input, shape index: {}]   ;;  %s1530_s1 = inlined_call_operand.vmem [shape: f32[2,32,16], index: 1, kind: input, shape index: {}]   ;;  %s1531_s2 = inlined_call_operand.vmem [shape: f32[2,1,16], index: 2, kind: input, shape index: {}]   ;;  %s1532_s3 = inlined_call_operand.vmem [shape: f32[2,32,16], index: 3, kind: input, shape index: {}]   ;;  %s1533_s4 = inlined_call_operand.vmem [shape: f32[2,1,16], index: 4, kind: input, shape index: {}]   ;;  %s1534_s5 = inlined_call_operand.vmem [shape: f32[2,32,16], index: 5, kind: input, shape index: {}]   ;;  %s1535_s6 = inlined_call_operand.vmem [shape: f32[2,1,16], index: 6, kind: input, shape index: {}]   ;;  %s1536_s7 = inlined_call_operand.vmem [shape: f32[2,16,32], index: 7, kind: input, shape index: {}]   ;;  %s1537_s8 = inlined_call_operand.vmem [shape: f32[1,32], index: 8, kind: input, shape index: {}]   ;;  %s1538_s9 = inlined_call_operand.vmem [shape: f32[2,1,16], index: 9, kind: input, shape index: {}]   ;;  %s1539_s10 = inlined_call_operand.vmem [shape: f32[2,1,32], index: 10, kind: input, shape index: {}]   ;;  %s1540_s11 = inlined_call_operand.vmem [shape: f32[2,1,32], index: 11, kind: input, shape index: {}]   ;;  %s1541_s12 = inlined_call_operand.vmem [shape: f32[2,16,1], index: 12, kind: input, shape index: {}]   ;;  %s1542_s13 = inlined_call_operand.vmem [shape: f32[2,16,32], index: 13, kind: output, shape index: {}]  }
   0x1 LB: > { %s1133_s26 = sadd.s32 4294967295, %s1244_s25   ;;  %p1137_p0 = scmp.ge.s32.totalorder %s1244_s25, 1  ;;  %s1244_s25 = sphi %s1318_s25, %s23_s25  }
   0x2   : > { %p421_p1 = scmp.lt.s32.totalorder %s1244_s25, 3 }
   0x4   : > { %p422_p2 = pnand %p1137_p0, %p421_p1 }
   0x5   : > { %p479_p3 = scmp.lt.s32.totalorder (!%p422_p2), %s1133_s26, 1 }
   0x6   : > { %425 = sbr.rel (%p422_p2) target bundleno = 1495 (0x5d7), region = 72 }
   0xb   : > { %v547_v0 = vld [vmem:[%s1532_s3 + $0x18] sm:$0xff]  ;;  %v546_v1 = vld [vmem:[%s1532_s3 + $0x10] sm:$0xff]  ;;  %v545_v4 = vld [vmem:[%s1532_s3 + $0x8] sm:$0xff]  ;;  %s1544_s26 = smov (!%p479_p3, %s1133_s26), 1  ;;  %vm514_vm0 = vcmask 261120   ;;  %vm606_vm1 = vcmask 130048  }
   0xc   : > { %564 = vmatpush.msra.mxu1 %v547_v0  ;;  %v509_v2 = vld [vmem:[%s1530_s1 + $0x18] sm:$0xff]  ;;  %v508_v3 = vld [vmem:[%s1530_s1 + $0x10] sm:$0xff]  ;;  %v507_v5 = vld [vmem:[%s1530_s1 + $0x8] sm:$0xff]  ;;  %s1350_s24 = sshll.u32 %s1544_s26, 4  ;;  %s486_s21 = scalar_lea.vmem %s1538_s9, %s1544_s26 }
   0xd   : > { %533 = vmatpush.msra.mxu0 %v509_v2  ;;  %v544_v6 = vld [vmem:[%s1532_s3] sm:$0xff]  ;;  %s483_s29 = scalar_lea.vmem %s1529_s0, %s1350_s24  ;;  %v578_v20 = vld [vmem:[%s1534_s5 + $0x18] sm:$0xff]  ;;  %v577_v21 = vld [vmem:[%s1534_s5 + $0x10] sm:$0xff]  ;;  %s497_s18 = scalar_lea.vmem %s1541_s12, %s1350_s24 }
   0xe   : > { %565 = vmatpush.msra.mxu1 %v546_v1  ;;  %v506_v7 = vld [vmem:[%s1530_s1] sm:$0xff]  ;;  %v1365_v9 = vld [vmem:[%s483_s29 + $0x8] sm:$0xff]  ;;  %595 = vmatpush.msra.mxu2 %v578_v20  ;;  %v1166_v24 = vld [vmem:[%s1532_s3 + $0x38] sm:$0xff]  ;;  %s489_s22 = scalar_lea.vmem %s1539_s10, %s1544_s26 }
   0xf   : > { %534 = vmatpush.msra.mxu0 %v508_v3  ;;  %v1359_v8 = vld [vmem:[%s483_s29] sm:$0xff]  ;;  %v576_v22 = vld [vmem:[%s1534_s5 + $0x8] sm:$0xff]  ;;  %v1165_v25 = vld [vmem:[%s1532_s3 + $0x30] sm:$0xff]  ;;  %s502_s29 = scalar_lea.vmem %s1542_s13, %s1350_s24 }
  0x10   : > { %566 = vmatpush.msra.mxu1 %v545_v4  ;;  %v1206_v11 = vld [vmem:[%s1533_s4] ss:$0 sm:$0xff]  ;;  %596 = vmatpush.msra.mxu2 %v577_v21  ;;  %v1164_v26 = vld [vmem:[%s1532_s3 + $0x28] sm:$0xff]  ;;  %v1159_v37 = vld [vmem:[%s1530_s1 + $0x38] sm:$0xff] }
  0x11   : > { %535 = vmatpush.msra.mxu0 %v507_v5  ;;  %v1207_v15 = vld [vmem:[%s1531_s2] ss:$0 sm:$0xff]  ;;  %v1158_v38 = vld [vmem:[%s1530_s1 + $0x30] sm:$0xff]  ;;  %v1157_v39 = vld [vmem:[%s1530_s1 + $0x28] sm:$0xff] }
  0x12   : > { %567 = vmatpush.msra.mxu1 %v544_v6  ;;  %v575_v23 = vld [vmem:[%s1534_s5] sm:$0xff]  ;;  %597 = vmatpush.msra.mxu2 %v576_v22  ;;  %v1173_v62 = vld [vmem:[%s1534_s5 + $0x38] sm:$0xff]  ;;  %v1172_v63 = vld [vmem:[%s1534_s5 + $0x30] sm:$0xff] }
  0x13   : > { %1146 = vmatmul.msk.f32.vlgmr.msra.gmra.mxu1 %vm514_vm0, %v1359_v8  ;;  %536 = vmatpush.msra.mxu0 %v506_v7  ;;  %v1163_v27 = vld [vmem:[%s1532_s3 + $0x20] sm:$0xff]  ;;  %v1171_v0 = vld [vmem:[%s1534_s5 + $0x28] sm:$0xff] }
  0x14   : > { %1144 = vmatmul.msk.f32.vlgmr.msra.gmra.mxu0 %vm514_vm0, %v1359_v8  ;;  %598 = vmatpush.msra.mxu2 %v575_v23  ;;  %v1413_v28 = vld [vmem:[%s486_s21] ss:$0 sm:$0xff]  ;;  %v1210_v57 = vld [vmem:[%s1533_s4 + $0x1] ss:$0 sm:$0xff]  ;;  %v701_v5 = vld [vmem:[%s1536_s7 + $0x8] sm:$0xff]  ;;  %s492_s21 = scalar_lea.vmem %s1540_s11, %s1544_s26 }
  0x15   : > { %1148 = vmatmul.msk.f32.vlgmr.msra.gmra.mxu2 %vm514_vm0, %v1359_v8  ;;  %724 = vmatpush.msrb.mxu1 %v1159_v37  ;;  %v1156_v40 = vld [vmem:[%s1530_s1 + $0x20] sm:$0xff] }
  0x16   : > { %757 = vmatpush.msrb.mxu2 %v1166_v24  ;;  %v1209_v45 = vld [vmem:[%s1535_s6] ss:$0 sm:$0xff] }
  0x17   : > { %725 = vmatpush.msrb.mxu1 %v1158_v38  ;;  %v1170_v1 = vld [vmem:[%s1534_s5 + $0x20] sm:$0xff] }
  0x18   : > { %758 = vmatpush.msrb.mxu2 %v1165_v25 }
  0x19   : > { %726 = vmatpush.msrb.mxu1 %v1157_v39 }
  0x1a   : > { %759 = vmatpush.msrb.mxu2 %v1164_v26 }
  0x1b   : > { %1147 = vmatmul.msk.f32.gmra.mxu1 %vm514_vm0, %v1365_v9 }
  0x1c   : > { %1145 = vmatmul.msk.f32.gmra.mxu0 %vm514_vm0, %v1365_v9  ;;  %760 = vmatpush.msrb.mxu2 %v1163_v27 }
  0x1d   : > { %1149 = vmatmul.msk.f32.gmra.mxu2 %vm514_vm0, %v1365_v9  ;;  %727 = vmatpush.msrb.mxu1 %v1156_v40 }
  0x23   : > { %1161 = vmatmul.msk.f32.vlgmr.msrb.gmra.mxu1 %vm514_vm0, %v1359_v8 }
  0x25   : > { %1168 = vmatmul.msk.f32.vlgmr.msrb.gmra.mxu2 %vm514_vm0, %v1359_v8 }
  0x2b   : > { %1162 = vmatmul.msk.f32.gmra.mxu1 %vm514_vm0, %v1365_v9 }
  0x2d   : > { %1169 = vmatmul.msk.f32.gmra.mxu2 %vm514_vm0, %v1365_v9 }
  0x90   : > { %v569_v10 = vpop.f32.mrf.mxu1 }
  0x91   : > { %v538_v14 = vpop.f32.mrf.mxu0  ;;  %v570_v16 = vadd.f32 %v1206_v11, %v569_v10 }
  0x92   : > { %v539_v17 = vadd.f32 %v1207_v15, %v538_v14 }
  0x98   : > { %v572_v12 = vpop.f32.mrf.mxu1  ;;  %v600_v42 = vpop.f32.mrf.mxu2 }
  0x99   : > { %v573_v13 = vadd.f32 %v1206_v11, %v572_v12  ;;  %v541_v18 = vpop.f32.mrf.mxu0  ;;  %v601_v49 = vadd.f32 %v1209_v45, %v600_v42  ;;  %v1211_v11 = vld [vmem:[%s1531_s2 + $0x1] ss:$0 sm:$0xff]  ;;  %v1183_v42 = vld [vmem:[%s1536_s7 + $0x10] sm:$0xff] }
  0x9a   : > { %v542_v19 = vadd.f32 %v1207_v15, %v541_v18  ;;  %v700_v15 = vld [vmem:[%s1536_s7] sm:$0xff] }
  0x9b   : > { %1150 = vmatpush.xpose.msk.msra.mxu3 %vm606_vm1, %v573_v13 }
  0x9f   : > { %1151 = vmatpush.xpose.msk.msra.mxu3 %vm606_vm1, %v570_v16 }
  0xa0   : > { %v603_v47 = vpop.f32.mrf.mxu2  ;;  %v729_v10 = vpop.f32.mrf.mxu1 }
  0xa1   : > { %v604_v50 = vadd.f32 %v1209_v45, %v603_v47  ;;  %v730_v12 = vadd.f32 %v1211_v11, %v729_v10 }
  0xa2   : > { %1152 = vmatmul.msk.f32.vlgmr.msra.gmra.mxu3 %vm606_vm1, %v539_v17 }
  0xa3   : > { %691 = vmatpush.msrb.mxu0 %v604_v50  ;;  %790 = vmatpush.msrb.mxu3 %v1173_v62 }
  0xa5   : > { %692 = vmatpush.msrb.mxu0 %v601_v49  ;;  %791 = vmatpush.msrb.mxu3 %v1172_v63 }
  0xa7   : > { %792 = vmatpush.msrb.mxu3 %v1171_v0  ;;  %v1246_v0 = vmov 32.0  }
  0xa8   : > { %v762_v54 = vpop.f32.mrf.mxu2  ;;  %v732_v13 = vpop.f32.mrf.mxu1 }
  0xa9   : > { %v763_v60 = vadd.f32 %v1210_v57, %v762_v54  ;;  %793 = vmatpush.msrb.mxu3 %v1170_v1  ;;  %v733_v14 = vadd.f32 %v1211_v11, %v732_v13 }
  0xaa   : > { %1153 = vmatmul.msk.f32.gmra.mxu3 %vm606_vm1, %v542_v19  ;;  %v1212_v19 = vld [vmem:[%s1535_s6 + $0x1] ss:$0 sm:$0xff] }
  0xab   : > { %943 = vmatpush.msra.mxu3 %v701_v5 }
  0xad   : > { %944 = vmatpush.msra.mxu3 %v700_v15 }
  0xb0   : > { %v765_v58 = vpop.f32.mrf.mxu2 }
  0xb1   : > { %v766_v59 = vadd.f32 %v1210_v57, %v765_v58 }
  0xb2   : > { %1175 = vmatmul.msk.f32.vlgmr.msrb.gmra.mxu3 %vm514_vm0, %v1359_v8 }
  0xb3   : > { %1177 = vmatpush.xpose.msk.msra.mxu0 %vm606_vm1, %v766_v59 }
  0xb7   : > { %1178 = vmatpush.xpose.msk.msra.mxu0 %vm606_vm1, %v763_v60 }
  0xba   : > { %1176 = vmatmul.msk.f32.gmra.mxu3 %vm514_vm0, %v1365_v9 }
 0x125   : > { %v636_v29 = vpop.f32.mrf.mxu3 }
 0x126   : > { %v642_v30 = vmul.f32 0.25, %v636_v29 }
 0x128   : > { %v647_v31 = vadd.f32 %v1413_v28, %v642_v30 }
 0x12a   : > { %v649_v32 = vsel %vm606_vm1, %v647_v31, -inf }
 0x12b   : > { %650 = vmax.xlane.f32.xlu0 %v649_v32 }
 0x12d   : > { %v639_v33 = vpop.f32.mrf.mxu3 }
 0x12e   : > { %v643_v34 = vmul.f32 0.25, %v639_v33 }
 0x130   : > { %v648_v35 = vadd.f32 %v1413_v28, %v643_v34 }
 0x132   : > { %v652_v36 = vsel %vm606_vm1, %v648_v35, -inf }
 0x133   : > { %653 = vmax.xlane.f32.xlu0 %v652_v36 }
 0x135   : > { %v795_v17 = vpop.f32.mrf.mxu3 }
 0x136   : > { %v796_v21 = vadd.f32 %v1212_v19, %v795_v17 }
 0x13d   : > { %v798_v20 = vpop.f32.mrf.mxu3 }
 0x13e   : > { %v799_v22 = vadd.f32 %v1212_v19, %v798_v20  ;;  %v1024_v19 = vld [vmem:[%s497_s18 + $0x8] sm:$0xff] }
 0x140   : > { %882 = vmatpush.msra.mxu1 %v799_v22 }
 0x142   : > { %883 = vmatpush.msra.mxu1 %v796_v21 }
 0x19e   : > { %v651_v41 = vpop.xlane.xlu0 %650 }
 0x19f   : > { %v655_v43 = vsub.f32 %v647_v31, %v651_v41 }
 0x1a1   : > { %v657_v44 = vmul.f32 1.442695, %v655_v43 }
 0x1a3   : > { %1216 = vpow2.f32 %v657_v44 }
 0x1a6   : > { %v654_v46 = vpop.xlane.xlu0 %653 }
 0x1a7   : > { %v656_v48 = vsub.f32 %v648_v35, %v654_v46 }
 0x1a9   : > { %v1217_v51 = vpop.eup %1216  ;;  %v659_v52 = vmul.f32 1.442695, %v656_v48 }
 0x1aa   : > { %v661_v53 = vsel %vm606_vm1, %v1217_v51, 0.0 }
 0x1ab   : > { %1218 = vpow2.f32 %v659_v52  ;;  %662 = vadd.xlane.f32.xlu1 %v661_v53  ;;  %v1213_v52 = vld [vmem:[%s1537_s8] ss:$0 sm:$0xff] }
 0x1b1   : > { %v1219_v55 = vpop.eup %1218 }
 0x1b2   : > { %v664_v56 = vsel %vm606_vm1, %v1219_v55, 0.0 }
 0x1b3   : > { %665 = vadd.xlane.f32.xlu1 %v664_v56 }
 0x21e   : > { %v663_v61 = vpop.xlane.xlu1 %662 }
 0x21f   : > { %1220 = vrcp.f32 %v663_v61 }
 0x225   : > { %v1221_v2 = vpop.eup %1220 }
 0x226   : > { %v666_v3 = vpop.xlane.xlu1 %665  ;;  %v669_v4 = vmul.f32 %v1221_v2, %v1217_v51  ;;  %v1023_v2 = vld [vmem:[%s497_s18] sm:$0xff] }
 0x227   : > { %1222 = vrcp.f32 %v666_v3  ;;  %v1247_v3 = vmov 0  }
 0x228   : > { %1154 = vmatmul.msk.f32.vlgmr.msrb.gmra.mxu0 %vm606_vm1, %v669_v4  ;;  %1204 = vset.pattern.permute.xlu0 %v1247_v3 }
 0x229   : > { %1205 = vset.pattern.permute.xlu1 %v1247_v3 }
 0x22d   : > { %v1223_v6 = vpop.eup %1222 }
 0x22e   : > { %v670_v7 = vmul.f32 %v1223_v6, %v1219_v55 }
 0x230   : > { %1155 = vmatmul.msk.f32.gmra.mxu0 %vm606_vm1, %v670_v7 }
 0x238   : > { %1179 = vmatmul.msk.f32.vlgmr.msra.gmra.mxu0 %vm606_vm1, %v730_v12 }
 0x240   : > { %1180 = vmatmul.msk.f32.gmra.mxu0 %vm606_vm1, %v733_v14 }
 0x2a5   : > { %v694_v16 = vpop.f32.mrf.mxu0 }
 0x2a6   : > { %1187 = vmatmul.msk.f32.vlgmr.msra.gmra.mxu3 %vm606_vm1, %v694_v16 }
 0x2ad   : > { %v697_v18 = vpop.f32.mrf.mxu0 }
 0x2ae   : > { %1188 = vmatmul.msk.f32.gmra.mxu3 %vm606_vm1, %v697_v18 }
 0x2b5   : > { %v830_v23 = vpop.f32.mrf.mxu0 }
 0x2b6   : > { %v836_v24 = vmul.f32 0.25, %v830_v23 }
 0x2b8   : > { %v838_v25 = vadd.f32 %v1413_v28, %v836_v24 }
 0x2ba   : > { %v840_v26 = vsel %vm606_vm1, %v838_v25, -inf }
 0x2bb   : > { %841 = vmax.xlane.f32.xlu2 %v840_v26 }
 0x2bd   : > { %v833_v27 = vpop.f32.mrf.mxu0 }
 0x2be   : > { %v837_v29 = vmul.f32 0.25, %v833_v27 }
 0x2c0   : > { %v839_v30 = vadd.f32 %v1413_v28, %v837_v29  ;;  %v1184_v28 = vld [vmem:[%s1536_s7 + $0x18] sm:$0xff] }
 0x2c1   : > { %914 = vmatpush.msra.mxu2 %v1184_v28 }
 0x2c2   : > { %v843_v31 = vsel %vm606_vm1, %v839_v30, -inf }
 0x2c3   : > { %844 = vmax.xlane.f32.xlu2 %v843_v31  ;;  %915 = vmatpush.msra.mxu2 %v1183_v42 }
 0x329   : > { %v946_v51 = vpop.f32.mrf.mxu3 }
 0x32e   : > { %v842_v32 = vpop.xlane.xlu2 %841 }
 0x32f   : > { %v846_v33 = vsub.f32 %v838_v25, %v842_v32 }
 0x331   : > { %v848_v34 = vmul.f32 1.442695, %v846_v33  ;;  %v949_v58 = vpop.f32.mrf.mxu3 }
 0x333   : > { %1224 = vpow2.f32 %v848_v34 }
 0x336   : > { %v845_v35 = vpop.xlane.xlu2 %844 }
 0x337   : > { %v847_v36 = vsub.f32 %v839_v30, %v845_v35  ;;  %v1214_v35 = vld [vmem:[%s489_s22] ss:$0 sm:$0xff] }
 0x339   : > { %v1225_v37 = vpop.eup %1224  ;;  %v850_v38 = vmul.f32 1.442695, %v847_v36 }
 0x33a   : > { %v852_v39 = vsel %vm606_vm1, %v1225_v37, 0.0 }
 0x33b   : > { %1226 = vpow2.f32 %v850_v38  ;;  %853 = vadd.xlane.f32.xlu0 %v852_v39  ;;  %v1215_v38 = vld [vmem:[%s492_s21] ss:$0 sm:$0xff] }
 0x341   : > { %v1227_v40 = vpop.eup %1226 }
 0x342   : > { %v855_v41 = vsel %vm606_vm1, %v1227_v40, 0.0 }
 0x343   : > { %856 = vadd.xlane.f32.xlu1 %v855_v41 }
 0x3ae   : > { %v854_v43 = vpop.xlane.xlu0 %853 }
 0x3af   : > { %1228 = vrcp.f32 %v854_v43 }
 0x3b5   : > { %v1229_v44 = vpop.eup %1228 }
 0x3b6   : > { %v860_v45 = vmul.f32 %v1229_v44, %v1225_v37  ;;  %v857_v46 = vpop.xlane.xlu1 %856 }
 0x3b7   : > { %1230 = vrcp.f32 %v857_v46 }
 0x3b8   : > { %1181 = vmatmul.msk.f32.vlgmr.msra.gmra.mxu1 %vm606_vm1, %v860_v45  ;;  %1232 = vrcp.f32 %v1246_v0 }
 0x3bd   : > { %v1231_v47 = vpop.eup %1230 }
 0x3be   : > { %v861_v48 = vmul.f32 %v1231_v47, %v1227_v40  ;;  %v1233_v1 = vpop.eup %1232 }
 0x3bf   : > { %vm971_vm2 = vweird.f32 %v1233_v1 }
 0x3c0   : > { %1182 = vmatmul.msk.f32.gmra.mxu1 %vm606_vm1, %v861_v48 }
 0x435   : > { %v885_v49 = vpop.f32.mrf.mxu1 }
 0x436   : > { %1185 = vmatmul.msk.f32.vlgmr.msra.gmra.mxu2 %vm606_vm1, %v885_v49 }
 0x43d   : > { %v888_v50 = vpop.f32.mrf.mxu1 }
 0x43e   : > { %1186 = vmatmul.msk.f32.gmra.mxu2 %vm606_vm1, %v888_v50 }
 0x4b9   : > { %v917_v53 = vpop.f32.mrf.mxu2 }
 0x4ba   : > { %v947_v54 = vadd.f32 %v946_v51, %v917_v53 }
 0x4bc   : > { %v956_v55 = vadd.f32 %v1213_v52, %v947_v54 }
 0x4be   : > { %v958_v56 = vadd.f32 %v956_v55, %v1359_v8  ;;  %v967_v8 = vmul.f32 32.0, %v1233_v1 }
 0x4c0   : > { %v960_v57 = vsel %vm514_vm0, %v958_v56, 0.0  ;;  %v968_v4 = vsub.f32 1.0, %v967_v8 }
 0x4c1   : > { %961 = vadd.xlane.f32.xlu2 %v960_v57  ;;  %v920_v59 = vpop.f32.mrf.mxu2 }
 0x4c2   : > { %v950_v60 = vadd.f32 %v949_v58, %v920_v59  ;;  %v969_v5 = vmul.f32 %v1233_v1, %v968_v4 }
 0x4c4   : > { %v957_v61 = vadd.f32 %v1213_v52, %v950_v60 }
 0x4c6   : > { %v959_v62 = vadd.f32 %v957_v61, %v1365_v9  ;;  %v970_v9 = vadd.f32 %v1233_v1, %v969_v5 }
 0x4c8   : > { %v963_v63 = vsel %vm514_vm0, %v959_v62, 0.0  ;;  %v972_v6 = vsel %vm971_vm2, %v1233_v1, %v970_v9 }
 0x4c9   : > { %964 = vadd.xlane.f32.xlu0 %v963_v63 }
 0x4dd   : > { %1027 = vperm.xlu0 %1204, %v1023_v2  }
 0x534   : > { %v962_v7 = vpop.xlane.xlu2 %961 }
 0x535   : > { %v973_v10 = vmul.f32 %v972_v6, %v962_v7 }
 0x537   : > { %v975_v11 = vsub.f32 %v958_v56, %v973_v10 }
 0x539   : > { %v977_v12 = vmul.f32 %v975_v11, %v975_v11 }
 0x53b   : > { %v979_v13 = vsel %vm514_vm0, %v977_v12, 0.0 }
 0x53c   : > { %v965_v14 = vpop.xlane.xlu0 %964  ;;  %980 = vadd.xlane.f32.xlu1 %v979_v13 }
 0x53d   : > { %v974_v15 = vmul.f32 %v972_v6, %v965_v14 }
 0x53f   : > { %v976_v16 = vsub.f32 %v959_v62, %v974_v15 }
 0x541   : > { %v978_v17 = vmul.f32 %v976_v16, %v976_v16 }
 0x543   : > { %v982_v18 = vsel %vm514_vm0, %v978_v17, 0.0 }
 0x544   : > { %983 = vadd.xlane.f32.xlu2 %v982_v18 }
 0x54f   : > { %v1028_v42 = vpop.permute.xlu0 %1027 }
 0x555   : > { %1032 = vperm.xlu1 %1205, %v1024_v19  }
 0x5af   : > { %v981_v20 = vpop.xlane.xlu1 %980 }
 0x5b0   : > { %v985_v21 = vmul.f32 %v981_v20, %v972_v6 }
 0x5b2   : > { %v987_v22 = vadd.f32 1e-05, %v985_v21 }
 0x5b4   : > { %1234 = vrsqrt.f32 %v987_v22  ;;  %vm995_vm4 = vweird.f32 %v987_v22 }
 0x5b7   : > { %v984_v23 = vpop.xlane.xlu2 %983 }
 0x5b8   : > { %v986_v24 = vmul.f32 %v984_v23, %v972_v6 }
 0x5ba   : > { %v1235_v25 = vpop.eup %1234  ;;  %v988_v26 = vadd.f32 1e-05, %v986_v24 }
 0x5bb   : > { %v990_v27 = vmul.f32 %v1235_v25, %v987_v22  ;;  %vm996_vm3 = vweird.f32 %v1235_v25 }
 0x5bc   : > { %1236 = vrsqrt.f32 %v988_v26  ;;  %vm997_vm5 = vmor %vm995_vm4, %vm996_vm3  ;;  %vm1005_vm7 = vweird.f32 %v988_v26 }
 0x5bd   : > { %v991_v29 = vmul.f32 %v1235_v25, %v990_v27 }
 0x5bf   : > { %v992_v30 = vmul.f32 0.5, %v991_v29 }
 0x5c1   : > { %v993_v31 = vsub.f32 1.5, %v992_v30 }
 0x5c2   : > { %v1237_v32 = vpop.eup %1236 }
 0x5c3   : > { %v994_v33 = vmul.f32 %v1235_v25, %v993_v31  ;;  %v1000_v34 = vmul.f32 %v1237_v32, %v988_v26  ;;  %vm1006_vm6 = vweird.f32 %v1237_v32 }
 0x5c4   : > { %vm1007_vm8 = vmor %vm1005_vm7, %vm1006_vm6 }
 0x5c5   : > { %v1001_v36 = vmul.f32 %v1237_v32, %v1000_v34  ;;  %v998_v37 = vsel %vm997_vm5, %v1235_v25, %v994_v33 }
 0x5c6   : > { %v1009_v39 = vmul.f32 %v998_v37, %v975_v11 }
 0x5c7   : > { %v1002_v40 = vmul.f32 0.5, %v1001_v36  ;;  %v1033_v49 = vpop.permute.xlu1 %1032 }
 0x5c8   : > { %v1015_v41 = vmul.f32 %v1214_v35, %v1009_v39 }
 0x5c9   : > { %v1003_v28 = vsub.f32 1.5, %v1002_v40 }
 0x5ca   : > { %v1021_v43 = vadd.f32 %v1215_v38, %v1015_v41 }
 0x5cb   : > { %v1004_v44 = vmul.f32 %v1237_v32, %v1003_v28 }
 0x5cc   : > { %v1035_v45 = vmul.f32 %v1028_v42, %v1021_v43 }
 0x5cd   : > { %v1008_v46 = vsel %vm1007_vm8, %v1237_v32, %v1004_v44 }
 0x5ce   : > { %1037 = vst.msk [vmem:[%s502_s29] sm:$0xff] %vm514_vm0, %v1035_v45  ;;  %v1010_v47 = vmul.f32 %v1008_v46, %v976_v16 }
 0x5d0   : > { %v1016_v48 = vmul.f32 %v1214_v35, %v1010_v47 }
 0x5d2   : > { %v1022_v50 = vadd.f32 %v1215_v38, %v1016_v48 }
 0x5d4   : > { %v1036_v51 = vmul.f32 %v1033_v49, %v1022_v50 }
 0x5d6   : > { %1038 = vst.msk [vmem:[%s502_s29 + $0x8] sm:$0xff] %vm514_vm0, %v1036_v51 }
 0x5d7 PF: > { %s23_s25 = sadd.s32 1, %s1244_s25  }
 0x5d8   : > { %p20_p4 = scmp.ge.s32.totalorder %s23_s25, 4  }
 0x5da   :  { %22 = sbr.rel (!%p20_p4) target bundleno = 1 (0x1), region = 121 }

// kernel: forward.36
= control target key start
LH: loop header
LB: loop body
LE: loop exit
PB: predicated region body
PF: predicated region fallthrough
CT: control target
= control target key end

     0   :  { %s515_s12 = smov 0   ;;  %s617_s0 = inlined_call_operand.vmem [shape: f32[2,20,32], index: 0, kind: input, shape index: {}]   ;;  %s618_s1 = inlined_call_operand.vmem [shape: f32[5,32,32], index: 1, kind: input, shape index: {}]   ;;  %s619_s2 = inlined_call_operand.vmem [shape: f32[1,32], index: 2, kind: input, shape index: {}]   ;;  %s620_s3 = inlined_call_operand.vmem [shape: f32[2,16,32], index: 3, kind: output, shape index: {}]  }
   0x1 LB: > { %s432_s13 = sadd.s32 4294967295, %s493_s12   ;;  %p436_p0 = scmp.ge.s32.totalorder %s493_s12, 1  ;;  %s493_s12 = sphi %s515_s12, %s13_s12  }
   0x2   : > { %p137_p1 = scmp.lt.s32.totalorder %s493_s12, 3 }
   0x4   : > { %p138_p2 = pnand %p436_p0, %p137_p1 }
   0x5   : > { %p161_p3 = scmp.lt.s32.totalorder (!%p138_p2), %s432_s13, 1 }
   0x6   : > { %141 = sbr.rel (%p138_p2) target bundleno = 181 (0xb5), region = 32 }
   0xb   : > { %v443_v0 = vld [vmem:[%s618_s1 + $0x38] sm:$0xff]  ;;  %v442_v1 = vld [vmem:[%s618_s1 + $0x30] sm:$0xff]  ;;  %v441_v4 = vld [vmem:[%s618_s1 + $0x28] sm:$0xff]  ;;  %s622_s13 = smov (!%p161_p3, %s432_s13), 1  ;;  %vm186_vm0 = vcmask 1046528   ;;  %vm192_vm1 = vcmask 261120  }
   0xc   : > { %469 = vmatpush.msra.mxu1 %v443_v0  ;;  %v451_v2 = vld [vmem:[%s618_s1 + $0x58] sm:$0xff]  ;;  %209 = vmatpush.msra.mxu0 %v443_v0  ;;  %v450_v3 = vld [vmem:[%s618_s1 + $0x50] sm:$0xff]  ;;  %v449_v6 = vld [vmem:[%s618_s1 + $0x48] sm:$0xff]  ;;  %s473_s5 = smul.u32 24, %s622_s13  ;;  %vm252_vm2 = vcmask 1045504   ;;  %vm292_vm3 = vcmask 1044480  }
   0xd   : > { %274 = vmatpush.msra.mxu2 %v451_v2  ;;  %v457_v5 = vld [vmem:[%s618_s1 + $0x78] sm:$0xff]  ;;  %v456_v7 = vld [vmem:[%s618_s1 + $0x70] sm:$0xff]  ;;  %v440_v8 = vld [vmem:[%s618_s1 + $0x20] sm:$0xff]  ;;  %vm332_vm4 = vcmask 1043456   ;;  %s468_s8 = sshll.u32 %s622_s13, 4 }
   0xe   : > { %470 = vmatpush.msra.mxu1 %v442_v1  ;;  %314 = vmatpush.msra.mxu3 %v457_v5  ;;  %v455_v9 = vld [vmem:[%s618_s1 + $0x68] sm:$0xff]  ;;  %v177_v10 = vld [vmem:[%s618_s1 + $0x18] sm:$0xff]  ;;  %v176_v11 = vld [vmem:[%s618_s1 + $0x10] sm:$0xff]  ;;  %s165_s18 = scalar_lea.vmem %s617_s0, %s473_s5  ;;  %s170_s11 = scalar_lea.vmem %s620_s3, %s468_s8 }
   0xf   : > { %275 = vmatpush.msra.mxu2 %v450_v3  ;;  %210 = vmatpush.msra.mxu0 %v442_v1  ;;  %v448_v12 = vld [vmem:[%s618_s1 + $0x40] sm:$0xff]  ;;  %v463_v14 = vld [vmem:[%s618_s1 + $0x98] sm:$0xff]  ;;  %v172_v15 = vld [vmem:[%s165_s18 + $0x8] sm:$0xff] }
  0x10   : > { %471 = vmatpush.msra.mxu1 %v441_v4  ;;  %315 = vmatpush.msra.mxu3 %v456_v7  ;;  %v454_v13 = vld [vmem:[%s618_s1 + $0x60] sm:$0xff]  ;;  %v173_v16 = vld [vmem:[%s165_s18 + $0x10] sm:$0xf]  ;;  %v188_v18 = vrot.slane %v172_v15, 1  ;;  %v254_v21 = vrot.slane %v172_v15, 2  ;;  %v175_v22 = vld [vmem:[%s618_s1 + $0x8] sm:$0xff] }
  0x11   : > { %276 = vmatpush.msra.mxu2 %v449_v6  ;;  %211 = vmatpush.msra.mxu0 %v441_v4  ;;  %v171_v17 = vld [vmem:[%s165_s18] sm:$0xff]  ;;  %v190_v19 = vrot.slane %v173_v16, 1  ;;  %v294_v25 = vrot.slane %v172_v15, 3  ;;  %v462_v28 = vld [vmem:[%s618_s1 + $0x90] sm:$0xff]  ;;  %v461_v32 = vld [vmem:[%s618_s1 + $0x88] sm:$0xff]  ;;  %v256_v33 = vrot.slane %v173_v16, 2 }
  0x12   : > { %472 = vmatpush.msra.mxu1 %v440_v8  ;;  %316 = vmatpush.msra.mxu3 %v455_v9  ;;  %v253_v20 = vrot.slane %v171_v17, 2  ;;  %v187_v23 = vrot.slane %v171_v17, 1  ;;  %v293_v24 = vrot.slane %v171_v17, 3  ;;  %v174_v30 = vld [vmem:[%s618_s1] sm:$0xff]  ;;  %v333_v34 = vrot.slane %v171_v17, 4 }
  0x13   : > { %277 = vmatpush.msra.mxu2 %v448_v12  ;;  %212 = vmatpush.msra.mxu0 %v440_v8  ;;  %v191_v26 = vsel %vm186_vm0, %v188_v18, %v190_v19  ;;  %v334_v35 = vrot.slane %v172_v15, 4  ;;  %v460_v36 = vld [vmem:[%s618_s1 + $0x80] sm:$0xff]  ;;  %v296_v37 = vrot.slane %v173_v16, 3  ;;  %v257_v38 = vsel %vm252_vm2, %v254_v21, %v256_v33 }
  0x14   : > { %236 = vmatpush.msrb.mxu1 %v177_v10  ;;  %317 = vmatpush.msra.mxu3 %v454_v13  ;;  %v255_v27 = vsel %vm252_vm2, %v253_v20, %v254_v21  ;;  %v189_v29 = vsel %vm186_vm0, %v187_v23, %v188_v18  ;;  %v295_v31 = vsel %vm292_vm3, %v293_v24, %v294_v25  ;;  %v336_v41 = vrot.slane %v173_v16, 4  ;;  %v482_v52 = vld [vmem:[%s619_s2] ss:$0 sm:$0xff] }
  0x15   : > { %354 = vmatpush.msrb.mxu0 %v463_v14  ;;  %445 = vmatmul.msk.f32.vlgmr.msra.gmra.mxu1 %vm192_vm1, %v191_v26  ;;  %v335_v39 = vsel %vm332_vm4, %v333_v34, %v334_v35  ;;  %v297_v40 = vsel %vm292_vm3, %v294_v25, %v296_v37 }
  0x16   : > { %237 = vmatpush.msrb.mxu1 %v176_v11  ;;  %452 = vmatmul.msk.f32.vlgmr.msra.gmra.mxu2 %vm192_vm1, %v255_v27  ;;  %v337_v42 = vsel %vm332_vm4, %v334_v35, %v336_v41 }
  0x17   : > { %444 = vmatmul.msk.f32.vlgmr.msra.gmra.mxu0 %vm192_vm1, %v189_v29  ;;  %458 = vmatmul.msk.f32.vlgmr.msra.gmra.mxu3 %vm192_vm1, %v295_v31 }
  0x18   : > { %238 = vmatpush.msrb.mxu1 %v175_v22  ;;  %355 = vmatpush.msrb.mxu0 %v462_v28 }
  0x1a   : > { %239 = vmatpush.msrb.mxu1 %v174_v30  ;;  %356 = vmatpush.msrb.mxu0 %v461_v32 }
  0x1c   : > { %357 = vmatpush.msrb.mxu0 %v460_v36 }
  0x1d   : > { %446 = vmatmul.msk.f32.vlgmr.msrb.gmra.mxu1 %vm192_vm1, %v171_v17 }
  0x1e   : > { %453 = vmatmul.msk.f32.gmra.mxu2 %vm192_vm1, %v257_v38 }
  0x1f   : > { %464 = vmatmul.msk.f32.vlgmr.msrb.gmra.mxu0 %vm192_vm1, %v335_v39  ;;  %459 = vmatmul.msk.f32.gmra.mxu3 %vm192_vm1, %v297_v40 }
  0x25   : > { %447 = vmatmul.msk.f32.gmra.mxu1 %vm192_vm1, %v172_v15 }
  0x27   : > { %465 = vmatmul.msk.f32.gmra.mxu0 %vm192_vm1, %v337_v42 }
  0x92   : > { %v217_v43 = vpop.f32.mrf.mxu1 }
  0x94   : > { %v214_v44 = vpop.f32.mrf.mxu0 }
  0x99   : > { %v279_v45 = vpop.f32.mrf.mxu2 }
  0x9a   : > { %v241_v46 = vpop.f32.mrf.mxu1  ;;  %v319_v47 = vpop.f32.mrf.mxu3 }
  0x9b   : > { %v242_v48 = vadd.f32 %v241_v46, %v214_v44 }
  0x9c   : > { %v359_v49 = vpop.f32.mrf.mxu0 }
  0x9d   : > { %v285_v50 = vadd.f32 %v279_v45, %v242_v48 }
  0x9f   : > { %v325_v51 = vadd.f32 %v319_v47, %v285_v50 }
  0xa1   : > { %v365_v53 = vadd.f32 %v359_v49, %v325_v51  ;;  %v282_v55 = vpop.f32.mrf.mxu2 }
  0xa2   : > { %v244_v54 = vpop.f32.mrf.mxu1  ;;  %v322_v58 = vpop.f32.mrf.mxu3 }
  0xa3   : > { %v371_v56 = vadd.f32 %v482_v52, %v365_v53  ;;  %v245_v57 = vadd.f32 %v244_v54, %v217_v43 }
  0xa4   : > { %v362_v60 = vpop.f32.mrf.mxu0 }
  0xa5   : > { %483 = vtanh.f32 %v371_v56  ;;  %v286_v59 = vadd.f32 %v282_v55, %v245_v57 }
  0xa7   : > { %v326_v61 = vadd.f32 %v322_v58, %v286_v59 }
  0xa9   : > { %v366_v62 = vadd.f32 %v362_v60, %v326_v61 }
  0xab   : > { %v484_v63 = vpop.eup %483  ;;  %v372_v0 = vadd.f32 %v482_v52, %v366_v62 }
  0xac   : > { %375 = vst.msk [vmem:[%s170_s11] sm:$0xff] %vm192_vm1, %v484_v63 }
  0xad   : > { %485 = vtanh.f32 %v372_v0 }
  0xb3   : > { %v486_v1 = vpop.eup %485 }
  0xb4   : > { %376 = vst.msk [vmem:[%s170_s11 + $0x8] sm:$0xff] %vm192_vm1, %v486_v1 }
  0xb5 PF: > { %s13_s12 = sadd.s32 1, %s493_s12  }
  0xb6   : > { %p10_p4 = scmp.ge.s32.totalorder %s13_s12, 4  }
  0xb8   :  { %12 = sbr.rel (!%p10_p4) target bundleno = 1 (0x1), region = 66 }

// kernel: forward.35
= control target key start
LH: loop header
LB: loop body
LE: loop exit
PB: predicated region body
PF: predicated region fallthrough
CT: control target
= control target key end

     0   :  { %s496_s12 = smov 0   ;;  %s566_s0 = inlined_call_operand.vmem [shape: f32[2,20,16], index: 0, kind: input, shape index: {}]   ;;  %s567_s1 = inlined_call_operand.vmem [shape: f32[5,16,32], index: 1, kind: input, shape index: {}]   ;;  %s568_s2 = inlined_call_operand.vmem [shape: f32[1,32], index: 2, kind: input, shape index: {}]   ;;  %s569_s3 = inlined_call_operand.vmem [shape: f32[2,16,32], index: 3, kind: output, shape index: {}]  }
   0x1 LB: > { %s423_s13 = sadd.s32 4294967295, %s474_s12   ;;  %p427_p0 = scmp.ge.s32.totalorder %s474_s12, 1  ;;  %s474_s12 = sphi %s496_s12, %s13_s12  }
   0x2   : > { %p137_p1 = scmp.lt.s32.totalorder %s474_s12, 3 }
   0x4   : > { %p138_p2 = pnand %p427_p0, %p137_p1 }
   0x5   : > { %p161_p3 = scmp.lt.s32.totalorder (!%p138_p2), %s423_s13, 1 }
   0x6   : > { %141 = sbr.rel (%p138_p2) target bundleno = 179 (0xb3), region = 32 }
   0xb   : > { %v432_v0 = vld [vmem:[%s567_s1 + $0x18] sm:$0xff]  ;;  %v431_v1 = vld [vmem:[%s567_s1 + $0x10] sm:$0xff]  ;;  %v175_v2 = vld [vmem:[%s567_s1 + $0x8] sm:$0xff]  ;;  %s571_s13 = smov (!%p161_p3, %s423_s13), 1  ;;  %vm182_vm0 = vcmask 1046528   ;;  %vm188_vm1 = vcmask 130048  }
   0xc   : > { %452 = vmatpush.msra.mxu1 %v432_v0  ;;  %v438_v3 = vld [vmem:[%s567_s1 + $0x28] sm:$0xff]  ;;  %207 = vmatpush.msra.mxu0 %v432_v0  ;;  %v437_v4 = vld [vmem:[%s567_s1 + $0x20] sm:$0xff]  ;;  %v442_v5 = vld [vmem:[%s567_s1 + $0x38] sm:$0xff]  ;;  %s454_s5 = smul.u32 24, %s571_s13  ;;  %vm246_vm2 = vcmask 1045504   ;;  %vm284_vm3 = vcmask 1044480  }
   0xd   : > { %270 = vmatpush.msra.mxu2 %v438_v3  ;;  %308 = vmatpush.msra.mxu3 %v442_v5  ;;  %v441_v6 = vld [vmem:[%s567_s1 + $0x30] sm:$0xff]  ;;  %v446_v7 = vld [vmem:[%s567_s1 + $0x48] sm:$0xff]  ;;  %v174_v8 = vld [vmem:[%s567_s1] sm:$0xff]  ;;  %vm322_vm4 = vcmask 1043456   ;;  %s451_s15 = sshll.u32 %s571_s13, 4  ;;  %vm365_vm5 = vcmask 261120  }
   0xe   : > { %453 = vmatpush.msra.mxu1 %v431_v1  ;;  %208 = vmatpush.msra.mxu0 %v431_v1  ;;  %v445_v9 = vld [vmem:[%s567_s1 + $0x40] sm:$0xff]  ;;  %s165_s10 = scalar_lea.vmem %s566_s0, %s454_s5  ;;  %s170_s18 = scalar_lea.vmem %s569_s3, %s451_s15 }
   0xf   : > { %271 = vmatpush.msra.mxu2 %v437_v4  ;;  %309 = vmatpush.msra.mxu3 %v441_v6  ;;  %v172_v10 = vld [vmem:[%s165_s10 + $0x8] sm:$0xff]  ;;  %v173_v11 = vld [vmem:[%s165_s10 + $0x10] sm:$0xf]  ;;  %v171_v12 = vld [vmem:[%s165_s10] sm:$0xff] }
  0x10   : > { %234 = vmatpush.msrb.mxu1 %v175_v2  ;;  %346 = vmatpush.msrb.mxu0 %v446_v7  ;;  %v184_v13 = vrot.slane %v172_v10, 1  ;;  %v186_v14 = vrot.slane %v173_v11, 1  ;;  %v247_v15 = vrot.slane %v171_v12, 2  ;;  %v248_v16 = vrot.slane %v172_v10, 2  ;;  %v463_v42 = vld [vmem:[%s568_s2] ss:$0 sm:$0xff] }
  0x11   : > { %v183_v17 = vrot.slane %v171_v12, 1  ;;  %v285_v18 = vrot.slane %v171_v12, 3  ;;  %v286_v19 = vrot.slane %v172_v10, 3  ;;  %v250_v24 = vrot.slane %v173_v11, 2 }
  0x12   : > { %235 = vmatpush.msrb.mxu1 %v174_v8  ;;  %347 = vmatpush.msrb.mxu0 %v445_v9  ;;  %v187_v20 = vsel %vm182_vm0, %v184_v13, %v186_v14  ;;  %v249_v21 = vsel %vm246_vm2, %v247_v15, %v248_v16  ;;  %v288_v25 = vrot.slane %v173_v11, 3  ;;  %v323_v26 = vrot.slane %v171_v12, 4 }
  0x13   : > { %434 = vmatmul.msk.f32.vlgmr.msra.gmra.mxu1 %vm188_vm1, %v187_v20  ;;  %439 = vmatmul.msk.f32.vlgmr.msra.gmra.mxu2 %vm188_vm1, %v249_v21  ;;  %v185_v22 = vsel %vm182_vm0, %v183_v17, %v184_v13  ;;  %v287_v23 = vsel %vm284_vm3, %v285_v18, %v286_v19  ;;  %v324_v27 = vrot.slane %v172_v10, 4  ;;  %v251_v28 = vsel %vm246_vm2, %v248_v16, %v250_v24 }
  0x14   : > { %433 = vmatmul.msk.f32.vlgmr.msra.gmra.mxu0 %vm188_vm1, %v185_v22  ;;  %443 = vmatmul.msk.f32.vlgmr.msra.gmra.mxu3 %vm188_vm1, %v287_v23  ;;  %v289_v29 = vsel %vm284_vm3, %v286_v19, %v288_v25  ;;  %v326_v31 = vrot.slane %v173_v11, 4 }
  0x15   : > { %v325_v30 = vsel %vm322_vm4, %v323_v26, %v324_v27 }
  0x16   : > { %v327_v32 = vsel %vm322_vm4, %v324_v27, %v326_v31 }
  0x1b   : > { %435 = vmatmul.msk.f32.vlgmr.msrb.gmra.mxu1 %vm188_vm1, %v171_v12  ;;  %440 = vmatmul.msk.f32.gmra.mxu2 %vm188_vm1, %v251_v28 }
  0x1c   : > { %444 = vmatmul.msk.f32.gmra.mxu3 %vm188_vm1, %v289_v29  ;;  %447 = vmatmul.msk.f32.vlgmr.msrb.gmra.mxu0 %vm188_vm1, %v325_v30 }
  0x23   : > { %436 = vmatmul.msk.f32.gmra.mxu1 %vm188_vm1, %v172_v10 }
  0x24   : > { %448 = vmatmul.msk.f32.gmra.mxu0 %vm188_vm1, %v327_v32 }
  0x90   : > { %v213_v33 = vpop.f32.mrf.mxu1 }
  0x91   : > { %v210_v34 = vpop.f32.mrf.mxu0 }
  0x96   : > { %v273_v35 = vpop.f32.mrf.mxu2 }
  0x97   : > { %v311_v37 = vpop.f32.mrf.mxu3 }
  0x98   : > { %v237_v36 = vpop.f32.mrf.mxu1 }
  0x99   : > { %v238_v38 = vadd.f32 %v237_v36, %v210_v34  ;;  %v349_v39 = vpop.f32.mrf.mxu0 }
  0x9b   : > { %v279_v40 = vadd.f32 %v273_v35, %v238_v38 }
  0x9d   : > { %v317_v41 = vadd.f32 %v311_v37, %v279_v40 }
  0x9e   : > { %v276_v45 = vpop.f32.mrf.mxu2 }
  0x9f   : > { %v355_v43 = vadd.f32 %v349_v39, %v317_v41  ;;  %v314_v48 = vpop.f32.mrf.mxu3 }
  0xa0   : > { %v240_v44 = vpop.f32.mrf.mxu1 }
  0xa1   : > { %v361_v46 = vadd.f32 %v463_v42, %v355_v43  ;;  %v241_v47 = vadd.f32 %v240_v44, %v213_v33  ;;  %v352_v50 = vpop.f32.mrf.mxu0 }
  0xa3   : > { %464 = vtanh.f32 %v361_v46  ;;  %v280_v49 = vadd.f32 %v276_v45, %v241_v47 }
  0xa5   : > { %v318_v51 = vadd.f32 %v314_v48, %v280_v49 }
  0xa7   : > { %v356_v52 = vadd.f32 %v352_v50, %v318_v51 }
  0xa9   : > { %v465_v53 = vpop.eup %464  ;;  %v362_v54 = vadd.f32 %v463_v42, %v356_v52 }
  0xaa   : > { %366 = vst.msk [vmem:[%s170_s18] sm:$0xff] %vm365_vm5, %v465_v53 }
  0xab   : > { %466 = vtanh.f32 %v362_v54 }
  0xb1   : > { %v467_v55 = vpop.eup %466 }
  0xb2   : > { %367 = vst.msk [vmem:[%s170_s18 + $0x8] sm:$0xff] %vm365_vm5, %v467_v55 }
  0xb3 PF: > { %s13_s12 = sadd.s32 1, %s474_s12  }
  0xb4   : > { %p10_p4 = scmp.ge.s32.totalorder %s13_s12, 4  }
  0xb6   :  { %12 = sbr.rel (!%p10_p4) target bundleno = 1 (0x1), region = 66 }

// kernel: forward.39
= control target key start
LH: loop header
LB: loop body
LE: loop exit
PB: predicated region body
PF: predicated region fallthrough
CT: control target
= control target key end

     0   :  { %s510_s12 = smov 0   ;;  %s610_s0 = inlined_call_operand.vmem [shape: f32[2,20,32], index: 0, kind: input, shape index: {}]   ;;  %s611_s1 = inlined_call_operand.vmem [shape: f32[5,32,16], index: 1, kind: input, shape index: {}]   ;;  %s612_s2 = inlined_call_operand.vmem [shape: f32[1,16], index: 2, kind: input, shape index: {}]   ;;  %s613_s3 = inlined_call_operand.vmem [shape: f32[2,16,16], index: 3, kind: output, shape index: {}]  }
   0x1 LB: > { %s431_s13 = sadd.s32 4294967295, %s488_s12   ;;  %p435_p0 = scmp.ge.s32.totalorder %s488_s12, 1  ;;  %s488_s12 = sphi %s510_s12, %s13_s12  }
   0x2   : > { %p137_p1 = scmp.lt.s32.totalorder %s488_s12, 3 }
   0x4   : > { %p138_p2 = pnand %p435_p0, %p137_p1 }
   0x5   : > { %p161_p3 = scmp.lt.s32.totalorder (!%p138_p2), %s431_s13, 1 }
   0x6   : > { %141 = sbr.rel (%p138_p2) target bundleno = 174 (0xae), region = 32 }
   0xb   : > { %v442_v0 = vld [vmem:[%s611_s1 + $0x38] sm:$0xff]  ;;  %v441_v1 = vld [vmem:[%s611_s1 + $0x30] sm:$0xff]  ;;  %v440_v4 = vld [vmem:[%s611_s1 + $0x28] sm:$0xff]  ;;  %s615_s13 = smov (!%p161_p3, %s431_s13), 1  ;;  %vm186_vm0 = vcmask 1046528   ;;  %vm192_vm1 = vcmask 261120  }
   0xc   : > { %468 = vmatpush.msra.mxu1 %v442_v0  ;;  %v450_v2 = vld [vmem:[%s611_s1 + $0x58] sm:$0xff]  ;;  %209 = vmatpush.msra.mxu0 %v442_v0  ;;  %v449_v3 = vld [vmem:[%s611_s1 + $0x50] sm:$0xff]  ;;  %v448_v6 = vld [vmem:[%s611_s1 + $0x48] sm:$0xff]  ;;  %s472_s5 = smul.u32 24, %s615_s13  ;;  %vm252_vm2 = vcmask 1045504   ;;  %vm292_vm3 = vcmask 1044480  }
   0xd   : > { %274 = vmatpush.msra.mxu2 %v450_v2  ;;  %v456_v5 = vld [vmem:[%s611_s1 + $0x78] sm:$0xff]  ;;  %v455_v7 = vld [vmem:[%s611_s1 + $0x70] sm:$0xff]  ;;  %v439_v8 = vld [vmem:[%s611_s1 + $0x20] sm:$0xff]  ;;  %vm332_vm4 = vcmask 1043456   ;;  %s467_s6 = sshll.u32 %s615_s13, 4  ;;  %vm373_vm5 = vcmask 130048  }
   0xe   : > { %469 = vmatpush.msra.mxu1 %v441_v1  ;;  %314 = vmatpush.msra.mxu3 %v456_v5  ;;  %v454_v9 = vld [vmem:[%s611_s1 + $0x68] sm:$0xff]  ;;  %v177_v10 = vld [vmem:[%s611_s1 + $0x18] sm:$0xff]  ;;  %v176_v11 = vld [vmem:[%s611_s1 + $0x10] sm:$0xff]  ;;  %s165_s18 = scalar_lea.vmem %s610_s0, %s472_s5  ;;  %s170_s11 = scalar_lea.vmem %s613_s3, %s467_s6 }
   0xf   : > { %275 = vmatpush.msra.mxu2 %v449_v3  ;;  %210 = vmatpush.msra.mxu0 %v441_v1  ;;  %v447_v12 = vld [vmem:[%s611_s1 + $0x40] sm:$0xff]  ;;  %v462_v14 = vld [vmem:[%s611_s1 + $0x98] sm:$0xff]  ;;  %v172_v15 = vld [vmem:[%s165_s18 + $0x8] sm:$0xff] }
  0x10   : > { %470 = vmatpush.msra.mxu1 %v440_v4  ;;  %315 = vmatpush.msra.mxu3 %v455_v7  ;;  %v453_v13 = vld [vmem:[%s611_s1 + $0x60] sm:$0xff]  ;;  %v173_v16 = vld [vmem:[%s165_s18 + $0x10] sm:$0xf]  ;;  %v188_v18 = vrot.slane %v172_v15, 1  ;;  %v254_v21 = vrot.slane %v172_v15, 2  ;;  %v175_v22 = vld [vmem:[%s611_s1 + $0x8] sm:$0xff] }
  0x11   : > { %276 = vmatpush.msra.mxu2 %v448_v6  ;;  %211 = vmatpush.msra.mxu0 %v440_v4  ;;  %v171_v17 = vld [vmem:[%s165_s18] sm:$0xff]  ;;  %v190_v19 = vrot.slane %v173_v16, 1  ;;  %v294_v25 = vrot.slane %v172_v15, 3  ;;  %v461_v28 = vld [vmem:[%s611_s1 + $0x90] sm:$0xff]  ;;  %v460_v32 = vld [vmem:[%s611_s1 + $0x88] sm:$0xff]  ;;  %v256_v33 = vrot.slane %v173_v16, 2 }
  0x12   : > { %471 = vmatpush.msra.mxu1 %v439_v8  ;;  %316 = vmatpush.msra.mxu3 %v454_v9  ;;  %v253_v20 = vrot.slane %v171_v17, 2  ;;  %v187_v23 = vrot.slane %v171_v17, 1  ;;  %v293_v24 = vrot.slane %v171_v17, 3  ;;  %v174_v30 = vld [vmem:[%s611_s1] sm:$0xff]  ;;  %v333_v34 = vrot.slane %v171_v17, 4 }
  0x13   : > { %277 = vmatpush.msra.mxu2 %v447_v12  ;;  %212 = vmatpush.msra.mxu0 %v439_v8  ;;  %v191_v26 = vsel %vm186_vm0, %v188_v18, %v190_v19  ;;  %v334_v35 = vrot.slane %v172_v15, 4  ;;  %v459_v36 = vld [vmem:[%s611_s1 + $0x80] sm:$0xff]  ;;  %v296_v37 = vrot.slane %v173_v16, 3  ;;  %v257_v38 = vsel %vm252_vm2, %v254_v21, %v256_v33 }
  0x14   : > { %236 = vmatpush.msrb.mxu1 %v177_v10  ;;  %317 = vmatpush.msra.mxu3 %v453_v13  ;;  %v255_v27 = vsel %vm252_vm2, %v253_v20, %v254_v21  ;;  %v189_v29 = vsel %vm186_vm0, %v187_v23, %v188_v18  ;;  %v295_v31 = vsel %vm292_vm3, %v293_v24, %v294_v25  ;;  %v336_v41 = vrot.slane %v173_v16, 4  ;;  %v481_v52 = vld [vmem:[%s612_s2] ss:$0 sm:$0xff] }
  0x15   : > { %354 = vmatpush.msrb.mxu0 %v462_v14  ;;  %444 = vmatmul.msk.f32.vlgmr.msra.gmra.mxu1 %vm192_vm1, %v191_v26  ;;  %v335_v39 = vsel %vm332_vm4, %v333_v34, %v334_v35  ;;  %v297_v40 = vsel %vm292_vm3, %v294_v25, %v296_v37 }
  0x16   : > { %237 = vmatpush.msrb.mxu1 %v176_v11  ;;  %451 = vmatmul.msk.f32.vlgmr.msra.gmra.mxu2 %vm192_vm1, %v255_v27  ;;  %v337_v42 = vsel %vm332_vm4, %v334_v35, %v336_v41 }
  0x17   : > { %443 = vmatmul.msk.f32.vlgmr.msra.gmra.mxu0 %vm192_vm1, %v189_v29  ;;  %457 = vmatmul.msk.f32.vlgmr.msra.gmra.mxu3 %vm192_vm1, %v295_v31 }
  0x18   : > { %238 = vmatpush.msrb.mxu1 %v175_v22  ;;  %355 = vmatpush.msrb.mxu0 %v461_v28 }
  0x1a   : > { %239 = vmatpush.msrb.mxu1 %v174_v30  ;;  %356 = vmatpush.msrb.mxu0 %v460_v32 }
  0x1c   : > { %357 = vmatpush.msrb.mxu0 %v459_v36 }
  0x1d   : > { %445 = vmatmul.msk.f32.vlgmr.msrb.gmra.mxu1 %vm192_vm1, %v171_v17 }
  0x1e   : > { %452 = vmatmul.msk.f32.gmra.mxu2 %vm192_vm1, %v257_v38 }
  0x1f   : > { %463 = vmatmul.msk.f32.vlgmr.msrb.gmra.mxu0 %vm192_vm1, %v335_v39  ;;  %458 = vmatmul.msk.f32.gmra.mxu3 %vm192_vm1, %v297_v40 }
  0x25   : > { %446 = vmatmul.msk.f32.gmra.mxu1 %vm192_vm1, %v172_v15 }
  0x27   : > { %464 = vmatmul.msk.f32.gmra.mxu0 %vm192_vm1, %v337_v42 }
  0x92   : > { %v217_v43 = vpop.f32.mrf.mxu1 }
  0x94   : > { %v214_v44 = vpop.f32.mrf.mxu0 }
  0x99   : > { %v279_v45 = vpop.f32.mrf.mxu2 }
  0x9a   : > { %v241_v46 = vpop.f32.mrf.mxu1  ;;  %v319_v47 = vpop.f32.mrf.mxu3 }
  0x9b   : > { %v242_v48 = vadd.f32 %v241_v46, %v214_v44 }
  0x9c   : > { %v359_v49 = vpop.f32.mrf.mxu0 }
  0x9d   : > { %v285_v50 = vadd.f32 %v279_v45, %v242_v48 }
  0x9f   : > { %v325_v51 = vadd.f32 %v319_v47, %v285_v50 }
  0xa1   : > { %v365_v53 = vadd.f32 %v359_v49, %v325_v51  ;;  %v282_v55 = vpop.f32.mrf.mxu2 }
  0xa2   : > { %v244_v54 = vpop.f32.mrf.mxu1  ;;  %v322_v58 = vpop.f32.mrf.mxu3 }
  0xa3   : > { %v371_v56 = vadd.f32 %v481_v52, %v365_v53  ;;  %v245_v57 = vadd.f32 %v244_v54, %v217_v43 }
  0xa4   : > { %v362_v60 = vpop.f32.mrf.mxu0 }
  0xa5   : > { %374 = vst.msk [vmem:[%s170_s11] sm:$0xff] %vm373_vm5, %v371_v56  ;;  %v286_v59 = vadd.f32 %v282_v55, %v245_v57 }
  0xa7   : > { %v326_v61 = vadd.f32 %v322_v58, %v286_v59 }
  0xa9   : > { %v366_v62 = vadd.f32 %v362_v60, %v326_v61 }
  0xab   : > { %v372_v63 = vadd.f32 %v481_v52, %v366_v62 }
  0xad   : > { %375 = vst.msk [vmem:[%s170_s11 + $0x8] sm:$0xff] %vm373_vm5, %v372_v63 }
  0xae PF: > { %s13_s12 = sadd.s32 1, %s488_s12  }
  0xaf   : > { %p10_p4 = scmp.ge.s32.totalorder %s13_s12, 4  }
  0xb1   :  { %12 = sbr.rel (!%p10_p4) target bundleno = 1 (0x1), region = 66 }

</bundles_post_ra>
